<compile_context>
chip_gen: v7x
topology: tpu7x:2x2x1
jax: 0.10.0
libtpu: 0.0.40
codegen_flags: <defaults>
</compile_context>

<pallas_src>
import jax
import jax.numpy as jnp
from jax import lax
from jax.experimental import pallas as pl
from jax.experimental.pallas import tpu as pltpu


# -----------------------------------------------------------------------------
# Fused kernel: one grid step = one batch element.
# -----------------------------------------------------------------------------
def transit_mask_fused_kernel(x_ref, w1_ref, b1_ref, w2_ref, b2_ref,
                              wm1_ref, bm1_ref, wm2_ref, bm2_ref,
                              o1_ref, o2_ref, m_ref, im_ref):
    H = x_ref.shape[1]
    W = x_ref.shape[2]
    x = x_ref[0]                                   # (H, W, C) f32

    def reflect_pad(t):
        # 1-pixel reflection halo built in VMEM (matches ReflectionPad2d(1)).
        t = jnp.concatenate([t[1:2], t, t[H - 2:H - 1]], axis=0)        # rows
        t = jnp.concatenate([t[:, 1:2], t, t[:, W - 2:W - 1]], axis=1)  # cols
        return t

    def conv3x3_relu(t, w_flat_bf16, b_row):
        # im2col: (H, W, 9C) patch tensor -> one K=9C matmul on the MXU.
        tp = reflect_pad(t)                                     # (H+2, W+2, C)
        patches = jnp.concatenate(
            [tp[dy:dy + H, dx:dx + W, :] for dy in range(3) for dx in range(3)],
            axis=-1)                                            # (H, W, 9C)
        patches = patches.reshape(H * W, patches.shape[-1])     # (HW, 9C)
        acc = jnp.dot(patches.astype(jnp.bfloat16), w_flat_bf16,
                      preferred_element_type=jnp.float32)       # (HW, O) f32
        return jnp.maximum(acc + b_row, 0.0)                    # bias + ReLU (f32)

    # conv branch
    h1 = conv3x3_relu(x, w1_ref[...], b1_ref[...])
    h1 = h1.reshape(H, W, h1.shape[-1])                         # (H, W, O)
    out = conv3x3_relu(h1, w2_ref[...], b2_ref[...])            # (HW, O) f32

    # mask branch: 1x1 conv -> tanh -> (1x1 conv to 1 channel as VPU mul+reduce) -> sigmoid
    hidden = jnp.tanh(
        jnp.dot(out.astype(jnp.bfloat16), wm1_ref[...],
                preferred_element_type=jnp.float32) + bm1_ref[...])     # (HW, D)
    logits = jnp.sum(hidden * wm2_ref[...], axis=-1, keepdims=True) + bm2_ref[...]
    m = jax.nn.sigmoid(logits)                                  # (HW, 1) f32
    inv = 1.0 - m

    # gating + lane-dense stores
    O = out.shape[-1]
    out3 = out.reshape(H, W, O)
    m3 = m.reshape(H, W, 1)
    o1_ref[0] = (out3 * m3).reshape(H, W * O).astype(o1_ref.dtype)
    o2_ref[0] = (out3 * (1.0 - m3)).reshape(H, W * O).astype(o2_ref.dtype)
    m_ref[0] = m.reshape(1, H * W).astype(m_ref.dtype)
    im_ref[0] = inv.reshape(1, H * W).astype(im_ref.dtype)


def transit_mask_pallas(x_nhwc, params):
    N, H, W, C = x_nhwc.shape
    O = params["w_c1"].shape[-1]
    D = params["w_m1"].shape[-1]

    # Flatten conv weights to im2col layout and pre-cast MXU operands to bf16.
    w1 = params["w_c1"].reshape(9 * C, O).astype(jnp.bfloat16)
    w2 = params["w_c2"].reshape(9 * O, O).astype(jnp.bfloat16)
    wm1 = params["w_m1"].astype(jnp.bfloat16)                    # (O, D)
    wm2 = params["w_m2"].reshape(1, D)                           # f32 row (VPU path)
    b1 = params["b_c1"].reshape(1, O)
    b2 = params["b_c2"].reshape(1, O)
    bm1 = params["b_m1"].reshape(1, D)
    bm2 = params["b_m2"].reshape(1, 1)

    out_shapes = (
        jax.ShapeDtypeStruct((N, H, W * O), x_nhwc.dtype),   # out1 (lane-dense)
        jax.ShapeDtypeStruct((N, H, W * O), x_nhwc.dtype),   # out2 (lane-dense)
        jax.ShapeDtypeStruct((N, 1, H * W), x_nhwc.dtype),   # mask (lane-dense)
        jax.ShapeDtypeStruct((N, 1, H * W), x_nhwc.dtype),   # 1 - mask
    )
    return pl.pallas_call(
        transit_mask_fused_kernel,
        out_shape=out_shapes,
        grid=(N,),
        in_specs=[
            pl.BlockSpec((1, H, W, C), lambda n: (n, 0, 0, 0)),
            pl.BlockSpec((9 * C, O), lambda n: (0, 0)),
            pl.BlockSpec((1, O), lambda n: (0, 0)),
            pl.BlockSpec((9 * O, O), lambda n: (0, 0)),
            pl.BlockSpec((1, O), lambda n: (0, 0)),
            pl.BlockSpec((O, D), lambda n: (0, 0)),
            pl.BlockSpec((1, D), lambda n: (0, 0)),
            pl.BlockSpec((1, D), lambda n: (0, 0)),
            pl.BlockSpec((1, 1), lambda n: (0, 0)),
        ],
        out_specs=(
            pl.BlockSpec((1, H, W * O), lambda n: (n, 0, 0)),
            pl.BlockSpec((1, H, W * O), lambda n: (n, 0, 0)),
            pl.BlockSpec((1, 1, H * W), lambda n: (n, 0, 0)),
            pl.BlockSpec((1, 1, H * W), lambda n: (n, 0, 0)),
        ),
        compiler_params=pltpu.CompilerParams(dimension_semantics=("parallel",)),
    )(x_nhwc, w1, b1, w2, b2, wm1, bm1, wm2, bm2)


@jax.jit
def transit_mask_forward(x_nchw, params):
    x = jnp.transpose(x_nchw, (0, 2, 3, 1))                      # NCHW -> NHWC
    N, H, W, C = x.shape
    O = params["w_c1"].shape[-1]
    o1, o2, m, im = transit_mask_pallas(x, params)
    o1 = jnp.transpose(o1.reshape(N, H, W, O), (0, 3, 1, 2))
    o2 = jnp.transpose(o2.reshape(N, H, W, O), (0, 3, 1, 2))
    m = m.reshape(N, 1, H, W)
    im = im.reshape(N, 1, H, W)
    return o1, o2, m, im


# -----------------------------------------------------------------------------
# Pure-JAX f32 reference (same math, no Pallas) for a sanity check.
# -----------------------------------------------------------------------------
def _ref_conv3x3_relu(x, w, b):
    xp = jnp.pad(x, ((0, 0), (1, 1), (1, 1), (0, 0)), mode="reflect")
    H, W = x.shape[1], x.shape[2]
    acc = jnp.zeros(x.shape[:3] + (w.shape[-1],), jnp.float32)
    for dy in range(3):
        for dx in range(3):
            acc = acc + jnp.einsum("nhwc,co->nhwo",
                                   xp[:, dy:dy + H, dx:dx + W, :], w[dy, dx],
                                   precision=lax.Precision.HIGHEST)
    return jnp.maximum(acc + b, 0.0)


def _ref_forward(x_nchw, p):
    x = jnp.transpose(x_nchw, (0, 2, 3, 1))
    out = _ref_conv3x3_relu(x, p["w_c1"], p["b_c1"])
    out = _ref_conv3x3_relu(out, p["w_c2"], p["b_c2"])
    h = jnp.tanh(jnp.einsum("nhwc,cd->nhwd", out, p["w_m1"],
                            precision=lax.Precision.HIGHEST) + p["b_m1"])
    m = jax.nn.sigmoid(jnp.einsum("nhwd,de->nhwe", h, p["w_m2"],
                                  precision=lax.Precision.HIGHEST) + p["b_m2"])
    to_nchw = lambda t: jnp.transpose(t, (0, 3, 1, 2))
    return (to_nchw(out * m), to_nchw(out * (1.0 - m)),
            to_nchw(m), to_nchw(1.0 - m))


def init_params(key, in_c, out_c, mask_hidden=64):
    ks = jax.random.split(key, 8)
    def w(k, shape, fan_in):
        return jax.random.normal(k, shape, jnp.float32) / jnp.sqrt(fan_in)
    return {
        "w_c1": w(ks[0], (3, 3, in_c, out_c), 9 * in_c),
        "b_c1": 0.01 * jax.random.normal(ks[1], (out_c,), jnp.float32),
        "w_c2": w(ks[2], (3, 3, out_c, out_c), 9 * out_c),
        "b_c2": 0.01 * jax.random.normal(ks[3], (out_c,), jnp.float32),
        "w_m1": w(ks[4], (out_c, mask_hidden), out_c),
        "b_m1": 0.01 * jax.random.normal(ks[5], (mask_hidden,), jnp.float32),
        "w_m2": w(ks[6], (mask_hidden, 1), mask_hidden),
        "b_m2": 0.01 * jax.random.normal(ks[7], (1,), jnp.float32),
    }


if __name__ == "__main__":
    key = jax.random.PRNGKey(0)
    k_x, k_p = jax.random.split(key)

    N, C, H, W = 2, 64, 16, 16          # module default in_c = out_c = 64
    x = jax.random.normal(k_x, (N, C, H, W), jnp.float32)
    params = init_params(k_p, in_c=C, out_c=C, mask_hidden=64)

    outs = jax.block_until_ready(transit_mask_forward(x, params))
    refs = _ref_forward(x, params)
    for o, r in zip(outs, refs):
        assert o.shape == r.shape, (o.shape, r.shape)
        err = float(jnp.max(jnp.abs(o - r)))
        # bf16 MXU inputs with f32 accumulation vs f32 HIGHEST reference.
        assert err < 5e-2, f"mismatch vs reference: {err}"

    print("KERNEL_OK")
</pallas_src>

<mosaic_0001>
module attributes {stable_mosaic.version = 11 : i64} {
  func.func @transit_mask_fused_kernel(%arg0: i32, %arg1: memref<1x16x16x64xf32, #tpu.memory_space<vmem>>, %arg2: memref<576x64xbf16, #tpu.memory_space<vmem>>, %arg3: memref<1x64xf32, #tpu.memory_space<vmem>>, %arg4: memref<576x64xbf16, #tpu.memory_space<vmem>>, %arg5: memref<1x64xf32, #tpu.memory_space<vmem>>, %arg6: memref<64x64xbf16, #tpu.memory_space<vmem>>, %arg7: memref<1x64xf32, #tpu.memory_space<vmem>>, %arg8: memref<1x64xf32, #tpu.memory_space<vmem>>, %arg9: memref<1x1xf32, #tpu.memory_space<vmem>>, %arg10: memref<1x16x1024xf32, #tpu.memory_space<vmem>>, %arg11: memref<1x16x1024xf32, #tpu.memory_space<vmem>>, %arg12: memref<1x1x256xf32, #tpu.memory_space<vmem>>, %arg13: memref<1x1x256xf32, #tpu.memory_space<vmem>>) attributes {dimension_semantics = [#tpu.dimension_semantics<parallel>], iteration_bounds = array<i64: 2>, scalar_prefetch = 0 : i64, scratch_operands = 0 : i64, tpu.core_type = #tpu.core_type<tc>, window_params = [{transform_indices = @transform_0, window_bounds = array<i64: 1, 16, 16, 64>}, {pipeline_mode = #tpu.pipeline_mode<synchronous>, transform_indices = @transform_1, window_bounds = array<i64: 576, 64>}, {pipeline_mode = #tpu.pipeline_mode<synchronous>, transform_indices = @transform_2, window_bounds = array<i64: 1, 64>}, {pipeline_mode = #tpu.pipeline_mode<synchronous>, transform_indices = @transform_3, window_bounds = array<i64: 576, 64>}, {pipeline_mode = #tpu.pipeline_mode<synchronous>, transform_indices = @transform_4, window_bounds = array<i64: 1, 64>}, {pipeline_mode = #tpu.pipeline_mode<synchronous>, transform_indices = @transform_5, window_bounds = array<i64: 64, 64>}, {pipeline_mode = #tpu.pipeline_mode<synchronous>, transform_indices = @transform_6, window_bounds = array<i64: 1, 64>}, {pipeline_mode = #tpu.pipeline_mode<synchronous>, transform_indices = @transform_7, window_bounds = array<i64: 1, 64>}, {pipeline_mode = #tpu.pipeline_mode<synchronous>, transform_indices = @transform_8, window_bounds = array<i64: 1, 1>}, {transform_indices = @transform_9, window_bounds = array<i64: 1, 16, 1024>}, {transform_indices = @transform_10, window_bounds = array<i64: 1, 16, 1024>}, {transform_indices = @transform_11, window_bounds = array<i64: 1, 1, 256>}, {transform_indices = @transform_12, window_bounds = array<i64: 1, 1, 256>}]} {
    %c0 = arith.constant 0 : index
    %c0_0 = arith.constant 0 : index
    %c0_1 = arith.constant 0 : index
    %c0_2 = arith.constant 0 : index
    %0 = vector.load %arg1[%c0, %c0_0, %c0_1, %c0_2] : memref<1x16x16x64xf32, #tpu.memory_space<vmem>>, vector<1x16x16x64xf32>
    %1 = vector.shape_cast %0 : vector<1x16x16x64xf32> to vector<16x16x64xf32>
    %c0_3 = arith.constant 0 : index
    %c0_4 = arith.constant 0 : index
    %2 = vector.load %arg2[%c0_3, %c0_4] : memref<576x64xbf16, #tpu.memory_space<vmem>>, vector<576x64xbf16>
    %c0_5 = arith.constant 0 : index
    %c0_6 = arith.constant 0 : index
    %3 = vector.load %arg3[%c0_5, %c0_6] : memref<1x64xf32, #tpu.memory_space<vmem>>, vector<1x64xf32>
    %4 = vector.extract_strided_slice %1 {offsets = [1, 0, 0], sizes = [1, 16, 64], strides = [1, 1, 1]} : vector<16x16x64xf32> to vector<1x16x64xf32>
    %5 = vector.extract_strided_slice %1 {offsets = [14, 0, 0], sizes = [1, 16, 64], strides = [1, 1, 1]} : vector<16x16x64xf32> to vector<1x16x64xf32>
    %6 = tpu.concatenate %4, %1, %5 in 0 : vector<1x16x64xf32>, vector<16x16x64xf32>, vector<1x16x64xf32> -> vector<18x16x64xf32>
    %7 = vector.extract_strided_slice %6 {offsets = [0, 1, 0], sizes = [18, 1, 64], strides = [1, 1, 1]} : vector<18x16x64xf32> to vector<18x1x64xf32>
    %8 = vector.extract_strided_slice %6 {offsets = [0, 14, 0], sizes = [18, 1, 64], strides = [1, 1, 1]} : vector<18x16x64xf32> to vector<18x1x64xf32>
    %9 = tpu.concatenate %7, %6, %8 in 1 : vector<18x1x64xf32>, vector<18x16x64xf32>, vector<18x1x64xf32> -> vector<18x18x64xf32>
    %10 = vector.extract_strided_slice %9 {offsets = [0, 0, 0], sizes = [16, 16, 64], strides = [1, 1, 1]} : vector<18x18x64xf32> to vector<16x16x64xf32>
    %11 = vector.extract_strided_slice %9 {offsets = [0, 1, 0], sizes = [16, 16, 64], strides = [1, 1, 1]} : vector<18x18x64xf32> to vector<16x16x64xf32>
    %12 = vector.extract_strided_slice %9 {offsets = [0, 2, 0], sizes = [16, 16, 64], strides = [1, 1, 1]} : vector<18x18x64xf32> to vector<16x16x64xf32>
    %13 = vector.extract_strided_slice %9 {offsets = [1, 0, 0], sizes = [16, 16, 64], strides = [1, 1, 1]} : vector<18x18x64xf32> to vector<16x16x64xf32>
    %14 = vector.extract_strided_slice %9 {offsets = [1, 1, 0], sizes = [16, 16, 64], strides = [1, 1, 1]} : vector<18x18x64xf32> to vector<16x16x64xf32>
    %15 = vector.extract_strided_slice %9 {offsets = [1, 2, 0], sizes = [16, 16, 64], strides = [1, 1, 1]} : vector<18x18x64xf32> to vector<16x16x64xf32>
    %16 = vector.extract_strided_slice %9 {offsets = [2, 0, 0], sizes = [16, 16, 64], strides = [1, 1, 1]} : vector<18x18x64xf32> to vector<16x16x64xf32>
    %17 = vector.extract_strided_slice %9 {offsets = [2, 1, 0], sizes = [16, 16, 64], strides = [1, 1, 1]} : vector<18x18x64xf32> to vector<16x16x64xf32>
    %18 = vector.extract_strided_slice %9 {offsets = [2, 2, 0], sizes = [16, 16, 64], strides = [1, 1, 1]} : vector<18x18x64xf32> to vector<16x16x64xf32>
    %19 = tpu.concatenate %10, %11, %12, %13, %14, %15, %16, %17, %18 in 2 : vector<16x16x64xf32>, vector<16x16x64xf32>, vector<16x16x64xf32>, vector<16x16x64xf32>, vector<16x16x64xf32>, vector<16x16x64xf32>, vector<16x16x64xf32>, vector<16x16x64xf32>, vector<16x16x64xf32> -> vector<16x16x576xf32>
    %20 = vector.shape_cast %19 : vector<16x16x576xf32> to vector<256x576xf32>
    %21 = arith.truncf %20 : vector<256x576xf32> to vector<256x576xbf16>
    %cst = arith.constant dense<0.000000e+00> : vector<256x64xf32>
    %22 = tpu.matmul %21, %2, %cst {dimension_numbers = #tpu.dot_dimension_numbers<[1], [0], [0], [1], [0, 0, 1, 1], [], []>} : vector<256x576xbf16>, vector<576x64xbf16>, vector<256x64xf32> -> vector<256x64xf32>
    %23 = vector.broadcast %3 : vector<1x64xf32> to vector<256x64xf32>
    %24 = arith.addf %22, %23 : vector<256x64xf32>
    %cst_7 = arith.constant 0.000000e+00 : f32
    %25 = vector.broadcast %cst_7 : f32 to vector<256x64xf32>
    %26 = arith.maximumf %24, %25 : vector<256x64xf32>
    %27 = vector.shape_cast %26 : vector<256x64xf32> to vector<16x16x64xf32>
    %c0_8 = arith.constant 0 : index
    %c0_9 = arith.constant 0 : index
    %28 = vector.load %arg4[%c0_8, %c0_9] : memref<576x64xbf16, #tpu.memory_space<vmem>>, vector<576x64xbf16>
    %c0_10 = arith.constant 0 : index
    %c0_11 = arith.constant 0 : index
    %29 = vector.load %arg5[%c0_10, %c0_11] : memref<1x64xf32, #tpu.memory_space<vmem>>, vector<1x64xf32>
    %30 = vector.extract_strided_slice %27 {offsets = [1, 0, 0], sizes = [1, 16, 64], strides = [1, 1, 1]} : vector<16x16x64xf32> to vector<1x16x64xf32>
    %31 = vector.extract_strided_slice %27 {offsets = [14, 0, 0], sizes = [1, 16, 64], strides = [1, 1, 1]} : vector<16x16x64xf32> to vector<1x16x64xf32>
    %32 = tpu.concatenate %30, %27, %31 in 0 : vector<1x16x64xf32>, vector<16x16x64xf32>, vector<1x16x64xf32> -> vector<18x16x64xf32>
    %33 = vector.extract_strided_slice %32 {offsets = [0, 1, 0], sizes = [18, 1, 64], strides = [1, 1, 1]} : vector<18x16x64xf32> to vector<18x1x64xf32>
    %34 = vector.extract_strided_slice %32 {offsets = [0, 14, 0], sizes = [18, 1, 64], strides = [1, 1, 1]} : vector<18x16x64xf32> to vector<18x1x64xf32>
    %35 = tpu.concatenate %33, %32, %34 in 1 : vector<18x1x64xf32>, vector<18x16x64xf32>, vector<18x1x64xf32> -> vector<18x18x64xf32>
    %36 = vector.extract_strided_slice %35 {offsets = [0, 0, 0], sizes = [16, 16, 64], strides = [1, 1, 1]} : vector<18x18x64xf32> to vector<16x16x64xf32>
    %37 = vector.extract_strided_slice %35 {offsets = [0, 1, 0], sizes = [16, 16, 64], strides = [1, 1, 1]} : vector<18x18x64xf32> to vector<16x16x64xf32>
    %38 = vector.extract_strided_slice %35 {offsets = [0, 2, 0], sizes = [16, 16, 64], strides = [1, 1, 1]} : vector<18x18x64xf32> to vector<16x16x64xf32>
    %39 = vector.extract_strided_slice %35 {offsets = [1, 0, 0], sizes = [16, 16, 64], strides = [1, 1, 1]} : vector<18x18x64xf32> to vector<16x16x64xf32>
    %40 = vector.extract_strided_slice %35 {offsets = [1, 1, 0], sizes = [16, 16, 64], strides = [1, 1, 1]} : vector<18x18x64xf32> to vector<16x16x64xf32>
    %41 = vector.extract_strided_slice %35 {offsets = [1, 2, 0], sizes = [16, 16, 64], strides = [1, 1, 1]} : vector<18x18x64xf32> to vector<16x16x64xf32>
    %42 = vector.extract_strided_slice %35 {offsets = [2, 0, 0], sizes = [16, 16, 64], strides = [1, 1, 1]} : vector<18x18x64xf32> to vector<16x16x64xf32>
    %43 = vector.extract_strided_slice %35 {offsets = [2, 1, 0], sizes = [16, 16, 64], strides = [1, 1, 1]} : vector<18x18x64xf32> to vector<16x16x64xf32>
    %44 = vector.extract_strided_slice %35 {offsets = [2, 2, 0], sizes = [16, 16, 64], strides = [1, 1, 1]} : vector<18x18x64xf32> to vector<16x16x64xf32>
    %45 = tpu.concatenate %36, %37, %38, %39, %40, %41, %42, %43, %44 in 2 : vector<16x16x64xf32>, vector<16x16x64xf32>, vector<16x16x64xf32>, vector<16x16x64xf32>, vector<16x16x64xf32>, vector<16x16x64xf32>, vector<16x16x64xf32>, vector<16x16x64xf32>, vector<16x16x64xf32> -> vector<16x16x576xf32>
    %46 = vector.shape_cast %45 : vector<16x16x576xf32> to vector<256x576xf32>
    %47 = arith.truncf %46 : vector<256x576xf32> to vector<256x576xbf16>
    %cst_12 = arith.constant dense<0.000000e+00> : vector<256x64xf32>
    %48 = tpu.matmul %47, %28, %cst_12 {dimension_numbers = #tpu.dot_dimension_numbers<[1], [0], [0], [1], [0, 0, 1, 1], [], []>} : vector<256x576xbf16>, vector<576x64xbf16>, vector<256x64xf32> -> vector<256x64xf32>
    %49 = vector.broadcast %29 : vector<1x64xf32> to vector<256x64xf32>
    %50 = arith.addf %48, %49 : vector<256x64xf32>
    %cst_13 = arith.constant 0.000000e+00 : f32
    %51 = vector.broadcast %cst_13 : f32 to vector<256x64xf32>
    %52 = arith.maximumf %50, %51 : vector<256x64xf32>
    %53 = arith.truncf %52 : vector<256x64xf32> to vector<256x64xbf16>
    %c0_14 = arith.constant 0 : index
    %c0_15 = arith.constant 0 : index
    %54 = vector.load %arg6[%c0_14, %c0_15] : memref<64x64xbf16, #tpu.memory_space<vmem>>, vector<64x64xbf16>
    %cst_16 = arith.constant dense<0.000000e+00> : vector<256x64xf32>
    %55 = tpu.matmul %53, %54, %cst_16 {dimension_numbers = #tpu.dot_dimension_numbers<[1], [0], [0], [1], [0, 0, 1, 1], [], []>} : vector<256x64xbf16>, vector<64x64xbf16>, vector<256x64xf32> -> vector<256x64xf32>
    %c0_17 = arith.constant 0 : index
    %c0_18 = arith.constant 0 : index
    %56 = vector.load %arg7[%c0_17, %c0_18] : memref<1x64xf32, #tpu.memory_space<vmem>>, vector<1x64xf32>
    %57 = vector.broadcast %56 : vector<1x64xf32> to vector<256x64xf32>
    %58 = arith.addf %55, %57 : vector<256x64xf32>
    %59 = math.tanh %58 : vector<256x64xf32>
    %c0_19 = arith.constant 0 : index
    %c0_20 = arith.constant 0 : index
    %60 = vector.load %arg8[%c0_19, %c0_20] : memref<1x64xf32, #tpu.memory_space<vmem>>, vector<1x64xf32>
    %61 = vector.broadcast %60 : vector<1x64xf32> to vector<256x64xf32>
    %62 = arith.mulf %59, %61 : vector<256x64xf32>
    %cst_21 = arith.constant dense<0.000000e+00> : vector<256xf32>
    %63 = vector.multi_reduction <add>, %62, %cst_21 [1] : vector<256x64xf32> to vector<256xf32>
    %64 = vector.shape_cast %63 : vector<256xf32> to vector<256x1xf32>
    %c0_22 = arith.constant 0 : index
    %c0_23 = arith.constant 0 : index
    %65 = vector.load %arg9[%c0_22, %c0_23] : memref<1x1xf32, #tpu.memory_space<vmem>>, vector<1x1xf32>
    %66 = vector.broadcast %65 : vector<1x1xf32> to vector<256x1xf32>
    %67 = arith.addf %64, %66 : vector<256x1xf32>
    %68 = arith.negf %67 : vector<256x1xf32>
    %69 = math.exp %68 : vector<256x1xf32>
    %cst_24 = arith.constant 1.000000e+00 : f32
    %70 = vector.broadcast %cst_24 : f32 to vector<256x1xf32>
    %71 = arith.addf %70, %69 : vector<256x1xf32>
    %72 = arith.divf %70, %71 : vector<256x1xf32>
    %cst_25 = arith.constant 1.000000e+00 : f32
    %73 = vector.broadcast %cst_25 : f32 to vector<256x1xf32>
    %74 = arith.subf %73, %72 : vector<256x1xf32>
    %75 = vector.shape_cast %52 : vector<256x64xf32> to vector<16x16x64xf32>
    %76 = vector.shape_cast %72 : vector<256x1xf32> to vector<16x16x1xf32>
    %77 = vector.broadcast %76 : vector<16x16x1xf32> to vector<16x16x64xf32>
    %78 = arith.mulf %75, %77 : vector<16x16x64xf32>
    %79 = vector.shape_cast %78 : vector<16x16x64xf32> to vector<16x1024xf32>
    %c0_26 = arith.constant 0 : index
    %c0_27 = arith.constant 0 : index
    %c0_28 = arith.constant 0 : index
    %80 = vector.load %arg10[%c0_26, %c0_27, %c0_28] : memref<1x16x1024xf32, #tpu.memory_space<vmem>>, vector<1x16x1024xf32>
    %81 = vector.shape_cast %80 : vector<1x16x1024xf32> to vector<16x1024xf32>
    %82 = vector.shape_cast %79 : vector<16x1024xf32> to vector<1x16x1024xf32>
    tpu.vector_store %arg10[%c0_26, %c0_27, %c0_28], %82 {strides = array<i32>} : memref<1x16x1024xf32, #tpu.memory_space<vmem>>, vector<1x16x1024xf32>,
    %cst_29 = arith.constant 1.000000e+00 : f32
    %83 = vector.broadcast %cst_29 : f32 to vector<16x16x1xf32>
    %84 = arith.subf %83, %76 : vector<16x16x1xf32>
    %85 = vector.broadcast %84 : vector<16x16x1xf32> to vector<16x16x64xf32>
    %86 = arith.mulf %75, %85 : vector<16x16x64xf32>
    %87 = vector.shape_cast %86 : vector<16x16x64xf32> to vector<16x1024xf32>
    %c0_30 = arith.constant 0 : index
    %c0_31 = arith.constant 0 : index
    %c0_32 = arith.constant 0 : index
    %88 = vector.load %arg11[%c0_30, %c0_31, %c0_32] : memref<1x16x1024xf32, #tpu.memory_space<vmem>>, vector<1x16x1024xf32>
    %89 = vector.shape_cast %88 : vector<1x16x1024xf32> to vector<16x1024xf32>
    %90 = vector.shape_cast %87 : vector<16x1024xf32> to vector<1x16x1024xf32>
    tpu.vector_store %arg11[%c0_30, %c0_31, %c0_32], %90 {strides = array<i32>} : memref<1x16x1024xf32, #tpu.memory_space<vmem>>, vector<1x16x1024xf32>,
    %91 = vector.shape_cast %72 : vector<256x1xf32> to vector<1x256xf32>
    %c0_33 = arith.constant 0 : index
    %c0_34 = arith.constant 0 : index
    %c0_35 = arith.constant 0 : index
    %92 = vector.load %arg12[%c0_33, %c0_34, %c0_35] : memref<1x1x256xf32, #tpu.memory_space<vmem>>, vector<1x1x256xf32>
    %93 = vector.shape_cast %92 : vector<1x1x256xf32> to vector<1x256xf32>
    %94 = vector.shape_cast %91 : vector<1x256xf32> to vector<1x1x256xf32>
    tpu.vector_store %arg12[%c0_33, %c0_34, %c0_35], %94 {strides = array<i32>} : memref<1x1x256xf32, #tpu.memory_space<vmem>>, vector<1x1x256xf32>,
    %95 = vector.shape_cast %74 : vector<256x1xf32> to vector<1x256xf32>
    %c0_36 = arith.constant 0 : index
    %c0_37 = arith.constant 0 : index
    %c0_38 = arith.constant 0 : index
    %96 = vector.load %arg13[%c0_36, %c0_37, %c0_38] : memref<1x1x256xf32, #tpu.memory_space<vmem>>, vector<1x1x256xf32>
    %97 = vector.shape_cast %96 : vector<1x1x256xf32> to vector<1x256xf32>
    %98 = vector.shape_cast %95 : vector<1x256xf32> to vector<1x1x256xf32>
    tpu.vector_store %arg13[%c0_36, %c0_37, %c0_38], %98 {strides = array<i32>} : memref<1x1x256xf32, #tpu.memory_space<vmem>>, vector<1x1x256xf32>,
    return
  }
  func.func @transform_0(%arg0: i32) -> (i32, i32, i32, i32) {
    %c0_i32 = arith.constant 0 : i32
    %c0_i32_0 = arith.constant 0 : i32
    %c0_i32_1 = arith.constant 0 : i32
    %c0_i32_2 = arith.constant 0 : i32
    return %arg0, %c0_i32, %c0_i32_0, %c0_i32_1 : i32, i32, i32, i32
  }
  func.func @transform_1(%arg0: i32) -> (i32, i32) {
    %c0_i32 = arith.constant 0 : i32
    %c0_i32_0 = arith.constant 0 : i32
    %c0_i32_1 = arith.constant 0 : i32
    return %c0_i32, %c0_i32_0 : i32, i32
  }
  func.func @transform_2(%arg0: i32) -> (i32, i32) {
    %c0_i32 = arith.constant 0 : i32
    %c0_i32_0 = arith.constant 0 : i32
    %c0_i32_1 = arith.constant 0 : i32
    return %c0_i32, %c0_i32_0 : i32, i32
  }
  func.func @transform_3(%arg0: i32) -> (i32, i32) {
    %c0_i32 = arith.constant 0 : i32
    %c0_i32_0 = arith.constant 0 : i32
    %c0_i32_1 = arith.constant 0 : i32
    return %c0_i32, %c0_i32_0 : i32, i32
  }
  func.func @transform_4(%arg0: i32) -> (i32, i32) {
    %c0_i32 = arith.constant 0 : i32
    %c0_i32_0 = arith.constant 0 : i32
    %c0_i32_1 = arith.constant 0 : i32
    return %c0_i32, %c0_i32_0 : i32, i32
  }
  func.func @transform_5(%arg0: i32) -> (i32, i32) {
    %c0_i32 = arith.constant 0 : i32
    %c0_i32_0 = arith.constant 0 : i32
    %c0_i32_1 = arith.constant 0 : i32
    return %c0_i32, %c0_i32_0 : i32, i32
  }
  func.func @transform_6(%arg0: i32) -> (i32, i32) {
    %c0_i32 = arith.constant 0 : i32
    %c0_i32_0 = arith.constant 0 : i32
    %c0_i32_1 = arith.constant 0 : i32
    return %c0_i32, %c0_i32_0 : i32, i32
  }
  func.func @transform_7(%arg0: i32) -> (i32, i32) {
    %c0_i32 = arith.constant 0 : i32
    %c0_i32_0 = arith.constant 0 : i32
    %c0_i32_1 = arith.constant 0 : i32
    return %c0_i32, %c0_i32_0 : i32, i32
  }
  func.func @transform_8(%arg0: i32) -> (i32, i32) {
    %c0_i32 = arith.constant 0 : i32
    %c0_i32_0 = arith.constant 0 : i32
    %c0_i32_1 = arith.constant 0 : i32
    return %c0_i32, %c0_i32_0 : i32, i32
  }
  func.func @transform_9(%arg0: i32) -> (i32, i32, i32) {
    %c0_i32 = arith.constant 0 : i32
    %c0_i32_0 = arith.constant 0 : i32
    %c0_i32_1 = arith.constant 0 : i32
    return %arg0, %c0_i32, %c0_i32_0 : i32, i32, i32
  }
  func.func @transform_10(%arg0: i32) -> (i32, i32, i32) {
    %c0_i32 = arith.constant 0 : i32
    %c0_i32_0 = arith.constant 0 : i32
    %c0_i32_1 = arith.constant 0 : i32
    return %arg0, %c0_i32, %c0_i32_0 : i32, i32, i32
  }
  func.func @transform_11(%arg0: i32) -> (i32, i32, i32) {
    %c0_i32 = arith.constant 0 : i32
    %c0_i32_0 = arith.constant 0 : i32
    %c0_i32_1 = arith.constant 0 : i32
    return %arg0, %c0_i32, %c0_i32_0 : i32, i32, i32
  }
  func.func @transform_12(%arg0: i32) -> (i32, i32, i32) {
    %c0_i32 = arith.constant 0 : i32
    %c0_i32_0 = arith.constant 0 : i32
    %c0_i32_1 = arith.constant 0 : i32
    return %arg0, %c0_i32, %c0_i32_0 : i32, i32, i32
  }
}

</mosaic_0001>

<bundles_post_ra>
// kernel: transit_mask_forward.1
= control target key start
LH: loop header
LB: loop body
LE: loop exit
PB: predicated region body
PF: predicated region fallthrough
CT: control target
= control target key end

     0   :  { %s15206_s23 = smov 0   ;;  %s21461_s0 = inlined_call_operand.vmem [shape: f32[2,16,16,64], index: 0, kind: input, shape index: {}]   ;;  %s21462_s1 = inlined_call_operand.vmem [shape: bf16[576,64], index: 1, kind: input, shape index: {}]   ;;  %s21463_s2 = inlined_call_operand.vmem [shape: f32[1,64], index: 2, kind: input, shape index: {}]   ;;  %s21464_s3 = inlined_call_operand.vmem [shape: bf16[576,64], index: 3, kind: input, shape index: {}]   ;;  %s21465_s4 = inlined_call_operand.vmem [shape: f32[1,64], index: 4, kind: input, shape index: {}]   ;;  %s21466_s5 = inlined_call_operand.vmem [shape: bf16[64,64], index: 5, kind: input, shape index: {}]   ;;  %s21467_s6 = inlined_call_operand.vmem [shape: f32[1,64], index: 6, kind: input, shape index: {}]   ;;  %s21468_s7 = inlined_call_operand.vmem [shape: f32[1,64], index: 7, kind: input, shape index: {}]   ;;  %s21469_s8 = inlined_call_operand.<no memory space> [shape: f32[1,1], index: 8, kind: input, shape index: {}]   ;;  %s21470_s9 = inlined_call_operand.vmem [shape: f32[2,16,1024], index: 9, kind: output, shape index: {0}]   ;;  %s21471_s10 = inlined_call_operand.vmem [shape: f32[2,16,1024], index: 10, kind: output, shape index: {1}]   ;;  %s21472_s11 = inlined_call_operand.vmem [shape: f32[2,1,256], index: 11, kind: output, shape index: {2}]   ;;  %s21473_s12 = inlined_call_operand.vmem [shape: f32[2,1,256], index: 12, kind: output, shape index: {3}]  }
   0x1   :  { %v18_v0 = vstv %s21469_s8 }
   0x2   :  { %19 = vst [vmem:[#allocation2] sm:$0x1] %v18_v0 }
   0x3 LB: > { %s13408_s24 = sadd.s32 4294967295, %s15131_s23   ;;  %p13412_p0 = scmp.ge.s32.totalorder %s15131_s23, 1  ;;  %s15131_s23 = sphi %s15206_s23, %s25_s23  }
   0x4   : > { %p371_p1 = scmp.lt.s32.totalorder %s15131_s23, 3 }
   0x6   : > { %p372_p2 = pnand %p13412_p0, %p371_p1 }
   0x8   : > { %375 = sbr.rel (%p372_p2) target bundleno = 2024 (0x7e8), region = 56 }
   0xf   : > { %p426_p3 = scmp.lt.s32.totalorder %s13408_s24, 1  ;;  %v14854_v1 = vld [vmem:[%s21462_s1 + $0x40] sm:$0xff]   ;;  %v14856_v3 = vld [vmem:[%s21462_s1 + $0x48] sm:$0xff]   ;;  %v14858_v5 = vld [vmem:[%s21462_s1 + $0x50] sm:$0xff]   ;;  %vm619_vm0 = vcmask 1040384   ;;  %vm810_vm1 = vcmask 1046528  }
  0x10   : > { %13715 = vmatprep.subr.bf16.mxu0 %v14854_v1  ;;  %v14855_v2 = vld [vmem:[%s21462_s1] sm:$0xff]   ;;  %14343 = vmatprep.subr.bf16.mxu1 %v14854_v1  ;;  %v14857_v4 = vld [vmem:[%s21462_s1 + $0x8] sm:$0xff]   ;;  %s15133_s20 = smov 64   ;;  %v14859_v62 = vld [vmem:[%s21462_s1 + $0x10] sm:$0xff]   ;;  %vm976_vm2 = vcmask 1045504   ;;  %vm1326_vm3 = vcmask 523264  }
  0x11   : > { %s22502_s24 = smov (!%p426_p3, %s13408_s24), 1  ;;  %13716 = vmatpush3.bf16.msra.mxu0 %v14855_v2  ;;  %14351 = vmatpush3.bf16.msra.mxu1 %v14855_v2  ;;  %v14860_v63 = vld [vmem:[%s21462_s1 + $0x58] sm:$0xff]   ;;  %vm9651_vm4 = vcmask 130112   ;;  %vm9658_vm5 = vcmask 195712   ;;  %vm9665_vm6 = vcmask 261312   ;;  %vm9672_vm7 = vcmask 326912  }
  0x12   : > { %s13712_s30 = sshll.u32 %s22502_s24, 8  ;;  %13717 = vmatprep.subr.bf16.mxu0 %v14856_v3  ;;  %14344 = vmatprep.subr.bf16.mxu1 %v14856_v3  ;;  %vm9679_vm8 = vcmask 392512   ;;  %vm9686_vm9 = vcmask 458112   ;;  %vm9693_vm10 = vcmask 523712   ;;  %vm9700_vm11 = vcmask 589312   ;;  %s13419_s22 = sshll.u32 %s22502_s24, 1 }
  0x13   : > { %s15232_s17 = scalar_lea.vmem %s21461_s0, %s13712_s30  ;;  %vm9707_vm12 = vcmask 654912   ;;  %vm9714_vm13 = vcmask 720512   ;;  %vm9721_vm14 = vcmask 786112   ;;  %vm9728_vm15 = vcmask 851712   ;;  %s444_s8 = scalar_lea.vmem %s21472_s11, %s13419_s22 }
  0x14   : > { %v450_v6 = vld [vmem:[%s15232_s17] sm:$0xff]  ;;  %v451_v7 = vld [vmem:[%s15232_s17 + $0x8] sm:$0xff]  ;;  %v452_v8 = vld [vmem:[%s15232_s17 + $0x10] sm:$0xff]  ;;  %s448_s29 = scalar_lea.vmem %s21473_s12, %s13419_s22 }
  0x15   : > { %v572_v9 = vrot.slane %v450_v6, 1  ;;  %v623_v10 = vrot.slane %v450_v6, 7  ;;  %v624_v11 = vrot.slane %v451_v7, 7  ;;  %v717_v12 = vrot.slane %v451_v7, 5  ;;  %v453_v13 = vld [vmem:[%s15232_s17 + $0x18] sm:$0xff]  ;;  %13718 = vmatpush3.bf16.msra.mxu0 %v14857_v4  ;;  %14352 = vmatpush3.bf16.msra.mxu1 %v14857_v4  ;;  %v454_v21 = vld [vmem:[%s15232_s17 + $0x20] sm:$0xff] }
  0x16   : > { %v571_v14 = vrot.slane %v452_v8, 1  ;;  %v620_v15 = vrot.slane %v452_v8, 7  ;;  %v621_v16 = vrot.slane %v453_v13, 7  ;;  %v716_v17 = vrot.slane %v453_v13, 5  ;;  %13719 = vmatprep.subr.bf16.mxu0 %v14858_v5  ;;  %14345 = vmatprep.subr.bf16.mxu1 %v14858_v5  ;;  %v455_v26 = vld [vmem:[%s15232_s17 + $0x28] sm:$0xff]  ;;  %v456_v29 = vld [vmem:[%s15232_s17 + $0x30] sm:$0xff] }
  0x17   : > { %v15242_v18 = vsel %vm619_vm0, %v623_v10, %v624_v11  ;;  %v15245_v19 = vsel %vm619_vm0, %v572_v9, %v623_v10  ;;  %v15248_v20 = vsel %vm619_vm0, %v624_v11, %v717_v12  ;;  %v573_v33 = vrot.slane %v454_v21, 1  ;;  %v457_v38 = vld [vmem:[%s15232_s17 + $0x38] sm:$0xff]  ;;  %v458_v51 = vld [vmem:[%s15232_s17 + $0x40] sm:$0xff]  ;;  %v459_v52 = vld [vmem:[%s15232_s17 + $0x48] sm:$0xff] }
  0x18   : > { %21789 = vst [vmem:[#allocation3_spill] sm:$0xff] %v15245_v19  ;;  %v14372_v22 = vpack.i.bf16 %v15242_v18, %v15245_v19  ;;  %v15254_v23 = vsel %vm619_vm0, %v620_v15, %v621_v16  ;;  %v15257_v24 = vsel %vm619_vm0, %v571_v14, %v620_v15  ;;  %v15260_v25 = vsel %vm619_vm0, %v621_v16, %v716_v17  ;;  %v460_v57 = vld [vmem:[%s15232_s17 + $0x50] sm:$0xff]  ;;  %v461_v4 = vld [vmem:[%s15232_s17 + $0x58] sm:$0xff]  ;;  %v462_v14 = vld [vmem:[%s15232_s17 + $0x60] sm:$0xff] }
  0x19   : > { %21790 = vst [vmem:[#allocation4_spill] sm:$0xff] %v15254_v23  ;;  %v14382_v27 = vpack.i.bf16 %v15254_v23, %v15257_v24  ;;  %v811_v28 = vrot.slane %v15257_v24, 1  ;;  %v812_v30 = vrot.slane %v15254_v23, 1  ;;  %v814_v31 = vrot.slane %v15260_v25, 1  ;;  %13720 = vmatpush3.bf16.msra.mxu0 %v14859_v62  ;;  %v14861_v9 = vld [vmem:[%s21462_s1 + $0x18] sm:$0xff]   ;;  %14353 = vmatpush3.bf16.msra.mxu1 %v14859_v62  ;;  %v14862_v15 = vld [vmem:[%s21462_s1 + $0x60] sm:$0xff]  }
  0x1a   : > { %14373 = vrot.lane.b32.xlu0 %v14372_v22, %s15133_s20  ;;  %v816_v32 = vrot.slane %v15245_v19, 1  ;;  %v817_v34 = vrot.slane %v15242_v18, 1  ;;  %v819_v35 = vrot.slane %v15248_v20, 1  ;;  %v626_v36 = vrot.slane %v454_v21, 7  ;;  %13721 = vmatprep.subr.bf16.mxu0 %v14860_v63 }
  0x1b   : > { %14383 = vrot.lane.b32.xlu1 %v14382_v27, %s15133_s20  ;;  %v627_v37 = vrot.slane %v455_v26, 7  ;;  %v15276_v39 = vsel %vm810_vm1, %v811_v28, %v812_v30  ;;  %v15279_v40 = vsel %vm810_vm1, %v812_v30, %v814_v31  ;;  %v718_v41 = vrot.slane %v455_v26, 5  ;;  %v15357_v26 = vld [vmem:[%s15232_s17 + $0x68] sm:$0xff]  ;;  %14346 = vmatprep.subr.bf16.mxu1 %v14860_v63  ;;  %v14863_v31 = vld [vmem:[%s21462_s1 + $0x20] sm:$0xff]  }
  0x1c   : > { %21791 = vst [vmem:[#allocation5_spill] sm:$0xff] %v15276_v39  ;;  %21792 = vst [vmem:[#allocation6_spill] sm:$0xff] %v15279_v40  ;;  %v574_v42 = vrot.slane %v456_v29, 1  ;;  %v14377_v43 = vpack.i.bf16 %v15279_v40, %v15276_v39  ;;  %v15284_v44 = vsel %vm810_vm1, %v816_v32, %v817_v34  ;;  %v15287_v45 = vsel %vm810_vm1, %v817_v34, %v819_v35  ;;  %v470_v39 = vld [vmem:[%s15232_s17 + $0xa0] sm:$0xff] }
  0x1d   : > { %21793 = vst [vmem:[#allocation7_spill] sm:$0xff] %v15284_v44  ;;  %21794 = vst [vmem:[#allocation8_spill] sm:$0xff] %v15287_v45  ;;  %v15290_v46 = vsel %vm619_vm0, %v626_v36, %v627_v37  ;;  %v14387_v47 = vpack.i.bf16 %v15287_v45, %v15284_v44  ;;  %v15295_v48 = vsel %vm619_vm0, %v573_v33, %v626_v36  ;;  %v629_v49 = vrot.slane %v456_v29, 7  ;;  %v474_v36 = vld [vmem:[%s15232_s17 + $0xc0] sm:$0xff] }
  0x1e   : > { %21795 = vst [vmem:[#allocation9_spill] sm:$0xff] %v15290_v46  ;;  %v630_v50 = vrot.slane %v457_v38, 7  ;;  %14378 = vrot.lane.b32.xlu0 %v14377_v43, %s15133_s20  ;;  %v14392_v53 = vpack.i.bf16 %v15290_v46, %v15295_v48  ;;  %v719_v54 = vrot.slane %v457_v38, 5  ;;  %v15303_v55 = vsel %vm619_vm0, %v627_v37, %v718_v41  ;;  %13722 = vmatpush3.bf16.msra.mxu0 %v14861_v9  ;;  %v15385_v43 = vld [vmem:[%s15232_s17 + $0xc8] sm:$0xff] }
  0x1f   : > { %v821_v56 = vrot.slane %v15295_v48, 1  ;;  %14388 = vrot.lane.b32.xlu1 %v14387_v47, %s15133_s20  ;;  %v15312_v59 = vsel %vm619_vm0, %v574_v42, %v629_v49  ;;  %v822_v60 = vrot.slane %v15290_v46, 1  ;;  %v824_v61 = vrot.slane %v15303_v55, 1  ;;  %14354 = vmatpush3.bf16.msra.mxu1 %v14861_v9  ;;  %v14864_v47 = vld [vmem:[%s21462_s1 + $0x68] sm:$0xff]  }
  0x20   : > { %v15309_v58 = vsel %vm619_vm0, %v629_v49, %v630_v50  ;;  %v575_v1 = vrot.slane %v458_v51, 1  ;;  %v632_v2 = vrot.slane %v458_v51, 7  ;;  %v633_v3 = vrot.slane %v459_v52, 7  ;;  %13723 = vmatprep.subr.bf16.mxu0 %v14862_v15  ;;  %14347 = vmatprep.subr.bf16.mxu1 %v14862_v15 }
  0x21   : > { %v14397_v0 = vpack.i.bf16 %v15309_v58, %v15312_v59  ;;  %v15326_v5 = vsel %vm810_vm1, %v821_v56, %v822_v60  ;;  %v15329_v6 = vsel %vm810_vm1, %v822_v60, %v824_v61  ;;  %v720_v7 = vrot.slane %v459_v52, 5  ;;  %v473_v60 = vld [vmem:[%s15232_s17 + $0xb8] sm:$0xff] }
  0x22   : > { %21796 = vst [vmem:[#allocation10_spill] sm:$0xff] %v15326_v5  ;;  %21797 = vst [vmem:[#allocation11_spill] sm:$0xff] %v15329_v6  ;;  %v15332_v8 = vsel %vm619_vm0, %v630_v50, %v719_v54  ;;  %14393 = vrot.lane.b32.xlu0 %v14392_v53, %s15133_s20  ;;  %v14402_v10 = vpack.i.bf16 %v15329_v6, %v15326_v5  ;;  %v15341_v11 = vsel %vm619_vm0, %v632_v2, %v633_v3  ;;  %v472_v53 = vld [vmem:[%s15232_s17 + $0xb0] sm:$0xff]  ;;  %v15606_v5 = vld [vmem:[%s15232_s17 + $0xf8] sm:$0xff] }
  0x23   : > { %v15344_v12 = vsel %vm619_vm0, %v575_v1, %v632_v2  ;;  %v826_v13 = vrot.slane %v15312_v59, 1  ;;  %14398 = vrot.lane.b32.xlu1 %v14397_v0, %s15133_s20  ;;  %v827_v17 = vrot.slane %v15309_v58, 1  ;;  %v829_v21 = vrot.slane %v15332_v8, 1  ;;  %v464_v1 = vld [vmem:[%s15232_s17 + $0x70] sm:$0xff]  ;;  %13724 = vmatpush3.bf16.msra.mxu0 %v14863_v31  ;;  %v14865_v2 = vld [vmem:[%s21462_s1 + $0x28] sm:$0xff]  }
  0x24   : > { %v14407_v16 = vpack.i.bf16 %v15341_v11, %v15344_v12  ;;  %v576_v22 = vrot.slane %v460_v57, 1  ;;  %v635_v27 = vrot.slane %v460_v57, 7  ;;  %v636_v28 = vrot.slane %v461_v4, 7  ;;  %14355 = vmatpush3.bf16.msra.mxu1 %v14863_v31  ;;  %13725 = vmatprep.subr.bf16.mxu0 %v14864_v47 }
  0x25   : > { %v721_v29 = vrot.slane %v461_v4, 5  ;;  %v15360_v30 = vsel %vm619_vm0, %v633_v3, %v720_v7  ;;  %v15366_v32 = vsel %vm810_vm1, %v826_v13, %v827_v17  ;;  %v15369_v33 = vsel %vm810_vm1, %v827_v17, %v829_v21  ;;  %v14866_v13 = vld [vmem:[%s21462_s1 + $0x70] sm:$0xff]   ;;  %14348 = vmatprep.subr.bf16.mxu1 %v14864_v47 }
  0x26   : > { %21798 = vst [vmem:[#allocation12_spill] sm:$0xff] %v15366_v32  ;;  %21799 = vst [vmem:[#allocation13_spill] sm:$0xff] %v15369_v33  ;;  %v831_v34 = vrot.slane %v15344_v12, 1  ;;  %v832_v35 = vrot.slane %v15341_v11, 1  ;;  %14403 = vrot.lane.b32.xlu0 %v14402_v10, %s15133_s20  ;;  %v14412_v37 = vpack.i.bf16 %v15369_v33, %v15366_v32  ;;  %v15378_v38 = vsel %vm619_vm0, %v635_v27, %v636_v28  ;;  %v15422_v10 = vld [vmem:[%s15232_s17 + $0x78] sm:$0xff] }
  0x27   : > { %v15381_v41 = vsel %vm619_vm0, %v576_v22, %v635_v27  ;;  %v834_v42 = vrot.slane %v15360_v30, 1  ;;  %14408 = vrot.lane.b32.xlu1 %v14407_v16, %s15133_s20  ;;  %v577_v51 = vrot.slane %v462_v14, 1  ;;  %v638_v52 = vrot.slane %v462_v14, 7  ;;  %13726 = vmatpush3.bf16.msra.mxu0 %v14865_v2 }
  0x28   : > { %21800 = vst [vmem:[#allocation14_spill] sm:$0xff] %v15381_v41  ;;  %v14417_v49 = vpack.i.bf16 %v15378_v38, %v15381_v41  ;;  %v15394_v50 = vsel %vm810_vm1, %v831_v34, %v832_v35  ;;  %v639_v56 = vrot.slane %v15357_v26, 7  ;;  %v15402_v57 = vsel %vm619_vm0, %v636_v28, %v721_v29  ;;  %14356 = vmatpush3.bf16.msra.mxu1 %v14865_v2 }
  0x29   : > { %21801 = vst [vmem:[#allocation15_spill] sm:$0xff] %v15394_v50  ;;  %v15398_v54 = vsel %vm810_vm1, %v832_v35, %v834_v42  ;;  %v15408_v62 = vsel %vm619_vm0, %v577_v51, %v638_v52  ;;  %v836_v63 = vrot.slane %v15381_v41, 1  ;;  %v837_v0 = vrot.slane %v15378_v38, 1  ;;  %v14867_v35 = vld [vmem:[%s21462_s1 + $0x30] sm:$0xff]   ;;  %13727 = vmatprep.subr.bf16.mxu0 %v14866_v13  ;;  %14349 = vmatprep.subr.bf16.mxu1 %v14866_v13 }
  0x2a   : > { %21802 = vst [vmem:[#allocation16_spill] sm:$0xff] %v15398_v54  ;;  %v14422_v61 = vpack.i.bf16 %v15398_v54, %v15394_v50  ;;  %21803 = vst [vmem:[#allocation17_spill] sm:$0xff] %v15408_v62  ;;  %14413 = vrot.lane.b32.xlu0 %v14412_v37, %s15133_s20  ;;  %v15418_v3 = vsel %vm619_vm0, %v638_v52, %v639_v56  ;;  %v839_v4 = vrot.slane %v15402_v57, 1  ;;  %v583_v7 = vrot.slane %v474_v36, 1  ;;  %v476_v51 = vld [vmem:[%s15232_s17 + $0xd0] sm:$0xff]  ;;  %v469_v50 = vld [vmem:[%s15232_s17 + $0x98] sm:$0xff] }
  0x2b   : > { %21804 = vst [vmem:[#allocation18_spill] sm:$0xff] %v15418_v3  ;;  %v656_v9 = vrot.slane %v474_v36, 7  ;;  %14418 = vrot.lane.b32.xlu1 %v14417_v49, %s15133_s20  ;;  %v722_v14 = vrot.slane %v15357_v26, 5  ;;  %v14427_v15 = vpack.i.bf16 %v15418_v3, %v15408_v62  ;;  %v15432_v16 = vsel %vm810_vm1, %v836_v63, %v837_v0  ;;  %v14868_v36 = vld [vmem:[%s21462_s1 + $0x78] sm:$0xff]   ;;  %13728 = vmatpush3.bf16.msra.mxu0 %v14867_v35 }
  0x2c   : > { %21805 = vst [vmem:[#allocation19_spill] sm:$0xff] %v15432_v16  ;;  %v657_v17 = vrot.slane %v15385_v43, 7  ;;  %v15436_v21 = vsel %vm810_vm1, %v837_v0, %v839_v4  ;;  %v582_v27 = vrot.slane %v472_v53, 1  ;;  %v653_v28 = vrot.slane %v472_v53, 7  ;;  %v15475_v4 = vld [vmem:[%s15232_s17 + $0xd8] sm:$0xff]  ;;  %14357 = vmatpush3.bf16.msra.mxu1 %v14867_v35  ;;  %13729 = vmatprep.subr.bf16.mxu0 %v14868_v36  ;;  %v14872_v35 = vld [vmem:[%s21462_s1 + $0xc0] sm:$0xff]  }
  0x2d   : > { %21806 = vst [vmem:[#allocation20_spill] sm:$0xff] %v15436_v21  ;;  %v15439_v22 = vsel %vm619_vm0, %v583_v7, %v656_v9  ;;  %v14432_v26 = vpack.i.bf16 %v15436_v21, %v15432_v16  ;;  %v654_v31 = vrot.slane %v473_v60, 7  ;;  %v727_v34 = vrot.slane %v473_v60, 5  ;;  %14350 = vmatprep.subr.bf16.mxu1 %v14868_v36 }
  0x2e   : > { %v15444_v29 = vsel %vm619_vm0, %v656_v9, %v657_v17  ;;  %14423 = vrot.lane.b32.xlu0 %v14422_v61, %s15133_s20  ;;  %v15456_v42 = vsel %vm619_vm0, %v582_v27, %v653_v28  ;;  %v578_v47 = vrot.slane %v464_v1, 1  ;;  %v641_v49 = vrot.slane %v464_v1, 7  ;;  %v14869_v27 = vld [vmem:[%s21462_s1 + $0x38] sm:$0xff]  }
  0x2f   : > { %v14437_v37 = vpack.i.bf16 %v15444_v29, %v15439_v22  ;;  %14428 = vrot.lane.b32.xlu1 %v14427_v15, %s15133_s20  ;;  %v15461_v52 = vsel %vm619_vm0, %v653_v28, %v654_v31  ;;  %v15464_v53 = vsel %vm619_vm0, %v654_v31, %v727_v34  ;;  %v866_v60 = vrot.slane %v15456_v42, 1  ;;  %v466_v15 = vld [vmem:[%s15232_s17 + $0x80] sm:$0xff]  ;;  %13730 = vmatpush3.bf16.msra.mxu0 %v14869_v27 }
  0x30   : > { %v642_v61 = vrot.slane %v15422_v10, 7  ;;  %v728_v63 = vrot.slane %v15385_v43, 5  ;;  %v867_v0 = vrot.slane %v15461_v52, 1  ;;  %v869_v1 = vrot.slane %v15464_v53, 1  ;;  %v15492_v28 = vld [vmem:[%s21462_s1 + $0x100] sm:$0xff]   ;;  %14358 = vmatpush3.bf16.msra.mxu1 %v14869_v27 }
  0x31   : > { %v15472_v2 = vsel %vm619_vm0, %v578_v47, %v641_v49  ;;  %v15481_v9 = vsel %vm619_vm0, %v639_v56, %v722_v14  ;;  %v841_v13 = vrot.slane %v15408_v62, 1  ;;  %v842_v43 = vrot.slane %v15418_v3, 1  ;;  %21809 = vst [vmem:[#allocation23_spill] sm:$0xff] %v15492_v28  ;;  %v15505_v47 = vld [vmem:[%s15232_s17 + $0x88] sm:$0xff]  ;;  %14223 = vmatprep.subr.bf16.mxu0 %v15492_v28  ;;  %13827 = vmatprep.subr.bf16.mxu1 %v14872_v35 }
  0x32   : > { %21807 = vst [vmem:[#allocation21_spill] sm:$0xff] %v15472_v2  ;;  %v15478_v7 = vsel %vm619_vm0, %v641_v49, %v642_v61  ;;  %14433 = vrot.lane.b32.xlu0 %v14432_v26, %s15133_s20  ;;  %v15496_v56 = vsel %vm810_vm1, %v866_v60, %v867_v0  ;;  %v15499_v14 = vsel %vm810_vm1, %v867_v0, %v869_v1  ;;  %v844_v34 = vrot.slane %v15481_v9, 1 }
  0x33   : > { %21808 = vst [vmem:[#allocation22_spill] sm:$0xff] %v15478_v7  ;;  %21810 = vst [vmem:[#allocation24_spill] sm:$0xff] %v15496_v56  ;;  %v14447_v31 = vpack.i.bf16 %v15478_v7, %v15472_v2  ;;  %14438 = vrot.lane.b32.xlu1 %v14437_v37, %s15133_s20  ;;  %v14442_v26 = vpack.i.bf16 %v15499_v14, %v15496_v56  ;;  %v15514_v49 = vsel %vm810_vm1, %v841_v13, %v842_v43 }
  0x34   : > { %21811 = vst [vmem:[#allocation25_spill] sm:$0xff] %v15499_v14  ;;  %21812 = vst [vmem:[#allocation26_spill] sm:$0xff] %v15514_v49  ;;  %v584_v60 = vrot.slane %v476_v51, 1  ;;  %v659_v0 = vrot.slane %v476_v51, 7  ;;  %v723_v1 = vrot.slane %v15422_v10, 5  ;;  %v15518_v21 = vsel %vm810_vm1, %v842_v43, %v844_v34 }
  0x35   : > { %21813 = vst [vmem:[#allocation27_spill] sm:$0xff] %v15518_v21  ;;  %v660_v16 = vrot.slane %v15475_v4, 7  ;;  %v15522_v54 = vsel %vm619_vm0, %v657_v17, %v728_v63  ;;  %v729_v37 = vrot.slane %v15475_v4, 5  ;;  %v871_v13 = vrot.slane %v15439_v22, 1  ;;  %v478_v4 = vld [vmem:[%s15232_s17 + $0xe0] sm:$0xff] }
  0x36   : > { %v15526_v14 = vsel %vm619_vm0, %v584_v60, %v659_v0  ;;  %v872_v36 = vrot.slane %v15444_v29, 1  ;;  %14443 = vrot.lane.b32.xlu0 %v14442_v26, %s15133_s20  ;;  %v14452_v10 = vpack.i.bf16 %v15518_v21, %v15514_v49  ;;  %v874_v51 = vrot.slane %v15522_v54, 1 }
  0x37   : > { %v15534_v17 = vsel %vm619_vm0, %v659_v0, %v660_v16  ;;  %v579_v63 = vrot.slane %v466_v15, 1  ;;  %14448 = vrot.lane.b32.xlu1 %v14447_v31, %s15133_s20  ;;  %v644_v34 = vrot.slane %v466_v15, 7  ;;  %v645_v26 = vrot.slane %v15505_v47, 7  ;;  %v479_v31 = vld [vmem:[%s15232_s17 + $0xe8] sm:$0xff] }
  0x38   : > { %v14457_v43 = vpack.i.bf16 %v15534_v17, %v15526_v14  ;;  %v15543_v27 = vsel %vm810_vm1, %v871_v13, %v872_v36  ;;  %v15547_v60 = vsel %vm810_vm1, %v872_v36, %v874_v51  ;;  %v15550_v0 = vsel %vm619_vm0, %v642_v61, %v723_v1 }
  0x39   : > { %21814 = vst [vmem:[#allocation28_spill] sm:$0xff] %v15543_v27  ;;  %21815 = vst [vmem:[#allocation29_spill] sm:$0xff] %v15547_v60  ;;  %v846_v56 = vrot.slane %v15472_v2, 1  ;;  %v15555_v21 = vsel %vm619_vm0, %v644_v34, %v645_v26  ;;  %v724_v13 = vrot.slane %v15505_v47, 5  ;;  %v15559_v15 = vsel %vm619_vm0, %v579_v63, %v644_v34 }
  0x3a   : > { %21816 = vst [vmem:[#allocation30_spill] sm:$0xff] %v15555_v21  ;;  %21817 = vst [vmem:[#allocation31_spill] sm:$0xff] %v15559_v15  ;;  %v847_v35 = vrot.slane %v15478_v7, 1  ;;  %14453 = vrot.lane.b32.xlu0 %v14452_v10, %s15133_s20  ;;  %v14462_v61 = vpack.i.bf16 %v15547_v60, %v15543_v27  ;;  %v849_v1 = vrot.slane %v15550_v0, 1  ;;  %v585_v36 = vrot.slane %v478_v4, 1  ;;  %v468_v10 = vld [vmem:[%s15232_s17 + $0x90] sm:$0xff] }
  0x3b   : > { %v662_v51 = vrot.slane %v478_v4, 7  ;;  %14458 = vrot.lane.b32.xlu1 %v14457_v43, %s15133_s20  ;;  %v14467_v47 = vpack.i.bf16 %v15555_v21, %v15559_v15  ;;  %v663_v34 = vrot.slane %v479_v31, 7  ;;  %v15573_v49 = vsel %vm619_vm0, %v660_v16, %v729_v37  ;;  %v480_v37 = vld [vmem:[%s15232_s17 + $0xf0] sm:$0xff] }
  0x3c   : > { %v15570_v63 = vsel %vm810_vm1, %v846_v56, %v847_v35  ;;  %v15577_v60 = vsel %vm810_vm1, %v847_v35, %v849_v1  ;;  %v876_v4 = vrot.slane %v15526_v14, 1  ;;  %v877_v43 = vrot.slane %v15534_v17, 1 }
  0x3d   : > { %21818 = vst [vmem:[#allocation32_spill] sm:$0xff] %v15570_v63  ;;  %21819 = vst [vmem:[#allocation33_spill] sm:$0xff] %v15577_v60  ;;  %v15580_v27 = vsel %vm619_vm0, %v585_v36, %v662_v51  ;;  %v15586_v56 = vsel %vm619_vm0, %v662_v51, %v663_v34  ;;  %v730_v33 = vrot.slane %v479_v31, 5  ;;  %v879_v16 = vrot.slane %v15573_v49, 1 }
  0x3e   : > { %14463 = vrot.lane.b32.xlu0 %v14462_v61, %s15133_s20  ;;  %v14472_v35 = vpack.i.bf16 %v15577_v60, %v15570_v63  ;;  %v14477_v1 = vpack.i.bf16 %v15586_v56, %v15580_v27  ;;  %v580_v36 = vrot.slane %v468_v10, 1  ;;  %v647_v32 = vrot.slane %v468_v10, 7 }
  0x3f   : > { %14468 = vrot.lane.b32.xlu1 %v14467_v47, %s15133_s20  ;;  %v15597_v6 = vsel %vm810_vm1, %v876_v4, %v877_v43  ;;  %v15600_v31 = vsel %vm810_vm1, %v877_v43, %v879_v16  ;;  %v648_v51 = vrot.slane %v469_v50, 7  ;;  %v15603_v61 = vsel %vm619_vm0, %v645_v26, %v724_v13 }
  0x40   : > { %21820 = vst [vmem:[#allocation34_spill] sm:$0xff] %v15597_v6  ;;  %21821 = vst [vmem:[#allocation35_spill] sm:$0xff] %v15600_v31  ;;  %v725_v60 = vrot.slane %v469_v50, 5  ;;  %v15609_v63 = vsel %vm619_vm0, %v580_v36, %v647_v32  ;;  %v851_v10 = vrot.slane %v15559_v15, 1  ;;  %v852_v47 = vrot.slane %v15555_v21, 1 }
  0x41   : > { %21822 = vst [vmem:[#allocation36_spill] sm:$0xff] %v15609_v63  ;;  %v15614_v4 = vsel %vm619_vm0, %v647_v32, %v648_v51  ;;  %v854_v43 = vrot.slane %v15603_v61, 1  ;;  %v586_v16 = vrot.slane %v480_v37, 1  ;;  %v665_v40 = vrot.slane %v480_v37, 7 }
  0x42   : > { %21823 = vst [vmem:[#allocation37_spill] sm:$0xff] %v15614_v4  ;;  %14473 = vrot.lane.b32.xlu0 %v14472_v35, %s15133_s20  ;;  %v14482_v50 = vpack.i.bf16 %v15600_v31, %v15597_v6  ;;  %v14487_v26 = vpack.i.bf16 %v15614_v4, %v15609_v63  ;;  %v15623_v13 = vsel %vm810_vm1, %v851_v10, %v852_v47  ;;  %v21495_v36 = vrot.slane %v15606_v5, 7  ;;  %v471_v6 = vld [vmem:[%s15232_s17 + $0xa8] sm:$0xff]  ;;  %s13713_s17 = sshll.u32 %s22502_s24, 7 }
  0x43   : > { %21824 = vst [vmem:[#allocation38_spill] sm:$0xff] %v15623_v13  ;;  %14478 = vrot.lane.b32.xlu1 %v14477_v1, %s15133_s20  ;;  %v15629_v32 = vsel %vm810_vm1, %v852_v47, %v854_v43  ;;  %v15632_v37 = vsel %vm619_vm0, %v586_v16, %v665_v40  ;;  %v15635_v35 = vsel %vm619_vm0, %v663_v34, %v730_v33  ;;  %v881_v31 = vrot.slane %v15580_v27, 1  ;;  %s21081_s18 = scalar_lea.vmem %s21470_s9, %s13713_s17  ;;  %s21233_s21 = scalar_lea.vmem %s21471_s10, %s13713_s17 }
  0x44   : > { %21825 = vst [vmem:[#allocation39_spill] sm:$0xff] %v15629_v32  ;;  %21826 = vst [vmem:[#allocation40_spill] sm:$0xff] %v15632_v37  ;;  %v15642_v10 = vsel %vm619_vm0, %v665_v40, %v21495_v36  ;;  %v882_v44 = vrot.slane %v15586_v56, 1  ;;  %v884_v1 = vrot.slane %v15635_v35, 1  ;;  %v978_v47 = vrot.slane %v15254_v23, 2 }
  0x45   : > { %21827 = vst [vmem:[#allocation41_spill] sm:$0xff] %v15642_v10  ;;  %v14492_v43 = vpack.i.bf16 %v15629_v32, %v15623_v13  ;;  %v581_v33 = vrot.slane %v470_v39, 1  ;;  %v650_v34 = vrot.slane %v470_v39, 7  ;;  %v14497_v16 = vpack.i.bf16 %v15642_v10, %v15632_v37 }
  0x46   : > { %14483 = vrot.lane.b32.xlu0 %v14482_v50, %s15133_s20  ;;  %v15653_v40 = vsel %vm810_vm1, %v881_v31, %v882_v44  ;;  %v15656_v36 = vsel %vm810_vm1, %v882_v44, %v884_v1  ;;  %v651_v45 = vrot.slane %v471_v6, 7  ;;  %v726_v28 = vrot.slane %v471_v6, 5 }
  0x47   : > { %21828 = vst [vmem:[#allocation42_spill] sm:$0xff] %v15653_v40  ;;  %21829 = vst [vmem:[#allocation43_spill] sm:$0xff] %v15656_v36  ;;  %14488 = vrot.lane.b32.xlu1 %v14487_v26, %s15133_s20  ;;  %v15660_v23 = vsel %vm619_vm0, %v581_v33, %v650_v34  ;;  %v15663_v39 = vsel %vm619_vm0, %v648_v51, %v725_v60  ;;  %v856_v50 = vrot.slane %v15609_v63, 1  ;;  %v857_v31 = vrot.slane %v15614_v4, 1 }
  0x48   : > { %21830 = vst [vmem:[#allocation44_spill] sm:$0xff] %v15660_v23  ;;  %v15667_v32 = vsel %vm619_vm0, %v650_v34, %v651_v45  ;;  %v859_v44 = vrot.slane %v15663_v39, 1  ;;  %v982_v1 = vrot.slane %v15245_v19, 2  ;;  %v977_v26 = vrot.slane %v15257_v24, 2 }
  0x49   : > { %21831 = vst [vmem:[#allocation45_spill] sm:$0xff] %v15667_v32  ;;  %v980_v6 = vrot.slane %v15260_v25, 2  ;;  %v983_v33 = vrot.slane %v15242_v18, 2  ;;  %v985_v60 = vrot.slane %v15248_v20, 2  ;;  %v14502_v51 = vpack.i.bf16 %v15656_v36, %v15653_v40 }
  0x4a   : > { %14493 = vrot.lane.b32.xlu0 %v14492_v43, %s15133_s20  ;;  %v14507_v34 = vpack.i.bf16 %v15667_v32, %v15660_v23  ;;  %v15683_v13 = vsel %vm810_vm1, %v856_v50, %v857_v31  ;;  %v15686_v19 = vsel %vm810_vm1, %v857_v31, %v859_v44  ;;  %v15695_v43 = vsel %vm619_vm0, %v651_v45, %v726_v28 }
  0x4b   : > { %14498 = vrot.lane.b32.xlu1 %v14497_v16, %s15133_s20  ;;  %21832 = vst [vmem:[#allocation46_spill] sm:$0xff] %v15683_v13  ;;  %21833 = vst [vmem:[#allocation47_spill] sm:$0xff] %v15686_v19  ;;  %v15689_v25 = vsel %vm976_vm2, %v982_v1, %v983_v33  ;;  %v15692_v20 = vsel %vm976_vm2, %v983_v33, %v985_v60  ;;  %v861_v16 = vrot.slane %v15660_v23, 1  ;;  %v862_v36 = vrot.slane %v15667_v32, 1 }
  0x4c   : > { %v864_v40 = vrot.slane %v15695_v43, 1  ;;  %v987_v50 = vrot.slane %v15295_v48, 2  ;;  %v988_v31 = vrot.slane %v15290_v46, 2  ;;  %v14512_v44 = vpack.i.bf16 %v15686_v19, %v15683_v13 }
  0x4d   : > { %v990_v1 = vrot.slane %v15303_v55, 2  ;;  %v14517_v45 = vpack.i.bf16 %v15692_v20, %v15689_v25  ;;  %v14522_v28 = vpack.i.bf16 %v15461_v52, %v15456_v42  ;;  %v15712_v33 = vsel %vm976_vm2, %v977_v26, %v978_v47 }
  0x4e   : > { %14503 = vrot.lane.b32.xlu0 %v14502_v51, %s15133_s20  ;;  %v15715_v60 = vsel %vm976_vm2, %v978_v47, %v980_v6  ;;  %v15718_v51 = vsel %vm810_vm1, %v861_v16, %v862_v36  ;;  %v15721_v19 = vsel %vm810_vm1, %v862_v36, %v864_v40  ;;  %v15724_v55 = vsel %vm976_vm2, %v987_v50, %v988_v31 }
  0x4f   : > { %14508 = vrot.lane.b32.xlu1 %v14507_v34, %s15133_s20  ;;  %21834 = vst [vmem:[#allocation48_spill] sm:$0xff] %v15718_v51  ;;  %21835 = vst [vmem:[#allocation49_spill] sm:$0xff] %v15721_v19  ;;  %v992_v34 = vrot.slane %v15312_v59, 2  ;;  %v993_v13 = vrot.slane %v15309_v58, 2  ;;  %v995_v46 = vrot.slane %v15332_v8, 2  ;;  %v15731_v47 = vsel %vm976_vm2, %v988_v31, %v990_v1 }
  0x50   : > { %v997_v26 = vrot.slane %v15344_v12, 2  ;;  %v998_v6 = vrot.slane %v15341_v11, 2  ;;  %v1000_v36 = vrot.slane %v15360_v30, 2  ;;  %v14527_v8 = vpack.i.bf16 %v15721_v19, %v15718_v51 }
  0x51   : > { %v731_v50 = vrot.slane %v15606_v5, 5  ;;  %v14537_v1 = vpack.i.bf16 %v15731_v47, %v15724_v55  ;;  %v15748_v30 = vsel %vm976_vm2, %v992_v34, %v993_v13  ;;  %v15751_v16 = vsel %vm976_vm2, %v993_v13, %v995_v46 }
  0x52   : > { %14513 = vrot.lane.b32.xlu0 %v14512_v44, %s15133_s20  ;;  %v14532_v44 = vpack.i.bf16 %v15715_v60, %v15712_v33  ;;  %v15756_v40 = vsel %vm976_vm2, %v997_v26, %v998_v6  ;;  %v15759_v31 = vsel %vm976_vm2, %v998_v6, %v1000_v36  ;;  %v1003_v19 = vrot.slane %v15378_v38, 2 }
  0x53   : > { %14518 = vrot.lane.b32.xlu1 %v14517_v45, %s15133_s20  ;;  %v1002_v45 = vrot.slane %v15381_v41, 2  ;;  %v1005_v51 = vrot.slane %v15402_v57, 2  ;;  %v1007_v34 = vrot.slane %v15408_v62, 2  ;;  %v1008_v46 = vrot.slane %v15418_v3, 2 }
  0x54   : > { %v1010_v13 = vrot.slane %v15481_v9, 2  ;;  %v1013_v26 = vrot.slane %v15478_v7, 2  ;;  %v1015_v41 = vrot.slane %v15550_v0, 2  ;;  %v14542_v6 = vpack.i.bf16 %v15751_v16, %v15748_v30 }
  0x55   : > { %v14547_v57 = vpack.i.bf16 %v15759_v31, %v15756_v40  ;;  %v1017_v36 = vrot.slane %v15559_v15, 2  ;;  %v15778_v9 = vsel %vm976_vm2, %v1002_v45, %v1003_v19  ;;  %v1020_v0 = vrot.slane %v15603_v61, 2 }
  0x56   : > { %14523 = vrot.lane.b32.xlu0 %v14522_v28, %s15133_s20  ;;  %v1012_v28 = vrot.slane %v15472_v2, 2  ;;  %v15781_v2 = vsel %vm976_vm2, %v1003_v19, %v1005_v51  ;;  %v1022_v7 = vrot.slane %v15609_v63, 2  ;;  %v15787_v3 = vsel %vm976_vm2, %v1007_v34, %v1008_v46 }
  0x57   : > { %14528 = vrot.lane.b32.xlu1 %v14527_v8, %s15133_s20  ;;  %v1018_v8 = vrot.slane %v15555_v21, 2  ;;  %v15790_v15 = vsel %vm976_vm2, %v1008_v46, %v1010_v13  ;;  %v1025_v45 = vrot.slane %v15663_v39, 2  ;;  %v1027_v21 = vrot.slane %v15660_v23, 2 }
  0x58   : > { %21836 = vst [vmem:[#allocation50_spill] sm:$0xff] %v15790_v15  ;;  %v1028_v19 = vrot.slane %v15667_v32, 2  ;;  %v1030_v61 = vrot.slane %v15695_v43, 2  ;;  %v1032_v51 = vrot.slane %v15456_v42, 2  ;;  %v1035_v34 = vrot.slane %v15464_v53, 2 }
  0x59   : > { %v14552_v46 = vpack.i.bf16 %v15781_v2, %v15778_v9  ;;  %v14557_v39 = vpack.i.bf16 %v15790_v15, %v15787_v3  ;;  %v15806_v13 = vsel %vm976_vm2, %v1012_v28, %v1013_v26  ;;  %v15810_v43 = vsel %vm976_vm2, %v1013_v26, %v1015_v41 }
  0x5a   : > { %14533 = vrot.lane.b32.xlu0 %v14532_v44, %s15133_s20  ;;  %v1023_v44 = vrot.slane %v15614_v4, 2  ;;  %v15813_v32 = vsel %vm976_vm2, %v1017_v36, %v1018_v8  ;;  %v15816_v53 = vsel %vm976_vm2, %v1018_v8, %v1020_v0  ;;  %v1037_v4 = vrot.slane %v15439_v22, 2 }
  0x5b   : > { %14538 = vrot.lane.b32.xlu1 %v14537_v1, %s15133_s20  ;;  %v1033_v1 = vrot.slane %v15461_v52, 2  ;;  %v1038_v28 = vrot.slane %v15444_v29, 2  ;;  %v1042_v63 = vrot.slane %v15526_v14, 2  ;;  %v1180_v41 = vrot.slane %v15632_v37, 1 }
  0x5c   : > { %v1181_v26 = vrot.slane %v15642_v10, 1  ;;  %v1217_v36 = vrot.slane %v15632_v37, 2  ;;  %v1218_v8 = vrot.slane %v15642_v10, 2  ;;  %v15836_v62 = vsel %vm976_vm2, %v1022_v7, %v1023_v44 }
  0x5d   : > { %v15839_v15 = vsel %vm976_vm2, %v1023_v44, %v1025_v45  ;;  %v15842_v10 = vsel %vm976_vm2, %v1027_v21, %v1028_v19  ;;  %v15862_v44 = vsel %vm976_vm2, %v1032_v51, %v1033_v1  ;;  %v15865_v45 = vsel %vm976_vm2, %v1033_v1, %v1035_v34 }
  0x5e   : > { %14543 = vrot.lane.b32.xlu0 %v14542_v6, %s15133_s20  ;;  %v21837_v6 = vrot.slane %v15606_v5, 7  ;;  %v14562_v5 = vpack.i.bf16 %v15810_v43, %v15806_v13  ;;  %v15848_v37 = vsel %vm976_vm2, %v1217_v36, %v1218_v8  ;;  %v14572_v7 = vpack.i.bf16 %v15839_v15, %v15836_v62 }
  0x5f   : > { %14548 = vrot.lane.b32.xlu1 %v14547_v57, %s15133_s20  ;;  %v1043_v57 = vrot.slane %v15534_v17, 2  ;;  %21838 = vst [vmem:[#allocation51_spill] sm:$0xff] %v15848_v37  ;;  %v21840_v36 = vrot.slane %v15522_v54, 2  ;;  %v15882_v1 = vsel %vm810_vm1, %v1180_v41, %v1181_v26 }
  0x60   : > { %v779_v23 = vsel %vm619_vm0, %v21837_v6, %v731_v50  ;;  %v14567_v6 = vpack.i.bf16 %v15816_v53, %v15813_v32  ;;  %21841 = vst [vmem:[#allocation53_spill] sm:$0xff] %v15882_v1 }
  0x61   : > { %v1183_v50 = vrot.slane %v779_v23, 1  ;;  %v1220_v0 = vrot.slane %v779_v23, 2 }
  0x62   : > { %14553 = vrot.lane.b32.xlu0 %v14552_v46, %s15133_s20  ;;  %v15845_v46 = vsel %vm976_vm2, %v1028_v19, %v1030_v61  ;;  %v14582_v19 = vpack.i.bf16 %v15865_v45, %v15862_v44  ;;  %v15871_v61 = vsel %vm976_vm2, %v1037_v4, %v1038_v28  ;;  %v21843_v4 = vrot.slane %v15573_v49, 2 }
  0x63   : > { %14558 = vrot.lane.b32.xlu1 %v14557_v39, %s15133_s20  ;;  %v15851_v23 = vsel %vm976_vm2, %v1218_v8, %v1220_v0  ;;  %v14577_v21 = vpack.i.bf16 %v15845_v46, %v15842_v10  ;;  %v15876_v8 = vsel %vm976_vm2, %v1038_v28, %v21840_v36  ;;  %v15885_v34 = vsel %vm810_vm1, %v1181_v26, %v1183_v50 }
  0x64   : > { %21839 = vst [vmem:[#allocation52_spill] sm:$0xff] %v15851_v23  ;;  %v14587_v51 = vpack.i.bf16 %v15876_v8, %v15871_v61  ;;  %21842 = vst [vmem:[#allocation54_spill] sm:$0xff] %v15885_v34  ;;  %v15893_v54 = vsel %vm976_vm2, %v1043_v57, %v21843_v4  ;;  %v1047_v28 = vrot.slane %v15580_v27, 2  ;;  %v1048_v0 = vrot.slane %v15586_v56, 2 }
  0x65   : > { %v21844_v49 = vrot.slane %v15635_v35, 2 }
  0x66   : > { %14563 = vrot.lane.b32.xlu0 %v14562_v5, %s15133_s20  ;;  %v15888_v5 = vsel %vm976_vm2, %v1042_v63, %v1043_v57  ;;  %v14597_v63 = vpack.i.bf16 %v15885_v34, %v15882_v1  ;;  %v15904_v26 = vsel %vm976_vm2, %v1047_v28, %v1048_v0  ;;  %v21845_v1 = vld [vmem:[#allocation4_spill] sm:$0xff] }
  0x67   : > { %14568 = vrot.lane.b32.xlu1 %v14567_v6, %s15133_s20  ;;  %v14592_v41 = vpack.i.bf16 %v15893_v54, %v15888_v5  ;;  %v15909_v57 = vsel %vm976_vm2, %v1048_v0, %v21844_v49  ;;  %v14607_v6 = vpack.i.bf16 %v15851_v23, %v15848_v37 }
  0x68   : > { %v14602_v50 = vpack.i.bf16 %v15909_v57, %v15904_v26 }
  0x6a   : > { %14573 = vrot.lane.b32.xlu0 %v14572_v7, %s15133_s20 }
  0x6b   : > { %14578 = vrot.lane.b32.xlu1 %v14577_v21, %s15133_s20 }
  0x6e   : > { %14583 = vrot.lane.b32.xlu0 %v14582_v19, %s15133_s20 }
  0x6f   : > { %14588 = vrot.lane.b32.xlu1 %v14587_v51, %s15133_s20 }
  0x72   : > { %14593 = vrot.lane.b32.xlu0 %v14592_v41, %s15133_s20 }
  0x73   : > { %14598 = vrot.lane.b32.xlu1 %v14597_v63, %s15133_s20 }
  0x76   : > { %14603 = vrot.lane.b32.xlu0 %v14602_v50, %s15133_s20 }
  0x77   : > { %14608 = vrot.lane.b32.xlu1 %v14607_v6, %s15133_s20 }
  0x8c   : > { %v14374_v7 = vpop.permute.xlu0 %14373 }
  0x8d   : > { %v14376_v35 = vunpack.i.h.bf16 %v14374_v7  ;;  %v14375_v21 = vunpack.i.l.bf16 %v14374_v7  ;;  %v14384_v19 = vpop.permute.xlu1 %14383 }
  0x8e   : > { %v14386_v36 = vunpack.i.h.bf16 %v14384_v19  ;;  %v14385_v51 = vunpack.i.l.bf16 %v14384_v19 }
  0x8f   : > { %v1357_v4 = vsel %vm1326_vm3, %v15712_v33, %v14375_v21  ;;  %v1358_v28 = vsel %vm1326_vm3, %v15715_v60, %v14376_v35 }
  0x90   : > { %v1424_v0 = vpack.c.bf16 %v1358_v28, %v1357_v4  ;;  %v1359_v41 = vsel %vm1326_vm3, %v15689_v25, %v14385_v51  ;;  %v1360_v63 = vsel %vm1326_vm3, %v15692_v20, %v14386_v36  ;;  %v14379_v49 = vpop.permute.xlu0 %14378  ;;  %v14871_v25 = vld [vmem:[%s21462_s1 + $0x108] sm:$0xff]  }
  0x91   : > { %v14381_v50 = vunpack.i.h.bf16 %v14379_v49  ;;  %v14380_v6 = vunpack.i.l.bf16 %v14379_v49  ;;  %v14389_v7 = vpop.permute.xlu1 %14388  ;;  %v1428_v39 = vpack.c.bf16 %v1360_v63, %v1359_v41  ;;  %v21847_v41 = vld [vmem:[#allocation3_spill] sm:$0xff] }
  0x92   : > { %1785 = vmatprep.mubr.bf16.mxu0 %v1424_v0  ;;  %v14391_v19 = vunpack.i.h.bf16 %v14389_v7  ;;  %v14390_v34 = vunpack.i.l.bf16 %v14389_v7  ;;  %v21846_v0 = vld [vmem:[#allocation23_spill] sm:$0xff] }
  0x93   : > { %v1327_v21 = vsel %vm1326_vm3, %v15257_v24, %v14380_v6  ;;  %v1328_v35 = vsel %vm1326_vm3, %v21845_v1, %v14381_v50  ;;  %v14884_v6 = vld [vmem:[%s21462_s1 + $0x110] sm:$0xff]  }
  0x94   : > { %v14394_v4 = vpop.permute.xlu0 %14393  ;;  %v15931_v28 = vpack.c.bf16 %v1328_v35, %v1327_v21  ;;  %v1329_v24 = vsel %vm1326_vm3, %v21847_v41, %v14390_v34  ;;  %v1330_v1 = vsel %vm1326_vm3, %v15242_v18, %v14391_v19  ;;  %v14889_v18 = vld [vmem:[%s21462_s1 + $0x118] sm:$0xff]  }
  0x95   : > { %v14396_v20 = vunpack.i.h.bf16 %v14394_v4  ;;  %v14395_v36 = vunpack.i.l.bf16 %v14394_v4  ;;  %v14399_v51 = vpop.permute.xlu1 %14398 }
  0x96   : > { %1786 = vmatmul.mubr.bf16.vlgmr.msra.gmra.mrb[0].mxu0 %v15931_v28  ;;  %v14401_v34 = vunpack.i.h.bf16 %v14399_v51  ;;  %v14400_v35 = vunpack.i.l.bf16 %v14399_v51 }
  0x97   : > { %14224 = vmatpush3.bf16.msra.mxu0 %v21846_v0  ;;  %1793 = vmatprep.mubr.bf16.mxu0 %v1428_v39  ;;  %v1361_v49 = vsel %vm1326_vm3, %v15712_v33, %v14395_v36  ;;  %v1362_v50 = vsel %vm1326_vm3, %v15715_v60, %v14396_v20  ;;  %v1427_v39 = vpack.c.bf16 %v1330_v1, %v1329_v24 }
  0x98   : > { %v14404_v63 = vpop.permute.xlu0 %14403  ;;  %14225 = vmatprep.subr.bf16.mxu0 %v14871_v25  ;;  %v1432_v21 = vpack.c.bf16 %v1362_v50, %v1361_v49  ;;  %v1363_v36 = vsel %vm1326_vm3, %v15724_v55, %v14400_v35  ;;  %v21848_v35 = vld [vmem:[#allocation9_spill] sm:$0xff] }
  0x99   : > { %v14409_v7 = vpop.permute.xlu1 %14408  ;;  %v14406_v0 = vunpack.i.h.bf16 %v14404_v63  ;;  %v14405_v41 = vunpack.i.l.bf16 %v14404_v63 }
  0x9a   : > { %v14411_v1 = vunpack.i.h.bf16 %v14409_v7  ;;  %v14410_v49 = vunpack.i.l.bf16 %v14409_v7 }
  0x9b   : > { %14226 = vmatpush3.bf16.msra.mxu0 %v14871_v25  ;;  %v1364_v25 = vsel %vm1326_vm3, %v15731_v47, %v14401_v34  ;;  %v1331_v34 = vsel %vm1326_vm3, %v15295_v48, %v14405_v41  ;;  %v1332_v37 = vsel %vm1326_vm3, %v21848_v35, %v14406_v0 }
  0x9c   : > { %v14414_v4 = vpop.permute.xlu0 %14413  ;;  %14227 = vmatprep.subr.bf16.mxu0 %v14884_v6  ;;  %v1436_v24 = vpack.c.bf16 %v1364_v25, %v1363_v36  ;;  %v1366_v36 = vsel %vm1326_vm3, %v15751_v16, %v14411_v1  ;;  %v15979_v0 = vpack.c.bf16 %v1332_v37, %v1331_v34  ;;  %v14873_v1 = vld [vmem:[%s21462_s1 + $0x80] sm:$0xff]  }
  0x9d   : > { %v15952_v19 = vpop.permute.xlu1 %14418  ;;  %v14416_v41 = vunpack.i.h.bf16 %v14414_v4  ;;  %v14415_v35 = vunpack.i.l.bf16 %v14414_v4 }
  0x9e   : > { %1794 = vmatmul.mubr.bf16.gmra.mrb[4].mxu0 %v1427_v39 }
  0x9f   : > { %1801 = vmatprep.mubr.bf16.mxu0 %v1432_v21  ;;  %14228 = vmatpush3.bf16.msra.mxu0 %v14884_v6 }
  0xa0   : > { %v15954_v20 = vpop.permute.xlu0 %14423  ;;  %14229 = vmatprep.subr.bf16.mxu0 %v14889_v18 }
  0xa1   : > { %v15960_v51 = vpop.permute.xlu1 %14428 }
  0xa3   : > { %14230 = vmatpush3.bf16.msra.mxu0 %v14889_v18  ;;  %v1365_v18 = vsel %vm1326_vm3, %v15748_v30, %v14410_v49 }
  0xa4   : > { %v15962_v50 = vpop.permute.xlu0 %14433  ;;  %v1440_v49 = vpack.c.bf16 %v1366_v36, %v1365_v18  ;;  %v1333_v18 = vsel %vm1326_vm3, %v15312_v59, %v14415_v35  ;;  %v1334_v36 = vsel %vm1326_vm3, %v15309_v58, %v14416_v41 }
  0xa5   : > { %v14439_v6 = vpop.permute.xlu1 %14438 }
  0xa6   : > { %1802 = vmatmul.mubr.bf16.gmra.mrb[8].mxu0 %v15931_v28  ;;  %v14441_v39 = vunpack.i.h.bf16 %v14439_v6  ;;  %v14440_v21 = vunpack.i.l.bf16 %v14439_v6 }
  0xa7   : > { %1809 = vmatprep.mubr.bf16.mxu0 %v1436_v24 }
  0xa8   : > { %v14444_v23 = vpop.permute.xlu0 %14443  ;;  %v1381_v63 = vsel %vm1326_vm3, %v15862_v44, %v14440_v21  ;;  %v1382_v7 = vsel %vm1326_vm3, %v15865_v45, %v14441_v39 }
  0xa9   : > { %v14446_v25 = vunpack.i.h.bf16 %v14444_v23  ;;  %v14445_v24 = vunpack.i.l.bf16 %v14444_v23  ;;  %v15977_v6 = vpop.permute.xlu1 %14448  ;;  %v1472_v48 = vpack.c.bf16 %v1382_v7, %v1381_v63  ;;  %v14421_v23 = vunpack.i.h.bf16 %v15952_v19 }
  0xaa   : > { %v14420_v63 = vunpack.i.l.bf16 %v15952_v19  ;;  %v14875_v19 = vld [vmem:[%s21462_s1 + $0x88] sm:$0xff]  }
  0xab   : > { %1881 = vmatprep.mubr.bf16.mxu1 %v1472_v48  ;;  %v1349_v21 = vsel %vm1326_vm3, %v15456_v42, %v14445_v24  ;;  %v1350_v39 = vsel %vm1326_vm3, %v15461_v52, %v14446_v25  ;;  %v14874_v42 = vld [vmem:[%s21462_s1 + $0xc8] sm:$0xff]   ;;  %v1368_v59 = vsel %vm1326_vm3, %v15759_v31, %v14421_v23  ;;  %v14877_v23 = vld [vmem:[%s21462_s1 + $0x90] sm:$0xff]  }
  0xac   : > { %v15990_v7 = vpop.permute.xlu0 %14453  ;;  %v15992_v37 = vpack.c.bf16 %v1350_v39, %v1349_v21  ;;  %v14876_v21 = vld [vmem:[%s21462_s1 + $0xd0] sm:$0xff]   ;;  %v1367_v39 = vsel %vm1326_vm3, %v15756_v40, %v14420_v63 }
  0xad   : > { %v14459_v4 = vpop.permute.xlu1 %14458 }
  0xae   : > { %1810 = vmatmul.mubr.bf16.gmra.mrb[12].mxu0 %v15979_v0  ;;  %1882 = vmatmul.mubr.bf16.vlgmr.msra.gmra.mrb[0].mxu1 %v15992_v37  ;;  %v14461_v52 = vunpack.i.h.bf16 %v14459_v4  ;;  %v14460_v34 = vunpack.i.l.bf16 %v14459_v4  ;;  %v14425_v4 = vunpack.i.l.bf16 %v15954_v20 }
  0xaf   : > { %13828 = vmatpush3.bf16.msra.mxu1 %v14873_v1  ;;  %1817 = vmatprep.mubr.bf16.mxu0 %v1440_v49  ;;  %v14426_v49 = vunpack.i.h.bf16 %v15954_v20 }
  0xb0   : > { %v14464_v25 = vpop.permute.xlu0 %14463  ;;  %13829 = vmatprep.subr.bf16.mxu1 %v14874_v42  ;;  %v1383_v24 = vsel %vm1326_vm3, %v15871_v61, %v14460_v34  ;;  %v1384_v48 = vsel %vm1326_vm3, %v15876_v8, %v14461_v52  ;;  %v16020_v42 = vpack.c.bf16 %v1334_v36, %v1333_v18  ;;  %v1444_v34 = vpack.c.bf16 %v1368_v59, %v1367_v39 }
  0xb1   : > { %v14466_v35 = vunpack.i.h.bf16 %v14464_v25  ;;  %v14465_v58 = vunpack.i.l.bf16 %v14464_v25  ;;  %v16017_v41 = vpop.permute.xlu1 %14468  ;;  %v1476_v1 = vpack.c.bf16 %v1384_v48, %v1383_v24  ;;  %v14431_v25 = vunpack.i.h.bf16 %v15960_v51 }
  0xb2   : > { %v14430_v18 = vunpack.i.l.bf16 %v15960_v51  ;;  %v14879_v51 = vld [vmem:[%s21462_s1 + $0x98] sm:$0xff]   ;;  %v1335_v48 = vsel %vm1326_vm3, %v15344_v12, %v14425_v4 }
  0xb3   : > { %13830 = vmatpush3.bf16.msra.mxu1 %v14875_v19  ;;  %1889 = vmatprep.mubr.bf16.mxu1 %v1476_v1  ;;  %v1351_v52 = vsel %vm1326_vm3, %v15439_v22, %v14465_v58  ;;  %v1352_v63 = vsel %vm1326_vm3, %v15444_v29, %v14466_v35  ;;  %v14878_v22 = vld [vmem:[%s21462_s1 + $0xd8] sm:$0xff]   ;;  %v14880_v58 = vld [vmem:[%s21462_s1 + $0xe0] sm:$0xff]   ;;  %v1370_v12 = vsel %vm1326_vm3, %v15781_v2, %v14431_v25 }
  0xb4   : > { %v16032_v36 = vpop.permute.xlu0 %14473  ;;  %v16034_v20 = vpack.c.bf16 %v1352_v63, %v1351_v52  ;;  %13831 = vmatprep.subr.bf16.mxu1 %v14876_v21  ;;  %v1336_v21 = vsel %vm1326_vm3, %v15341_v11, %v14426_v49  ;;  %v1369_v1 = vsel %vm1326_vm3, %v15778_v9, %v14430_v18  ;;  %v14436_v63 = vunpack.i.h.bf16 %v15962_v50  ;;  %v14881_v25 = vld [vmem:[%s21462_s1 + $0xa0] sm:$0xff]  }
  0xb5   : > { %v14479_v19 = vpop.permute.xlu1 %14478 }
  0xb6   : > { %1818 = vmatmul.mubr.bf16.gmra.mrb[16].mxu0 %v16020_v42  ;;  %1890 = vmatmul.mubr.bf16.gmra.mrb[4].mxu1 %v16034_v20  ;;  %v14481_v29 = vunpack.i.h.bf16 %v14479_v19  ;;  %v14480_v24 = vunpack.i.l.bf16 %v14479_v19  ;;  %v1448_v19 = vpack.c.bf16 %v1370_v12, %v1369_v1 }
  0xb7   : > { %13832 = vmatpush3.bf16.msra.mxu1 %v14877_v23  ;;  %1825 = vmatprep.mubr.bf16.mxu0 %v1444_v34  ;;  %v16062_v23 = vpack.c.bf16 %v1336_v21, %v1335_v48  ;;  %v14435_v34 = vunpack.i.l.bf16 %v15962_v50  ;;  %v14882_v50 = vld [vmem:[%s21462_s1 + $0xe8] sm:$0xff]  }
  0xb8   : > { %v14484_v39 = vpop.permute.xlu0 %14483  ;;  %13833 = vmatprep.subr.bf16.mxu1 %v14878_v22  ;;  %v1385_v59 = vsel %vm1326_vm3, %v15888_v5, %v14480_v24  ;;  %v1386_v35 = vsel %vm1326_vm3, %v15893_v54, %v14481_v29  ;;  %v14450_v29 = vunpack.i.l.bf16 %v15977_v6 }
  0xb9   : > { %v14486_v4 = vunpack.i.h.bf16 %v14484_v39  ;;  %v14485_v11 = vunpack.i.l.bf16 %v14484_v39  ;;  %v16059_v49 = vpop.permute.xlu1 %14488  ;;  %v1480_v52 = vpack.c.bf16 %v1386_v35, %v1385_v59  ;;  %v14883_v39 = vld [vmem:[%s21462_s1 + $0xa8] sm:$0xff]   ;;  %v21849_v59 = vld [vmem:[#allocation14_spill] sm:$0xff] }
  0xba   : > { %v1337_v35 = vsel %vm1326_vm3, %v21849_v59, %v14435_v34 }
  0xbb   : > { %13834 = vmatpush3.bf16.msra.mxu1 %v14879_v51  ;;  %1897 = vmatprep.mubr.bf16.mxu1 %v1480_v52  ;;  %v1353_v22 = vsel %vm1326_vm3, %v15526_v14, %v14485_v11  ;;  %v1354_v18 = vsel %vm1326_vm3, %v15534_v17, %v14486_v4  ;;  %v14451_v14 = vunpack.i.h.bf16 %v15977_v6  ;;  %v14885_v4 = vld [vmem:[%s21462_s1 + $0xf0] sm:$0xff]   ;;  %v1371_v11 = vsel %vm1326_vm3, %v15787_v3, %v14450_v29 }
  0xbc   : > { %v16073_v24 = vpop.permute.xlu0 %14493  ;;  %v16075_v48 = vpack.c.bf16 %v1354_v18, %v1353_v22  ;;  %13835 = vmatprep.subr.bf16.mxu1 %v14880_v58  ;;  %v1338_v58 = vsel %vm1326_vm3, %v15378_v38, %v14436_v63  ;;  %v21850_v63 = vld [vmem:[#allocation50_spill] sm:$0xff] }
  0xbd   : > { %v14499_v51 = vpop.permute.xlu1 %14498  ;;  %v1372_v18 = vsel %vm1326_vm3, %v21850_v63, %v14451_v14  ;;  %v14886_v14 = vld [vmem:[%s21462_s1 + $0xb0] sm:$0xff]  }
  0xbe   : > { %1826 = vmatmul.mubr.bf16.gmra.mrb[20].mxu0 %v16062_v23  ;;  %1898 = vmatmul.mubr.bf16.gmra.mrb[8].mxu1 %v16075_v48  ;;  %v14501_v17 = vunpack.i.h.bf16 %v14499_v51  ;;  %v14500_v21 = vunpack.i.l.bf16 %v14499_v51  ;;  %v14470_v51 = vunpack.i.l.bf16 %v16017_v41 }
  0xbf   : > { %13836 = vmatpush3.bf16.msra.mxu1 %v14881_v25  ;;  %1833 = vmatprep.mubr.bf16.mxu0 %v1448_v19  ;;  %v14456_v25 = vunpack.i.h.bf16 %v15990_v7  ;;  %v16104_v19 = vpack.c.bf16 %v1338_v58, %v1337_v35  ;;  %v1452_v35 = vpack.c.bf16 %v1372_v18, %v1371_v11 }
  0xc0   : > { %v14504_v6 = vpop.permute.xlu0 %14503  ;;  %13837 = vmatprep.subr.bf16.mxu1 %v14882_v50  ;;  %v1387_v1 = vsel %vm1326_vm3, %v15904_v26, %v14500_v21  ;;  %v1388_v12 = vsel %vm1326_vm3, %v15909_v57, %v14501_v17  ;;  %v14455_v50 = vunpack.i.l.bf16 %v15990_v7  ;;  %v14471_v21 = vunpack.i.h.bf16 %v16017_v41  ;;  %v14888_v41 = vld [vmem:[%s21462_s1 + $0xb8] sm:$0xff]  }
  0xc1   : > { %v14506_v52 = vunpack.i.h.bf16 %v14504_v6  ;;  %v14505_v34 = vunpack.i.l.bf16 %v14504_v6  ;;  %v16099_v22 = vpop.permute.xlu1 %14508  ;;  %v1484_v38 = vpack.c.bf16 %v1388_v12, %v1387_v1  ;;  %v21851_v6 = vld [vmem:[#allocation17_spill] sm:$0xff]  ;;  %v21852_v12 = vld [vmem:[#allocation18_spill] sm:$0xff]  ;;  %v1373_v11 = vsel %vm1326_vm3, %v15806_v13, %v14470_v51 }
  0xc2   : > { %v1339_v1 = vsel %vm1326_vm3, %v21851_v6, %v14455_v50  ;;  %v14475_v50 = vunpack.i.l.bf16 %v16032_v36  ;;  %v14476_v51 = vunpack.i.h.bf16 %v16032_v36 }
  0xc3   : > { %13838 = vmatpush3.bf16.msra.mxu1 %v14883_v39  ;;  %1905 = vmatprep.mubr.bf16.mxu1 %v1484_v38  ;;  %v1355_v29 = vsel %vm1326_vm3, %v15580_v27, %v14505_v34  ;;  %v1356_v17 = vsel %vm1326_vm3, %v15586_v56, %v14506_v52  ;;  %v14887_v39 = vld [vmem:[%s21462_s1 + $0xf8] sm:$0xff]   ;;  %v21853_v52 = vld [vmem:[#allocation8_spill] sm:$0xff]  ;;  %v21854_v38 = vld [vmem:[#allocation7_spill] sm:$0xff] }
  0xc4   : > { %v16116_v59 = vpack.c.bf16 %v1356_v17, %v1355_v29  ;;  %13839 = vmatprep.subr.bf16.mxu1 %v14885_v4  ;;  %v16118_v7 = vpop.permute.xlu0 %14513  ;;  %v1340_v4 = vsel %vm1326_vm3, %v21852_v12, %v14456_v25  ;;  %v1374_v29 = vsel %vm1326_vm3, %v15810_v43, %v14471_v21  ;;  %v21855_v21 = vld [vmem:[#allocation21_spill] sm:$0xff]  ;;  %v21856_v12 = vld [vmem:[#allocation22_spill] sm:$0xff] }
  0xc5   : > { %v14519_v27 = vpop.permute.xlu1 %14518  ;;  %v16144_v25 = vpack.c.bf16 %v1340_v4, %v1339_v1  ;;  %v1341_v1 = vsel %vm1326_vm3, %v21855_v21, %v14475_v50  ;;  %v1342_v36 = vsel %vm1326_vm3, %v21856_v12, %v14476_v51  ;;  %v14496_v50 = vunpack.i.h.bf16 %v16073_v24  ;;  %v21862_v12 = vld [vmem:[#allocation11_spill] sm:$0xff] }
  0xc6   : > { %1834 = vmatmul.mubr.bf16.gmra.mrb[24].mxu0 %v16104_v19  ;;  %1906 = vmatmul.mubr.bf16.gmra.mrb[12].mxu1 %v16116_v59  ;;  %v14521_v56 = vunpack.i.h.bf16 %v14519_v27  ;;  %v14520_v58 = vunpack.i.l.bf16 %v14519_v27  ;;  %v1456_v27 = vpack.c.bf16 %v1374_v29, %v1373_v11  ;;  %v21858_v11 = vld [vmem:[#allocation6_spill] sm:$0xff] }
  0xc7   : > { %13840 = vmatpush3.bf16.msra.mxu1 %v14886_v14  ;;  %1946 = vmatprep.mubr.bf16.mxu1 %v15931_v28 }
  0xc8   : > { %v1390_v34 = vsel %vm1326_vm3, %v21853_v52, %v14521_v56  ;;  %v1389_v18 = vsel %vm1326_vm3, %v21854_v38, %v14520_v58  ;;  %13841 = vmatprep.subr.bf16.mxu1 %v14887_v39  ;;  %v16139_v28 = vpop.permute.xlu0 %14523  ;;  %1841 = vmatprep.mubr.bf16.mxu0 %v1452_v35  ;;  %v14491_v56 = vunpack.i.h.bf16 %v16059_v49  ;;  %v14490_v39 = vunpack.i.l.bf16 %v16059_v49 }
  0xc9   : > { %v1425_v17 = vpack.c.bf16 %v1390_v34, %v1389_v18  ;;  %v16146_v14 = vpop.permute.xlu1 %14528  ;;  %v14495_v18 = vunpack.i.l.bf16 %v16073_v24  ;;  %v21861_v24 = vld [vmem:[#allocation10_spill] sm:$0xff] }
  0xca   : > { %v1375_v34 = vsel %vm1326_vm3, %v15813_v32, %v14490_v39  ;;  %v1376_v38 = vsel %vm1326_vm3, %v15816_v53, %v14491_v56  ;;  %v21859_v39 = vld [vmem:[#allocation31_spill] sm:$0xff] }
  0xcb   : > { %13842 = vmatpush3.bf16.msra.mxu1 %v14888_v41  ;;  %v21857_v41 = vld [vmem:[#allocation5_spill] sm:$0xff]  ;;  %v1343_v56 = vsel %vm1326_vm3, %v21859_v39, %v14495_v18 }
  0xcc   : > { %v14534_v58 = vpop.permute.xlu0 %14533  ;;  %v21866_v39 = vld [vmem:[#allocation13_spill] sm:$0xff] }
  0xcd   : > { %v14536_v35 = vunpack.i.h.bf16 %v14534_v58  ;;  %v14535_v6 = vunpack.i.l.bf16 %v14534_v58  ;;  %v14539_v52 = vpop.permute.xlu1 %14538  ;;  %v14511_v58 = vunpack.i.h.bf16 %v16099_v22 }
  0xce   : > { %1842 = vmatmul.mubr.bf16.gmra.mrb[28].mxu0 %v16144_v25  ;;  %1947 = vmatmul.mubr.bf16.vlgmr.msra.gmra.mrb[16].mxu1 %v1425_v17  ;;  %v14541_v17 = vunpack.i.h.bf16 %v14539_v52  ;;  %v14540_v51 = vunpack.i.l.bf16 %v14539_v52  ;;  %v14516_v52 = vunpack.i.h.bf16 %v16118_v7 }
  0xcf   : > { %1954 = vmatprep.mubr.bf16.mxu1 %v15979_v0  ;;  %1849 = vmatprep.mubr.bf16.mxu0 %v1456_v27  ;;  %v1391_v4 = vsel %vm1326_vm3, %v21857_v41, %v14535_v6  ;;  %v1392_v49 = vsel %vm1326_vm3, %v21858_v11, %v14536_v35  ;;  %v16166_v0 = vpack.c.bf16 %v1342_v36, %v1341_v1  ;;  %v14510_v35 = vunpack.i.l.bf16 %v16099_v22  ;;  %v21860_v6 = vld [vmem:[#allocation30_spill] sm:$0xff] }
  0xd0   : > { %v1429_v29 = vpack.c.bf16 %v1392_v49, %v1391_v4  ;;  %v1460_v27 = vpack.c.bf16 %v1376_v38, %v1375_v34  ;;  %v1344_v21 = vsel %vm1326_vm3, %v21860_v6, %v14496_v50  ;;  %v1393_v1 = vsel %vm1326_vm3, %v21861_v24, %v14540_v51  ;;  %v14544_v41 = vpop.permute.xlu0 %14543 }
  0xd1   : > { %v1394_v36 = vsel %vm1326_vm3, %v21862_v12, %v14541_v17  ;;  %v1377_v22 = vsel %vm1326_vm3, %v15836_v62, %v14510_v35  ;;  %v1378_v4 = vsel %vm1326_vm3, %v15839_v15, %v14511_v58  ;;  %v14515_v11 = vunpack.i.l.bf16 %v16118_v7  ;;  %v21863_v17 = vld [vmem:[#allocation36_spill] sm:$0xff]  ;;  %v14549_v6 = vpop.permute.xlu1 %14548 }
  0xd2   : > { %v1433_v49 = vpack.c.bf16 %v1394_v36, %v1393_v1  ;;  %v14546_v34 = vunpack.i.h.bf16 %v14544_v41  ;;  %v14545_v38 = vunpack.i.l.bf16 %v14544_v41  ;;  %v1464_v18 = vpack.c.bf16 %v1378_v4, %v1377_v22  ;;  %v21865_v7 = vld [vmem:[#allocation12_spill] sm:$0xff] }
  0xd3   : > { %v14525_v50 = vunpack.i.l.bf16 %v16139_v28  ;;  %v1345_v51 = vsel %vm1326_vm3, %v21863_v17, %v14515_v11  ;;  %v14530_v24 = vunpack.i.l.bf16 %v16146_v14  ;;  %v14531_v12 = vunpack.i.h.bf16 %v16146_v14  ;;  %v21867_v4 = vld [vmem:[#allocation44_spill] sm:$0xff] }
  0xd4   : > { %v1395_v35 = vsel %vm1326_vm3, %v21865_v7, %v14545_v38  ;;  %v14551_v36 = vunpack.i.h.bf16 %v14549_v6  ;;  %v14550_v41 = vunpack.i.l.bf16 %v14549_v6  ;;  %v1431_v6 = vpack.c.bf16 %v15731_v47, %v15724_v55 }
  0xd5   : > { %v1347_v11 = vsel %vm1326_vm3, %v21867_v4, %v14530_v24  ;;  %v21876_v4 = vld [vmem:[#allocation33_spill] sm:$0xff] }
  0xd6   : > { %1850 = vmatmul.mubr.bf16.gmra.mrb[32].mxu0 %v16166_v0  ;;  %1955 = vmatmul.mubr.bf16.gmra.mrb[20].mxu1 %v1429_v29  ;;  %v14526_v29 = vunpack.i.h.bf16 %v16139_v28  ;;  %v1379_v28 = vsel %vm1326_vm3, %v15842_v10, %v14525_v50 }
  0xd7   : > { %1962 = vmatprep.mubr.bf16.mxu1 %v16020_v42  ;;  %1857 = vmatprep.mubr.bf16.mxu0 %v1460_v27  ;;  %v16186_v42 = vpack.c.bf16 %v1344_v21, %v1343_v56  ;;  %v21864_v27 = vld [vmem:[#allocation37_spill] sm:$0xff]  ;;  %v1396_v56 = vsel %vm1326_vm3, %v21866_v39, %v14546_v34  ;;  %v21869_v34 = vld [vmem:[#allocation15_spill] sm:$0xff] }
  0xd8   : > { %v1346_v58 = vsel %vm1326_vm3, %v21864_v27, %v14516_v52  ;;  %v1380_v21 = vsel %vm1326_vm3, %v15845_v46, %v14526_v29  ;;  %v1437_v1 = vpack.c.bf16 %v1396_v56, %v1395_v35  ;;  %v1397_v38 = vsel %vm1326_vm3, %v21869_v34, %v14550_v41  ;;  %v14554_v29 = vpop.permute.xlu0 %14553  ;;  %v21872_v35 = vld [vmem:[#allocation20_spill] sm:$0xff]  ;;  %v14559_v56 = vpop.permute.xlu1 %14558 }
  0xd9   : > { %v1468_v22 = vpack.c.bf16 %v1380_v21, %v1379_v28  ;;  %v14555_v27 = vunpack.i.l.bf16 %v14554_v29  ;;  %v14561_v21 = vunpack.i.h.bf16 %v14559_v56  ;;  %v14560_v24 = vunpack.i.l.bf16 %v14559_v56 }
  0xdc   : > { %v14564_v55 = vpop.permute.xlu0 %14563 }
  0xdd   : > { %v14566_v41 = vunpack.i.h.bf16 %v14564_v55 }
  0xde   : > { %1858 = vmatmul.mubr.bf16.gmra.mrb[36].mxu0 %v16186_v42  ;;  %1963 = vmatmul.mubr.bf16.gmra.mrb[24].mxu1 %v1433_v49  ;;  %v21868_v49 = vld [vmem:[#allocation45_spill] sm:$0xff] }
  0xdf   : > { %1970 = vmatprep.mubr.bf16.mxu1 %v16062_v23  ;;  %1865 = vmatprep.mubr.bf16.mxu0 %v1464_v18  ;;  %v1458_v23 = vpack.c.bf16 %v1346_v58, %v1345_v51  ;;  %v1348_v52 = vsel %vm1326_vm3, %v21868_v49, %v14531_v12  ;;  %v21870_v18 = vld [vmem:[#allocation16_spill] sm:$0xff]  ;;  %v14556_v51 = vunpack.i.h.bf16 %v14554_v29  ;;  %v1426_v58 = vpack.c.bf16 %v15715_v60, %v15712_v33  ;;  %v21873_v60 = vld [vmem:[#allocation26_spill] sm:$0xff]  ;;  %v14569_v49 = vpop.permute.xlu1 %14568 }
  0xe0   : > { %v1398_v14 = vsel %vm1326_vm3, %v21870_v18, %v14551_v36  ;;  %v1462_v50 = vpack.c.bf16 %v1348_v52, %v1347_v11  ;;  %v1435_v33 = vpack.c.bf16 %v15751_v16, %v15748_v30  ;;  %v1439_v36 = vpack.c.bf16 %v15759_v31, %v15756_v40 }
  0xe1   : > { %v1441_v17 = vpack.c.bf16 %v1398_v14, %v1397_v38  ;;  %v1400_v39 = vsel %vm1326_vm3, %v21872_v35, %v14556_v51  ;;  %v14565_v16 = vunpack.i.l.bf16 %v14564_v55  ;;  %v1443_v30 = vpack.c.bf16 %v15781_v2, %v15778_v9  ;;  %v21878_v38 = vld [vmem:[#allocation39_spill] sm:$0xff]  ;;  %v14574_v14 = vpop.permute.xlu0 %14573  ;;  %v21882_v35 = vld [vmem:[#allocation49_spill] sm:$0xff] }
  0xe2   : > { %v1404_v11 = vsel %vm1326_vm3, %v21876_v4, %v14566_v41  ;;  %v1447_v31 = vpack.c.bf16 %v21850_v63, %v15787_v3  ;;  %v14571_v52 = vunpack.i.h.bf16 %v14569_v49  ;;  %v14570_v2 = vunpack.i.l.bf16 %v14569_v49  ;;  %v21880_v51 = vld [vmem:[#allocation47_spill] sm:$0xff] }
  0xe3   : > { %v1451_v9 = vpack.c.bf16 %v15810_v43, %v15806_v13  ;;  %v1455_v3 = vpack.c.bf16 %v15816_v53, %v15813_v32  ;;  %v14576_v63 = vunpack.i.h.bf16 %v14574_v14  ;;  %v1459_v13 = vpack.c.bf16 %v15839_v15, %v15836_v62  ;;  %v21879_v43 = vld [vmem:[#allocation46_spill] sm:$0xff]  ;;  %v21888_v55 = vld [vmem:[#allocation51_spill] sm:$0xff] }
  0xe4   : > { %v1406_v18 = vsel %vm1326_vm3, %v21878_v38, %v14571_v52  ;;  %v1463_v32 = vpack.c.bf16 %v15845_v46, %v15842_v10  ;;  %v1467_v62 = vpack.c.bf16 %v15865_v45, %v15862_v44  ;;  %v1471_v46 = vpack.c.bf16 %v15876_v8, %v15871_v61  ;;  %v21891_v4 = vld [vmem:[#allocation35_spill] sm:$0xff]  ;;  %v21893_v52 = vld [vmem:[#allocation41_spill] sm:$0xff] }
  0xe5   : > { %v14584_v56 = vpop.permute.xlu0 %14583  ;;  %v1479_v8 = vpack.c.bf16 %v15909_v57, %v15904_v26 }
  0xe6   : > { %1866 = vmatmul.mubr.bf16.gmra.mrb[40].mxu0 %v1458_v23  ;;  %1971 = vmatmul.mubr.bf16.gmra.mrb[28].mxu1 %v1437_v1  ;;  %v21874_v1 = vld [vmem:[#allocation27_spill] sm:$0xff]  ;;  %v14586_v44 = vunpack.i.h.bf16 %v14584_v56  ;;  %v14585_v45 = vunpack.i.l.bf16 %v14584_v56 }
  0xe7   : > { %1978 = vmatprep.mubr.bf16.mxu1 %v16104_v19  ;;  %1873 = vmatprep.mubr.bf16.mxu0 %v1468_v22  ;;  %v21871_v19 = vld [vmem:[#allocation19_spill] sm:$0xff]  ;;  %v1402_v12 = vsel %vm1326_vm3, %v21874_v1, %v14561_v21  ;;  %v21884_v21 = vld [vmem:[#allocation25_spill] sm:$0xff] }
  0xe8   : > { %v1399_v7 = vsel %vm1326_vm3, %v21871_v19, %v14555_v27  ;;  %v1408_v27 = vsel %vm1326_vm3, %v21880_v51, %v14576_v63 }
  0xe9   : > { %v1445_v28 = vpack.c.bf16 %v1400_v39, %v1399_v7 }
  0xee   : > { %1874 = vmatmul.mubr.bf16.gmra.mrb[44].mxu0 %v1462_v50  ;;  %1979 = vmatmul.mubr.bf16.gmra.mrb[32].mxu1 %v1441_v17  ;;  %v14575_v17 = vunpack.i.l.bf16 %v14574_v14 }
  0xef   : > { %1986 = vmatprep.mubr.bf16.mxu1 %v16144_v25  ;;  %14231 = vmatprep.mubr.msk.bf16.mxu0 %vm1326_vm3, %v1426_v58  ;;  %v1401_v25 = vsel %vm1326_vm3, %v21873_v60, %v14560_v24  ;;  %v14579_v58 = vpop.permute.xlu1 %14578  ;;  %v1412_v24 = vsel %vm1326_vm3, %v21884_v21, %v14586_v44 }
  0xf0   : > { %v1449_v47 = vpack.c.bf16 %v1402_v12, %v1401_v25  ;;  %v14581_v15 = vunpack.i.h.bf16 %v14579_v58  ;;  %v14580_v53 = vunpack.i.l.bf16 %v14579_v58  ;;  %v21886_v25 = vld [vmem:[#allocation29_spill] sm:$0xff]  ;;  %v21887_v12 = vld [vmem:[#allocation52_spill] sm:$0xff] }
  0xf2   : > { %v1410_v39 = vsel %vm1326_vm3, %v21882_v35, %v14581_v15  ;;  %v14893_v15 = vld [vmem:[%s21464_s3 + $0x8] sm:$0xff]  }
  0xf6   : > { %1987 = vmatmul.mubr.bf16.gmra.mrb[36].mxu1 %v1445_v28  ;;  %14232 = vmatmul.mubr.msk.bf16.vlgmr.msra.gmra.mrb[48].mxu0 %vm1326_vm3, %v1431_v6  ;;  %v1475_v6 = vpack.c.bf16 %v15893_v54, %v15888_v5  ;;  %v21885_v54 = vld [vmem:[#allocation28_spill] sm:$0xff] }
  0xf7   : > { %1994 = vmatprep.mubr.bf16.mxu1 %v16166_v0  ;;  %14235 = vmatprep.mubr.msk.bf16.mxu0 %vm1326_vm3, %v1435_v33  ;;  %v21875_v0 = vld [vmem:[#allocation32_spill] sm:$0xff]  ;;  %v14589_v33 = vpop.permute.xlu1 %14588 }
  0xf8   : > { %v1403_v22 = vsel %vm1326_vm3, %v21875_v0, %v14565_v16  ;;  %v14591_v60 = vunpack.i.h.bf16 %v14589_v33  ;;  %v14590_v5 = vunpack.i.l.bf16 %v14589_v33 }
  0xf9   : > { %v1453_v40 = vpack.c.bf16 %v1404_v11, %v1403_v22 }
  0xfa   : > { %v1414_v1 = vsel %vm1326_vm3, %v21886_v25, %v14591_v60 }
  0xfb   : > { %v14599_v26 = vpop.permute.xlu1 %14598 }
  0xfc   : > { %v14600_v0 = vunpack.i.l.bf16 %v14599_v26 }
  0xfe   : > { %1995 = vmatmul.mubr.bf16.gmra.mrb[40].mxu1 %v1449_v47  ;;  %14236 = vmatmul.mubr.msk.bf16.gmra.mrb[52].mxu0 %vm1326_vm3, %v1439_v36  ;;  %v21889_v47 = vpack.c.bf16 %v21887_v12, %v21888_v55  ;;  %v14594_v36 = vpop.permute.xlu0 %14593 }
  0xff   : > { %2002 = vmatprep.mubr.bf16.mxu1 %v16186_v42  ;;  %14239 = vmatprep.mubr.msk.bf16.mxu0 %vm1326_vm3, %v1443_v30  ;;  %v21877_v42 = vld [vmem:[#allocation38_spill] sm:$0xff]  ;;  %v14596_v41 = vunpack.i.h.bf16 %v14594_v36  ;;  %v14595_v16 = vunpack.i.l.bf16 %v14594_v36  ;;  %v14601_v30 = vunpack.i.h.bf16 %v14599_v26  ;;  %v14609_v63 = vpop.permute.xlu1 %14608 }
 0x100   : > { %v1405_v34 = vsel %vm1326_vm3, %v21877_v42, %v14570_v2 }
 0x101   : > { %v1457_v29 = vpack.c.bf16 %v1406_v18, %v1405_v34  ;;  %v1416_v11 = vsel %vm1326_vm3, %v21891_v4, %v14596_v41  ;;  %v1422_v2 = vsel %vm1326_vm3, %v21893_v52, %v14601_v30  ;;  %v21894_v18 = vld [vmem:[#allocation42_spill] sm:$0xff] }
 0x102   : > { %v14604_v49 = vpop.permute.xlu0 %14603  ;;  %v14896_v4 = vld [vmem:[%s21464_s3 + $0x58] sm:$0xff]  }
 0x103   : > { %v14606_v42 = vunpack.i.h.bf16 %v14604_v49  ;;  %v14605_v34 = vunpack.i.l.bf16 %v14604_v49 }
 0x105   : > { %v1417_v14 = vsel %vm1326_vm3, %v21894_v18, %v14605_v34 }
 0x106   : > { %2003 = vmatmul.mubr.bf16.gmra.mrb[44].mxu1 %v1453_v40  ;;  %14240 = vmatmul.mubr.msk.bf16.gmra.mrb[56].mxu0 %vm1326_vm3, %v1447_v31  ;;  %v21892_v40 = vld [vmem:[#allocation40_spill] sm:$0xff] }
 0x107   : > { %2010 = vmatprep.mubr.bf16.mxu1 %v1458_v23  ;;  %14243 = vmatprep.mubr.msk.bf16.mxu0 %vm1326_vm3, %v1451_v9  ;;  %v1407_v23 = vsel %vm1326_vm3, %v21879_v43, %v14575_v17  ;;  %v1421_v31 = vsel %vm1326_vm3, %v21892_v40, %v14600_v0  ;;  %v14610_v43 = vunpack.i.l.bf16 %v14609_v63 }
 0x108   : > { %v1461_v19 = vpack.c.bf16 %v1408_v27, %v1407_v23  ;;  %v1482_v38 = vpack.c.bf16 %v1422_v2, %v1421_v31  ;;  %v21896_v23 = vld [vmem:[#allocation53_spill] sm:$0xff]  ;;  %v21897_v27 = vld [vmem:[#allocation54_spill] sm:$0xff] }
 0x109   : > { %v1419_v51 = vsel %vm1326_vm3, %v21896_v23, %v14610_v43 }
 0x10e   : > { %2011 = vmatmul.mubr.bf16.gmra.mrb[48].mxu1 %v1457_v29  ;;  %14244 = vmatmul.mubr.msk.bf16.gmra.mrb[60].mxu0 %vm1326_vm3, %v1455_v3  ;;  %v21895_v29 = vld [vmem:[#allocation43_spill] sm:$0xff] }
 0x10f   : > { %2018 = vmatprep.mubr.bf16.mxu1 %v1462_v50  ;;  %14247 = vmatprep.mubr.msk.bf16.mxu0 %vm1326_vm3, %v1459_v13  ;;  %v21881_v50 = vld [vmem:[#allocation48_spill] sm:$0xff]  ;;  %v1418_v3 = vsel %vm1326_vm3, %v21895_v29, %v14606_v42  ;;  %v14611_v13 = vunpack.i.h.bf16 %v14609_v63 }
 0x110   : > { %v1409_v7 = vsel %vm1326_vm3, %v21881_v50, %v14580_v53  ;;  %v1481_v17 = vpack.c.bf16 %v1418_v3, %v1417_v14 }
 0x111   : > { %v1465_v10 = vpack.c.bf16 %v1410_v39, %v1409_v7  ;;  %v1420_v58 = vsel %vm1326_vm3, %v21897_v27, %v14611_v13 }
 0x116   : > { %2019 = vmatmul.mubr.bf16.gmra.mrb[52].mxu1 %v1461_v19  ;;  %14248 = vmatmul.mubr.msk.bf16.gmra.mrb[64].mxu0 %vm1326_vm3, %v1463_v32  ;;  %v1485_v19 = vpack.c.bf16 %v1420_v58, %v1419_v51  ;;  %v14890_v32 = vld [vmem:[%s21464_s3 + $0x40] sm:$0xff]  }
 0x117   : > { %2026 = vmatprep.mubr.bf16.mxu1 %v15992_v37  ;;  %14251 = vmatprep.mubr.msk.bf16.mxu0 %vm1326_vm3, %v1467_v62  ;;  %v21883_v37 = vld [vmem:[#allocation24_spill] sm:$0xff]  ;;  %v14891_v62 = vld [vmem:[%s21464_s3] sm:$0xff]  }
 0x118   : > { %v1411_v28 = vsel %vm1326_vm3, %v21883_v37, %v14585_v45  ;;  %13959 = vmatprep.subr.bf16.mxu1 %v14890_v32 }
 0x119   : > { %v1469_v61 = vpack.c.bf16 %v1412_v24, %v1411_v28  ;;  %13960 = vmatpush3.bf16.msra.mxu1 %v14891_v62 }
 0x11e   : > { %2027 = vmatmul.mubr.bf16.gmra.mrb[56].mxu1 %v1465_v10  ;;  %14252 = vmatmul.mubr.msk.bf16.gmra.mrb[68].mxu0 %vm1326_vm3, %v1471_v46 }
 0x11f   : > { %2034 = vmatprep.mubr.bf16.mxu1 %v16034_v20  ;;  %14255 = vmatprep.mubr.msk.bf16.mxu0 %vm1326_vm3, %v1475_v6  ;;  %v1413_v20 = vsel %vm1326_vm3, %v21885_v54, %v14590_v5 }
 0x120   : > { %v1473_v57 = vpack.c.bf16 %v1414_v1, %v1413_v20 }
 0x126   : > { %2035 = vmatmul.mubr.bf16.gmra.mrb[60].mxu1 %v1469_v61  ;;  %14256 = vmatmul.mubr.msk.bf16.gmra.mrb[72].mxu0 %vm1326_vm3, %v1479_v8  ;;  %v14894_v61 = vld [vmem:[%s21464_s3 + $0x50] sm:$0xff]  }
 0x127   : > { %2042 = vmatprep.mubr.bf16.mxu1 %v16075_v48  ;;  %14259 = vmatprep.mubr.msk.bf16.mxu0 %vm1326_vm3, %v21889_v47  ;;  %v21890_v48 = vld [vmem:[#allocation34_spill] sm:$0xff] }
 0x128   : > { %v1415_v22 = vsel %vm1326_vm3, %v21890_v48, %v14595_v16 }
 0x129   : > { %v1477_v9 = vpack.c.bf16 %v1416_v11, %v1415_v22  ;;  %v14897_v11 = vld [vmem:[%s21464_s3 + $0x18] sm:$0xff]  }
 0x12e   : > { %2043 = vmatmul.mubr.bf16.gmra.mrb[64].mxu1 %v1473_v57  ;;  %14260 = vmatmul.mubr.msk.bf16.gmra.mrb[76].mxu0 %vm1326_vm3, %v1479_v8  ;;  %v14895_v8 = vld [vmem:[%s21464_s3 + $0x10] sm:$0xff]  }
 0x12f   : > { %2050 = vmatprep.mubr.bf16.mxu1 %v16116_v59 }
 0x136   : > { %2051 = vmatmul.mubr.bf16.gmra.mrb[68].mxu1 %v1477_v9 }
 0x137   : > { %2058 = vmatprep.mubr.bf16.mxu1 %v1482_v38 }
 0x13e   : > { %2059 = vmatmul.mubr.bf16.gmra.mrb[72].mxu1 %v1481_v17 }
 0x13f   : > { %2066 = vmatprep.mubr.bf16.mxu1 %v16116_v59  ;;  %v14892_v59 = vld [vmem:[%s21464_s3 + $0x48] sm:$0xff]  }
 0x140   : > { %13961 = vmatprep.subr.bf16.mxu1 %v14892_v59 }
 0x141   : > { %13962 = vmatpush3.bf16.msra.mxu1 %v14893_v15 }
 0x142   : > { %13963 = vmatprep.subr.bf16.mxu1 %v14894_v61 }
 0x145   : > { %13964 = vmatpush3.bf16.msra.mxu1 %v14895_v8 }
 0x146   : > { %2067 = vmatmul.mubr.bf16.gmra.mrb[76].mxu1 %v1485_v19  ;;  %13965 = vmatprep.subr.bf16.mxu1 %v14896_v4 }
 0x149   : > { %13966 = vmatpush3.bf16.msra.mxu1 %v14897_v11 }
 0x169   : > { %v13731_v53 = vpop.f32.mrb[0].mxu0 }
 0x16a   : > { %v13732_v50 = vpop.f32.mrb[1].mxu0 }
 0x16b   : > { %v16331_v7 = vadd.f32 %v13732_v50, %v13731_v53  ;;  %v13734_v35 = vpop.f32.mrb[2].mxu0 }
 0x16c   : > { %v13735_v39 = vpop.f32.mrb[3].mxu0 }
 0x16d   : > { %v16333_v56 = vadd.f32 %v13735_v39, %v13734_v35  ;;  %v14898_v35 = vld [vmem:[%s21464_s3 + $0x60] sm:$0xff]  }
 0x16e   : > { %v14899_v39 = vld [vmem:[%s21464_s3 + $0x20] sm:$0xff]   ;;  %13967 = vmatprep.subr.bf16.mxu1 %v14898_v35 }
 0x16f   : > { %13968 = vmatpush3.bf16.msra.mxu1 %v14899_v39 }
 0x171   : > { %v13737_v10 = vpop.f32.mrb[4].mxu0 }
 0x172   : > { %v13738_v46 = vpop.f32.mrb[5].mxu0 }
 0x173   : > { %v16335_v44 = vadd.f32 %v13738_v46, %v13737_v10  ;;  %v13740_v45 = vpop.f32.mrb[6].mxu0 }
 0x174   : > { %v13741_v6 = vpop.f32.mrb[7].mxu0 }
 0x175   : > { %v16337_v37 = vadd.f32 %v13741_v6, %v13740_v45 }
 0x179   : > { %v13743_v28 = vpop.f32.mrb[8].mxu0 }
 0x17a   : > { %v13744_v21 = vpop.f32.mrb[9].mxu0 }
 0x17b   : > { %v16339_v24 = vadd.f32 %v13744_v21, %v13743_v28  ;;  %v13746_v33 = vpop.f32.mrb[10].mxu0  ;;  %v16396_v28 = vld [vmem:[%s21463_s2] ss:$0 sm:$0xff] }
 0x17c   : > { %v13747_v60 = vpop.f32.mrb[11].mxu0 }
 0x17d   : > { %v16347_v5 = vadd.f32 %v13747_v60, %v13746_v33  ;;  %v1788_v60 = vadd.f32 %v16331_v7, %v16396_v28  ;;  %v14900_v7 = vld [vmem:[%s21464_s3 + $0x68] sm:$0xff]  }
 0x17e   : > { %13969 = vmatprep.subr.bf16.mxu1 %v14900_v7 }
 0x181   : > { %v13749_v54 = vpop.f32.mrb[12].mxu0  ;;  %v13803_v20 = vpop.f32.mrb[0].mxu1 }
 0x182   : > { %v13750_v25 = vpop.f32.mrb[13].mxu0  ;;  %v13804_v1 = vpop.f32.mrb[1].mxu1 }
 0x183   : > { %v16349_v12 = vadd.f32 %v13750_v25, %v13749_v54  ;;  %v13752_v55 = vpop.f32.mrb[14].mxu0  ;;  %v16351_v47 = vadd.f32 %v13804_v1, %v13803_v20  ;;  %v13806_v36 = vpop.f32.mrb[2].mxu1 }
 0x184   : > { %v13753_v26 = vpop.f32.mrb[15].mxu0  ;;  %v13807_v57 = vpop.f32.mrb[3].mxu1 }
 0x185   : > { %v16353_v41 = vadd.f32 %v13753_v26, %v13752_v55  ;;  %v16355_v16 = vadd.f32 %v13807_v57, %v13806_v36  ;;  %v1791_v26 = vadd.f32 %v16333_v56, %v16396_v28 }
 0x189   : > { %v13755_v30 = vpop.f32.mrb[16].mxu0  ;;  %v13809_v0 = vpop.f32.mrb[4].mxu1 }
 0x18a   : > { %v13756_v48 = vpop.f32.mrb[17].mxu0  ;;  %v13810_v22 = vpop.f32.mrb[5].mxu1 }
 0x18b   : > { %v16363_v49 = vadd.f32 %v13756_v48, %v13755_v30  ;;  %v13758_v40 = vpop.f32.mrb[18].mxu0  ;;  %v16365_v31 = vadd.f32 %v13810_v22, %v13809_v0  ;;  %v13812_v52 = vpop.f32.mrb[6].mxu1  ;;  %v14901_v22 = vld [vmem:[%s21464_s3 + $0x28] sm:$0xff]  }
 0x18c   : > { %v13759_v2 = vpop.f32.mrb[19].mxu0  ;;  %v13813_v9 = vpop.f32.mrb[7].mxu1  ;;  %13970 = vmatpush3.bf16.msra.mxu1 %v14901_v22 }
 0x18d   : > { %v16367_v42 = vadd.f32 %v13759_v2, %v13758_v40  ;;  %v16369_v34 = vadd.f32 %v13813_v9, %v13812_v52  ;;  %v1796_v52 = vadd.f32 %v16335_v44, %v16396_v28 }
 0x191   : > { %v13761_v38 = vpop.f32.mrb[20].mxu0  ;;  %v13815_v18 = vpop.f32.mrb[8].mxu1 }
 0x192   : > { %v13762_v14 = vpop.f32.mrb[21].mxu0  ;;  %v13816_v29 = vpop.f32.mrb[9].mxu1 }
 0x193   : > { %v16371_v3 = vadd.f32 %v13762_v14, %v13761_v38  ;;  %v13764_v63 = vpop.f32.mrb[22].mxu0  ;;  %v16373_v17 = vadd.f32 %v13816_v29, %v13815_v18  ;;  %v13818_v13 = vpop.f32.mrb[10].mxu1 }
 0x194   : > { %v13765_v43 = vpop.f32.mrb[23].mxu0  ;;  %v13819_v23 = vpop.f32.mrb[11].mxu1 }
 0x195   : > { %v16375_v51 = vadd.f32 %v13765_v43, %v13764_v63  ;;  %v16377_v27 = vadd.f32 %v13819_v23, %v13818_v13  ;;  %v1799_v63 = vadd.f32 %v16337_v37, %v16396_v28 }
 0x199   : > { %v13767_v58 = vpop.f32.mrb[24].mxu0  ;;  %v13821_v19 = vpop.f32.mrb[12].mxu1 }
 0x19a   : > { %v13768_v32 = vpop.f32.mrb[25].mxu0  ;;  %v13822_v62 = vpop.f32.mrb[13].mxu1 }
 0x19b   : > { %v16379_v59 = vadd.f32 %v13768_v32, %v13767_v58  ;;  %v13770_v15 = vpop.f32.mrb[26].mxu0  ;;  %v16381_v53 = vadd.f32 %v13822_v62, %v13821_v19  ;;  %v13824_v50 = vpop.f32.mrb[14].mxu1 }
 0x19c   : > { %v13771_v10 = vpop.f32.mrb[27].mxu0  ;;  %v13825_v46 = vpop.f32.mrb[15].mxu1 }
 0x19d   : > { %v16389_v45 = vadd.f32 %v13771_v10, %v13770_v15  ;;  %v16391_v6 = vadd.f32 %v13825_v46, %v13824_v50  ;;  %v1804_v15 = vadd.f32 %v16339_v24, %v16396_v28 }
 0x19f   : > { %21898 = vst [vmem:[#allocation4_spill] sm:$0xff] %v16391_v6 }
 0x1a1   : > { %v13773_v21 = vpop.f32.mrb[28].mxu0  ;;  %v13843_v33 = vpop.f32.mrb[16].mxu1 }
 0x1a2   : > { %v13774_v61 = vpop.f32.mrb[29].mxu0  ;;  %v13844_v8 = vpop.f32.mrb[17].mxu1 }
 0x1a3   : > { %v16400_v54 = vadd.f32 %v13774_v61, %v13773_v21  ;;  %v13845_v20 = vadd.f32 %v13844_v8, %v13843_v33  ;;  %v13776_v25 = vpop.f32.mrb[30].mxu0  ;;  %v13846_v1 = vpop.f32.mrb[18].mxu1  ;;  %v14902_v21 = vld [vmem:[%s21464_s3 + $0x70] sm:$0xff]   ;;  %v1807_v61 = vadd.f32 %v16347_v5, %v16396_v28 }
 0x1a4   : > { %v13777_v55 = vpop.f32.mrb[31].mxu0  ;;  %v13847_v36 = vpop.f32.mrb[19].mxu1  ;;  %v14903_v33 = vld [vmem:[%s21464_s3 + $0x30] sm:$0xff]   ;;  %13971 = vmatprep.subr.bf16.mxu1 %v14902_v21  ;;  %v16476_v21 = vadd.f32 %v16351_v47, %v16396_v28 }
 0x1a5   : > { %v16404_v57 = vadd.f32 %v13777_v55, %v13776_v25  ;;  %v13848_v30 = vadd.f32 %v13847_v36, %v13846_v1  ;;  %v16406_v0 = vadd.f32 %v13845_v20, %v1788_v60  ;;  %13972 = vmatpush3.bf16.msra.mxu1 %v14903_v33  ;;  %v16480_v33 = vadd.f32 %v16355_v16, %v16396_v28 }
 0x1a6   : > { %v1831_v16 = vadd.f32 %v16375_v51, %v16396_v28 }
 0x1a7   : > { %v16408_v48 = vadd.f32 %v13848_v30, %v1791_v26  ;;  %v1812_v26 = vadd.f32 %v16349_v12, %v16396_v28 }
 0x1a9   : > { %v13779_v4 = vpop.f32.mrb[32].mxu0  ;;  %v13849_v11 = vpop.f32.mrb[20].mxu1 }
 0x1aa   : > { %v13780_v40 = vpop.f32.mrb[33].mxu0  ;;  %v13850_v56 = vpop.f32.mrb[21].mxu1 }
 0x1ab   : > { %v16418_v2 = vadd.f32 %v13780_v40, %v13779_v4  ;;  %v13851_v9 = vadd.f32 %v13850_v56, %v13849_v11  ;;  %v13782_v38 = vpop.f32.mrb[34].mxu0  ;;  %v13852_v18 = vpop.f32.mrb[22].mxu1  ;;  %v1815_v40 = vadd.f32 %v16353_v41, %v16396_v28  ;;  %v14904_v41 = vld [vmem:[%s21464_s3 + $0x78] sm:$0xff]  }
 0x1ac   : > { %v13783_v14 = vpop.f32.mrb[35].mxu0  ;;  %v13853_v29 = vpop.f32.mrb[23].mxu1  ;;  %13973 = vmatprep.subr.bf16.mxu1 %v14904_v41 }
 0x1ad   : > { %v16422_v13 = vadd.f32 %v13783_v14, %v13782_v38  ;;  %v13854_v43 = vadd.f32 %v13853_v29, %v13852_v18  ;;  %v16424_v23 = vadd.f32 %v13851_v9, %v1796_v52 }
 0x1af   : > { %v16426_v58 = vadd.f32 %v13854_v43, %v1799_v63  ;;  %v1820_v63 = vadd.f32 %v16363_v49, %v16396_v28 }
 0x1b1   : > { %v13785_v19 = vpop.f32.mrb[36].mxu0  ;;  %v13855_v32 = vpop.f32.mrb[24].mxu1 }
 0x1b2   : > { %v13786_v44 = vpop.f32.mrb[37].mxu0  ;;  %v13856_v62 = vpop.f32.mrb[25].mxu1 }
 0x1b3   : > { %v16430_v50 = vadd.f32 %v13786_v44, %v13785_v19  ;;  %v13857_v35 = vadd.f32 %v13856_v62, %v13855_v32  ;;  %v13788_v39 = vpop.f32.mrb[38].mxu0  ;;  %v13858_v10 = vpop.f32.mrb[26].mxu1  ;;  %v14905_v62 = vld [vmem:[%s21464_s3 + $0x38] sm:$0xff]  }
 0x1b4   : > { %v13789_v37 = vpop.f32.mrb[39].mxu0  ;;  %v13859_v46 = vpop.f32.mrb[27].mxu1  ;;  %13974 = vmatpush3.bf16.msra.mxu1 %v14905_v62 }
 0x1b5   : > { %v16440_v8 = vadd.f32 %v13789_v37, %v13788_v39  ;;  %v13860_v24 = vadd.f32 %v13859_v46, %v13858_v10  ;;  %v16442_v60 = vadd.f32 %v13857_v35, %v1804_v15  ;;  %v1823_v39 = vadd.f32 %v16367_v42, %v16396_v28 }
 0x1b6   : > { %v16486_v42 = vadd.f32 %v16365_v31, %v16396_v28  ;;  %v16504_v31 = vadd.f32 %v16377_v27, %v16396_v28  ;;  %v16518_v27 = vadd.f32 %v16400_v54, %v16396_v28 }
 0x1b7   : > { %v16444_v20 = vadd.f32 %v13860_v24, %v1807_v61  ;;  %v1828_v61 = vadd.f32 %v16371_v3, %v16396_v28  ;;  %v16490_v24 = vadd.f32 %v16369_v34, %v16396_v28  ;;  %v16500_v3 = vadd.f32 %v16379_v59, %v16396_v28 }
 0x1b9   : > { %v13791_v25 = vpop.f32.mrb[40].mxu0  ;;  %v13861_v1 = vpop.f32.mrb[28].mxu1 }
 0x1ba   : > { %v13792_v55 = vpop.f32.mrb[41].mxu0  ;;  %v13862_v36 = vpop.f32.mrb[29].mxu1 }
 0x1bb   : > { %v16448_v30 = vadd.f32 %v13792_v55, %v13791_v25  ;;  %v13863_v7 = vadd.f32 %v13862_v36, %v13861_v1  ;;  %v13794_v5 = vpop.f32.mrb[42].mxu0  ;;  %v13864_v22 = vpop.f32.mrb[30].mxu1  ;;  %v16494_v25 = vadd.f32 %v16373_v17, %v16396_v28  ;;  %v16509_v17 = vadd.f32 %v16389_v45, %v16396_v28 }
 0x1bc   : > { %v13795_v4 = vpop.f32.mrb[43].mxu0  ;;  %v13865_v11 = vpop.f32.mrb[31].mxu1 }
 0x1bd   : > { %v16452_v56 = vadd.f32 %v13795_v4, %v13794_v5  ;;  %v13866_v52 = vadd.f32 %v13865_v11, %v13864_v22  ;;  %v16454_v9 = vadd.f32 %v13863_v7, %v1812_v26  ;;  %v16513_v26 = vadd.f32 %v16381_v53, %v16396_v28 }
 0x1bf   : > { %v16456_v38 = vadd.f32 %v13866_v52, %v1815_v40  ;;  %21899 = vst [vmem:[#allocation23_spill] sm:$0xff] %v16513_v26 }
 0x1c1   : > { %v13797_v18 = vpop.f32.mrb[44].mxu0  ;;  %v13867_v14 = vpop.f32.mrb[32].mxu1 }
 0x1c2   : > { %v13798_v12 = vpop.f32.mrb[45].mxu0  ;;  %v13868_v29 = vpop.f32.mrb[33].mxu1 }
 0x1c3   : > { %v16460_v43 = vadd.f32 %v13798_v12, %v13797_v18  ;;  %v13869_v19 = vadd.f32 %v13868_v29, %v13867_v14  ;;  %v13800_v32 = vpop.f32.mrb[46].mxu0  ;;  %v13870_v44 = vpop.f32.mrb[34].mxu1  ;;  %v16530_v18 = vadd.f32 %v16418_v2, %v16396_v28  ;;  %v16548_v2 = vadd.f32 %v16448_v30, %v16396_v28 }
 0x1c4   : > { %v13801_v15 = vpop.f32.mrb[47].mxu0  ;;  %v13871_v35 = vpop.f32.mrb[35].mxu1 }
 0x1c5   : > { %v13802_v10 = vadd.f32 %v13801_v15, %v13800_v32  ;;  %v13872_v49 = vadd.f32 %v13871_v35, %v13870_v44  ;;  %v16470_v37 = vadd.f32 %v13869_v19, %v1820_v63  ;;  %v16555_v35 = vadd.f32 %v16452_v56, %v16396_v28 }
 0x1c7   : > { %v16472_v46 = vadd.f32 %v13872_v49, %v1823_v39  ;;  %v16572_v56 = vadd.f32 %v13802_v10, %v16396_v28 }
 0x1c9   : > { %v13873_v47 = vpop.f32.mrb[36].mxu1  ;;  %v14233_v1 = vpop.f32.mrb[48].mxu0 }
 0x1ca   : > { %v2118_v34 = vadd.f32 %v14233_v1, %v16424_v23  ;;  %v13874_v55 = vpop.f32.mrb[37].mxu1  ;;  %v2109_v36 = vpop.f32.mrb[49].mxu0  ;;  %v16522_v23 = vadd.f32 %v16404_v57, %v16396_v28  ;;  %v16534_v57 = vadd.f32 %v16422_v13, %v16396_v28  ;;  %v16569_v1 = vadd.f32 %v16460_v43, %v16396_v28 }
 0x1cb   : > { %v13875_v51 = vadd.f32 %v13874_v55, %v13873_v47  ;;  %v2110_v59 = vadd.f32 %v2109_v36, %v16406_v0  ;;  %v13876_v7 = vpop.f32.mrb[38].mxu1  ;;  %v14234_v5 = vpop.f32.mrb[50].mxu0  ;;  %v14906_v47 = vld [vmem:[%s21464_s3 + $0xc0] sm:$0xff]  }
 0x1cc   : > { %v2238_v22 = vmax.f32 %v2118_v34, 0.0  ;;  %v2121_v45 = vadd.f32 %v14234_v5, %v16426_v58  ;;  %v13877_v4 = vpop.f32.mrb[39].mxu1  ;;  %v2112_v11 = vpop.f32.mrb[51].mxu0  ;;  %v16538_v58 = vadd.f32 %v16430_v50, %v16396_v28  ;;  %14071 = vmatprep.subr.bf16.mxu0 %v14906_v47 }
 0x1cd   : > { %v2236_v53 = vmax.f32 %v2110_v59, 0.0  ;;  %v13878_v40 = vadd.f32 %v13877_v4, %v13876_v7  ;;  %v2113_v52 = vadd.f32 %v2112_v11, %v16408_v48  ;;  %v16526_v0 = vadd.f32 %v13875_v51, %v1828_v61 }
 0x1ce   : > { %v2357_v54 = vrot.slane %v2238_v22, 1  ;;  %v2405_v14 = vrot.slane %v2238_v22, 7  ;;  %v2239_v12 = vmax.f32 %v2121_v45, 0.0  ;;  %v16544_v48 = vadd.f32 %v16440_v8, %v16396_v28 }
 0x1cf   : > { %v2237_v29 = vmax.f32 %v2113_v52, 0.0  ;;  %v16540_v63 = vadd.f32 %v13878_v40, %v1831_v16  ;;  %v2358_v44 = vrot.slane %v2236_v53, 1  ;;  %v2408_v41 = vrot.slane %v2236_v53, 7 }
 0x1d0   : > { %v2406_v19 = vrot.slane %v2239_v12, 7  ;;  %v2501_v32 = vrot.slane %v2239_v12, 5  ;;  %v16551_v13 = vsel %vm619_vm0, %v2357_v54, %v2405_v14 }
 0x1d1   : > { %21900 = vst [vmem:[#allocation3_spill] sm:$0xff] %v16551_v13  ;;  %v2409_v50 = vrot.slane %v2237_v29, 7  ;;  %v13879_v62 = vpop.f32.mrb[40].mxu1  ;;  %v14237_v15 = vpop.f32.mrb[52].mxu0  ;;  %v2502_v34 = vrot.slane %v2237_v29, 5  ;;  %v16582_v43 = vsel %vm619_vm0, %v2358_v44, %v2408_v41  ;;  %v2595_v40 = vrot.slane %v16551_v13, 1 }
 0x1d2   : > { %v16558_v8 = vsel %vm619_vm0, %v2405_v14, %v2406_v19  ;;  %v16561_v30 = vsel %vm619_vm0, %v2406_v19, %v2501_v32  ;;  %v2134_v39 = vadd.f32 %v14237_v15, %v16454_v9  ;;  %v13880_v49 = vpop.f32.mrb[41].mxu1  ;;  %v2125_v61 = vpop.f32.mrb[53].mxu0  ;;  %21902 = vst [vmem:[#allocation14_spill] sm:$0xff] %v16582_v43 }
 0x1d3   : > { %v16575_v16 = vsel %vm619_vm0, %v2408_v41, %v2409_v50  ;;  %v13882_v55 = vpop.f32.mrb[42].mxu1  ;;  %v14238_v36 = vpop.f32.mrb[54].mxu0  ;;  %v16578_v59 = vadd.f32 %v13880_v49, %v13879_v62  ;;  %v2126_v7 = vadd.f32 %v2125_v61, %v16442_v60  ;;  %v2598_v28 = vrot.slane %v16561_v30, 1 }
 0x1d4   : > { %21901 = vst [vmem:[#allocation9_spill] sm:$0xff] %v16575_v16  ;;  %v2242_v51 = vmax.f32 %v2134_v39, 0.0  ;;  %v13883_v5 = vpop.f32.mrb[43].mxu1  ;;  %v2128_v22 = vpop.f32.mrb[55].mxu0  ;;  %v2137_v10 = vadd.f32 %v14238_v36, %v16456_v38  ;;  %v16592_v60 = vsel %vm619_vm0, %v2409_v50, %v2502_v34  ;;  %v14612_v54 = vpack.i.bf16 %v16575_v16, %v16582_v43 }
 0x1d5   : > { %v16586_v45 = vadd.f32 %v13883_v5, %v13882_v55  ;;  %v2240_v11 = vmax.f32 %v2126_v7, 0.0  ;;  %v2129_v53 = vadd.f32 %v2128_v22, %v16444_v20  ;;  %v2596_v14 = vrot.slane %v16558_v8, 1 }
 0x1d6   : > { %v2243_v52 = vmax.f32 %v2137_v10, 0.0  ;;  %v2414_v12 = vrot.slane %v2242_v51, 7  ;;  %14613 = vrot.lane.b32.xlu0 %v14612_v54, %s15133_s20  ;;  %v14622_v5 = vpack.i.bf16 %v16558_v8, %v16551_v13  ;;  %v14907_v10 = vld [vmem:[%s21464_s3 + $0x80] sm:$0xff]   ;;  %v1997_v6 = vadd.f32 %v16578_v59, %v16500_v3 }
 0x1d7   : > { %v2359_v38 = vrot.slane %v2240_v11, 1  ;;  %v2411_v29 = vrot.slane %v2240_v11, 7  ;;  %v2241_v19 = vmax.f32 %v2129_v53, 0.0  ;;  %v16599_v20 = vsel %vm810_vm1, %v2595_v40, %v2596_v14  ;;  %v14908_v11 = vld [vmem:[%s21464_s3 + $0x100] sm:$0xff]   ;;  %v14909_v53 = vld [vmem:[%s21464_s3 + $0xc8] sm:$0xff]   ;;  %14072 = vmatpush3.bf16.msra.mxu0 %v14907_v10 }
 0x1d8   : > { %v2415_v32 = vrot.slane %v2243_v52, 7  ;;  %v2504_v44 = vrot.slane %v2243_v52, 5  ;;  %21903 = vst [vmem:[#allocation50_spill] sm:$0xff] %v16599_v20  ;;  %v16602_v41 = vsel %vm810_vm1, %v2596_v14, %v2598_v28  ;;  %v2360_v40 = vrot.slane %v2242_v51, 1  ;;  %14263 = vmatprep.subr.bf16.mxu1 %v14908_v11  ;;  %14073 = vmatprep.subr.bf16.mxu0 %v14909_v53 }
 0x1d9   : > { %21904 = vst [vmem:[#allocation17_spill] sm:$0xff] %v16602_v41  ;;  %v13885_v50 = vpop.f32.mrb[44].mxu1  ;;  %v14241_v62 = vpop.f32.mrb[56].mxu0  ;;  %v2412_v39 = vrot.slane %v2241_v19, 7  ;;  %v2503_v49 = vrot.slane %v2241_v19, 5  ;;  %v14617_v61 = vpack.i.bf16 %v16602_v41, %v16599_v20  ;;  %v2600_v10 = vrot.slane %v16582_v43, 1 }
 0x1da   : > { %v13886_v47 = vpop.f32.mrb[45].mxu1  ;;  %v2141_v34 = vpop.f32.mrb[57].mxu0  ;;  %v16608_v55 = vsel %vm619_vm0, %v2414_v12, %v2415_v32  ;;  %v2150_v36 = vadd.f32 %v14241_v62, %v16526_v0  ;;  %v2603_v0 = vrot.slane %v16592_v60, 1  ;;  %v16624_v52 = vsel %vm619_vm0, %v2415_v32, %v2504_v44  ;;  %14623 = vrot.lane.b32.xlu0 %v14622_v5, %s15133_s20 }
 0x1db   : > { %21905 = vst [vmem:[#allocation18_spill] sm:$0xff] %v16608_v55  ;;  %v13887_v7 = vadd.f32 %v13886_v47, %v13885_v50  ;;  %v13888_v22 = vpop.f32.mrb[46].mxu1  ;;  %v14242_v28 = vpop.f32.mrb[58].mxu0  ;;  %v16627_v54 = vsel %vm619_vm0, %v2411_v29, %v2412_v39  ;;  %14618 = vrot.lane.b32.xlu1 %v14617_v61, %s15133_s20  ;;  %v16631_v50 = vsel %vm619_vm0, %v2359_v38, %v2411_v29  ;;  %v2611_v3 = vrot.slane %v16608_v55, 1 }
 0x1dc   : > { %v13889_v14 = vpop.f32.mrb[47].mxu1  ;;  %v2144_v19 = vpop.f32.mrb[59].mxu0  ;;  %v16634_v62 = vsel %vm619_vm0, %v2412_v39, %v2503_v49  ;;  %v2246_v47 = vmax.f32 %v2150_v36, 0.0  ;;  %v2142_v15 = vadd.f32 %v2141_v34, %v16470_v37  ;;  %v2153_v32 = vadd.f32 %v14242_v28, %v16540_v63  ;;  %v14910_v37 = vld [vmem:[%s21464_s3 + $0x88] sm:$0xff]   ;;  %v14911_v63 = vld [vmem:[%s21464_s3 + $0xd0] sm:$0xff]  }
 0x1dd   : > { %v13890_v44 = vadd.f32 %v13889_v14, %v13888_v22  ;;  %v2145_v61 = vadd.f32 %v2144_v19, %v16472_v46  ;;  %v2601_v49 = vrot.slane %v16575_v16, 1  ;;  %v2608_v34 = vrot.slane %v16634_v62, 1  ;;  %14074 = vmatpush3.bf16.msra.mxu0 %v14910_v37  ;;  %v14912_v14 = vld [vmem:[%s21464_s3 + $0x90] sm:$0xff]  }
 0x1de   : > { %v2244_v39 = vmax.f32 %v2142_v15, 0.0  ;;  %v2247_v46 = vmax.f32 %v2153_v32, 0.0  ;;  %v14632_v5 = vpack.i.bf16 %v16627_v54, %v16631_v50  ;;  %v16654_v22 = vsel %vm619_vm0, %v2360_v40, %v2414_v12  ;;  %14075 = vmatprep.subr.bf16.mxu0 %v14911_v63 }
 0x1df   : > { %v2245_v36 = vmax.f32 %v2145_v61, 0.0  ;;  %21906 = vst [vmem:[#allocation8_spill] sm:$0xff] %v16654_v22  ;;  %v2362_v15 = vrot.slane %v2246_v47, 1  ;;  %v2420_v28 = vrot.slane %v2246_v47, 7  ;;  %v16662_v40 = vsel %vm810_vm1, %v2600_v10, %v2601_v49 }
 0x1e0   : > { %v2417_v19 = vrot.slane %v2244_v39, 7  ;;  %v2421_v32 = vrot.slane %v2247_v46, 7  ;;  %v2506_v61 = vrot.slane %v2247_v46, 5  ;;  %14633 = vrot.lane.b32.xlu0 %v14632_v5, %s15133_s20  ;;  %21907 = vst [vmem:[#allocation7_spill] sm:$0xff] %v16662_v40  ;;  %v16665_v47 = vsel %vm810_vm1, %v2601_v49, %v2603_v0  ;;  %v14913_v46 = vld [vmem:[%s21464_s3 + $0xd8] sm:$0xff]  }
 0x1e1   : > { %v13891_v11 = vpop.f32.mrb[48].mxu1  ;;  %v14245_v53 = vpop.f32.mrb[60].mxu0  ;;  %v2418_v29 = vrot.slane %v2245_v36, 7  ;;  %21908 = vst [vmem:[#allocation21_spill] sm:$0xff] %v16665_v47  ;;  %v2005_v37 = vadd.f32 %v13887_v7, %v16518_v27  ;;  %v14637_v0 = vpack.i.bf16 %v16608_v55, %v16654_v22  ;;  %v2361_v49 = vrot.slane %v2244_v39, 1  ;;  %14076 = vmatpush3.bf16.msra.mxu0 %v14912_v14  ;;  %v14914_v5 = vld [vmem:[%s21464_s3 + $0x98] sm:$0xff]  }
 0x1e2   : > { %v13892_v51 = vpop.f32.mrb[49].mxu1  ;;  %v2157_v12 = vpop.f32.mrb[61].mxu0  ;;  %v16675_v63 = vsel %vm619_vm0, %v2420_v28, %v2421_v32  ;;  %v2505_v41 = vrot.slane %v2245_v36, 5  ;;  %v14627_v20 = vpack.i.bf16 %v16665_v47, %v16662_v40  ;;  %14077 = vmatprep.subr.bf16.mxu0 %v14913_v46  ;;  %v2606_v39 = vrot.slane %v16627_v54, 1 }
 0x1e3   : > { %v16668_v9 = vadd.f32 %v13892_v51, %v13891_v11  ;;  %v13894_v4 = vpop.f32.mrb[50].mxu1  ;;  %v14246_v38 = vpop.f32.mrb[62].mxu0  ;;  %21909 = vst [vmem:[#allocation22_spill] sm:$0xff] %v16675_v63  ;;  %v16678_v10 = vsel %vm619_vm0, %v2417_v19, %v2418_v29  ;;  %v16683_v51 = vsel %vm619_vm0, %v2362_v15, %v2420_v28  ;;  %v16686_v11 = vsel %vm619_vm0, %v2421_v32, %v2506_v61 }
 0x1e4   : > { %v13895_v27 = vpop.f32.mrb[51].mxu1  ;;  %v2160_v7 = vpop.f32.mrb[63].mxu0  ;;  %v2166_v26 = vadd.f32 %v14245_v53, %v2005_v37  ;;  %v2605_v15 = vrot.slane %v16631_v50, 1  ;;  %v2008_v28 = vadd.f32 %v13890_v44, %v16522_v23  ;;  %v2000_v14 = vadd.f32 %v16586_v45, %v16509_v17  ;;  %14628 = vrot.lane.b32.xlu1 %v14627_v20, %s15133_s20  ;;  %v14915_v17 = vld [vmem:[%s21464_s3 + $0xe0] sm:$0xff]  }
 0x1e5   : > { %v16698_v36 = vadd.f32 %v13895_v27, %v13894_v4  ;;  %v2158_v61 = vadd.f32 %v2157_v12, %v1997_v6  ;;  %v2610_v53 = vrot.slane %v16654_v22, 1  ;;  %v16709_v37 = vsel %vm810_vm1, %v2606_v39, %v2608_v34  ;;  %14078 = vmatpush3.bf16.msra.mxu0 %v14914_v5  ;;  %v14916_v6 = vld [vmem:[%s21464_s3 + $0xa0] sm:$0xff]  }
 0x1e6   : > { %v2250_v32 = vmax.f32 %v2166_v26, 0.0  ;;  %v16706_v59 = vsel %vm810_vm1, %v2605_v15, %v2606_v39  ;;  %21911 = vst [vmem:[#allocation6_spill] sm:$0xff] %v16709_v37  ;;  %v2169_v23 = vadd.f32 %v14246_v38, %v2008_v28  ;;  %v2161_v4 = vadd.f32 %v2160_v7, %v2000_v14  ;;  %14079 = vmatprep.subr.bf16.mxu0 %v14915_v17  ;;  %v14917_v17 = vld [vmem:[%s21464_s3 + $0xe8] sm:$0xff]  }
 0x1e7   : > { %21910 = vst [vmem:[#allocation5_spill] sm:$0xff] %v16706_v59  ;;  %v16718_v26 = vsel %vm619_vm0, %v2361_v49, %v2417_v19  ;;  %v16721_v45 = vsel %vm619_vm0, %v2418_v29, %v2505_v41  ;;  %v2248_v20 = vmax.f32 %v2158_v61, 0.0  ;;  %v14642_v38 = vpack.i.bf16 %v16709_v37, %v16706_v59 }
 0x1e8   : > { %v2251_v5 = vmax.f32 %v2169_v23, 0.0  ;;  %v2249_v27 = vmax.f32 %v2161_v4, 0.0  ;;  %v16726_v7 = vsel %vm810_vm1, %v2610_v53, %v2611_v3  ;;  %v21913_v15 = vrot.slane %v16624_v52, 1  ;;  %14638 = vrot.lane.b32.xlu1 %v14637_v0, %s15133_s20  ;;  %v14918_v0 = vld [vmem:[%s21464_s3 + $0xa8] sm:$0xff]  }
 0x1e9   : > { %v13897_v44 = vpop.f32.mrb[52].mxu1  ;;  %v14249_v46 = vpop.f32.mrb[64].mxu0  ;;  %21912 = vst [vmem:[#allocation31_spill] sm:$0xff] %v16726_v7  ;;  %v16737_v29 = vrot.slane %v2250_v32, 7  ;;  %v2363_v28 = vrot.slane %v2248_v20, 1  ;;  %v2423_v14 = vrot.slane %v2248_v20, 7  ;;  %14643 = vrot.lane.b32.xlu0 %v14642_v38, %s15133_s20  ;;  %14080 = vmatpush3.bf16.msra.mxu0 %v14916_v6  ;;  %v14647_v38 = vpack.i.bf16 %v16678_v10, %v16718_v26 }
 0x1ea   : > { %v13898_v34 = vpop.f32.mrb[53].mxu1  ;;  %v2173_v12 = vpop.f32.mrb[65].mxu0  ;;  %v16731_v39 = vsel %vm810_vm1, %v2611_v3, %v21913_v15  ;;  %v2427_v23 = vrot.slane %v2251_v5, 7  ;;  %v2508_v4 = vrot.slane %v2251_v5, 5  ;;  %v2424_v3 = vrot.slane %v2249_v27, 7  ;;  %14081 = vmatprep.subr.bf16.mxu0 %v14917_v17 }
 0x1eb   : > { %21914 = vst [vmem:[#allocation30_spill] sm:$0xff] %v16731_v39  ;;  %v13900_v19 = vpop.f32.mrb[54].mxu1  ;;  %v16733_v49 = vpop.f32.mrb[66].mxu0  ;;  %v2507_v15 = vrot.slane %v2249_v27, 5  ;;  %v14652_v20 = vpack.i.bf16 %v16731_v39, %v16726_v7  ;;  %v13899_v41 = vadd.f32 %v13898_v34, %v13897_v44  ;;  %v2013_v5 = vadd.f32 %v16668_v9, %v16530_v18 }
 0x1ec   : > { %v13901_v61 = vpop.f32.mrb[55].mxu1  ;;  %v2176_v53 = vpop.f32.mrb[67].mxu0  ;;  %v2618_v27 = vrot.slane %v16721_v45, 1  ;;  %v16756_v37 = vsel %vm619_vm0, %v16737_v29, %v2427_v23  ;;  %v16759_v59 = vsel %vm619_vm0, %v2423_v14, %v2424_v3  ;;  %v2364_v39 = vrot.slane %v2250_v32, 1  ;;  %14648 = vrot.lane.b32.xlu1 %v14647_v38, %s15133_s20 }
 0x1ed   : > { %21915 = vst [vmem:[#allocation10_spill] sm:$0xff] %v16759_v59  ;;  %v16762_v7 = vsel %vm619_vm0, %v2363_v28, %v2423_v14  ;;  %v16765_v44 = vsel %vm619_vm0, %v2427_v23, %v2508_v4  ;;  %v16768_v18 = vsel %vm619_vm0, %v2424_v3, %v2507_v15  ;;  %14653 = vrot.lane.b32.xlu0 %v14652_v20, %s15133_s20  ;;  %v2615_v6 = vrot.slane %v16718_v26, 1  ;;  %v14919_v14 = vld [vmem:[%s21464_s3 + $0xf0] sm:$0xff]  }
 0x1ee   : > { %21916 = vst [vmem:[#allocation11_spill] sm:$0xff] %v16765_v44  ;;  %v2021_v9 = vadd.f32 %v13899_v41, %v16538_v58  ;;  %v2174_v34 = vadd.f32 %v2173_v12, %v2013_v5  ;;  %v2616_v32 = vrot.slane %v16678_v10, 1  ;;  %14082 = vmatpush3.bf16.msra.mxu0 %v14918_v0  ;;  %v14920_v23 = vld [vmem:[%s21464_s3 + $0xb0] sm:$0xff]   ;;  %v14657_v58 = vpack.i.bf16 %v16675_v63, %v16683_v51 }
 0x1ef   : > { %v13902_v12 = vadd.f32 %v13901_v61, %v13900_v19  ;;  %v2016_v41 = vadd.f32 %v16698_v36, %v16534_v57  ;;  %v2620_v4 = vrot.slane %v16683_v51, 1  ;;  %14083 = vmatprep.subr.bf16.mxu0 %v14919_v14 }
 0x1f0   : > { %v2182_v0 = vadd.f32 %v14249_v46, %v2021_v9  ;;  %v2252_v20 = vmax.f32 %v2174_v34, 0.0  ;;  %v16791_v38 = vsel %vm810_vm1, %v2615_v6, %v2616_v32  ;;  %v16794_v5 = vsel %vm810_vm1, %v2616_v32, %v2618_v27  ;;  %14658 = vrot.lane.b32.xlu1 %v14657_v58, %s15133_s20 }
 0x1f1   : > { %v13903_v17 = vpop.f32.mrb[56].mxu1  ;;  %v16775_v28 = vpop.f32.mrb[68].mxu0  ;;  %21917 = vst [vmem:[#allocation36_spill] sm:$0xff] %v16791_v38  ;;  %21918 = vst [vmem:[#allocation37_spill] sm:$0xff] %v16794_v5  ;;  %v14662_v57 = vpack.i.bf16 %v16794_v5, %v16791_v38  ;;  %v2024_v36 = vadd.f32 %v13902_v12, %v16544_v48  ;;  %v2177_v19 = vadd.f32 %v2176_v53, %v2016_v41  ;;  %v2621_v46 = vrot.slane %v16675_v63, 1 }
 0x1f2   : > { %v13904_v3 = vpop.f32.mrb[57].mxu1  ;;  %v16788_v15 = vpop.f32.mrb[69].mxu0  ;;  %v2254_v9 = vmax.f32 %v2182_v0, 0.0  ;;  %v2365_v34 = vrot.slane %v2252_v20, 1  ;;  %v2429_v27 = vrot.slane %v2252_v20, 7  ;;  %v14667_v32 = vpack.i.bf16 %v16759_v59, %v16762_v7  ;;  %14084 = vmatpush3.bf16.msra.mxu0 %v14920_v23 }
 0x1f3   : > { %v13906_v40 = vpop.f32.mrb[58].mxu1  ;;  %v16796_v47 = vpop.f32.mrb[70].mxu0  ;;  %14663 = vrot.lane.b32.xlu0 %v14662_v57, %s15133_s20  ;;  %v16807_v14 = vadd.f32 %v16733_v49, %v2024_v36  ;;  %v2253_v58 = vmax.f32 %v2177_v19, 0.0  ;;  %v16810_v48 = vsel %vm810_vm1, %v2620_v4, %v2621_v46  ;;  %v21920_v53 = vrot.slane %v16686_v11, 1  ;;  %v14921_v19 = vld [vmem:[%s21464_s3 + $0xf8] sm:$0xff]  }
 0x1f4   : > { %v13907_v61 = vpop.f32.mrb[59].mxu1  ;;  %v2192_v6 = vpop.f32.mrb[71].mxu0  ;;  %21919 = vst [vmem:[#allocation12_spill] sm:$0xff] %v16810_v48  ;;  %v16820_v0 = vsel %vm619_vm0, %v2364_v39, %v16737_v29  ;;  %v2633_v23 = vrot.slane %v16765_v44, 1  ;;  %v2628_v49 = vrot.slane %v16768_v18, 1  ;;  %14668 = vrot.lane.b32.xlu1 %v14667_v32, %s15133_s20  ;;  %v13905_v36 = vadd.f32 %v13904_v3, %v13903_v17  ;;  %v14922_v39 = vld [vmem:[%s21464_s3 + $0xb8] sm:$0xff]   ;;  %14085 = vmatprep.subr.bf16.mxu0 %v14921_v19 }
 0x1f5   : > { %v16815_v12 = vsel %vm810_vm1, %v2621_v46, %v21920_v53  ;;  %v2430_v20 = vrot.slane %v2253_v58, 7  ;;  %v2509_v57 = vrot.slane %v2253_v58, 5  ;;  %v16833_v29 = vrot.slane %v2254_v9, 1 }
 0x1f6   : > { %21921 = vst [vmem:[#allocation13_spill] sm:$0xff] %v16815_v12  ;;  %v14672_v4 = vpack.i.bf16 %v16815_v12, %v16810_v48  ;;  %v2625_v46 = vrot.slane %v16762_v7, 1  ;;  %v2626_v58 = vrot.slane %v16759_v59, 1  ;;  %v13908_v53 = vadd.f32 %v13907_v61, %v13906_v40  ;;  %14086 = vmatpush3.bf16.msra.mxu0 %v14922_v39 }
 0x1f7   : > { %v16839_v32 = vrot.slane %v2254_v9, 7  ;;  %v16842_v17 = vsel %vm619_vm0, %v2365_v34, %v2429_v27  ;;  %v16845_v3 = vsel %vm619_vm0, %v2429_v27, %v2430_v20  ;;  %v14677_v48 = vpack.i.bf16 %v16756_v37, %v16820_v0 }
 0x1f8   : > { %14673 = vrot.lane.b32.xlu0 %v14672_v4, %s15133_s20  ;;  %v2255_v40 = vmax.f32 %v16807_v14, 0.0  ;;  %v16854_v61 = vsel %vm619_vm0, %v2430_v20, %v2509_v57  ;;  %v16857_v9 = vsel %vm810_vm1, %v2625_v46, %v2626_v58  ;;  %v16860_v34 = vsel %vm810_vm1, %v2626_v58, %v2628_v49 }
 0x1f9   : > { %v13909_v41 = vpop.f32.mrb[60].mxu1  ;;  %v16837_v12 = vpop.f32.mrb[72].mxu0  ;;  %21922 = vst [vmem:[#allocation44_spill] sm:$0xff] %v16857_v9  ;;  %21923 = vst [vmem:[#allocation45_spill] sm:$0xff] %v16860_v34  ;;  %v14682_v44 = vpack.i.bf16 %v16860_v34, %v16857_v9  ;;  %14678 = vrot.lane.b32.xlu1 %v14677_v48, %s15133_s20  ;;  %v2029_v14 = vadd.f32 %v13905_v36, %v16548_v2  ;;  %v14692_v20 = vpack.i.bf16 %v16845_v3, %v16842_v17 }
 0x1fa   : > { %v13910_v5 = vpop.f32.mrb[61].mxu1  ;;  %v16850_v38 = vpop.f32.mrb[73].mxu0  ;;  %v2765_v57 = vrot.slane %v16582_v43, 2  ;;  %v2766_v49 = vrot.slane %v16575_v16, 2  ;;  %v2032_v58 = vadd.f32 %v13908_v53, %v16555_v35  ;;  %v21924_v59 = vrot.slane %v16558_v8, 2 }
 0x1fb   : > { %v13912_v27 = vpop.f32.mrb[62].mxu1  ;;  %v16862_v4 = vpop.f32.mrb[74].mxu0  ;;  %v13911_v39 = vadd.f32 %v13910_v5, %v13909_v41  ;;  %v21925_v34 = vrot.slane %v16551_v13, 2  ;;  %v2190_v2 = vadd.f32 %v16788_v15, %v2029_v14  ;;  %v21927_v36 = vrot.slane %v16561_v30, 2 }
 0x1fc   : > { %v13913_v19 = vpop.f32.mrb[63].mxu1  ;;  %v16871_v46 = vpop.f32.mrb[75].mxu0  ;;  %14683 = vrot.lane.b32.xlu0 %v14682_v44, %s15133_s20  ;;  %v21928_v9 = vmov %v21924_v59  ;;  %v2630_v35 = vrot.slane %v16820_v0, 1  ;;  %v2631_v5 = vrot.slane %v16756_v37, 1  ;;  %v16894_v41 = vsel %vm976_vm2, %v2765_v57, %v2766_v49 }
 0x1fd   : > { %v16880_v48 = vsel %vm976_vm2, %v21925_v34, %v21924_v59  ;;  %v16889_v16 = vsel %vm976_vm2, %v21928_v9, %v21927_v36  ;;  %21930 = vst [vmem:[#allocation19_spill] sm:$0xff] %v16894_v41  ;;  %v21931_v59 = vrot.slane %v16592_v60, 2  ;;  %v2193_v15 = vadd.f32 %v2192_v6, %v2032_v58 }
 0x1fe   : > { %21926 = vst [vmem:[#allocation15_spill] sm:$0xff] %v16880_v48  ;;  %21929 = vst [vmem:[#allocation16_spill] sm:$0xff] %v16889_v16  ;;  %v2037_v30 = vadd.f32 %v13911_v39, %v16569_v1  ;;  %v16902_v53 = vrot.slane %v2255_v40, 7  ;;  %v2256_v34 = vmax.f32 %v2190_v2, 0.0  ;;  %v16907_v14 = vsel %vm810_vm1, %v2630_v35, %v2631_v5 }
 0x1ff   : > { %v16899_v44 = vsel %vm976_vm2, %v2766_v49, %v21931_v59  ;;  %21933 = vst [vmem:[#allocation26_spill] sm:$0xff] %v16907_v14  ;;  %v2257_v36 = vmax.f32 %v2193_v15, 0.0  ;;  %v16911_v60 = vsel %vm810_vm1, %v2631_v5, %v2633_v23  ;;  %v13914_v49 = vadd.f32 %v13913_v19, %v13912_v27 }
 0x200   : > { %21932 = vst [vmem:[#allocation20_spill] sm:$0xff] %v16899_v44  ;;  %v14687_v9 = vpack.i.bf16 %v16899_v44, %v16894_v41  ;;  %v2198_v57 = vadd.f32 %v16775_v28, %v2037_v30  ;;  %21934 = vst [vmem:[#allocation27_spill] sm:$0xff] %v16911_v60  ;;  %v2638_v1 = vrot.slane %v16854_v61, 1  ;;  %v2367_v58 = vrot.slane %v2256_v34, 1  ;;  %14693 = vrot.lane.b32.xlu0 %v14692_v20, %s15133_s20 }
 0x201   : > { %v13915_v59 = vpop.f32.mrb[64].mxu1  ;;  %v16913_v6 = vpop.f32.mrb[76].mxu0  ;;  %v2435_v39 = vrot.slane %v2256_v34, 7  ;;  %v14702_v2 = vpack.i.bf16 %v16889_v16, %v16880_v48  ;;  %v2436_v23 = vrot.slane %v2257_v36, 7  ;;  %v2511_v5 = vrot.slane %v2257_v36, 5 }
 0x202   : > { %14688 = vrot.lane.b32.xlu1 %v14687_v9, %s15133_s20  ;;  %v13916_v35 = vpop.f32.mrb[65].mxu1  ;;  %v16920_v28 = vpop.f32.mrb[77].mxu0  ;;  %v2258_v27 = vmax.f32 %v2198_v57, 0.0  ;;  %v2040_v19 = vadd.f32 %v13914_v49, %v16572_v56  ;;  %v14697_v34 = vpack.i.bf16 %v16911_v60, %v16907_v14  ;;  %v2635_v20 = vrot.slane %v16842_v17, 1 }
 0x203   : > { %v13918_v15 = vpop.f32.mrb[66].mxu1  ;;  %v16923_v30 = vpop.f32.mrb[78].mxu0  ;;  %v2636_v9 = vrot.slane %v16845_v3, 1  ;;  %v16932_v43 = vsel %vm619_vm0, %v16839_v32, %v16902_v53  ;;  %v2510_v57 = vrot.slane %v2255_v40, 5  ;;  %v16937_v56 = vsel %vm619_vm0, %v2367_v58, %v2435_v39 }
 0x204   : > { %v13919_v44 = vpop.f32.mrb[67].mxu1  ;;  %v16934_v36 = vpop.f32.mrb[79].mxu0  ;;  %v16940_v49 = vsel %vm619_vm0, %v2435_v39, %v2436_v23  ;;  %v16945_v60 = vsel %vm619_vm0, %v16833_v29, %v16839_v32  ;;  %v16948_v14 = vsel %vm619_vm0, %v2436_v23, %v2511_v5  ;;  %v2368_v41 = vrot.slane %v2258_v27, 1  ;;  %14703 = vrot.lane.b32.xlu0 %v14702_v2, %s15133_s20 }
 0x205   : > { %v2201_v40 = vadd.f32 %v16796_v47, %v2040_v19  ;;  %v16954_v58 = vsel %vm810_vm1, %v2635_v20, %v2636_v9  ;;  %v2438_v39 = vrot.slane %v2258_v27, 7  ;;  %v16957_v13 = vsel %vm810_vm1, %v2636_v9, %v2638_v1 }
 0x206   : > { %14698 = vrot.lane.b32.xlu1 %v14697_v34, %s15133_s20  ;;  %21935 = vst [vmem:[#allocation32_spill] sm:$0xff] %v16954_v58  ;;  %21936 = vst [vmem:[#allocation33_spill] sm:$0xff] %v16957_v13  ;;  %v14707_v29 = vpack.i.bf16 %v16932_v43, %v16945_v60  ;;  %v13917_v32 = vadd.f32 %v13916_v35, %v13915_v59  ;;  %v14712_v5 = vpack.i.bf16 %v16957_v13, %v16954_v58 }
 0x207   : > { %v2259_v23 = vmax.f32 %v2201_v40, 0.0  ;;  %v2770_v2 = vrot.slane %v16631_v50, 2  ;;  %v2771_v34 = vrot.slane %v16627_v54, 2  ;;  %v13920_v47 = vadd.f32 %v13919_v44, %v13918_v15 }
 0x208   : > { %v2045_v19 = vadd.f32 %v13917_v32, %v16476_v21  ;;  %v2775_v27 = vrot.slane %v16654_v22, 2  ;;  %v2776_v1 = vrot.slane %v16608_v55, 2  ;;  %v2648_v9 = vrot.slane %v16948_v14, 1  ;;  %14713 = vrot.lane.b32.xlu0 %v14712_v5, %s15133_s20 }
 0x209   : > { %v13921_v20 = vpop.f32.mrb[68].mxu1  ;;  %v14722_v59 = vpack.i.bf16 %v16940_v49, %v16937_v56  ;;  %v16974_v35 = vsel %vm976_vm2, %v2770_v2, %v2771_v34  ;;  %v21938_v44 = vrot.slane %v16634_v62, 2  ;;  %v2439_v40 = vrot.slane %v2259_v23, 7 }
 0x20a   : > { %14708 = vrot.lane.b32.xlu1 %v14707_v29, %s15133_s20  ;;  %21937 = vst [vmem:[#allocation38_spill] sm:$0xff] %v16974_v35  ;;  %v13922_v15 = vpop.f32.mrb[69].mxu1  ;;  %v2206_v5 = vadd.f32 %v16850_v38, %v2045_v19  ;;  %v16985_v29 = vsel %vm976_vm2, %v2775_v27, %v2776_v1  ;;  %v21941_v58 = vrot.slane %v16624_v52, 2  ;;  %v16994_v62 = vsel %vm619_vm0, %v16902_v53, %v2510_v57 }
 0x20b   : > { %v16979_v21 = vsel %vm976_vm2, %v2771_v34, %v21938_v44  ;;  %21940 = vst [vmem:[#allocation46_spill] sm:$0xff] %v16985_v29  ;;  %v13924_v13 = vpop.f32.mrb[70].mxu1  ;;  %v2640_v34 = vrot.slane %v16945_v60, 1  ;;  %v2641_v44 = vrot.slane %v16932_v43, 1  ;;  %v2512_v22 = vrot.slane %v2259_v23, 5 }
 0x20c   : > { %21939 = vst [vmem:[#allocation39_spill] sm:$0xff] %v16979_v21  ;;  %v14717_v32 = vpack.i.bf16 %v16979_v21, %v16974_v35  ;;  %v16990_v2 = vsel %vm976_vm2, %v2776_v1, %v21941_v58  ;;  %v13925_v55 = vpop.f32.mrb[71].mxu1  ;;  %v2260_v38 = vmax.f32 %v2206_v5, 0.0  ;;  %v2643_v19 = vrot.slane %v16994_v62, 1  ;;  %14723 = vrot.lane.b32.xlu0 %v14722_v59, %s15133_s20 }
 0x20d   : > { %21942 = vst [vmem:[#allocation47_spill] sm:$0xff] %v16990_v2  ;;  %v2048_v27 = vadd.f32 %v13920_v47, %v16480_v33  ;;  %v17003_v52 = vsel %vm810_vm1, %v2640_v34, %v2641_v44  ;;  %v13923_v53 = vadd.f32 %v13922_v15, %v13921_v20  ;;  %v2645_v57 = vrot.slane %v16937_v56, 1 }
 0x20e   : > { %14718 = vrot.lane.b32.xlu1 %v14717_v32, %s15133_s20  ;;  %21943 = vst [vmem:[#allocation48_spill] sm:$0xff] %v17003_v52  ;;  %v2646_v58 = vrot.slane %v16940_v49, 1  ;;  %v2369_v1 = vrot.slane %v2260_v38, 1  ;;  %v14732_v23 = vpack.i.bf16 %v16990_v2, %v16985_v29  ;;  %v17010_v5 = vsel %vm810_vm1, %v2641_v44, %v2643_v19 }
 0x20f   : > { %21944 = vst [vmem:[#allocation49_spill] sm:$0xff] %v17010_v5  ;;  %v2209_v33 = vadd.f32 %v16871_v46, %v2048_v27  ;;  %v14727_v47 = vpack.i.bf16 %v17010_v5, %v17003_v52  ;;  %v2053_v59 = vadd.f32 %v13923_v53, %v16486_v42  ;;  %v2441_v32 = vrot.slane %v2260_v38, 7 }
 0x210   : > { %v17017_v20 = vsel %vm810_vm1, %v2645_v57, %v2646_v58  ;;  %v17020_v15 = vsel %vm810_vm1, %v2646_v58, %v2648_v9  ;;  %v17025_v44 = vsel %vm619_vm0, %v2438_v39, %v2439_v40  ;;  %14733 = vrot.lane.b32.xlu0 %v14732_v23, %s15133_s20  ;;  %v17031_v19 = vsel %vm619_vm0, %v2368_v41, %v2438_v39 }
 0x211   : > { %21945 = vst [vmem:[#allocation24_spill] sm:$0xff] %v17017_v20  ;;  %21946 = vst [vmem:[#allocation25_spill] sm:$0xff] %v17020_v15  ;;  %v2261_v34 = vmax.f32 %v2209_v33, 0.0  ;;  %v14742_v2 = vpack.i.bf16 %v17020_v15, %v17017_v20  ;;  %v13927_v46 = vpop.f32.mrb[72].mxu1  ;;  %v2214_v42 = vadd.f32 %v16837_v12, %v2053_v59  ;;  %v13926_v9 = vadd.f32 %v13925_v55, %v13924_v13 }
 0x212   : > { %14728 = vrot.lane.b32.xlu1 %v14727_v47, %s15133_s20  ;;  %v2780_v38 = vrot.slane %v16718_v26, 2  ;;  %v13928_v27 = vpop.f32.mrb[73].mxu1  ;;  %v14737_v58 = vpack.i.bf16 %v17025_v44, %v17031_v19  ;;  %v2781_v33 = vrot.slane %v16678_v10, 2  ;;  %v17039_v12 = vsel %vm619_vm0, %v2439_v40, %v2512_v22 }
 0x213   : > { %v2442_v53 = vrot.slane %v2261_v34, 7  ;;  %v2513_v57 = vrot.slane %v2261_v34, 5  ;;  %v13930_v15 = vpop.f32.mrb[74].mxu1  ;;  %v2262_v23 = vmax.f32 %v2214_v42, 0.0  ;;  %v2056_v47 = vadd.f32 %v13926_v9, %v16490_v24 }
 0x214   : > { %v13929_v20 = vadd.f32 %v13928_v27, %v13927_v46  ;;  %v13931_v41 = vpop.f32.mrb[75].mxu1  ;;  %v17048_v39 = vsel %vm976_vm2, %v2780_v38, %v2781_v33  ;;  %v21948_v59 = vrot.slane %v16721_v45, 2  ;;  %v17056_v24 = vsel %vm619_vm0, %v2369_v1, %v2441_v32  ;;  %14743 = vrot.lane.b32.xlu0 %v14742_v2, %s15133_s20 }
 0x215   : > { %v17042_v13 = vsel %vm619_vm0, %v2441_v32, %v2442_v53  ;;  %v17045_v55 = vsel %vm619_vm0, %v2442_v53, %v2513_v57  ;;  %v2370_v40 = vrot.slane %v2262_v23, 1  ;;  %v2444_v46 = vrot.slane %v2262_v23, 7 }
 0x216   : > { %21947 = vst [vmem:[#allocation28_spill] sm:$0xff] %v17042_v13  ;;  %v17053_v34 = vsel %vm976_vm2, %v2781_v33, %v21948_v59  ;;  %v2658_v22 = vrot.slane %v17045_v55, 1  ;;  %14738 = vrot.lane.b32.xlu1 %v14737_v58, %s15133_s20  ;;  %v2217_v42 = vadd.f32 %v16862_v4, %v2056_v47  ;;  %v14752_v45 = vpack.i.bf16 %v17042_v13, %v17056_v24 }
 0x217   : > { %21949 = vst [vmem:[#allocation29_spill] sm:$0xff] %v17053_v34  ;;  %v14747_v9 = vpack.i.bf16 %v17053_v34, %v17048_v39  ;;  %v2650_v38 = vrot.slane %v17031_v19, 1  ;;  %v2651_v1 = vrot.slane %v17025_v44, 1  ;;  %v2653_v32 = vrot.slane %v17039_v12, 1 }
 0x218   : > { %v13932_v27 = vadd.f32 %v13931_v41, %v13930_v15  ;;  %v2061_v53 = vadd.f32 %v13929_v20, %v16494_v25  ;;  %v2263_v2 = vmax.f32 %v2217_v42, 0.0  ;;  %v2785_v57 = vrot.slane %v16683_v51, 2  ;;  %14753 = vrot.lane.b32.xlu0 %v14752_v45, %s15133_s20 }
 0x219   : > { %v2786_v4 = vrot.slane %v16675_v63, 2  ;;  %v13933_v58 = vpop.f32.mrb[76].mxu1  ;;  %v2655_v33 = vrot.slane %v17056_v24, 1  ;;  %v17076_v23 = vsel %vm810_vm1, %v2650_v38, %v2651_v1  ;;  %v17079_v47 = vsel %vm810_vm1, %v2651_v1, %v2653_v32 }
 0x21a   : > { %14748 = vrot.lane.b32.xlu1 %v14747_v9, %s15133_s20  ;;  %21950 = vst [vmem:[#allocation52_spill] sm:$0xff] %v17076_v23  ;;  %21951 = vst [vmem:[#allocation51_spill] sm:$0xff] %v17079_v47  ;;  %v2222_v25 = vadd.f32 %v16920_v28, %v2061_v53  ;;  %v13934_v20 = vpop.f32.mrb[77].mxu1  ;;  %v2656_v15 = vrot.slane %v17042_v13, 1  ;;  %v2445_v41 = vrot.slane %v2263_v2, 7  ;;  %v2514_v59 = vrot.slane %v2263_v2, 5 }
 0x21b   : > { %v14757_v42 = vpack.i.bf16 %v17079_v47, %v17076_v23  ;;  %v17086_v9 = vsel %vm976_vm2, %v2785_v57, %v2786_v4  ;;  %v13936_v45 = vpop.f32.mrb[78].mxu1  ;;  %v21952_v38 = vrot.slane %v16686_v11, 2  ;;  %v2064_v28 = vadd.f32 %v13932_v27, %v16504_v31  ;;  %v15122_v11 = vld [vmem:[%s21463_s2] ss:$0 sm:$0xff] }
 0x21c   : > { %v2264_v5 = vmax.f32 %v2222_v25, 0.0  ;;  %v13935_v32 = vadd.f32 %v13934_v20, %v13933_v58  ;;  %v13937_v53 = vpop.f32.mrb[79].mxu1  ;;  %v17097_v52 = vsel %vm810_vm1, %v2655_v33, %v2656_v15  ;;  %v17100_v57 = vsel %vm810_vm1, %v2656_v15, %v2658_v22  ;;  %v21957_v33 = vld [vmem:[#allocation23_spill] sm:$0xff] }
 0x21d   : > { %v17091_v1 = vsel %vm976_vm2, %v2786_v4, %v21952_v38  ;;  %21953 = vst [vmem:[#allocation34_spill] sm:$0xff] %v17097_v52  ;;  %21954 = vst [vmem:[#allocation35_spill] sm:$0xff] %v17100_v57  ;;  %v17103_v25 = vsel %vm619_vm0, %v2444_v46, %v2445_v41  ;;  %v21956_v4 = vld [vmem:[#allocation4_spill] sm:$0xff]  ;;  %v2793_v27 = vrot.slane %v16768_v18, 2  ;;  %v2225_v58 = vadd.f32 %v16934_v36, %v2064_v28 }
 0x21e   : > { %v14762_v2 = vpack.i.bf16 %v17091_v1, %v17086_v9  ;;  %21955 = vst [vmem:[#allocation40_spill] sm:$0xff] %v17103_v25  ;;  %v1911_v31 = vadd.f32 %v15122_v11, %v21956_v4  ;;  %14758 = vrot.lane.b32.xlu1 %v14757_v42, %s15133_s20  ;;  %v2069_v20 = vadd.f32 %v13935_v32, %v21957_v33  ;;  %v2371_v38 = vrot.slane %v2264_v5, 1  ;;  %v21959_v32 = vld [vmem:[#allocation10_spill] sm:$0xff] }
 0x21f   : > { %v2447_v22 = vrot.slane %v2264_v5, 7  ;;  %v17115_v15 = vsel %vm619_vm0, %v2370_v40, %v2444_v46  ;;  %v13938_v47 = vadd.f32 %v13937_v53, %v13936_v45  ;;  %v2265_v23 = vmax.f32 %v2225_v58, 0.0 }
 0x220   : > { %14763 = vrot.lane.b32.xlu0 %v14762_v2, %s15133_s20  ;;  %21958 = vst [vmem:[#allocation41_spill] sm:$0xff] %v17115_v15  ;;  %v2230_v63 = vadd.f32 %v16913_v6, %v2069_v20  ;;  %v14772_v18 = vpack.i.bf16 %v17100_v57, %v17097_v52  ;;  %v14767_v42 = vpack.i.bf16 %v17103_v25, %v17115_v15  ;;  %v2790_v28 = vrot.slane %v16762_v7, 2 }
 0x221   : > { %v2072_v36 = vadd.f32 %v13938_v47, %v1911_v31  ;;  %v2791_v5 = vrot.slane %v21959_v32, 2  ;;  %v17125_v2 = vsel %vm619_vm0, %v2445_v41, %v2514_v59  ;;  %v2448_v40 = vrot.slane %v2265_v23, 7  ;;  %v21960_v59 = vld [vmem:[#allocation11_spill] sm:$0xff] }
 0x222   : > { %v2515_v46 = vrot.slane %v2265_v23, 5  ;;  %v2266_v45 = vmax.f32 %v2230_v63, 0.0  ;;  %14768 = vrot.lane.b32.xlu1 %v14767_v42, %s15133_s20  ;;  %v2661_v6 = vrot.slane %v17103_v25, 1  ;;  %v2663_v41 = vrot.slane %v17125_v2, 1 }
 0x223   : > { %v2233_v53 = vadd.f32 %v16923_v30, %v2072_v36  ;;  %v17132_v47 = vsel %vm976_vm2, %v2790_v28, %v2791_v5  ;;  %v17135_v11 = vsel %vm976_vm2, %v2791_v5, %v2793_v27  ;;  %v2798_v4 = vrot.slane %v21960_v59, 2 }
 0x224   : > { %14773 = vrot.lane.b32.xlu0 %v14772_v18, %s15133_s20  ;;  %v17140_v63 = vsel %vm619_vm0, %v2447_v22, %v2448_v40  ;;  %v17143_v23 = vsel %vm619_vm0, %v2448_v40, %v2515_v46  ;;  %v2660_v31 = vrot.slane %v17115_v15, 1  ;;  %v17147_v30 = vsel %vm619_vm0, %v2371_v38, %v2447_v22 }
 0x225   : > { %21961 = vst [vmem:[#allocation42_spill] sm:$0xff] %v17140_v63  ;;  %21962 = vst [vmem:[#allocation43_spill] sm:$0xff] %v17147_v30  ;;  %v2372_v58 = vrot.slane %v2266_v45, 1  ;;  %v2267_v33 = vmax.f32 %v2233_v53, 0.0  ;;  %v14777_v27 = vpack.i.bf16 %v17135_v11, %v17132_v47  ;;  %v2450_v20 = vrot.slane %v2266_v45, 7 }
 0x226   : > { %v14782_v18 = vpack.i.bf16 %v17140_v63, %v17147_v30  ;;  %v17154_v42 = vsel %vm810_vm1, %v2660_v31, %v2661_v6  ;;  %v17157_v36 = vsel %vm810_vm1, %v2661_v6, %v2663_v41  ;;  %v2668_v28 = vrot.slane %v17143_v23, 1 }
 0x227   : > { %21963 = vst [vmem:[#allocation53_spill] sm:$0xff] %v17154_v42  ;;  %21964 = vst [vmem:[#allocation54_spill] sm:$0xff] %v17157_v36  ;;  %v2451_v5 = vrot.slane %v2267_v33, 7  ;;  %14778 = vrot.lane.b32.xlu1 %v14777_v27, %s15133_s20  ;;  %v2795_v38 = vrot.slane %v16820_v0, 2  ;;  %v2796_v22 = vrot.slane %v16756_v37, 2  ;;  %v14787_v40 = vpack.i.bf16 %v17157_v36, %v17154_v42 }
 0x228   : > { %14783 = vrot.lane.b32.xlu0 %v14782_v18, %s15133_s20  ;;  %v2666_v46 = vrot.slane %v17140_v63, 1  ;;  %v2665_v53 = vrot.slane %v17147_v30, 1  ;;  %v2803_v59 = vrot.slane %v16854_v61, 2  ;;  %v17181_v27 = vsel %vm619_vm0, %v2372_v58, %v2450_v20 }
 0x229   : > { %v17168_v45 = vsel %vm976_vm2, %v2795_v38, %v2796_v22  ;;  %v17171_v6 = vsel %vm976_vm2, %v2796_v22, %v2798_v4  ;;  %v17175_v41 = vsel %vm619_vm0, %v2450_v20, %v2451_v5  ;;  %21966 = vst [vmem:[#allocation23_spill] sm:$0xff] %v17181_v27  ;;  %v2806_v18 = vrot.slane %v16932_v43, 2 }
 0x22a   : > { %21965 = vst [vmem:[#allocation4_spill] sm:$0xff] %v17175_v41  ;;  %v14792_v31 = vpack.i.bf16 %v17171_v6, %v17168_v45  ;;  %v17186_v4 = vsel %vm810_vm1, %v2665_v53, %v2666_v46  ;;  %v17189_v38 = vsel %vm810_vm1, %v2666_v46, %v2668_v28  ;;  %v14797_v22 = vpack.i.bf16 %v17175_v41, %v17181_v27 }
 0x22b   : > { %14788 = vrot.lane.b32.xlu1 %v14787_v40, %s15133_s20  ;;  %21967 = vst [vmem:[#allocation10_spill] sm:$0xff] %v17186_v4  ;;  %21968 = vst [vmem:[#allocation11_spill] sm:$0xff] %v17189_v38  ;;  %v2808_v61 = vrot.slane %v16994_v62, 2  ;;  %v2813_v36 = vrot.slane %v16948_v14, 2  ;;  %v2800_v58 = vrot.slane %v16842_v17, 2  ;;  %v2801_v20 = vrot.slane %v16845_v3, 2 }
 0x22c   : > { %14793 = vrot.lane.b32.xlu0 %v14792_v31, %s15133_s20  ;;  %v2816_v40 = vrot.slane %v17025_v44, 2  ;;  %v2516_v53 = vrot.slane %v2267_v33, 5  ;;  %v2805_v42 = vrot.slane %v16945_v60, 2  ;;  %v2818_v28 = vrot.slane %v17039_v12, 2 }
 0x22d   : > { %v2811_v46 = vrot.slane %v16940_v49, 2  ;;  %v14802_v62 = vpack.i.bf16 %v17189_v38, %v17186_v4  ;;  %v17205_v14 = vsel %vm976_vm2, %v2800_v58, %v2801_v20  ;;  %v17208_v31 = vsel %vm976_vm2, %v2801_v20, %v2803_v59 }
 0x22e   : > { %v2815_v57 = vrot.slane %v17031_v19, 2  ;;  %v17213_v33 = vsel %vm976_vm2, %v2805_v42, %v2806_v18  ;;  %v17216_v12 = vsel %vm976_vm2, %v2806_v18, %v2808_v61  ;;  %v2810_v52 = vrot.slane %v16937_v56, 2 }
 0x22f   : > { %14798 = vrot.lane.b32.xlu1 %v14797_v22, %s15133_s20  ;;  %v14807_v59 = vpack.i.bf16 %v17208_v31, %v17205_v14  ;;  %v17226_v20 = vsel %vm976_vm2, %v2816_v40, %v2818_v28  ;;  %v17232_v42 = vsel %vm976_vm2, %v2811_v46, %v2813_v36  ;;  %v2823_v18 = vrot.slane %v17045_v55, 2 }
 0x230   : > { %14803 = vrot.lane.b32.xlu0 %v14802_v62, %s15133_s20  ;;  %v17221_v58 = vsel %vm976_vm2, %v2815_v57, %v2816_v40  ;;  %v17229_v22 = vsel %vm976_vm2, %v2810_v52, %v2811_v46  ;;  %v14812_v61 = vpack.i.bf16 %v17216_v12, %v17213_v33  ;;  %v2821_v57 = vrot.slane %v17042_v13, 2 }
 0x231   : > { %v2564_v62 = vsel %vm619_vm0, %v2451_v5, %v2516_v53  ;;  %v2833_v38 = vrot.slane %v17143_v23, 2  ;;  %v2826_v40 = vrot.slane %v17103_v25, 2  ;;  %v2828_v52 = vrot.slane %v17125_v2, 2 }
 0x232   : > { %v14822_v55 = vpack.i.bf16 %v17226_v20, %v17221_v58  ;;  %v14817_v36 = vpack.i.bf16 %v17232_v42, %v17229_v22  ;;  %v2825_v28 = vrot.slane %v17115_v15, 2  ;;  %v2820_v5 = vrot.slane %v17056_v24, 2 }
 0x233   : > { %14808 = vrot.lane.b32.xlu1 %v14807_v59, %s15133_s20  ;;  %v2831_v23 = vrot.slane %v17140_v63, 2  ;;  %v3000_v53 = vrot.slane %v17181_v27, 2  ;;  %v3001_v46 = vrot.slane %v17175_v41, 2  ;;  %v3003_v59 = vrot.slane %v2564_v62, 2 }
 0x234   : > { %14813 = vrot.lane.b32.xlu0 %v14812_v61, %s15133_s20  ;;  %v17254_v2 = vsel %vm976_vm2, %v2820_v5, %v2821_v57  ;;  %v17257_v61 = vsel %vm976_vm2, %v2821_v57, %v2823_v18  ;;  %v2964_v4 = vrot.slane %v17175_v41, 1  ;;  %v2966_v25 = vrot.slane %v2564_v62, 1  ;;  %v21976_v41 = vld [vmem:[#allocation19_spill] sm:$0xff] }
 0x235   : > { %v17262_v15 = vsel %vm976_vm2, %v2825_v28, %v2826_v40  ;;  %v17265_v63 = vsel %vm976_vm2, %v2826_v40, %v2828_v52  ;;  %v17268_v13 = vsel %vm976_vm2, %v3000_v53, %v3001_v46  ;;  %v17271_v5 = vsel %vm976_vm2, %v3001_v46, %v3003_v59 }
 0x236   : > { %21969 = vst [vmem:[#allocation55_spill] sm:$0xff] %v17268_v13  ;;  %21970 = vst [vmem:[#allocation56_spill] sm:$0xff] %v17271_v5  ;;  %v2963_v18 = vrot.slane %v17181_v27, 1  ;;  %v14827_v62 = vpack.i.bf16 %v17257_v61, %v17254_v2  ;;  %v14832_v40 = vpack.i.bf16 %v17265_v63, %v17262_v15  ;;  %v17286_v28 = vsel %vm810_vm1, %v2964_v4, %v2966_v25  ;;  %v21977_v27 = vld [vmem:[#allocation20_spill] sm:$0xff] }
 0x237   : > { %14818 = vrot.lane.b32.xlu1 %v14817_v36, %s15133_s20  ;;  %v2830_v36 = vrot.slane %v17147_v30, 2  ;;  %21972 = vst [vmem:[#allocation58_spill] sm:$0xff] %v17286_v28  ;;  %v17293_v53 = vsel %vm976_vm2, %v2831_v23, %v2833_v38  ;;  %v14847_v25 = vpack.i.bf16 %v17271_v5, %v17268_v13  ;;  %vm9735_vm0 = vcmask 917312  }
 0x238   : > { %14823 = vrot.lane.b32.xlu0 %v14822_v55, %s15133_s20  ;;  %v17283_v52 = vsel %vm810_vm1, %v2963_v18, %v2964_v4  ;;  %21974 = vst [vmem:[#allocation60_spill] sm:$0xff] %v17293_v53  ;;  %vm9742_vm1 = vcmask 982912  }
 0x239   : > { %21971 = vst [vmem:[#allocation57_spill] sm:$0xff] %v17283_v52  ;;  %v17290_v55 = vsel %vm976_vm2, %v2830_v36, %v2831_v23  ;;  %v14837_v46 = vpack.i.bf16 %v17286_v28, %v17283_v52  ;;  %vm21788_vm2 = vcmask 1048512  }
 0x23a   : > { %21973 = vst [vmem:[#allocation59_spill] sm:$0xff] %v17290_v55  ;;  %v14842_v59 = vpack.i.bf16 %v17293_v53, %v17290_v55 }
 0x23b   : > { %14828 = vrot.lane.b32.xlu1 %v14827_v62, %s15133_s20 }
 0x23c   : > { %14833 = vrot.lane.b32.xlu0 %v14832_v40, %s15133_s20 }
 0x23f   : > { %14838 = vrot.lane.b32.xlu1 %v14837_v46, %s15133_s20 }
 0x240   : > { %14843 = vrot.lane.b32.xlu0 %v14842_v59, %s15133_s20 }
 0x243   : > { %14848 = vrot.lane.b32.xlu1 %v14847_v25, %s15133_s20  ;;  %v21975_v25 = vld [vmem:[#allocation3_spill] sm:$0xff] }
 0x248   : > { %v14614_v4 = vpop.permute.xlu0 %14613 }
 0x249   : > { %v14616_v38 = vunpack.i.h.bf16 %v14614_v4  ;;  %v14615_v23 = vunpack.i.l.bf16 %v14614_v4 }
 0x24b   : > { %v3139_v62 = vsel %vm1326_vm3, %v16880_v48, %v14615_v23  ;;  %v3140_v36 = vsel %vm1326_vm3, %v16889_v16, %v14616_v38 }
 0x24c   : > { %v14624_v46 = vpop.permute.xlu0 %14623  ;;  %v3206_v28 = vpack.c.bf16 %v3140_v36, %v3139_v62 }
 0x24d   : > { %v14619_v18 = vpop.permute.xlu1 %14618  ;;  %v14626_v59 = vunpack.i.h.bf16 %v14624_v46  ;;  %v14625_v52 = vunpack.i.l.bf16 %v14624_v46 }
 0x24e   : > { %v14621_v40 = vunpack.i.h.bf16 %v14619_v18  ;;  %v14620_v57 = vunpack.i.l.bf16 %v14619_v18  ;;  %3567 = vmatprep.mubr.bf16.mxu1 %v3206_v28  ;;  %v14923_v18 = vld [vmem:[%s21464_s3 + $0x108] sm:$0xff]  }
 0x24f   : > { %v3141_v23 = vsel %vm1326_vm3, %v21976_v41, %v14625_v52  ;;  %v3142_v38 = vsel %vm1326_vm3, %v21977_v27, %v14626_v59  ;;  %v21978_v59 = vld [vmem:[#allocation14_spill] sm:$0xff] }
 0x250   : > { %v3110_v13 = vsel %vm1326_vm3, %v16558_v8, %v14621_v40  ;;  %v3109_v5 = vsel %vm1326_vm3, %v21975_v25, %v14620_v57  ;;  %v3210_v62 = vpack.c.bf16 %v3142_v38, %v3141_v23  ;;  %v15123_v8 = vld [vmem:[%s21464_s3 + $0x100] sm:$0xff]   ;;  %v14925_v57 = vld [vmem:[%s21464_s3 + $0x118] sm:$0xff]  }
 0x251   : > { %v3205_v4 = vpack.c.bf16 %v3110_v13, %v3109_v5  ;;  %v14924_v13 = vld [vmem:[%s21464_s3 + $0x110] sm:$0xff]  }
 0x252   : > { %v14634_v36 = vpop.permute.xlu0 %14633  ;;  %v21979_v23 = vld [vmem:[#allocation9_spill] sm:$0xff] }
 0x253   : > { %3568 = vmatmul.mubr.bf16.vlgmr.msra.gmra.mrb[80].mxu1 %v3205_v4  ;;  %3728 = vmatprep.mubr.bf16.mxu0 %v3205_v4  ;;  %v14636_v41 = vunpack.i.h.bf16 %v14634_v36  ;;  %v14635_v27 = vunpack.i.l.bf16 %v14634_v36 }
 0x254   : > { %14264 = vmatpush3.bf16.msra.mxu1 %v15123_v8  ;;  %3575 = vmatprep.mubr.bf16.mxu1 %v3210_v62 }
 0x255   : > { %14265 = vmatprep.subr.bf16.mxu1 %v14923_v18  ;;  %v3143_v40 = vsel %vm1326_vm3, %v16880_v48, %v14635_v27  ;;  %v3144_v46 = vsel %vm1326_vm3, %v16889_v16, %v14636_v41 }
 0x256   : > { %v14629_v5 = vpop.permute.xlu1 %14628  ;;  %v3214_v8 = vpack.c.bf16 %v3144_v46, %v3143_v40 }
 0x257   : > { %v14631_v52 = vunpack.i.h.bf16 %v14629_v5  ;;  %v14630_v28 = vunpack.i.l.bf16 %v14629_v5 }
 0x258   : > { %14266 = vmatpush3.bf16.msra.mxu1 %v14923_v18 }
 0x259   : > { %14267 = vmatprep.subr.bf16.mxu1 %v14924_v13  ;;  %v3111_v25 = vsel %vm1326_vm3, %v21978_v59, %v14630_v28  ;;  %v3112_v38 = vsel %vm1326_vm3, %v21979_v23, %v14631_v52 }
 0x25a   : > { %v14639_v18 = vpop.permute.xlu1 %14638  ;;  %v3209_v36 = vpack.c.bf16 %v3112_v38, %v3111_v25 }
 0x25b   : > { %v14644_v62 = vpop.permute.xlu0 %14643  ;;  %v14641_v30 = vunpack.i.h.bf16 %v14639_v18  ;;  %v14640_v5 = vunpack.i.l.bf16 %v14639_v18 }
 0x25c   : > { %14268 = vmatpush3.bf16.msra.mxu1 %v14924_v13  ;;  %v14646_v13 = vunpack.i.h.bf16 %v14644_v62  ;;  %v14645_v59 = vunpack.i.l.bf16 %v14644_v62 }
 0x25d   : > { %14269 = vmatprep.subr.bf16.mxu1 %v14925_v57  ;;  %3576 = vmatmul.mubr.bf16.gmra.mrb[84].mxu1 %v3209_v36  ;;  %v3145_v41 = vsel %vm1326_vm3, %v16974_v35, %v14640_v5  ;;  %v3146_v28 = vsel %vm1326_vm3, %v16979_v21, %v14641_v30 }
 0x25e   : > { %3583 = vmatprep.mubr.bf16.mxu1 %v3214_v8  ;;  %v14649_v48 = vpop.permute.xlu1 %14648  ;;  %v3218_v23 = vpack.c.bf16 %v3146_v28, %v3145_v41  ;;  %v3113_v18 = vsel %vm1326_vm3, %v16631_v50, %v14645_v59  ;;  %v21980_v8 = vld [vmem:[#allocation47_spill] sm:$0xff]  ;;  %v21982_v59 = vld [vmem:[#allocation18_spill] sm:$0xff] }
 0x25f   : > { %v14654_v27 = vpop.permute.xlu0 %14653  ;;  %v14651_v25 = vunpack.i.h.bf16 %v14649_v48  ;;  %v14650_v38 = vunpack.i.l.bf16 %v14649_v48 }
 0x260   : > { %14270 = vmatpush3.bf16.msra.mxu1 %v14925_v57  ;;  %v3114_v57 = vsel %vm1326_vm3, %v16627_v54, %v14646_v13  ;;  %v14655_v41 = vunpack.i.l.bf16 %v14654_v27  ;;  %v21981_v54 = vld [vmem:[#allocation8_spill] sm:$0xff] }
 0x261   : > { %v3147_v30 = vsel %vm1326_vm3, %v16985_v29, %v14650_v38  ;;  %v3148_v62 = vsel %vm1326_vm3, %v21980_v8, %v14651_v25  ;;  %v3212_v48 = vpack.c.bf16 %v3114_v57, %v3113_v18  ;;  %v21983_v8 = vld [vmem:[#allocation21_spill] sm:$0xff] }
 0x262   : > { %v14659_v52 = vpop.permute.xlu1 %14658  ;;  %v3222_v28 = vpack.c.bf16 %v3148_v62, %v3147_v30  ;;  %v3115_v13 = vsel %vm1326_vm3, %v21981_v54, %v14655_v41  ;;  %v21984_v54 = vld [vmem:[#allocation7_spill] sm:$0xff] }
 0x263   : > { %v14660_v21 = vunpack.i.l.bf16 %v14659_v52 }
 0x265   : > { %v14664_v40 = vpop.permute.xlu0 %14663  ;;  %3584 = vmatmul.mubr.bf16.gmra.mrb[88].mxu1 %v3205_v4  ;;  %v14656_v4 = vunpack.i.h.bf16 %v14654_v27  ;;  %v3149_v18 = vsel %vm1326_vm3, %v17048_v39, %v14660_v21 }
 0x266   : > { %3591 = vmatprep.mubr.bf16.mxu1 %v3218_v23  ;;  %v14669_v46 = vpop.permute.xlu1 %14668  ;;  %v14661_v23 = vunpack.i.h.bf16 %v14659_v52  ;;  %v14666_v30 = vunpack.i.h.bf16 %v14664_v40 }
 0x267   : > { %v3116_v38 = vsel %vm1326_vm3, %v21982_v59, %v14656_v4  ;;  %v14671_v35 = vunpack.i.h.bf16 %v14669_v46  ;;  %v14670_v16 = vunpack.i.l.bf16 %v14669_v46 }
 0x268   : > { %v3150_v27 = vsel %vm1326_vm3, %v17053_v34, %v14661_v23  ;;  %v3216_v62 = vpack.c.bf16 %v3116_v38, %v3115_v13 }
 0x269   : > { %v3226_v59 = vpack.c.bf16 %v3150_v27, %v3149_v18  ;;  %v3151_v46 = vsel %vm1326_vm3, %v17086_v9, %v14670_v16 }
 0x26a   : > { %v17345_v36 = vpop.permute.xlu0 %14673 }
 0x26b   : > { %v17351_v5 = vpop.permute.xlu1 %14678  ;;  %v14676_v27 = vunpack.i.h.bf16 %v17345_v36 }
 0x26d   : > { %3592 = vmatmul.mubr.bf16.gmra.mrb[92].mxu1 %v3212_v48 }
 0x26e   : > { %v17353_v50 = vpop.permute.xlu0 %14683  ;;  %3599 = vmatprep.mubr.bf16.mxu1 %v3222_v28  ;;  %v14665_v28 = vunpack.i.l.bf16 %v14664_v40 }
 0x270   : > { %v3117_v40 = vsel %vm1326_vm3, %v16718_v26, %v14665_v28 }
 0x272   : > { %v17359_v29 = vpop.permute.xlu0 %14693 }
 0x274   : > { %v14689_v25 = vpop.permute.xlu1 %14688 }
 0x275   : > { %v14691_v52 = vunpack.i.h.bf16 %v14689_v25  ;;  %v14690_v57 = vunpack.i.l.bf16 %v14689_v25  ;;  %3600 = vmatmul.mubr.bf16.gmra.mrb[96].mxu1 %v3216_v62  ;;  %v3152_v25 = vsel %vm1326_vm3, %v17091_v1, %v14671_v35 }
 0x276   : > { %v14704_v55 = vpop.permute.xlu0 %14703  ;;  %3607 = vmatprep.mubr.bf16.mxu1 %v3226_v59 }
 0x277   : > { %v3172_v41 = vsel %vm1326_vm3, %v21983_v8, %v14691_v52  ;;  %v3171_v4 = vsel %vm1326_vm3, %v21984_v54, %v14690_v57  ;;  %v14706_v23 = vunpack.i.h.bf16 %v14704_v55  ;;  %v14705_v34 = vunpack.i.l.bf16 %v14704_v55  ;;  %v21985_v55 = vld [vmem:[#allocation50_spill] sm:$0xff] }
 0x278   : > { %v3207_v53 = vpack.c.bf16 %v3172_v41, %v3171_v4  ;;  %v17369_v21 = vpop.permute.xlu1 %14698  ;;  %v3118_v8 = vsel %vm1326_vm3, %v16678_v10, %v14666_v30  ;;  %v14675_v10 = vunpack.i.l.bf16 %v17345_v36  ;;  %v3230_v52 = vpack.c.bf16 %v3152_v25, %v3151_v46  ;;  %v21987_v4 = vld [vmem:[#allocation22_spill] sm:$0xff] }
 0x279   : > { %v3220_v26 = vpack.c.bf16 %v3118_v8, %v3117_v40  ;;  %v14681_v57 = vunpack.i.h.bf16 %v17351_v5  ;;  %v14680_v30 = vunpack.i.l.bf16 %v17351_v5  ;;  %v3120_v36 = vsel %vm1326_vm3, %v21987_v4, %v14676_v27  ;;  %v21988_v40 = vld [vmem:[#allocation5_spill] sm:$0xff]  ;;  %v21989_v46 = vld [vmem:[#allocation6_spill] sm:$0xff] }
 0x27a   : > { %3729 = vmatmul.mubr.bf16.vlgmr.msra.gmra.mrb[80].mxu0 %v3207_v53  ;;  %v17375_v13 = vpop.permute.xlu0 %14713  ;;  %v3173_v53 = vsel %vm1326_vm3, %v21985_v55, %v14705_v34  ;;  %v3119_v54 = vsel %vm1326_vm3, %v16683_v51, %v14675_v10  ;;  %v14686_v51 = vunpack.i.h.bf16 %v17353_v50  ;;  %v14695_v27 = vunpack.i.l.bf16 %v17359_v29  ;;  %v21991_v4 = vld [vmem:[#allocation30_spill] sm:$0xff] }
 0x27b   : > { %3736 = vmatprep.mubr.bf16.mxu0 %v3212_v48  ;;  %v21986_v48 = vld [vmem:[#allocation17_spill] sm:$0xff]  ;;  %v3153_v5 = vsel %vm1326_vm3, %v17132_v47, %v14680_v30  ;;  %v3224_v55 = vpack.c.bf16 %v3120_v36, %v3119_v54 }
 0x27c   : > { %v17377_v38 = vpop.permute.xlu1 %14708  ;;  %v3174_v18 = vsel %vm1326_vm3, %v21986_v48, %v14706_v23  ;;  %v3154_v23 = vsel %vm1326_vm3, %v17135_v11, %v14681_v57 }
 0x27d   : > { %v3211_v35 = vpack.c.bf16 %v3174_v18, %v3173_v53  ;;  %3608 = vmatmul.mubr.bf16.gmra.mrb[100].mxu1 %v3220_v26  ;;  %v14685_v53 = vunpack.i.l.bf16 %v17353_v50  ;;  %v3234_v48 = vpack.c.bf16 %v3154_v23, %v3153_v5  ;;  %v14696_v18 = vunpack.i.h.bf16 %v17359_v29 }
 0x27e   : > { %v17391_v16 = vpop.permute.xlu0 %14723  ;;  %3615 = vmatprep.mubr.bf16.mxu1 %v3230_v52  ;;  %v3122_v50 = vsel %vm1326_vm3, %v21959_v32, %v14686_v51  ;;  %v3155_v29 = vsel %vm1326_vm3, %v17168_v45, %v14695_v27  ;;  %v14700_v32 = vunpack.i.l.bf16 %v17369_v21  ;;  %v21992_v27 = vld [vmem:[#allocation36_spill] sm:$0xff] }
 0x280   : > { %v14719_v28 = vpop.permute.xlu1 %14718 }
 0x281   : > { %v14721_v41 = vunpack.i.h.bf16 %v14719_v28  ;;  %v14720_v34 = vunpack.i.l.bf16 %v14719_v28  ;;  %v3121_v28 = vsel %vm1326_vm3, %v16762_v7, %v14685_v53  ;;  %v14701_v7 = vunpack.i.h.bf16 %v17369_v21 }
 0x282   : > { %3737 = vmatmul.mubr.bf16.gmra.mrb[84].mxu0 %v3211_v35  ;;  %v14734_v25 = vpop.permute.xlu0 %14733  ;;  %v3228_v5 = vpack.c.bf16 %v3122_v50, %v3121_v28  ;;  %v3123_v53 = vsel %vm1326_vm3, %v16820_v0, %v14700_v32  ;;  %v14716_v0 = vunpack.i.h.bf16 %v17375_v13 }
 0x283   : > { %3744 = vmatprep.mubr.bf16.mxu0 %v3216_v62  ;;  %v3175_v8 = vsel %vm1326_vm3, %v21988_v40, %v14720_v34  ;;  %v3176_v62 = vsel %vm1326_vm3, %v21989_v46, %v14721_v41  ;;  %v14736_v57 = vunpack.i.h.bf16 %v14734_v25  ;;  %v14735_v30 = vunpack.i.l.bf16 %v14734_v25  ;;  %v21990_v34 = vld [vmem:[#allocation31_spill] sm:$0xff] }
 0x284   : > { %v17397_v59 = vpop.permute.xlu1 %14728  ;;  %v3215_v52 = vpack.c.bf16 %v3176_v62, %v3175_v8  ;;  %v3156_v41 = vsel %vm1326_vm3, %v17171_v6, %v14696_v18  ;;  %v14711_v40 = vunpack.i.h.bf16 %v17377_v38  ;;  %v14710_v8 = vunpack.i.l.bf16 %v17377_v38 }
 0x285   : > { %3616 = vmatmul.mubr.bf16.gmra.mrb[104].mxu1 %v3224_v55  ;;  %v3177_v54 = vsel %vm1326_vm3, %v21990_v34, %v14735_v30  ;;  %v3238_v23 = vpack.c.bf16 %v3156_v41, %v3155_v29  ;;  %v3124_v21 = vsel %vm1326_vm3, %v16756_v37, %v14701_v7  ;;  %v14715_v37 = vunpack.i.l.bf16 %v17375_v13 }
 0x286   : > { %3623 = vmatprep.mubr.bf16.mxu1 %v3234_v48  ;;  %v17417_v35 = vpop.permute.xlu0 %14743  ;;  %v3157_v38 = vsel %vm1326_vm3, %v17205_v14, %v14710_v8  ;;  %v3158_v18 = vsel %vm1326_vm3, %v17208_v31, %v14711_v40  ;;  %v3232_v28 = vpack.c.bf16 %v3124_v21, %v3123_v53  ;;  %v14726_v29 = vunpack.i.h.bf16 %v17391_v16  ;;  %v21995_v8 = vld [vmem:[#allocation13_spill] sm:$0xff] }
 0x287   : > { %v3242_v50 = vpack.c.bf16 %v3158_v18, %v3157_v38  ;;  %v14725_v41 = vunpack.i.l.bf16 %v17391_v16  ;;  %v3126_v13 = vsel %vm1326_vm3, %v16845_v3, %v14716_v0  ;;  %v14730_v3 = vunpack.i.l.bf16 %v17397_v59  ;;  %v21996_v0 = vld [vmem:[#allocation44_spill] sm:$0xff] }
 0x288   : > { %v17411_v10 = vpop.permute.xlu1 %14738  ;;  %v3160_v32 = vsel %vm1326_vm3, %v17216_v12, %v14726_v29 }
 0x289   : > { %v3159_v16 = vsel %vm1326_vm3, %v17213_v33, %v14725_v41  ;;  %v14741_v53 = vunpack.i.h.bf16 %v17411_v10  ;;  %v14740_v21 = vunpack.i.l.bf16 %v17411_v10 }
 0x28a   : > { %3745 = vmatmul.mubr.bf16.gmra.mrb[88].mxu0 %v3215_v52  ;;  %v17431_v46 = vpop.permute.xlu0 %14753 }
 0x28b   : > { %3752 = vmatprep.mubr.bf16.mxu0 %v3220_v26  ;;  %v3178_v26 = vsel %vm1326_vm3, %v21991_v4, %v14736_v57  ;;  %v21993_v57 = vld [vmem:[#allocation37_spill] sm:$0xff]  ;;  %v3161_v10 = vsel %vm1326_vm3, %v17229_v22, %v14740_v21 }
 0x28c   : > { %v14749_v36 = vpop.permute.xlu1 %14748  ;;  %v3219_v62 = vpack.c.bf16 %v3178_v26, %v3177_v54 }
 0x28d   : > { %3624 = vmatmul.mubr.bf16.gmra.mrb[108].mxu1 %v3228_v5  ;;  %v14751_v25 = vunpack.i.h.bf16 %v14749_v36  ;;  %v14750_v51 = vunpack.i.l.bf16 %v14749_v36  ;;  %v3125_v36 = vsel %vm1326_vm3, %v16842_v17, %v14715_v37  ;;  %v14731_v17 = vunpack.i.h.bf16 %v17397_v59 }
 0x28e   : > { %3631 = vmatprep.mubr.bf16.mxu1 %v3238_v23  ;;  %v21994_v23 = vld [vmem:[#allocation12_spill] sm:$0xff] }
 0x28f   : > { %v3179_v52 = vsel %vm1326_vm3, %v21992_v27, %v14750_v51  ;;  %v3246_v51 = vpack.c.bf16 %v3160_v32, %v3159_v16  ;;  %v3128_v59 = vsel %vm1326_vm3, %v16932_v43, %v14731_v17  ;;  %v14745_v43 = vunpack.i.l.bf16 %v17417_v35 }
 0x290   : > { %v17437_v48 = vpop.permute.xlu1 %14758 }
 0x292   : > { %3753 = vmatmul.mubr.bf16.gmra.mrb[92].mxu0 %v3219_v62  ;;  %v14764_v30 = vpop.permute.xlu0 %14763 }
 0x293   : > { %3760 = vmatprep.mubr.bf16.mxu0 %v3224_v55  ;;  %v3180_v55 = vsel %vm1326_vm3, %v21993_v57, %v14751_v25  ;;  %v14766_v4 = vunpack.i.h.bf16 %v14764_v30  ;;  %v14765_v26 = vunpack.i.l.bf16 %v14764_v30  ;;  %v3236_v25 = vpack.c.bf16 %v3126_v13, %v3125_v36 }
 0x294   : > { %v17451_v34 = vpop.permute.xlu1 %14768  ;;  %v3223_v54 = vpack.c.bf16 %v3180_v55, %v3179_v52  ;;  %v3127_v57 = vsel %vm1326_vm3, %v16945_v60, %v14730_v3  ;;  %v3162_v30 = vsel %vm1326_vm3, %v17232_v42, %v14741_v53  ;;  %v14746_v60 = vunpack.i.h.bf16 %v17417_v35 }
 0x295   : > { %3632 = vmatmul.mubr.bf16.gmra.mrb[112].mxu1 %v3232_v28  ;;  %v3181_v40 = vsel %vm1326_vm3, %v21994_v23, %v14765_v26  ;;  %v3240_v41 = vpack.c.bf16 %v3128_v59, %v3127_v57  ;;  %v14755_v26 = vunpack.i.l.bf16 %v17431_v46  ;;  %v3129_v23 = vsel %vm1326_vm3, %v16937_v56, %v14745_v43 }
 0x296   : > { %3639 = vmatprep.mubr.bf16.mxu1 %v3242_v50  ;;  %v17457_v7 = vpop.permute.xlu0 %14773  ;;  %v21997_v50 = vld [vmem:[#allocation45_spill] sm:$0xff]  ;;  %v3130_v35 = vsel %vm1326_vm3, %v16940_v49, %v14746_v60  ;;  %v14760_v56 = vunpack.i.l.bf16 %v17437_v48  ;;  %v14771_v49 = vunpack.i.h.bf16 %v17451_v34  ;;  %v14770_v21 = vunpack.i.l.bf16 %v17451_v34 }
 0x298   : > { %v3131_v59 = vsel %vm1326_vm3, %v17031_v19, %v14760_v56  ;;  %v3166_v34 = vsel %vm1326_vm3, %v17257_v61, %v14771_v49  ;;  %v14775_v19 = vunpack.i.l.bf16 %v17457_v7 }
 0x299   : > { %v14779_v62 = vpop.permute.xlu1 %14778 }
 0x29a   : > { %3761 = vmatmul.mubr.bf16.gmra.mrb[96].mxu0 %v3223_v54  ;;  %v17471_v38 = vpop.permute.xlu0 %14783  ;;  %v14781_v27 = vunpack.i.h.bf16 %v14779_v62  ;;  %v14780_v52 = vunpack.i.l.bf16 %v14779_v62  ;;  %v3250_v54 = vpack.c.bf16 %v3162_v30, %v3161_v10  ;;  %v21999_v62 = vld [vmem:[#allocation27_spill] sm:$0xff]  ;;  %v3165_v10 = vsel %vm1326_vm3, %v17254_v2, %v14770_v21  ;;  %v22000_v30 = vld [vmem:[#allocation32_spill] sm:$0xff]  ;;  %v22005_v21 = vld [vmem:[#allocation41_spill] sm:$0xff] }
 0x29b   : > { %3768 = vmatprep.mubr.bf16.mxu0 %v3228_v5  ;;  %v3182_v5 = vsel %vm1326_vm3, %v21995_v8, %v14766_v4  ;;  %v14756_v4 = vunpack.i.h.bf16 %v17431_v46  ;;  %v21998_v8 = vld [vmem:[#allocation26_spill] sm:$0xff]  ;;  %v3258_v60 = vpack.c.bf16 %v3166_v34, %v3165_v10  ;;  %v14786_v43 = vunpack.i.h.bf16 %v17471_v38 }
 0x29c   : > { %v3227_v18 = vpack.c.bf16 %v3182_v5, %v3181_v40  ;;  %v3183_v37 = vsel %vm1326_vm3, %v21996_v0, %v14780_v52  ;;  %v3163_v40 = vsel %vm1326_vm3, %v17221_v58, %v14755_v26 }
 0x29d   : > { %3640 = vmatmul.mubr.bf16.gmra.mrb[116].mxu1 %v3236_v25  ;;  %v17477_v55 = vpop.permute.xlu1 %14788  ;;  %v3164_v46 = vsel %vm1326_vm3, %v17226_v20, %v14756_v4 }
 0x29e   : > { %3647 = vmatprep.mubr.bf16.mxu1 %v3246_v51  ;;  %v14794_v29 = vpop.permute.xlu0 %14793  ;;  %v14761_v51 = vunpack.i.h.bf16 %v17437_v48  ;;  %v3254_v53 = vpack.c.bf16 %v3164_v46, %v3163_v40  ;;  %v22004_v46 = vld [vmem:[#allocation49_spill] sm:$0xff] }
 0x29f   : > { %v14796_v16 = vunpack.i.h.bf16 %v14794_v29  ;;  %v14795_v32 = vunpack.i.l.bf16 %v14794_v29 }
 0x2a0   : > { %v3132_v48 = vsel %vm1326_vm3, %v17025_v44, %v14761_v51  ;;  %v14926_v44 = vld [vmem:[%s21466_s5] sm:$0xff]  }
 0x2a1   : > { %v17491_v36 = vpop.permute.xlu1 %14798  ;;  %v3185_v5 = vsel %vm1326_vm3, %v21998_v8, %v14795_v32  ;;  %v3186_v17 = vsel %vm1326_vm3, %v21999_v62, %v14796_v16  ;;  %v3248_v29 = vpack.c.bf16 %v3132_v48, %v3131_v59  ;;  %14303 = vmatprep.subr.bf16.mxu0 %v14926_v44  ;;  %v22002_v16 = vld [vmem:[#allocation28_spill] sm:$0xff]  ;;  %v22007_v59 = vld [vmem:[#allocation59_spill] sm:$0xff] }
 0x2a2   : > { %3769 = vmatmul.mubr.bf16.gmra.mrb[100].mxu0 %v3227_v18  ;;  %v17509_v18 = vpop.permute.xlu0 %14803  ;;  %v14800_v51 = vunpack.i.l.bf16 %v17491_v36  ;;  %v22008_v48 = vld [vmem:[#allocation60_spill] sm:$0xff] }
 0x2a3   : > { %3776 = vmatprep.mubr.bf16.mxu0 %v3232_v28  ;;  %v3184_v28 = vsel %vm1326_vm3, %v21997_v50, %v14781_v27  ;;  %v3235_v27 = vpack.c.bf16 %v3186_v17, %v3185_v5  ;;  %14304 = vmatpush3.bf16.msra.mxu0 %v14926_v44  ;;  %v14790_v17 = vunpack.i.l.bf16 %v17477_v55 }
 0x2a4   : > { %v3231_v13 = vpack.c.bf16 %v3184_v28, %v3183_v37  ;;  %v22001_v37 = vld [vmem:[#allocation33_spill] sm:$0xff] }
 0x2a5   : > { %3648 = vmatmul.mubr.bf16.gmra.mrb[120].mxu1 %v3240_v41  ;;  %v14809_v3 = vpop.permute.xlu1 %14808 }
 0x2a6   : > { %3655 = vmatprep.mubr.bf16.mxu1 %v3250_v54  ;;  %v14811_v52 = vunpack.i.h.bf16 %v14809_v3  ;;  %v14810_v57 = vunpack.i.l.bf16 %v14809_v3  ;;  %v14814_v28 = vpop.permute.xlu0 %14813  ;;  %v14785_v54 = vunpack.i.l.bf16 %v17471_v38  ;;  %v3168_v38 = vsel %vm1326_vm3, %v17265_v63, %v14786_v43  ;;  %v22011_v43 = vld [vmem:[#allocation43_spill] sm:$0xff] }
 0x2a7   : > { %v14816_v26 = vunpack.i.h.bf16 %v14814_v28 }
 0x2a8   : > { %v3187_v0 = vsel %vm1326_vm3, %v22000_v30, %v14810_v57  ;;  %v3188_v50 = vsel %vm1326_vm3, %v22001_v37, %v14811_v52  ;;  %v22006_v52 = vld [vmem:[#allocation40_spill] sm:$0xff]  ;;  %v22010_v30 = vld [vmem:[#allocation25_spill] sm:$0xff] }
 0x2a9   : > { %v3239_v4 = vpack.c.bf16 %v3188_v50, %v3187_v0  ;;  %v3190_v8 = vsel %vm1326_vm3, %v22004_v46, %v14816_v26  ;;  %v14819_v5 = vpop.permute.xlu1 %14818 }
 0x2aa   : > { %3777 = vmatmul.mubr.bf16.gmra.mrb[104].mxu0 %v3231_v13  ;;  %v14815_v13 = vunpack.i.l.bf16 %v14814_v28  ;;  %v14820_v49 = vunpack.i.l.bf16 %v14819_v5  ;;  %v14824_v37 = vpop.permute.xlu0 %14823  ;;  %v14806_v28 = vunpack.i.h.bf16 %v17509_v18 }
 0x2ab   : > { %3784 = vmatprep.mubr.bf16.mxu0 %v3236_v25  ;;  %v3244_v25 = vpack.c.bf16 %v3130_v35, %v3129_v23  ;;  %v3167_v23 = vsel %vm1326_vm3, %v17262_v15, %v14785_v54  ;;  %v22003_v35 = vld [vmem:[#allocation48_spill] sm:$0xff]  ;;  %v14825_v44 = vunpack.i.l.bf16 %v14824_v37 }
 0x2ac   : > { %v3189_v40 = vsel %vm1326_vm3, %v22003_v35, %v14815_v13  ;;  %v3262_v3 = vpack.c.bf16 %v3168_v38, %v3167_v23  ;;  %v22013_v13 = vld [vmem:[#allocation52_spill] sm:$0xff]  ;;  %v22015_v38 = vld [vmem:[#allocation15_spill] sm:$0xff] }
 0x2ad   : > { %3656 = vmatmul.mubr.bf16.gmra.mrb[124].mxu1 %v3244_v25  ;;  %v3243_v56 = vpack.c.bf16 %v3190_v8, %v3189_v40  ;;  %v22016_v35 = vld [vmem:[#allocation16_spill] sm:$0xff] }
 0x2ae   : > { %3663 = vmatprep.mubr.bf16.mxu1 %v3254_v53  ;;  %v14821_v53 = vunpack.i.h.bf16 %v14819_v5  ;;  %v3208_v40 = vpack.c.bf16 %v22016_v35, %v22015_v38  ;;  %v22029_v38 = vld [vmem:[#allocation11_spill] sm:$0xff] }
 0x2b0   : > { %v3192_v0 = vsel %vm1326_vm3, %v22010_v30, %v14821_v53  ;;  %v14834_v53 = vpop.permute.xlu0 %14833 }
 0x2b2   : > { %3785 = vmatmul.mubr.bf16.gmra.mrb[108].mxu0 %v3235_v27  ;;  %v3135_v27 = vsel %vm1326_vm3, %v22005_v21, %v14790_v17  ;;  %v22018_v17 = vld [vmem:[#allocation35_spill] sm:$0xff]  ;;  %v22021_v21 = vld [vmem:[#allocation46_spill] sm:$0xff] }
 0x2b3   : > { %3792 = vmatprep.mubr.bf16.mxu0 %v3240_v41  ;;  %v14776_v41 = vunpack.i.h.bf16 %v17457_v7  ;;  %v3133_v7 = vsel %vm1326_vm3, %v17056_v24, %v14775_v19  ;;  %v14791_v24 = vunpack.i.h.bf16 %v17477_v55  ;;  %v3169_v55 = vsel %vm1326_vm3, %v22007_v59, %v14800_v51  ;;  %v22020_v51 = vld [vmem:[#allocation39_spill] sm:$0xff] }
 0x2b5   : > { %3664 = vmatmul.mubr.bf16.gmra.mrb[128].mxu1 %v3248_v29  ;;  %v3134_v32 = vsel %vm1326_vm3, %v22002_v16, %v14776_v41  ;;  %v3136_v57 = vsel %vm1326_vm3, %v22006_v52, %v14791_v24  ;;  %v22014_v16 = vld [vmem:[#allocation51_spill] sm:$0xff] }
 0x2b6   : > { %3671 = vmatprep.mubr.bf16.mxu1 %v3258_v60  ;;  %v3252_v62 = vpack.c.bf16 %v3134_v32, %v3133_v7  ;;  %v3256_v50 = vpack.c.bf16 %v3136_v57, %v3135_v27  ;;  %v14826_v60 = vunpack.i.h.bf16 %v14824_v37  ;;  %v3193_v7 = vsel %vm1326_vm3, %v22013_v13, %v14825_v44  ;;  %v14829_v32 = vpop.permute.xlu1 %14828  ;;  %v22022_v27 = vld [vmem:[#allocation47_spill] sm:$0xff] }
 0x2b7   : > { %v14831_v8 = vunpack.i.h.bf16 %v14829_v32  ;;  %v14830_v5 = vunpack.i.l.bf16 %v14829_v32  ;;  %v3217_v52 = vpack.c.bf16 %v22022_v27, %v22021_v21 }
 0x2ba   : > { %3793 = vmatmul.mubr.bf16.gmra.mrb[112].mxu0 %v3239_v4  ;;  %v22012_v4 = vld [vmem:[#allocation42_spill] sm:$0xff] }
 0x2bb   : > { %3800 = vmatprep.mubr.bf16.mxu0 %v3244_v25  ;;  %v14801_v25 = vunpack.i.h.bf16 %v17491_v36  ;;  %v22009_v36 = vld [vmem:[#allocation24_spill] sm:$0xff]  ;;  %v3138_v26 = vsel %vm1326_vm3, %v22012_v4, %v14806_v28  ;;  %v3225_v4 = vpack.c.bf16 %v17091_v1, %v17086_v9  ;;  %v3229_v9 = vpack.c.bf16 %v17135_v11, %v17132_v47 }
 0x2bc   : > { %v3191_v34 = vsel %vm1326_vm3, %v22009_v36, %v14820_v49  ;;  %v14839_v49 = vpop.permute.xlu1 %14838  ;;  %v14927_v36 = vld [vmem:[%s21466_s5 + $0x8] sm:$0xff]   ;;  %v3233_v1 = vpack.c.bf16 %v17171_v6, %v17168_v45  ;;  %v3237_v47 = vpack.c.bf16 %v17208_v31, %v17205_v14  ;;  %v3241_v11 = vpack.c.bf16 %v17216_v12, %v17213_v33  ;;  %v14928_v14 = vld [vmem:[%s21466_s5 + $0x10] sm:$0xff]  }
 0x2bd   : > { %3672 = vmatmul.mubr.bf16.gmra.mrb[132].mxu1 %v3252_v62  ;;  %v3170_v10 = vsel %vm1326_vm3, %v22008_v48, %v14801_v25  ;;  %v3247_v19 = vpack.c.bf16 %v3192_v0, %v3191_v34  ;;  %v22019_v25 = vld [vmem:[#allocation38_spill] sm:$0xff]  ;;  %v14841_v34 = vunpack.i.h.bf16 %v14839_v49  ;;  %v14840_v30 = vunpack.i.l.bf16 %v14839_v49  ;;  %14305 = vmatprep.subr.bf16.mxu0 %v14927_v36  ;;  %v22023_v0 = vld [vmem:[#allocation53_spill] sm:$0xff] }
 0x2be   : > { %3679 = vmatprep.mubr.bf16.mxu1 %v3262_v3  ;;  %v3266_v41 = vpack.c.bf16 %v3170_v10, %v3169_v55  ;;  %v3196_v3 = vsel %vm1326_vm3, %v22018_v17, %v14831_v8  ;;  %v14836_v55 = vunpack.i.h.bf16 %v14834_v53  ;;  %v14835_v10 = vunpack.i.l.bf16 %v14834_v53  ;;  %14306 = vmatpush3.bf16.msra.mxu0 %v14927_v36 }
 0x2bf   : > { %v3245_v6 = vpack.c.bf16 %v17232_v42, %v17229_v22  ;;  %14307 = vmatprep.subr.bf16.mxu0 %v14928_v14  ;;  %v3253_v31 = vpack.c.bf16 %v17257_v61, %v17254_v2  ;;  %v3257_v33 = vpack.c.bf16 %v17265_v63, %v17262_v15  ;;  %v3261_v12 = vpack.c.bf16 %v22008_v48, %v22007_v59  ;;  %v14929_v15 = vld [vmem:[%s21466_s5 + $0x18] sm:$0xff]  }
 0x2c0   : > { %v3197_v37 = vsel %vm1326_vm3, %v22023_v0, %v14835_v10 }
 0x2c2   : > { %3801 = vmatmul.mubr.bf16.gmra.mrb[116].mxu0 %v3243_v56  ;;  %v3213_v56 = vpack.c.bf16 %v22020_v51, %v22019_v25 }
 0x2c3   : > { %3808 = vmatprep.mubr.bf16.mxu0 %v3248_v29  ;;  %v14805_v29 = vunpack.i.l.bf16 %v17509_v18  ;;  %v3194_v18 = vsel %vm1326_vm3, %v22014_v16, %v14826_v60  ;;  %v22026_v60 = vld [vmem:[#allocation4_spill] sm:$0xff]  ;;  %14308 = vmatpush3.bf16.msra.mxu0 %v14928_v14 }
 0x2c4   : > { %v3251_v46 = vpack.c.bf16 %v3194_v18, %v3193_v7  ;;  %v3204_v44 = vsel %vm1326_vm3, %v22026_v60, %v14841_v34  ;;  %v22028_v18 = vld [vmem:[#allocation10_spill] sm:$0xff]  ;;  %14309 = vmatprep.subr.bf16.mxu0 %v14929_v15 }
 0x2c5   : > { %3680 = vmatmul.mubr.bf16.gmra.mrb[136].mxu1 %v3256_v50  ;;  %v3137_v54 = vsel %vm1326_vm3, %v22011_v43, %v14805_v29  ;;  %v14844_v29 = vpop.permute.xlu0 %14843  ;;  %v22027_v43 = vld [vmem:[#allocation29_spill] sm:$0xff] }
 0x2c6   : > { %3687 = vmatprep.mubr.bf16.mxu1 %v3266_v41  ;;  %v3260_v23 = vpack.c.bf16 %v3138_v26, %v3137_v54  ;;  %v22025_v41 = vld [vmem:[#allocation23_spill] sm:$0xff]  ;;  %v3221_v54 = vpack.c.bf16 %v22027_v43, %v17048_v39  ;;  %v14846_v13 = vunpack.i.h.bf16 %v14844_v29  ;;  %v14845_v7 = vunpack.i.l.bf16 %v14844_v29  ;;  %v14849_v39 = vpop.permute.xlu1 %14848  ;;  %v17647_v29 = vld [vmem:[%s21465_s4] ss:$0 sm:$0xff] }
 0x2c7   : > { %v14850_v8 = vunpack.i.l.bf16 %v14849_v39  ;;  %14310 = vmatpush3.bf16.msra.mxu0 %v14929_v15 }
 0x2c8   : > { %v3199_v32 = vsel %vm1326_vm3, %v22028_v18, %v14845_v7  ;;  %v3200_v35 = vsel %vm1326_vm3, %v22029_v38, %v14846_v13 }
 0x2ca   : > { %3809 = vmatmul.mubr.bf16.gmra.mrb[120].mxu0 %v3247_v19  ;;  %v3203_v19 = vsel %vm1326_vm3, %v22025_v41, %v14840_v30 }
 0x2cb   : > { %3816 = vmatprep.mubr.bf16.mxu0 %v3252_v62  ;;  %v22017_v62 = vld [vmem:[#allocation34_spill] sm:$0xff]  ;;  %v3264_v16 = vpack.c.bf16 %v3204_v44, %v3203_v19 }
 0x2cc   : > { %v3195_v24 = vsel %vm1326_vm3, %v22017_v62, %v14830_v5  ;;  %v22030_v5 = vld [vmem:[#allocation57_spill] sm:$0xff] }
 0x2cd   : > { %3688 = vmatmul.mubr.bf16.gmra.mrb[140].mxu1 %v3260_v23  ;;  %v3255_v57 = vpack.c.bf16 %v3196_v3, %v3195_v24  ;;  %v3201_v62 = vsel %vm1326_vm3, %v22030_v5, %v14850_v8  ;;  %v22031_v24 = vld [vmem:[#allocation58_spill] sm:$0xff] }
 0x2ce   : > { %14271 = vmatprep.mubr.msk.bf16.mxu1 %vm1326_vm3, %v3208_v40  ;;  %v3263_v40 = vpack.c.bf16 %v3200_v35, %v3199_v32 }
 0x2d2   : > { %3817 = vmatmul.mubr.bf16.gmra.mrb[124].mxu0 %v3251_v46  ;;  %v14851_v46 = vunpack.i.h.bf16 %v14849_v39 }
 0x2d3   : > { %3824 = vmatprep.mubr.bf16.mxu0 %v3256_v50  ;;  %v22024_v50 = vld [vmem:[#allocation54_spill] sm:$0xff] }
 0x2d4   : > { %v3198_v28 = vsel %vm1326_vm3, %v22024_v50, %v14836_v55  ;;  %v3202_v17 = vsel %vm1326_vm3, %v22031_v24, %v14851_v46 }
 0x2d5   : > { %14272 = vmatmul.mubr.msk.bf16.vlgmr.msra.gmra.mrb[144].mxu1 %vm1326_vm3, %v3213_v56  ;;  %v3259_v26 = vpack.c.bf16 %v3198_v28, %v3197_v37  ;;  %v3267_v45 = vpack.c.bf16 %v3202_v17, %v3201_v62 }
 0x2d6   : > { %14275 = vmatprep.mubr.msk.bf16.mxu1 %vm1326_vm3, %v3217_v52 }
 0x2da   : > { %3825 = vmatmul.mubr.bf16.gmra.mrb[128].mxu0 %v3255_v57 }
 0x2db   : > { %3832 = vmatprep.mubr.bf16.mxu0 %v3260_v23 }
 0x2dd   : > { %14276 = vmatmul.mubr.msk.bf16.gmra.mrb[148].mxu1 %vm1326_vm3, %v3221_v54 }
 0x2de   : > { %14279 = vmatprep.mubr.msk.bf16.mxu1 %vm1326_vm3, %v3225_v4 }
 0x2e2   : > { %3833 = vmatmul.mubr.bf16.gmra.mrb[132].mxu0 %v3259_v26 }
 0x2e3   : > { %3840 = vmatprep.mubr.bf16.mxu0 %v3264_v16 }
 0x2e5   : > { %14280 = vmatmul.mubr.msk.bf16.gmra.mrb[152].mxu1 %vm1326_vm3, %v3229_v9 }
 0x2e6   : > { %14283 = vmatprep.mubr.msk.bf16.mxu1 %vm1326_vm3, %v3233_v1 }
 0x2ea   : > { %3841 = vmatmul.mubr.bf16.gmra.mrb[136].mxu0 %v3263_v40 }
 0x2eb   : > { %3848 = vmatprep.mubr.bf16.mxu0 %v3260_v23  ;;  %v3249_v23 = vpack.c.bf16 %v17226_v20, %v17221_v58  ;;  %v22032_v58 = vld [vmem:[#allocation56_spill] sm:$0xff]  ;;  %v22033_v20 = vld [vmem:[#allocation55_spill] sm:$0xff] }
 0x2ec   : > { %v22034_v22 = vpack.c.bf16 %v22032_v58, %v22033_v20 }
 0x2ed   : > { %14284 = vmatmul.mubr.msk.bf16.gmra.mrb[156].mxu1 %vm1326_vm3, %v3237_v47 }
 0x2ee   : > { %14287 = vmatprep.mubr.msk.bf16.mxu1 %vm1326_vm3, %v3241_v11 }
 0x2f2   : > { %3849 = vmatmul.mubr.bf16.gmra.mrb[140].mxu0 %v3267_v45 }
 0x2f5   : > { %14288 = vmatmul.mubr.msk.bf16.gmra.mrb[160].mxu1 %vm1326_vm3, %v3245_v6 }
 0x2f6   : > { %14291 = vmatprep.mubr.msk.bf16.mxu1 %vm1326_vm3, %v3249_v23 }
 0x2fd   : > { %14292 = vmatmul.mubr.msk.bf16.gmra.mrb[164].mxu1 %vm1326_vm3, %v3253_v31 }
 0x2fe   : > { %14295 = vmatprep.mubr.msk.bf16.mxu1 %vm1326_vm3, %v3257_v33 }
 0x305   : > { %14296 = vmatmul.mubr.msk.bf16.gmra.mrb[168].mxu1 %vm1326_vm3, %v3261_v12 }
 0x306   : > { %14299 = vmatprep.mubr.msk.bf16.mxu1 %vm1326_vm3, %v22034_v22 }
 0x30d   : > { %14300 = vmatmul.mubr.msk.bf16.gmra.mrb[172].mxu1 %vm1326_vm3, %v3261_v12 }
 0x326   : > { %v13975_v63 = vpop.f32.mrb[80].mxu1 }
 0x327   : > { %v13976_v42 = vpop.f32.mrb[81].mxu1 }
 0x328   : > { %v13977_v2 = vadd.f32 %v13976_v42, %v13975_v63  ;;  %v13978_v61 = vpop.f32.mrb[82].mxu1 }
 0x329   : > { %v13979_v59 = vpop.f32.mrb[83].mxu1 }
 0x32a   : > { %v13980_v48 = vadd.f32 %v13979_v59, %v13978_v61  ;;  %v3570_v4 = vadd.f32 %v13977_v2, %v17647_v29 }
 0x32c   : > { %v3573_v18 = vadd.f32 %v13980_v48, %v17647_v29 }
 0x330   : > { %v13981_v3 = vpop.f32.mrb[84].mxu1 }
 0x331   : > { %v13982_v25 = vpop.f32.mrb[85].mxu1 }
 0x332   : > { %v13983_v51 = vadd.f32 %v13982_v25, %v13981_v3  ;;  %v13984_v56 = vpop.f32.mrb[86].mxu1 }
 0x333   : > { %v13985_v53 = vpop.f32.mrb[87].mxu1 }
 0x334   : > { %v13986_v49 = vadd.f32 %v13985_v53, %v13984_v56  ;;  %v3578_v62 = vadd.f32 %v13983_v51, %v17647_v29 }
 0x336   : > { %v3581_v45 = vadd.f32 %v13986_v49, %v17647_v29 }
 0x338   : > { %v13987_v21 = vpop.f32.mrb[88].mxu1 }
 0x339   : > { %v13988_v27 = vpop.f32.mrb[89].mxu1 }
 0x33a   : > { %v13989_v52 = vadd.f32 %v13988_v27, %v13987_v21  ;;  %v13990_v57 = vpop.f32.mrb[90].mxu1 }
 0x33b   : > { %v13991_v55 = vpop.f32.mrb[91].mxu1 }
 0x33c   : > { %v13992_v10 = vadd.f32 %v13991_v55, %v13990_v57  ;;  %v3586_v63 = vadd.f32 %v13989_v52, %v17647_v29 }
 0x33e   : > { %v3589_v48 = vadd.f32 %v13992_v10, %v17647_v29 }
 0x340   : > { %v13993_v36 = vpop.f32.mrb[92].mxu1 }
 0x341   : > { %v13994_v34 = vpop.f32.mrb[93].mxu1 }
 0x342   : > { %v13995_v30 = vadd.f32 %v13994_v34, %v13993_v36  ;;  %v13996_v0 = vpop.f32.mrb[94].mxu1 }
 0x343   : > { %v13997_v37 = vpop.f32.mrb[95].mxu1 }
 0x344   : > { %v13998_v50 = vadd.f32 %v13997_v37, %v13996_v0  ;;  %v3594_v55 = vadd.f32 %v13995_v30, %v17647_v29 }
 0x346   : > { %v3597_v37 = vadd.f32 %v13998_v50, %v17647_v29 }
 0x348   : > { %v13999_v28 = vpop.f32.mrb[96].mxu1 }
 0x349   : > { %v14000_v41 = vpop.f32.mrb[97].mxu1 }
 0x34a   : > { %v17649_v60 = vadd.f32 %v14000_v41, %v13999_v28  ;;  %v14002_v44 = vpop.f32.mrb[98].mxu1 }
 0x34b   : > { %v14003_v54 = vpop.f32.mrb[99].mxu1 }
 0x34c   : > { %v17652_v7 = vadd.f32 %v14003_v54, %v14002_v44 }
 0x34d   : > { %v14087_v19 = vpop.f32.mrb[80].mxu0 }
 0x34e   : > { %v14088_v43 = vpop.f32.mrb[81].mxu0 }
 0x34f   : > { %v14089_v26 = vadd.f32 %v14088_v43, %v14087_v19  ;;  %v14090_v13 = vpop.f32.mrb[82].mxu0 }
 0x350   : > { %v14091_v16 = vpop.f32.mrb[83].mxu0  ;;  %v14005_v35 = vpop.f32.mrb[100].mxu1 }
 0x351   : > { %v14092_v32 = vadd.f32 %v14091_v16, %v14090_v13  ;;  %v17655_v38 = vadd.f32 %v14089_v26, %v3570_v4  ;;  %v14006_v9 = vpop.f32.mrb[101].mxu1  ;;  %v3602_v16 = vadd.f32 %v17649_v60, %v17647_v29 }
 0x352   : > { %v17659_v40 = vadd.f32 %v14006_v9, %v14005_v35  ;;  %v14008_v46 = vpop.f32.mrb[102].mxu1  ;;  %v3605_v9 = vadd.f32 %v17652_v7, %v17647_v29 }
 0x353   : > { %v17657_v39 = vadd.f32 %v14092_v32, %v3573_v18  ;;  %v14009_v5 = vpop.f32.mrb[103].mxu1 }
 0x354   : > { %v17662_v47 = vadd.f32 %v14009_v5, %v14008_v46 }
 0x355   : > { %v14093_v1 = vpop.f32.mrb[84].mxu0 }
 0x356   : > { %v14094_v8 = vpop.f32.mrb[85].mxu0 }
 0x357   : > { %v14095_v24 = vadd.f32 %v14094_v8, %v14093_v1  ;;  %v14096_v17 = vpop.f32.mrb[86].mxu0 }
 0x358   : > { %v14097_v11 = vpop.f32.mrb[87].mxu0  ;;  %v14011_v14 = vpop.f32.mrb[104].mxu1 }
 0x359   : > { %v14098_v6 = vadd.f32 %v14097_v11, %v14096_v17  ;;  %v17665_v23 = vadd.f32 %v14095_v24, %v3578_v62  ;;  %v14012_v33 = vpop.f32.mrb[105].mxu1 }
 0x35a   : > { %v17669_v58 = vadd.f32 %v14012_v33, %v14011_v14  ;;  %v14014_v20 = vpop.f32.mrb[106].mxu1 }
 0x35b   : > { %v17667_v31 = vadd.f32 %v14098_v6, %v3581_v45  ;;  %v14015_v15 = vpop.f32.mrb[107].mxu1  ;;  %v3610_v6 = vadd.f32 %v17659_v40, %v17647_v29 }
 0x35c   : > { %v17672_v61 = vadd.f32 %v14015_v15, %v14014_v20  ;;  %v3613_v20 = vadd.f32 %v17662_v47, %v17647_v29 }
 0x35d   : > { %v14099_v12 = vpop.f32.mrb[88].mxu0 }
 0x35e   : > { %v14100_v22 = vpop.f32.mrb[89].mxu0 }
 0x35f   : > { %v14101_v42 = vadd.f32 %v14100_v22, %v14099_v12  ;;  %v14102_v2 = vpop.f32.mrb[90].mxu0 }
 0x360   : > { %v14103_v59 = vpop.f32.mrb[91].mxu0  ;;  %v14017_v51 = vpop.f32.mrb[108].mxu1 }
 0x361   : > { %v14104_v3 = vadd.f32 %v14103_v59, %v14102_v2  ;;  %v17675_v25 = vadd.f32 %v14101_v42, %v3586_v63  ;;  %v14018_v53 = vpop.f32.mrb[109].mxu1 }
 0x362   : > { %v17679_v21 = vadd.f32 %v14018_v53, %v14017_v51  ;;  %v14020_v27 = vpop.f32.mrb[110].mxu1  ;;  %v3618_v53 = vadd.f32 %v17669_v58, %v17647_v29 }
 0x363   : > { %v17677_v56 = vadd.f32 %v14104_v3, %v3589_v48  ;;  %v14021_v52 = vpop.f32.mrb[111].mxu1 }
 0x364   : > { %v17682_v0 = vadd.f32 %v14021_v52, %v14020_v27  ;;  %v3621_v52 = vadd.f32 %v17672_v61, %v17647_v29 }
 0x365   : > { %v14105_v49 = vpop.f32.mrb[92].mxu0 }
 0x366   : > { %v14106_v57 = vpop.f32.mrb[93].mxu0 }
 0x367   : > { %v14107_v36 = vadd.f32 %v14106_v57, %v14105_v49  ;;  %v14108_v34 = vpop.f32.mrb[94].mxu0 }
 0x368   : > { %v14109_v10 = vpop.f32.mrb[95].mxu0  ;;  %v14023_v19 = vpop.f32.mrb[112].mxu1 }
 0x369   : > { %v14110_v28 = vadd.f32 %v14109_v10, %v14108_v34  ;;  %v17685_v41 = vadd.f32 %v14107_v36, %v3594_v55  ;;  %v14024_v43 = vpop.f32.mrb[113].mxu1 }
 0x36a   : > { %v17689_v4 = vadd.f32 %v14024_v43, %v14023_v19  ;;  %v14026_v26 = vpop.f32.mrb[114].mxu1 }
 0x36b   : > { %v17687_v44 = vadd.f32 %v14110_v28, %v3597_v37  ;;  %v14027_v30 = vpop.f32.mrb[115].mxu1 }
 0x36c   : > { %v17693_v35 = vadd.f32 %v14027_v30, %v14026_v26  ;;  %v3626_v26 = vadd.f32 %v17679_v21, %v17647_v29 }
 0x36d   : > { %v14111_v54 = vpop.f32.mrb[96].mxu0 }
 0x36e   : > { %v14112_v13 = vpop.f32.mrb[97].mxu0 }
 0x36f   : > { %v14113_v18 = vadd.f32 %v14112_v13, %v14111_v54  ;;  %v14114_v32 = vpop.f32.mrb[98].mxu0 }
 0x370   : > { %v14115_v50 = vpop.f32.mrb[99].mxu0  ;;  %v14029_v8 = vpop.f32.mrb[116].mxu1 }
 0x371   : > { %v14116_v1 = vadd.f32 %v14115_v50, %v14114_v32  ;;  %v17697_v46 = vadd.f32 %v14113_v18, %v3602_v16  ;;  %v14030_v62 = vpop.f32.mrb[117].mxu1  ;;  %v3629_v18 = vadd.f32 %v17682_v0, %v17647_v29 }
 0x372   : > { %v17701_v17 = vadd.f32 %v14030_v62, %v14029_v8  ;;  %v14032_v11 = vpop.f32.mrb[118].mxu1 }
 0x373   : > { %v17699_v5 = vadd.f32 %v14116_v1, %v3605_v9  ;;  %v14033_v45 = vpop.f32.mrb[119].mxu1 }
 0x374   : > { %v17705_v12 = vadd.f32 %v14033_v45, %v14032_v11  ;;  %v3634_v45 = vadd.f32 %v17689_v4, %v17647_v29 }
 0x375   : > { %v14117_v24 = vpop.f32.mrb[100].mxu0 }
 0x376   : > { %v14118_v60 = vpop.f32.mrb[101].mxu0 }
 0x377   : > { %v14119_v14 = vadd.f32 %v14118_v60, %v14117_v24  ;;  %v14120_v33 = vpop.f32.mrb[102].mxu0 }
 0x378   : > { %v14121_v7 = vpop.f32.mrb[103].mxu0  ;;  %v14035_v63 = vpop.f32.mrb[120].mxu1 }
 0x379   : > { %v14122_v22 = vadd.f32 %v14121_v7, %v14120_v33  ;;  %v17709_v15 = vadd.f32 %v14119_v14, %v3610_v6  ;;  %v14036_v2 = vpop.f32.mrb[121].mxu1  ;;  %v3637_v7 = vadd.f32 %v17693_v35, %v17647_v29 }
 0x37a   : > { %v17713_v48 = vadd.f32 %v14036_v2, %v14035_v63  ;;  %v14038_v3 = vpop.f32.mrb[122].mxu1 }
 0x37b   : > { %v17711_v42 = vadd.f32 %v14122_v22, %v3613_v20  ;;  %v14039_v51 = vpop.f32.mrb[123].mxu1 }
 0x37c   : > { %v17717_v57 = vadd.f32 %v14039_v51, %v14038_v3 }
 0x37d   : > { %v14123_v59 = vpop.f32.mrb[104].mxu0 }
 0x37e   : > { %v14124_v40 = vpop.f32.mrb[105].mxu0 }
 0x37f   : > { %v14125_v49 = vadd.f32 %v14124_v40, %v14123_v59  ;;  %v14126_v27 = vpop.f32.mrb[106].mxu0 }
 0x380   : > { %v14127_v47 = vpop.f32.mrb[107].mxu0  ;;  %v14041_v34 = vpop.f32.mrb[124].mxu1 }
 0x381   : > { %v14128_v55 = vadd.f32 %v14127_v47, %v14126_v27  ;;  %v17721_v36 = vadd.f32 %v14125_v49, %v3618_v53  ;;  %v14042_v37 = vpop.f32.mrb[125].mxu1  ;;  %v3642_v49 = vadd.f32 %v17701_v17, %v17647_v29 }
 0x382   : > { %v17725_v19 = vadd.f32 %v14042_v37, %v14041_v34  ;;  %v14044_v43 = vpop.f32.mrb[126].mxu1 }
 0x383   : > { %v17723_v10 = vadd.f32 %v14128_v55, %v3621_v52  ;;  %v14045_v54 = vpop.f32.mrb[127].mxu1  ;;  %v3645_v55 = vadd.f32 %v17705_v12, %v17647_v29 }
 0x384   : > { %v17729_v16 = vadd.f32 %v14045_v54, %v14044_v43 }
 0x385   : > { %v14129_v28 = vpop.f32.mrb[108].mxu0 }
 0x386   : > { %v14130_v58 = vpop.f32.mrb[109].mxu0 }
 0x387   : > { %v14131_v13 = vadd.f32 %v14130_v58, %v14129_v28  ;;  %v14132_v30 = vpop.f32.mrb[110].mxu0 }
 0x388   : > { %v14133_v61 = vpop.f32.mrb[111].mxu0  ;;  %v14047_v9 = vpop.f32.mrb[128].mxu1 }
 0x389   : > { %v14134_v32 = vadd.f32 %v14133_v61, %v14132_v30  ;;  %v17733_v50 = vadd.f32 %v14131_v13, %v3626_v26  ;;  %v14048_v8 = vpop.f32.mrb[129].mxu1  ;;  %v3650_v61 = vadd.f32 %v17713_v48, %v17647_v29 }
 0x38a   : > { %v17737_v24 = vadd.f32 %v14048_v8, %v14047_v9  ;;  %v14050_v11 = vpop.f32.mrb[130].mxu1  ;;  %v3653_v8 = vadd.f32 %v17717_v57, %v17647_v29 }
 0x38b   : > { %v17735_v1 = vadd.f32 %v14134_v32, %v3629_v18  ;;  %v14051_v60 = vpop.f32.mrb[131].mxu1 }
 0x38c   : > { %v17741_v33 = vadd.f32 %v14051_v60, %v14050_v11 }
 0x38d   : > { %v14135_v62 = vpop.f32.mrb[112].mxu0 }
 0x38e   : > { %v14136_v21 = vpop.f32.mrb[113].mxu0 }
 0x38f   : > { %v14137_v6 = vadd.f32 %v14136_v21, %v14135_v62  ;;  %v14138_v14 = vpop.f32.mrb[114].mxu0 }
 0x390   : > { %v14139_v0 = vpop.f32.mrb[115].mxu0  ;;  %v14053_v63 = vpop.f32.mrb[132].mxu1 }
 0x391   : > { %v14140_v20 = vadd.f32 %v14139_v0, %v14138_v14  ;;  %v17745_v22 = vadd.f32 %v14137_v6, %v3634_v45  ;;  %v14054_v59 = vpop.f32.mrb[133].mxu1 }
 0x392   : > { %v17749_v40 = vadd.f32 %v14054_v59, %v14053_v63  ;;  %v14056_v51 = vpop.f32.mrb[134].mxu1 }
 0x393   : > { %v17747_v2 = vadd.f32 %v14140_v20, %v3637_v7  ;;  %v14057_v53 = vpop.f32.mrb[135].mxu1  ;;  %v3658_v20 = vadd.f32 %v17725_v19, %v17647_v29 }
 0x394   : > { %v17753_v52 = vadd.f32 %v14057_v53, %v14056_v51  ;;  %v3661_v51 = vadd.f32 %v17729_v16, %v17647_v29  ;;  %v3666_v16 = vadd.f32 %v17737_v24, %v17647_v29 }
 0x395   : > { %v14141_v3 = vpop.f32.mrb[116].mxu0 }
 0x396   : > { %v14142_v4 = vpop.f32.mrb[117].mxu0 }
 0x397   : > { %v14143_v27 = vadd.f32 %v14142_v4, %v14141_v3  ;;  %v14144_v47 = vpop.f32.mrb[118].mxu0 }
 0x398   : > { %v14145_v35 = vpop.f32.mrb[119].mxu0  ;;  %v14059_v28 = vpop.f32.mrb[136].mxu1 }
 0x399   : > { %v14146_v34 = vadd.f32 %v14145_v35, %v14144_v47  ;;  %v17757_v37 = vadd.f32 %v14143_v27, %v3642_v49  ;;  %v14060_v58 = vpop.f32.mrb[137].mxu1 }
 0x39a   : > { %v17761_v26 = vadd.f32 %v14060_v58, %v14059_v28  ;;  %v14062_v13 = vpop.f32.mrb[138].mxu1 }
 0x39b   : > { %v17759_v43 = vadd.f32 %v14146_v34, %v3645_v55  ;;  %v14063_v30 = vpop.f32.mrb[139].mxu1 }
 0x39c   : > { %v17765_v9 = vadd.f32 %v14063_v30, %v14062_v13 }
 0x39d   : > { %v14147_v54 = vpop.f32.mrb[120].mxu0 }
 0x39e   : > { %v14148_v17 = vpop.f32.mrb[121].mxu0 }
 0x39f   : > { %v14149_v18 = vadd.f32 %v14148_v17, %v14147_v54  ;;  %v14150_v32 = vpop.f32.mrb[122].mxu0 }
 0x3a0   : > { %v14151_v12 = vpop.f32.mrb[123].mxu0  ;;  %v14065_v21 = vpop.f32.mrb[140].mxu1 }
 0x3a1   : > { %v14152_v62 = vadd.f32 %v14151_v12, %v14150_v32  ;;  %v17769_v11 = vadd.f32 %v14149_v18, %v3650_v61  ;;  %v14066_v45 = vpop.f32.mrb[141].mxu1  ;;  %v3669_v61 = vadd.f32 %v17741_v33, %v17647_v29 }
 0x3a2   : > { %v17773_v14 = vadd.f32 %v14066_v45, %v14065_v21  ;;  %v14068_v0 = vpop.f32.mrb[142].mxu1 }
 0x3a3   : > { %v17771_v60 = vadd.f32 %v14152_v62, %v3653_v8  ;;  %v14069_v7 = vpop.f32.mrb[143].mxu1 }
 0x3a4   : > { %v17777_v3 = vadd.f32 %v14069_v7, %v14068_v0 }
 0x3a5   : > { %v14153_v6 = vpop.f32.mrb[124].mxu0 }
 0x3a6   : > { %v14154_v48 = vpop.f32.mrb[125].mxu0 }
 0x3a7   : > { %v14155_v63 = vadd.f32 %v14154_v48, %v14153_v6  ;;  %v14156_v59 = vpop.f32.mrb[126].mxu0 }
 0x3a8   : > { %v14157_v57 = vpop.f32.mrb[127].mxu0  ;;  %v14273_v49 = vpop.f32.mrb[144].mxu1 }
 0x3a9   : > { %v14158_v4 = vadd.f32 %v14157_v57, %v14156_v59  ;;  %v17781_v53 = vadd.f32 %v14155_v63, %v3658_v20  ;;  %v3900_v47 = vadd.f32 %v14273_v49, %v17665_v23  ;;  %v3891_v35 = vpop.f32.mrb[145].mxu1  ;;  %v3674_v59 = vadd.f32 %v17749_v40, %v17647_v29 }
 0x3aa   : > { %v3892_v19 = vadd.f32 %v3891_v35, %v17655_v38  ;;  %v14274_v34 = vpop.f32.mrb[146].mxu1 }
 0x3ab   : > { %v17783_v27 = vadd.f32 %v14158_v4, %v3661_v51  ;;  %v3903_v58 = vadd.f32 %v14274_v34, %v17667_v31  ;;  %v3894_v54 = vpop.f32.mrb[147].mxu1  ;;  %v17801_v8 = vmax.f32 %v3900_v47, 0.0  ;;  %v3677_v4 = vadd.f32 %v17753_v52, %v17647_v29 }
 0x3ac   : > { %v3895_v30 = vadd.f32 %v3894_v54, %v17657_v39  ;;  %v17795_v38 = vmax.f32 %v3892_v19, 0.0 }
 0x3ad   : > { %v14159_v55 = vpop.f32.mrb[128].mxu0  ;;  %v17793_v18 = vmax.f32 %v3903_v58, 0.0  ;;  %22038 = vst [vmem:[#allocation14_spill] sm:$0xff] %v17801_v8 }
 0x3ae   : > { %v14160_v28 = vpop.f32.mrb[129].mxu0  ;;  %22036 = vst [vmem:[#allocation19_spill] sm:$0xff] %v17795_v38  ;;  %v17797_v12 = vmax.f32 %v3895_v30, 0.0 }
 0x3af   : > { %v14161_v13 = vadd.f32 %v14160_v28, %v14159_v55  ;;  %v14162_v17 = vpop.f32.mrb[130].mxu0  ;;  %22035 = vst [vmem:[#allocation3_spill] sm:$0xff] %v17793_v18  ;;  %v4051_v33 = vpack.c.bf16 %v17793_v18, %v17801_v8 }
 0x3b0   : > { %v14163_v23 = vpop.f32.mrb[131].mxu0  ;;  %22037 = vst [vmem:[#allocation20_spill] sm:$0xff] %v17797_v12  ;;  %v4050_v24 = vpack.c.bf16 %v17797_v12, %v17795_v38  ;;  %v14277_v62 = vpop.f32.mrb[148].mxu1 }
 0x3b1   : > { %v14164_v32 = vadd.f32 %v14163_v23, %v14162_v17  ;;  %v17799_v31 = vadd.f32 %v14161_v13, %v3666_v16  ;;  %v3916_v21 = vadd.f32 %v14277_v62, %v17685_v41  ;;  %v3907_v45 = vpop.f32.mrb[149].mxu1  ;;  %v3682_v23 = vadd.f32 %v17761_v26, %v17647_v29 }
 0x3b2   : > { %v3908_v0 = vadd.f32 %v3907_v45, %v17675_v25  ;;  %v14278_v48 = vpop.f32.mrb[150].mxu1  ;;  %14311 = vmatprep.mubr.msk.bf16.mxu0 %vm1326_vm3, %v4050_v24  ;;  %v3685_v62 = vadd.f32 %v17765_v9, %v17647_v29 }
 0x3b3   : > { %v17805_v39 = vadd.f32 %v14164_v32, %v3669_v61  ;;  %v3919_v20 = vadd.f32 %v14278_v48, %v17687_v44  ;;  %v3910_v63 = vpop.f32.mrb[151].mxu1  ;;  %14312 = vmatmul.mubr.msk.bf16.vlgmr.msra.gmra.mrb[144].mxu0 %vm1326_vm3, %v4051_v33  ;;  %v17827_v19 = vmax.f32 %v3916_v21, 0.0 }
 0x3b4   : > { %v3911_v41 = vadd.f32 %v3910_v63, %v17677_v56  ;;  %v17821_v35 = vmax.f32 %v3908_v0, 0.0 }
 0x3b5   : > { %v14165_v6 = vpop.f32.mrb[132].mxu0  ;;  %v17819_v49 = vmax.f32 %v3919_v20, 0.0  ;;  %22042 = vst [vmem:[#allocation21_spill] sm:$0xff] %v17827_v19 }
 0x3b6   : > { %v14166_v7 = vpop.f32.mrb[133].mxu0  ;;  %22040 = vst [vmem:[#allocation8_spill] sm:$0xff] %v17821_v35  ;;  %v17823_v44 = vmax.f32 %v3911_v41, 0.0 }
 0x3b7   : > { %v14167_v57 = vadd.f32 %v14166_v7, %v14165_v6  ;;  %v14168_v51 = vpop.f32.mrb[134].mxu0  ;;  %22039 = vst [vmem:[#allocation9_spill] sm:$0xff] %v17819_v49  ;;  %v4053_v52 = vpack.c.bf16 %v17819_v49, %v17827_v19 }
 0x3b8   : > { %v14169_v25 = vpop.f32.mrb[135].mxu0  ;;  %22041 = vst [vmem:[#allocation18_spill] sm:$0xff] %v17823_v44  ;;  %v4052_v40 = vpack.c.bf16 %v17823_v44, %v17821_v35  ;;  %v14281_v34 = vpop.f32.mrb[152].mxu1 }
 0x3b9   : > { %v14170_v47 = vadd.f32 %v14169_v25, %v14168_v51  ;;  %v17825_v55 = vadd.f32 %v14167_v57, %v3674_v59  ;;  %v3932_v28 = vadd.f32 %v14281_v34, %v17709_v15  ;;  %v3923_v58 = vpop.f32.mrb[153].mxu1  ;;  %v3690_v25 = vadd.f32 %v17773_v14, %v17647_v29 }
 0x3ba   : > { %v3924_v16 = vadd.f32 %v3923_v58, %v17697_v46  ;;  %v14282_v13 = vpop.f32.mrb[154].mxu1  ;;  %14315 = vmatprep.mubr.msk.bf16.mxu0 %vm1326_vm3, %v4052_v40  ;;  %v3693_v34 = vadd.f32 %v17777_v3, %v17647_v29 }
 0x3bb   : > { %v17831_v56 = vadd.f32 %v14170_v47, %v3677_v4  ;;  %v3935_v30 = vadd.f32 %v14282_v13, %v17711_v42  ;;  %v3926_v61 = vpop.f32.mrb[155].mxu1  ;;  %14316 = vmatmul.mubr.msk.bf16.gmra.mrb[148].mxu0 %vm1326_vm3, %v4053_v52  ;;  %v17853_v0 = vmax.f32 %v3932_v28, 0.0 }
 0x3bc   : > { %v3927_v15 = vadd.f32 %v3926_v61, %v17699_v5  ;;  %v17847_v45 = vmax.f32 %v3924_v16, 0.0 }
 0x3bd   : > { %v14171_v54 = vpop.f32.mrb[136].mxu0  ;;  %v17845_v33 = vmax.f32 %v3935_v30, 0.0  ;;  %22046 = vst [vmem:[#allocation22_spill] sm:$0xff] %v17853_v0 }
 0x3be   : > { %v14172_v17 = vpop.f32.mrb[137].mxu0  ;;  %22044 = vst [vmem:[#allocation50_spill] sm:$0xff] %v17847_v45  ;;  %v17849_v42 = vmax.f32 %v3927_v15, 0.0 }
 0x3bf   : > { %v14173_v32 = vadd.f32 %v14172_v17, %v14171_v54  ;;  %v14174_v24 = vpop.f32.mrb[138].mxu0  ;;  %22043 = vst [vmem:[#allocation7_spill] sm:$0xff] %v17845_v33  ;;  %v4055_v9 = vpack.c.bf16 %v17845_v33, %v17853_v0 }
 0x3c0   : > { %v14175_v46 = vpop.f32.mrb[139].mxu0  ;;  %22045 = vst [vmem:[#allocation17_spill] sm:$0xff] %v17849_v42  ;;  %v4054_v26 = vpack.c.bf16 %v17849_v42, %v17847_v45  ;;  %v14285_v48 = vpop.f32.mrb[156].mxu1 }
 0x3c1   : > { %v14176_v21 = vadd.f32 %v14175_v46, %v14174_v24  ;;  %v17851_v6 = vadd.f32 %v14173_v32, %v3682_v23  ;;  %v3948_v7 = vadd.f32 %v14285_v48, %v17733_v50  ;;  %v3939_v20 = vpop.f32.mrb[157].mxu1 }
 0x3c2   : > { %v3940_v59 = vadd.f32 %v3939_v20, %v17721_v36  ;;  %v14286_v57 = vpop.f32.mrb[158].mxu1  ;;  %14319 = vmatprep.mubr.msk.bf16.mxu0 %vm1326_vm3, %v4054_v26 }
 0x3c3   : > { %v17857_v5 = vadd.f32 %v14176_v21, %v3685_v62  ;;  %v3951_v41 = vadd.f32 %v14286_v57, %v17735_v1  ;;  %v3942_v4 = vpop.f32.mrb[159].mxu1  ;;  %14320 = vmatmul.mubr.msk.bf16.gmra.mrb[152].mxu0 %vm1326_vm3, %v4055_v9  ;;  %v17877_v16 = vmax.f32 %v3948_v7, 0.0 }
 0x3c4   : > { %v3943_v50 = vadd.f32 %v3942_v4, %v17723_v10  ;;  %v17873_v58 = vmax.f32 %v3940_v59, 0.0 }
 0x3c5   : > { %v14177_v63 = vpop.f32.mrb[140].mxu0  ;;  %v17871_v52 = vmax.f32 %v3951_v41, 0.0  ;;  %22050 = vst [vmem:[#allocation30_spill] sm:$0xff] %v17877_v16 }
 0x3c6   : > { %v14178_v51 = vpop.f32.mrb[141].mxu0  ;;  %22048 = vst [vmem:[#allocation6_spill] sm:$0xff] %v17873_v58  ;;  %v17875_v1 = vmax.f32 %v3943_v50, 0.0 }
 0x3c7   : > { %v14179_v47 = vadd.f32 %v14178_v51, %v14177_v63  ;;  %v14180_v40 = vpop.f32.mrb[142].mxu0  ;;  %22047 = vst [vmem:[#allocation5_spill] sm:$0xff] %v17871_v52  ;;  %v4057_v10 = vpack.c.bf16 %v17871_v52, %v17877_v16 }
 0x3c8   : > { %v14181_v36 = vpop.f32.mrb[143].mxu0  ;;  %22049 = vst [vmem:[#allocation31_spill] sm:$0xff] %v17875_v1  ;;  %v4056_v14 = vpack.c.bf16 %v17875_v1, %v17873_v58  ;;  %v14289_v13 = vpop.f32.mrb[160].mxu1 }
 0x3c9   : > { %v14182_v28 = vadd.f32 %v14181_v36, %v14180_v40  ;;  %v3851_v54 = vadd.f32 %v14179_v47, %v3690_v25  ;;  %v3964_v29 = vadd.f32 %v14289_v13, %v17757_v37  ;;  %v3955_v3 = vpop.f32.mrb[161].mxu1 }
 0x3ca   : > { %v3956_v30 = vadd.f32 %v3955_v3, %v17745_v22  ;;  %v14290_v61 = vpop.f32.mrb[162].mxu1  ;;  %14323 = vmatprep.mubr.msk.bf16.mxu0 %vm1326_vm3, %v4056_v14 }
 0x3cb   : > { %v3854_v17 = vadd.f32 %v14182_v28, %v3693_v34  ;;  %v3967_v23 = vadd.f32 %v14290_v61, %v17759_v43  ;;  %v3958_v32 = vpop.f32.mrb[163].mxu1  ;;  %14324 = vmatmul.mubr.msk.bf16.gmra.mrb[156].mxu0 %vm1326_vm3, %v4057_v10  ;;  %v17895_v37 = vmax.f32 %v3964_v29, 0.0 }
 0x3cc   : > { %v3959_v24 = vadd.f32 %v3958_v32, %v17747_v2  ;;  %v17891_v62 = vmax.f32 %v3956_v30, 0.0 }
 0x3cd   : > { %v17889_v15 = vmax.f32 %v3967_v23, 0.0  ;;  %22054 = vst [vmem:[#allocation13_spill] sm:$0xff] %v17895_v37 }
 0x3ce   : > { %22052 = vst [vmem:[#allocation37_spill] sm:$0xff] %v17891_v62  ;;  %v17893_v46 = vmax.f32 %v3959_v24, 0.0 }
 0x3cf   : > { %22051 = vst [vmem:[#allocation36_spill] sm:$0xff] %v17889_v15  ;;  %v4059_v43 = vpack.c.bf16 %v17889_v15, %v17895_v37 }
 0x3d0   : > { %22053 = vst [vmem:[#allocation12_spill] sm:$0xff] %v17893_v46  ;;  %v4058_v22 = vpack.c.bf16 %v17893_v46, %v17891_v62  ;;  %v14293_v21 = vpop.f32.mrb[164].mxu1 }
 0x3d1   : > { %v3980_v26 = vadd.f32 %v14293_v21, %v17781_v53  ;;  %v3971_v48 = vpop.f32.mrb[165].mxu1 }
 0x3d2   : > { %v3972_v2 = vadd.f32 %v3971_v48, %v17769_v11  ;;  %v14294_v9 = vpop.f32.mrb[166].mxu1  ;;  %14327 = vmatprep.mubr.msk.bf16.mxu0 %vm1326_vm3, %v4058_v22 }
 0x3d3   : > { %v3983_v7 = vadd.f32 %v14294_v9, %v17783_v27  ;;  %v3974_v20 = vpop.f32.mrb[167].mxu1  ;;  %14328 = vmatmul.mubr.msk.bf16.gmra.mrb[160].mxu0 %vm1326_vm3, %v4059_v43  ;;  %v17913_v53 = vmax.f32 %v3980_v26, 0.0 }
 0x3d4   : > { %v3975_v63 = vadd.f32 %v3974_v20, %v17771_v60  ;;  %v17909_v57 = vmax.f32 %v3972_v2, 0.0 }
 0x3d5   : > { %v17907_v59 = vmax.f32 %v3983_v7, 0.0  ;;  %22058 = vst [vmem:[#allocation27_spill] sm:$0xff] %v17913_v53 }
 0x3d6   : > { %22056 = vst [vmem:[#allocation45_spill] sm:$0xff] %v17909_v57  ;;  %v17911_v51 = vmax.f32 %v3975_v63, 0.0 }
 0x3d7   : > { %22055 = vst [vmem:[#allocation44_spill] sm:$0xff] %v17907_v59  ;;  %v4061_v27 = vpack.c.bf16 %v17907_v59, %v17913_v53 }
 0x3d8   : > { %22057 = vst [vmem:[#allocation26_spill] sm:$0xff] %v17911_v51  ;;  %v4060_v11 = vpack.c.bf16 %v17911_v51, %v17909_v57  ;;  %v14297_v41 = vpop.f32.mrb[168].mxu1 }
 0x3d9   : > { %v3996_v4 = vadd.f32 %v14297_v41, %v17825_v55  ;;  %v3987_v25 = vpop.f32.mrb[169].mxu1 }
 0x3da   : > { %v3988_v60 = vadd.f32 %v3987_v25, %v17799_v31  ;;  %v14298_v47 = vpop.f32.mrb[170].mxu1  ;;  %14331 = vmatprep.mubr.msk.bf16.mxu0 %vm1326_vm3, %v4060_v11 }
 0x3db   : > { %v3999_v40 = vadd.f32 %v14298_v47, %v17831_v56  ;;  %v3990_v50 = vpop.f32.mrb[171].mxu1  ;;  %14332 = vmatmul.mubr.msk.bf16.gmra.mrb[164].mxu0 %vm1326_vm3, %v4061_v27  ;;  %v17931_v55 = vmax.f32 %v3996_v4, 0.0  ;;  %v17970_v47 = vld [vmem:[%s21468_s7] ss:$0 sm:$0xff] }
 0x3dc   : > { %v3991_v34 = vadd.f32 %v3990_v50, %v17805_v39  ;;  %v17927_v28 = vmax.f32 %v3988_v60, 0.0 }
 0x3dd   : > { %v17925_v36 = vmax.f32 %v3999_v40, 0.0  ;;  %22062 = vst [vmem:[#allocation48_spill] sm:$0xff] %v17931_v55 }
 0x3de   : > { %22060 = vst [vmem:[#allocation33_spill] sm:$0xff] %v17927_v28  ;;  %v17929_v14 = vmax.f32 %v3991_v34, 0.0 }
 0x3df   : > { %22059 = vst [vmem:[#allocation32_spill] sm:$0xff] %v17925_v36  ;;  %v4063_v56 = vpack.c.bf16 %v17925_v36, %v17931_v55 }
 0x3e0   : > { %22061 = vst [vmem:[#allocation28_spill] sm:$0xff] %v17929_v14  ;;  %v4062_v31 = vpack.c.bf16 %v17929_v14, %v17927_v28  ;;  %v14301_v13 = vpop.f32.mrb[172].mxu1 }
 0x3e1   : > { %v4012_v10 = vadd.f32 %v14301_v13, %v3851_v54  ;;  %v4003_v29 = vpop.f32.mrb[173].mxu1 }
 0x3e2   : > { %v4004_v3 = vadd.f32 %v4003_v29, %v17851_v6  ;;  %v14302_v39 = vpop.f32.mrb[174].mxu1  ;;  %14335 = vmatprep.mubr.msk.bf16.mxu0 %vm1326_vm3, %v4062_v31 }
 0x3e3   : > { %v4015_v30 = vadd.f32 %v14302_v39, %v3854_v17  ;;  %v4006_v61 = vpop.f32.mrb[175].mxu1  ;;  %14336 = vmatmul.mubr.msk.bf16.gmra.mrb[168].mxu0 %vm1326_vm3, %v4063_v56  ;;  %v17947_v21 = vmax.f32 %v4012_v10, 0.0 }
 0x3e4   : > { %v4007_v23 = vadd.f32 %v4006_v61, %v17857_v5  ;;  %v17943_v24 = vmax.f32 %v4004_v3, 0.0  ;;  %v17958_v5 = vld [vmem:[%s21467_s6] ss:$0 sm:$0xff] }
 0x3e5   : > { %v17941_v32 = vmax.f32 %v4015_v30, 0.0  ;;  %22066 = vst [vmem:[#allocation59_spill] sm:$0xff] %v17947_v21 }
 0x3e6   : > { %22064 = vst [vmem:[#allocation41_spill] sm:$0xff] %v17943_v24  ;;  %v17945_v22 = vmax.f32 %v4007_v23, 0.0 }
 0x3e7   : > { %22063 = vst [vmem:[#allocation49_spill] sm:$0xff] %v17941_v32  ;;  %v4065_v54 = vpack.c.bf16 %v17941_v32, %v17947_v21 }
 0x3e8   : > { %22065 = vst [vmem:[#allocation40_spill] sm:$0xff] %v17945_v22  ;;  %v4064_v6 = vpack.c.bf16 %v17945_v22, %v17943_v24 }
 0x3ea   : > { %14339 = vmatprep.mubr.msk.bf16.mxu0 %vm1326_vm3, %v4064_v6 }
 0x3eb   : > { %14340 = vmatmul.mubr.msk.bf16.gmra.mrb[172].mxu0 %vm1326_vm3, %v4065_v54 }
 0x486   : > { %v14313_v17 = vpop.f32.mrb[144].mxu0 }
 0x487   : > { %v4196_v43 = vadd.f32 %v14313_v17, %v17958_v5  ;;  %v4187_v26 = vpop.f32.mrb[145].mxu0 }
 0x488   : > { %v4188_v48 = vadd.f32 %v17958_v5, %v4187_v26  ;;  %v14314_v2 = vpop.f32.mrb[146].mxu0 }
 0x489   : > { %14930 = vtanh.f32 %v4196_v43  ;;  %v4199_v9 = vadd.f32 %v14314_v2, %v17958_v5  ;;  %v4190_v7 = vpop.f32.mrb[147].mxu0 }
 0x48a   : > { %14932 = vtanh.f32 %v4188_v48  ;;  %v4191_v20 = vadd.f32 %v17958_v5, %v4190_v7 }
 0x48c   : > { %14934 = vtanh.f32 %v4191_v20 }
 0x48d   : > { %14936 = vtanh.f32 %v4199_v9 }
 0x48e   : > { %v14317_v63 = vpop.f32.mrb[148].mxu0 }
 0x48f   : > { %v4212_v11 = vadd.f32 %v14317_v63, %v17958_v5  ;;  %v4203_v41 = vpop.f32.mrb[149].mxu0 }
 0x490   : > { %v4204_v27 = vadd.f32 %v17958_v5, %v4203_v41  ;;  %v14318_v4 = vpop.f32.mrb[150].mxu0 }
 0x491   : > { %14938 = vtanh.f32 %v4212_v11  ;;  %v4215_v25 = vadd.f32 %v14318_v4, %v17958_v5  ;;  %v4206_v60 = vpop.f32.mrb[151].mxu0 }
 0x492   : > { %14940 = vtanh.f32 %v4204_v27  ;;  %v4207_v40 = vadd.f32 %v17958_v5, %v4206_v60 }
 0x493   : > { %v14931_v50 = vpop.eup %14930  ;;  %14942 = vtanh.f32 %v4215_v25 }
 0x494   : > { %v14933_v34 = vpop.eup %14932  ;;  %v4355_v31 = vmul.f32 %v14931_v50, %v17970_v47  ;;  %14944 = vtanh.f32 %v4207_v40 }
 0x495   : > { %v4353_v29 = vmul.f32 %v14933_v34, %v17970_v47 }
 0x496   : > { %v14935_v13 = vpop.eup %14934  ;;  %v14321_v56 = vpop.f32.mrb[152].mxu0  ;;  %v4391_v10 = vsel %vm1326_vm3, %v4355_v31, 0.0 }
 0x497   : > { %v14937_v3 = vpop.eup %14936  ;;  %v4228_v39 = vadd.f32 %v14321_v56, %v17958_v5  ;;  %4392 = vadd.xlane.f32.xlu0 %v4391_v10  ;;  %v4219_v30 = vpop.f32.mrb[153].mxu0  ;;  %v4354_v61 = vmul.f32 %v14935_v13, %v17970_v47  ;;  %v4385_v48 = vsel %vm1326_vm3, %v4353_v29, 0.0 }
 0x498   : > { %v4220_v23 = vadd.f32 %v17958_v5, %v4219_v30  ;;  %v14322_v6 = vpop.f32.mrb[154].mxu0  ;;  %v4356_v2 = vmul.f32 %v14937_v3, %v17970_v47 }
 0x499   : > { %14946 = vtanh.f32 %v4228_v39  ;;  %v4231_v54 = vadd.f32 %v14322_v6, %v17958_v5  ;;  %v4222_v17 = vpop.f32.mrb[155].mxu0  ;;  %v4388_v43 = vsel %vm1326_vm3, %v4354_v61, 0.0 }
 0x49a   : > { %14948 = vtanh.f32 %v4220_v23  ;;  %v4223_v26 = vadd.f32 %v17958_v5, %v4222_v17  ;;  %4389 = vadd.xlane.f32.xlu1 %v4388_v43  ;;  %v4394_v4 = vsel %vm1326_vm3, %v4356_v2, 0.0 }
 0x49b   : > { %v14939_v9 = vpop.eup %14938  ;;  %14950 = vtanh.f32 %v4231_v54  ;;  %4386 = vadd.xlane.f32.xlu0 %v4385_v48 }
 0x49c   : > { %v14941_v7 = vpop.eup %14940  ;;  %v4359_v20 = vmul.f32 %v14939_v9, %v17970_v47  ;;  %14952 = vtanh.f32 %v4223_v26 }
 0x49d   : > { %v14943_v63 = vpop.eup %14942  ;;  %v4357_v11 = vmul.f32 %v14941_v7, %v17970_v47 }
 0x49e   : > { %v14325_v41 = vpop.f32.mrb[156].mxu0  ;;  %v4403_v27 = vsel %vm1326_vm3, %v4359_v20, 0.0  ;;  %v4360_v25 = vmul.f32 %v14943_v63, %v17970_v47  ;;  %v14945_v60 = vpop.eup %14944 }
 0x49f   : > { %v4244_v40 = vadd.f32 %v14325_v41, %v17958_v5  ;;  %v4235_v50 = vpop.f32.mrb[157].mxu0  ;;  %4404 = vadd.xlane.f32.xlu1 %v4403_v27  ;;  %4395 = vadd.xlane.f32.xlu0 %v4394_v4  ;;  %v4397_v10 = vsel %vm1326_vm3, %v4357_v11, 0.0  ;;  %v4358_v39 = vmul.f32 %v14945_v60, %v17970_v47 }
 0x4a0   : > { %v4236_v34 = vadd.f32 %v17958_v5, %v4235_v50  ;;  %v14326_v31 = vpop.f32.mrb[158].mxu0  ;;  %v4406_v3 = vsel %vm1326_vm3, %v4360_v25, 0.0 }
 0x4a1   : > { %14954 = vtanh.f32 %v4244_v40  ;;  %v4247_v13 = vadd.f32 %v14326_v31, %v17958_v5  ;;  %v4238_v56 = vpop.f32.mrb[159].mxu0  ;;  %v4400_v26 = vsel %vm1326_vm3, %v4358_v39, 0.0 }
 0x4a2   : > { %14956 = vtanh.f32 %v4236_v34  ;;  %v4239_v29 = vadd.f32 %v17958_v5, %v4238_v56 }
 0x4a3   : > { %v14947_v30 = vpop.eup %14946  ;;  %14958 = vtanh.f32 %v4247_v13  ;;  %4398 = vadd.xlane.f32.xlu1 %v4397_v10  ;;  %4407 = vadd.xlane.f32.xlu0 %v4406_v3 }
 0x4a4   : > { %v14949_v61 = vpop.eup %14948  ;;  %v4363_v23 = vmul.f32 %v14947_v30, %v17970_v47  ;;  %14960 = vtanh.f32 %v4239_v29 }
 0x4a5   : > { %v14951_v6 = vpop.eup %14950  ;;  %v4361_v54 = vmul.f32 %v14949_v61, %v17970_v47 }
 0x4a6   : > { %v14329_v17 = vpop.f32.mrb[160].mxu0  ;;  %v4415_v43 = vsel %vm1326_vm3, %v4363_v23, 0.0  ;;  %v4364_v48 = vmul.f32 %v14951_v6, %v17970_v47  ;;  %v14953_v2 = vpop.eup %14952 }
 0x4a7   : > { %v4260_v9 = vadd.f32 %v14329_v17, %v17958_v5  ;;  %v4251_v7 = vpop.f32.mrb[161].mxu0  ;;  %4416 = vadd.xlane.f32.xlu1 %v4415_v43  ;;  %4401 = vadd.xlane.f32.xlu0 %v4400_v26  ;;  %v4409_v27 = vsel %vm1326_vm3, %v4361_v54, 0.0  ;;  %v4362_v60 = vmul.f32 %v14953_v2, %v17970_v47 }
 0x4a8   : > { %v4252_v20 = vadd.f32 %v17958_v5, %v4251_v7  ;;  %v14330_v63 = vpop.f32.mrb[162].mxu0  ;;  %v4418_v25 = vsel %vm1326_vm3, %v4364_v48, 0.0 }
 0x4a9   : > { %14962 = vtanh.f32 %v4260_v9  ;;  %v4263_v11 = vadd.f32 %v14330_v63, %v17958_v5  ;;  %v4254_v41 = vpop.f32.mrb[163].mxu0  ;;  %v4412_v29 = vsel %vm1326_vm3, %v4362_v60, 0.0 }
 0x4aa   : > { %14964 = vtanh.f32 %v4252_v20  ;;  %v4255_v4 = vadd.f32 %v17958_v5, %v4254_v41 }
 0x4ab   : > { %v14955_v40 = vpop.eup %14954  ;;  %14966 = vtanh.f32 %v4263_v11  ;;  %4410 = vadd.xlane.f32.xlu1 %v4409_v27  ;;  %4419 = vadd.xlane.f32.xlu0 %v4418_v25 }
 0x4ac   : > { %v14957_v50 = vpop.eup %14956  ;;  %v4367_v34 = vmul.f32 %v14955_v40, %v17970_v47  ;;  %14968 = vtanh.f32 %v4255_v4 }
 0x4ad   : > { %v14959_v31 = vpop.eup %14958  ;;  %v4365_v13 = vmul.f32 %v14957_v50, %v17970_v47 }
 0x4ae   : > { %v14333_v56 = vpop.f32.mrb[164].mxu0  ;;  %v4427_v10 = vsel %vm1326_vm3, %v4367_v34, 0.0  ;;  %v4368_v3 = vmul.f32 %v14959_v31, %v17970_v47  ;;  %v14961_v39 = vpop.eup %14960 }
 0x4af   : > { %v4276_v30 = vadd.f32 %v14333_v56, %v17958_v5  ;;  %v4267_v61 = vpop.f32.mrb[165].mxu0  ;;  %4428 = vadd.xlane.f32.xlu1 %v4427_v10  ;;  %4413 = vadd.xlane.f32.xlu0 %v4412_v29  ;;  %v4421_v43 = vsel %vm1326_vm3, %v4365_v13, 0.0  ;;  %v4366_v2 = vmul.f32 %v14961_v39, %v17970_v47 }
 0x4b0   : > { %v4268_v23 = vadd.f32 %v17958_v5, %v4267_v61  ;;  %v14334_v6 = vpop.f32.mrb[166].mxu0  ;;  %v4430_v48 = vsel %vm1326_vm3, %v4368_v3, 0.0 }
 0x4b1   : > { %14970 = vtanh.f32 %v4276_v30  ;;  %v4279_v54 = vadd.f32 %v14334_v6, %v17958_v5  ;;  %v4270_v17 = vpop.f32.mrb[167].mxu0  ;;  %v4424_v4 = vsel %vm1326_vm3, %v4366_v2, 0.0 }
 0x4b2   : > { %14972 = vtanh.f32 %v4268_v23  ;;  %v4271_v26 = vadd.f32 %v17958_v5, %v4270_v17 }
 0x4b3   : > { %v14963_v9 = vpop.eup %14962  ;;  %14974 = vtanh.f32 %v4279_v54  ;;  %4422 = vadd.xlane.f32.xlu1 %v4421_v43  ;;  %4431 = vadd.xlane.f32.xlu0 %v4430_v48 }
 0x4b4   : > { %v14965_v7 = vpop.eup %14964  ;;  %v4371_v20 = vmul.f32 %v14963_v9, %v17970_v47  ;;  %14976 = vtanh.f32 %v4271_v26 }
 0x4b5   : > { %v14967_v63 = vpop.eup %14966  ;;  %v4369_v11 = vmul.f32 %v14965_v7, %v17970_v47 }
 0x4b6   : > { %v14337_v41 = vpop.f32.mrb[168].mxu0  ;;  %v4439_v27 = vsel %vm1326_vm3, %v4371_v20, 0.0  ;;  %v4372_v25 = vmul.f32 %v14967_v63, %v17970_v47  ;;  %v14969_v60 = vpop.eup %14968 }
 0x4b7   : > { %v4292_v40 = vadd.f32 %v14337_v41, %v17958_v5  ;;  %v4283_v50 = vpop.f32.mrb[169].mxu0  ;;  %4440 = vadd.xlane.f32.xlu1 %v4439_v27  ;;  %4425 = vadd.xlane.f32.xlu0 %v4424_v4  ;;  %v4433_v10 = vsel %vm1326_vm3, %v4369_v11, 0.0  ;;  %v4370_v39 = vmul.f32 %v14969_v60, %v17970_v47 }
 0x4b8   : > { %v4284_v34 = vadd.f32 %v17958_v5, %v4283_v50  ;;  %v14338_v31 = vpop.f32.mrb[170].mxu0  ;;  %v4442_v3 = vsel %vm1326_vm3, %v4372_v25, 0.0 }
 0x4b9   : > { %14978 = vtanh.f32 %v4292_v40  ;;  %v4295_v13 = vadd.f32 %v14338_v31, %v17958_v5  ;;  %v4286_v56 = vpop.f32.mrb[171].mxu0  ;;  %v4436_v26 = vsel %vm1326_vm3, %v4370_v39, 0.0 }
 0x4ba   : > { %14980 = vtanh.f32 %v4284_v34  ;;  %v4287_v29 = vadd.f32 %v17958_v5, %v4286_v56 }
 0x4bb   : > { %v14971_v30 = vpop.eup %14970  ;;  %14982 = vtanh.f32 %v4295_v13  ;;  %4434 = vadd.xlane.f32.xlu1 %v4433_v10  ;;  %4443 = vadd.xlane.f32.xlu0 %v4442_v3 }
 0x4bc   : > { %v14973_v61 = vpop.eup %14972  ;;  %v4375_v23 = vmul.f32 %v14971_v30, %v17970_v47  ;;  %14984 = vtanh.f32 %v4287_v29 }
 0x4bd   : > { %v14975_v6 = vpop.eup %14974  ;;  %v4373_v54 = vmul.f32 %v14973_v61, %v17970_v47 }
 0x4be   : > { %v14341_v17 = vpop.f32.mrb[172].mxu0  ;;  %v4451_v43 = vsel %vm1326_vm3, %v4375_v23, 0.0  ;;  %v4376_v48 = vmul.f32 %v14975_v6, %v17970_v47  ;;  %v14977_v2 = vpop.eup %14976 }
 0x4bf   : > { %v4308_v9 = vadd.f32 %v14341_v17, %v17958_v5  ;;  %v4299_v7 = vpop.f32.mrb[173].mxu0  ;;  %4452 = vadd.xlane.f32.xlu1 %v4451_v43  ;;  %4437 = vadd.xlane.f32.xlu0 %v4436_v26  ;;  %v4445_v27 = vsel %vm1326_vm3, %v4373_v54, 0.0  ;;  %v4374_v60 = vmul.f32 %v14977_v2, %v17970_v47 }
 0x4c0   : > { %v4300_v20 = vadd.f32 %v17958_v5, %v4299_v7  ;;  %v14342_v63 = vpop.f32.mrb[174].mxu0  ;;  %v4454_v25 = vsel %vm1326_vm3, %v4376_v48, 0.0  ;;  %v15134_v7 = vmov 0  }
 0x4c1   : > { %14986 = vtanh.f32 %v4308_v9  ;;  %v4311_v11 = vadd.f32 %v14342_v63, %v17958_v5  ;;  %v4302_v41 = vpop.f32.mrb[175].mxu0  ;;  %v4448_v56 = vsel %vm1326_vm3, %v4374_v60, 0.0  ;;  %14852 = vset.pattern.permute.xlu1 %v15134_v7  ;;  %14853 = vset.pattern.permute.xlu0 %v15134_v7 }
 0x4c2   : > { %14988 = vtanh.f32 %v4300_v20  ;;  %v4303_v4 = vadd.f32 %v17958_v5, %v4302_v41  ;;  %v18061_v41 = vld [vmem:[#allocation2] ss:$0 sm:$0xff] }
 0x4c3   : > { %v14979_v40 = vpop.eup %14978  ;;  %14990 = vtanh.f32 %v4311_v11  ;;  %4446 = vadd.xlane.f32.xlu1 %v4445_v27  ;;  %4455 = vadd.xlane.f32.xlu0 %v4454_v25 }
 0x4c4   : > { %v14981_v50 = vpop.eup %14980  ;;  %14992 = vtanh.f32 %v4303_v4  ;;  %v4379_v34 = vmul.f32 %v14979_v40, %v17970_v47 }
 0x4c5   : > { %v14983_v31 = vpop.eup %14982  ;;  %v4377_v10 = vmul.f32 %v14981_v50, %v17970_v47 }
 0x4c6   : > { %v4463_v13 = vsel %vm1326_vm3, %v4379_v34, 0.0  ;;  %v4380_v5 = vmul.f32 %v14983_v31, %v17970_v47  ;;  %v14985_v29 = vpop.eup %14984 }
 0x4c7   : > { %4464 = vadd.xlane.f32.xlu1 %v4463_v13  ;;  %4449 = vadd.xlane.f32.xlu0 %v4448_v56  ;;  %v4457_v3 = vsel %vm1326_vm3, %v4377_v10, 0.0  ;;  %v4378_v30 = vmul.f32 %v14985_v29, %v17970_v47 }
 0x4c8   : > { %v4466_v39 = vsel %vm1326_vm3, %v4380_v5, 0.0 }
 0x4c9   : > { %v4460_v26 = vsel %vm1326_vm3, %v4378_v30, 0.0 }
 0x4cb   : > { %v14987_v61 = vpop.eup %14986  ;;  %4458 = vadd.xlane.f32.xlu1 %v4457_v3  ;;  %4467 = vadd.xlane.f32.xlu0 %v4466_v39 }
 0x4cc   : > { %v14989_v23 = vpop.eup %14988  ;;  %v4383_v6 = vmul.f32 %v14987_v61, %v17970_v47 }
 0x4cd   : > { %v14991_v54 = vpop.eup %14990  ;;  %v4381_v48 = vmul.f32 %v14989_v23, %v17970_v47 }
 0x4ce   : > { %v14993_v17 = vpop.eup %14992  ;;  %v4475_v43 = vsel %vm1326_vm3, %v4383_v6, 0.0  ;;  %v4384_v2 = vmul.f32 %v14991_v54, %v17970_v47 }
 0x4cf   : > { %4476 = vadd.xlane.f32.xlu1 %v4475_v43  ;;  %4461 = vadd.xlane.f32.xlu0 %v4460_v26  ;;  %v4382_v9 = vmul.f32 %v14993_v17, %v17970_v47  ;;  %v4469_v20 = vsel %vm1326_vm3, %v4381_v48, 0.0 }
 0x4d0   : > { %v4478_v63 = vsel %vm1326_vm3, %v4384_v2, 0.0 }
 0x4d1   : > { %v4472_v11 = vsel %vm1326_vm3, %v4382_v9, 0.0 }
 0x4d3   : > { %4470 = vadd.xlane.f32.xlu1 %v4469_v20  ;;  %4479 = vadd.xlane.f32.xlu0 %v4478_v63 }
 0x4d7   : > { %4473 = vadd.xlane.f32.xlu0 %v4472_v11 }
 0x524   : > { %v4393_v27 = vpop.xlane.xlu0 %4392 }
 0x525   : > { %v4490_v4 = vadd.f32 %v18061_v41, %v4393_v27 }
 0x527   : > { %v13552_v25 = vmul.f32 -1.442695, %v4490_v4  ;;  %v4390_v60 = vpop.xlane.xlu1 %4389 }
 0x528   : > { %v4489_v47 = vadd.f32 %v18061_v41, %v4390_v60  ;;  %v4387_v40 = vpop.xlane.xlu0 %4386 }
 0x529   : > { %14994 = vpow2.f32 %v13552_v25  ;;  %v4488_v50 = vadd.f32 %v18061_v41, %v4387_v40 }
 0x52a   : > { %v13551_v34 = vmul.f32 -1.442695, %v4489_v47 }
 0x52b   : > { %v13550_v31 = vmul.f32 -1.442695, %v4488_v50 }
 0x52c   : > { %14996 = vpow2.f32 %v13551_v34  ;;  %v4405_v13 = vpop.xlane.xlu1 %4404  ;;  %v4396_v56 = vpop.xlane.xlu0 %4395 }
 0x52d   : > { %14998 = vpow2.f32 %v13550_v31  ;;  %v4494_v10 = vadd.f32 %v18061_v41, %v4405_v13  ;;  %v4491_v5 = vadd.f32 %v18061_v41, %v4396_v56 }
 0x52f   : > { %v13556_v29 = vmul.f32 -1.442695, %v4494_v10  ;;  %v13553_v3 = vmul.f32 -1.442695, %v4491_v5 }
 0x530   : > { %v4399_v39 = vpop.xlane.xlu1 %4398  ;;  %v4408_v54 = vpop.xlane.xlu0 %4407 }
 0x531   : > { %15000 = vpow2.f32 %v13556_v29  ;;  %v4492_v30 = vadd.f32 %v18061_v41, %v4399_v39  ;;  %v4495_v9 = vadd.f32 %v18061_v41, %v4408_v54 }
 0x532   : > { %15002 = vpow2.f32 %v13553_v3 }
 0x533   : > { %v14995_v61 = vpop.eup %14994  ;;  %v13554_v6 = vmul.f32 -1.442695, %v4492_v30  ;;  %v13557_v25 = vmul.f32 -1.442695, %v4495_v9 }
 0x534   : > { %v4618_v23 = vadd.f32 1.0, %v14995_v61  ;;  %v4417_v26 = vpop.xlane.xlu1 %4416  ;;  %v4402_v63 = vpop.xlane.xlu0 %4401 }
 0x535   : > { %v4498_v7 = vadd.f32 %v18061_v41, %v4417_v26  ;;  %v4493_v47 = vadd.f32 %v18061_v41, %v4402_v63 }
 0x536   : > { %v14997_v17 = vpop.eup %14996  ;;  %15004 = vrcp.f32 %v4618_v23 }
 0x537   : > { %v14999_v43 = vpop.eup %14998  ;;  %v4617_v48 = vadd.f32 1.0, %v14997_v17  ;;  %15006 = vpow2.f32 %v13554_v6  ;;  %v13560_v60 = vmul.f32 -1.442695, %v4498_v7  ;;  %v13555_v34 = vmul.f32 -1.442695, %v4493_v47 }
 0x538   : > { %v4616_v2 = vadd.f32 1.0, %v14999_v43  ;;  %v4411_v29 = vpop.xlane.xlu1 %4410  ;;  %v4420_v61 = vpop.xlane.xlu0 %4419 }
 0x539   : > { %v4496_v54 = vadd.f32 %v18061_v41, %v4411_v29  ;;  %v4499_v63 = vadd.f32 %v18061_v41, %v4420_v61 }
 0x53a   : > { %15008 = vrcp.f32 %v4616_v2 }
 0x53b   : > { %v15001_v20 = vpop.eup %15000  ;;  %15010 = vrcp.f32 %v4617_v48  ;;  %v13558_v7 = vmul.f32 -1.442695, %v4496_v54 }
 0x53c   : > { %v15003_v11 = vpop.eup %15002  ;;  %v4622_v27 = vadd.f32 1.0, %v15001_v20  ;;  %v4429_v48 = vpop.xlane.xlu1 %4428 }
 0x53d   : > { %v4619_v4 = vadd.f32 1.0, %v15003_v11  ;;  %v4414_v20 = vpop.xlane.xlu0 %4413  ;;  %v21592_v11 = vlaneseq }
 0x53f   : > { %15012 = vrcp.f32 %v4619_v4  ;;  %v4502_v4 = vadd.f32 %v18061_v41, %v4429_v48  ;;  %v18114_v61 = vshrl.u32 %v21592_v11, 7 }
 0x540   : > { %v18072_v40 = vpop.eup %15004  ;;  %15014 = vrcp.f32 %v4622_v27 }
 0x541   : > { %15016 = vpow2.f32 %v13557_v25  ;;  %4756 = vperm.xlu1 %14852, %v18072_v40   ;;  %v18076_v50 = vsub.f32 1.0, %v18072_v40  ;;  %v15007_v31 = vpop.eup %15006  ;;  %v15135_v25 = vmov 1966171168   ;;  %v13564_v29 = vmul.f32 -1.442695, %v4502_v4  ;;  %22067 = vst [vmem:[#allocation60_spill] sm:$0xff] %v18114_v61 }
 0x542   : > { %15018 = vpow2.f32 %v13560_v60  ;;  %v4620_v10 = vadd.f32 1.0, %v15007_v31  ;;  %v6410_v60 = vunpack.c.l.s4 %v15135_v25  ;;  %v13561_v31 = vmul.f32 -1.442695, %v4499_v63 }
 0x543   : > { %5588 = vperm.xlu0 %14853, %v18076_v50   ;;  %15020 = vpow2.f32 %v13555_v34  ;;  %v4423_v34 = vpop.xlane.xlu1 %4422  ;;  %v9949_v4 = vcombine.high %v18076_v50, %v18076_v50 }
 0x544   : > { %v18079_v13 = vpop.eup %15008  ;;  %15022 = vrcp.f32 %v4620_v10  ;;  %v4497_v10 = vadd.f32 %v18061_v41, %v4414_v20  ;;  %v6506_v20 = vcombine.high %v18072_v40, %v18072_v40 }
 0x545   : > { %4746 = vperm.xlu1 %14852, %v18079_v13   ;;  %v18082_v56 = vpop.eup %15010  ;;  %v18088_v3 = vsub.f32 1.0, %v18079_v13 }
 0x546   : > { %v18104_v9 = vsub.f32 1.0, %v18082_v56 }
 0x547   : > { %4751 = vperm.xlu0 %14853, %v18082_v56  }
 0x549   : > { %v18085_v5 = vpop.eup %15012 }
 0x54a   : > { %v18090_v39 = vpop.eup %15014  ;;  %4761 = vperm.xlu1 %14852, %v18085_v5   ;;  %v18095_v6 = vsub.f32 1.0, %v18085_v5 }
 0x54b   : > { %v15017_v30 = vpop.eup %15016  ;;  %5578 = vperm.xlu0 %14853, %v18088_v3   ;;  %v18099_v17 = vsub.f32 1.0, %v18090_v39 }
 0x54c   : > { %v15019_v23 = vpop.eup %15018  ;;  %v4623_v43 = vadd.f32 1.0, %v15017_v30  ;;  %v4432_v30 = vpop.xlane.xlu0 %4431 }
 0x54d   : > { %v4626_v26 = vadd.f32 1.0, %v15019_v23  ;;  %v15021_v2 = vpop.eup %15020  ;;  %v6411_v23 = vunpack.c.0.s8 %v6410_v60  ;;  %v4503_v48 = vadd.f32 %v18061_v41, %v4432_v30 }
 0x54e   : > { %5593 = vperm.xlu1 %14852, %v18095_v6   ;;  %15024 = vrcp.f32 %v4623_v43  ;;  %v4621_v27 = vadd.f32 1.0, %v15021_v2  ;;  %v18109_v47 = vpop.eup %15022  ;;  %v13559_v43 = vmul.f32 -1.442695, %v4497_v10 }
 0x54f   : > { %5608 = vperm.xlu0 %14853, %v18099_v17   ;;  %15026 = vrcp.f32 %v4626_v26  ;;  %v18117_v54 = vsub.f32 1.0, %v18109_v47  ;;  %v4500_v26 = vadd.f32 %v18061_v41, %v4423_v34  ;;  %v18124_v2 = vsub.s32 %v6411_v23, %v18114_v61 }
 0x550   : > { %15028 = vpow2.f32 %v13558_v7  ;;  %v4441_v7 = vpop.xlane.xlu1 %4440  ;;  %v4426_v25 = vpop.xlane.xlu0 %4425  ;;  %v13565_v10 = vmul.f32 -1.442695, %v4503_v48 }
 0x551   : > { %15030 = vrcp.f32 %v4621_v27  ;;  %v13562_v60 = vmul.f32 -1.442695, %v4500_v26  ;;  %v9956_v34 = vrot.slane %v18076_v50, %v18124_v2  ;;  %v6520_v30 = vrot.slane %v6506_v20, %v18124_v2 }
 0x552   : > { %5583 = vperm.xlu1 %14852, %v18104_v9   ;;  %15032 = vpow2.f32 %v13561_v31  ;;  %v4506_v23 = vadd.f32 %v18061_v41, %v4441_v7  ;;  %v18148_v50 = vrot.slane %v9949_v4, %v18124_v2  ;;  %v4501_v48 = vadd.f32 %v18061_v41, %v4426_v25 }
 0x553   : > { %5598 = vperm.xlu0 %14853, %v18117_v54   ;;  %15034 = vpow2.f32 %v13564_v29  ;;  %v6513_v29 = vrot.slane %v18072_v40, %v18124_v2  ;;  %v9964_v22 = vcombine.high %v9956_v34, %v9956_v34  ;;  %v6522_v20 = vcombine.high %v6520_v30, %v6520_v30 }
 0x554   : > { %15036 = vpow2.f32 %v13559_v43  ;;  %v4435_v26 = vpop.xlane.xlu1 %4434  ;;  %v4444_v40 = vpop.xlane.xlu0 %4443  ;;  %v13568_v14 = vmul.f32 -1.442695, %v4506_v23  ;;  %v18161_v25 = vrot.slane %v18148_v50, %v18124_v2  ;;  %v13563_v21 = vmul.f32 -1.442695, %v4501_v48 }
 0x555   : > { %15038 = vpow2.f32 %v13562_v60  ;;  %v6521_v7 = vcombine.high %v6513_v29, %v6513_v29  ;;  %v4504_v24 = vadd.f32 %v18061_v41, %v4435_v26  ;;  %v18157_v60 = vrot.slane %v9956_v34, %v18124_v2 }
 0x556   : > { %4776 = vperm.xlu1 %14852, %v18090_v39   ;;  %15040 = vpow2.f32 %v13565_v10  ;;  %v18164_v10 = vrot.slane %v9964_v22, %v18124_v2  ;;  %v4507_v23 = vadd.f32 %v18061_v41, %v4444_v40  ;;  %v6529_v26 = vrot.slane %v6513_v29, %v18124_v2 }
 0x557   : > { %v6536_v28 = vrot.slane %v6520_v30, %v18124_v2  ;;  %v6550_v34 = vrot.slane %v6522_v20, %v18124_v2  ;;  %v13566_v46 = vmul.f32 -1.442695, %v4504_v24  ;;  %v9858_v30 = vrot.slane %v18088_v3, %v18124_v2 }
 0x558   : > { %v18128_v63 = vpop.eup %15024  ;;  %v4453_v22 = vpop.xlane.xlu1 %4452  ;;  %v13569_v29 = vmul.f32 -1.442695, %v4507_v23  ;;  %v11517_v58 = vcombine.low %v18157_v60, %v18164_v10 }
 0x559   : > { %v18130_v27 = vpop.eup %15026  ;;  %v4438_v48 = vpop.xlane.xlu0 %4437  ;;  %v8076_v37 = vcombine.low %v6536_v28, %v6550_v34  ;;  %v4510_v53 = vadd.f32 %v18061_v41, %v4453_v22 }
 0x55a   : > { %4766 = vperm.xlu1 %14852, %v18109_v47   ;;  %4796 = vperm.xlu0 %14853, %v18130_v27   ;;  %v15029_v31 = vpop.eup %15028  ;;  %v18143_v11 = vsub.f32 1.0, %v18130_v27 }
 0x55b   : > { %v18145_v43 = vpop.eup %15030  ;;  %v4624_v36 = vadd.f32 1.0, %v15029_v31  ;;  %v6543_v31 = vrot.slane %v6521_v7, %v18124_v2  ;;  %v13587_v7 = vcombine.high %v6536_v28, %v6550_v34  ;;  %v8098_v24 = vrot.slane %v8076_v37, %v18124_v2 }
 0x55c   : > { %v15033_v32 = vpop.eup %15032  ;;  %v9998_v37 = vcombine.high %v18095_v6, %v18095_v6  ;;  %v9866_v34 = vcombine.high %v9858_v30, %v9858_v30 }
 0x55d   : > { %v15035_v4 = vpop.eup %15034  ;;  %15042 = vrcp.f32 %v4624_v36  ;;  %v4627_v51 = vadd.f32 1.0, %v15033_v32  ;;  %v9851_v36 = vcombine.high %v18088_v3, %v18088_v3  ;;  %v8074_v15 = vcombine.low %v6529_v26, %v6543_v31 }
 0x55e   : > { %4781 = vperm.xlu1 %14852, %v18128_v63   ;;  %5628 = vperm.xlu0 %14853, %v18143_v11   ;;  %v15037_v55 = vpop.eup %15036  ;;  %v4630_v59 = vadd.f32 1.0, %v15035_v4  ;;  %15044 = vpow2.f32 %v13568_v14  ;;  %v13586_v40 = vcombine.high %v6529_v26, %v6543_v31  ;;  %v4505_v31 = vadd.f32 %v18061_v41, %v4438_v48 }
 0x55f   : > { %15046 = vpow2.f32 %v13563_v21  ;;  %v4625_v20 = vadd.f32 1.0, %v15037_v55  ;;  %v8084_v32 = vrot.slane %v8074_v15, %v18124_v2  ;;  %v15039_v4 = vpop.eup %15038  ;;  %v8105_v21 = vrot.slane %v13587_v7, %v18124_v2 }
 0x560   : > { %v8091_v14 = vrot.slane %v13586_v40, %v18124_v2  ;;  %15048 = vrcp.f32 %v4627_v51  ;;  %v15041_v23 = vpop.eup %15040  ;;  %v18182_v3 = vrot.slane %v9851_v36, %v18124_v2  ;;  %v18185_v15 = vsub.f32 1.0, %v18128_v63 }
 0x561   : > { %15050 = vrcp.f32 %v4630_v59  ;;  %v8107_v55 = vcombine.low %v8098_v24, %v8105_v21  ;;  %v4628_v26 = vadd.f32 1.0, %v15039_v4  ;;  %v18192_v59 = vrot.slane %v9858_v30, %v18124_v2  ;;  %v4447_v4 = vpop.xlane.xlu1 %4446 }
 0x562   : > { %4771 = vperm.xlu1 %14852, %v18145_v43   ;;  %v8106_v28 = vcombine.low %v8084_v32, %v8091_v14  ;;  %15052 = vpow2.f32 %v13566_v46  ;;  %v4631_v22 = vadd.f32 1.0, %v15041_v23  ;;  %v10005_v46 = vrot.slane %v18095_v6, %v18124_v2 }
 0x563   : > { %15054 = vrcp.f32 %v4625_v20  ;;  %v8121_v40 = vrot.slane %v8107_v55, %v18124_v2  ;;  %v13572_v20 = vmul.f32 -1.442695, %v4510_v53  ;;  %v13567_v32 = vmul.f32 -1.442695, %v4505_v31 }
 0x564   : > { %v8114_v48 = vrot.slane %v8106_v28, %v18124_v2  ;;  %15056 = vpow2.f32 %v13569_v29  ;;  %v18204_v14 = vrot.slane %v9998_v37, %v18124_v2  ;;  %v10145_v24 = vcombine.high %v18099_v17, %v18099_v17 }
 0x565   : > { %v6408_v6 = vcombine.high %v18079_v13, %v18079_v13  ;;  %15058 = vrcp.f32 %v4628_v26  ;;  %v18212_v29 = vrot.slane %v18182_v3, %v18124_v2  ;;  %v6415_v53 = vrot.slane %v18079_v13, %v18124_v2 }
 0x566   : > { %5613 = vperm.xlu1 %14852, %v18185_v15   ;;  %v8122_v21 = vcombine.low %v8114_v48, %v8121_v40  ;;  %v18217_v31 = vsub.f32 1.0, %v18145_v43  ;;  %15060 = vrcp.f32 %v4631_v22  ;;  %v18220_v28 = vrot.slane %v9866_v34, %v18124_v2 }
 0x567   : > { %v18195_v36 = vpop.eup %15042  ;;  %v10013_v37 = vcombine.high %v10005_v46, %v10005_v46  ;;  %v10152_v55 = vrot.slane %v18099_v17, %v18124_v2  ;;  %v18225_v26 = vrot.slane %v10005_v46, %v18124_v2  ;;  %v4508_v48 = vadd.f32 %v18061_v41, %v4447_v4 }
 0x568   : > { %v15045_v30 = vpop.eup %15044  ;;  %9551 = vperm.xlu0 %14853, %v8122_v21   ;;  %v6422_v13 = vrot.slane %v6408_v6, %v18124_v2  ;;  %v6423_v40 = vcombine.high %v6415_v53, %v6415_v53  ;;  %15062 = vpow2.f32 %v13572_v20  ;;  %v18235_v22 = vrot.slane %v10145_v24, %v18124_v2 }
 0x569   : > { %v15047_v23 = vpop.eup %15046  ;;  %v18238_v17 = vsub.f32 1.0, %v18195_v36  ;;  %v18244_v4 = vrot.slane %v18204_v14, %v18124_v2  ;;  %v6431_v6 = vrot.slane %v6415_v53, %v18124_v2  ;;  %15064 = vpow2.f32 %v13567_v32 }
 0x56a   : > { %5603 = vperm.xlu1 %14852, %v18217_v31   ;;  %v18230_v51 = vpop.eup %15048  ;;  %v6424_v21 = vcombine.high %v6422_v13, %v6422_v13  ;;  %v6445_v20 = vrot.slane %v6423_v40, %v18124_v2  ;;  %v18251_v24 = vrot.slane %v10013_v37, %v18124_v2  ;;  %v10160_v34 = vcombine.high %v10152_v55, %v10152_v55 }
 0x56b   : > { %v18240_v46 = vpop.eup %15050  ;;  %v18254_v62 = vrot.slane %v10152_v55, %v18124_v2  ;;  %v6438_v1 = vrot.slane %v6422_v13, %v18124_v2  ;;  %v22070_v32 = vcombine.high %v18148_v50, %v18148_v50  ;;  %v4634_v37 = vadd.f32 1.0, %v15045_v30  ;;  %v4456_v55 = vpop.xlane.xlu0 %4455 }
 0x56c   : > { %22068 = vst [vmem:[#allocation24_spill] sm:$0xff] %v18240_v46  ;;  %v18248_v7 = vpop.eup %15052  ;;  %5618 = vperm.xlu0 %14853, %v18238_v17   ;;  %v6452_v53 = vrot.slane %v6424_v21, %v18124_v2  ;;  %v7976_v52 = vcombine.low %v6431_v6, %v6445_v20  ;;  %v13582_v42 = vcombine.high %v6431_v6, %v6445_v20  ;;  %v13570_v45 = vmul.f32 -1.442695, %v4508_v48 }
 0x56d   : > { %v18257_v57 = vpop.eup %15054  ;;  %v9993_v40 = vrot.slane %v22070_v32, %v18124_v2  ;;  %v18274_v13 = vrot.slane %v18235_v22, %v18124_v2  ;;  %v4629_v32 = vadd.f32 1.0, %v15047_v23  ;;  %v13650_v6 = vcombine.high %v18157_v60, %v18164_v10 }
 0x56e   : > { %22069 = vst [vmem:[#allocation25_spill] sm:$0xff] %v18257_v57  ;;  %4786 = vperm.xlu1 %14852, %v18195_v36   ;;  %v18270_v33 = vpop.eup %15056  ;;  %v7978_v21 = vcombine.low %v6438_v1, %v6452_v53  ;;  %v13583_v16 = vcombine.high %v6438_v1, %v6452_v53  ;;  %v7986_v50 = vrot.slane %v7976_v52, %v18124_v2  ;;  %15066 = vrcp.f32 %v4634_v37 }
 0x56f   : > { %v7993_v30 = vrot.slane %v13582_v42, %v18124_v2  ;;  %v18280_v20 = vpop.eup %15058  ;;  %v11519_v0 = vcombine.low %v18161_v25, %v9993_v40  ;;  %v13651_v1 = vcombine.high %v18161_v25, %v9993_v40  ;;  %v11527_v42 = vrot.slane %v11517_v58, %v18124_v2 }
 0x570   : > { %22071 = vst [vmem:[#allocation43_spill] sm:$0xff] %v18280_v20  ;;  %v8000_v44 = vrot.slane %v7978_v21, %v18124_v2  ;;  %v8007_v49 = vrot.slane %v13583_v16, %v18124_v2  ;;  %v18287_v52 = vpop.eup %15060  ;;  %v11534_v60 = vrot.slane %v13650_v6, %v18124_v2  ;;  %v22072_v10 = vcombine.high %v18182_v3, %v18182_v3 }
 0x571   : > { %v8008_v23 = vcombine.low %v7986_v50, %v7993_v30  ;;  %v18296_v16 = vrot.slane %v10160_v34, %v18124_v2  ;;  %v11541_v25 = vrot.slane %v11519_v0, %v18124_v2  ;;  %v11548_v40 = vrot.slane %v13651_v1, %v18124_v2 }
 0x572   : > { %4801 = vperm.xlu1 %14852, %v18230_v51   ;;  %v9895_v48 = vrot.slane %v22072_v10, %v18124_v2  ;;  %v8009_v53 = vcombine.low %v8000_v44, %v8007_v49  ;;  %v18300_v21 = vpop.eup %15062  ;;  %v4511_v50 = vadd.f32 %v18061_v41, %v4456_v55  ;;  %v11419_v30 = vcombine.low %v18192_v59, %v18220_v28 }
 0x573   : > { %v8016_v58 = vrot.slane %v8008_v23, %v18124_v2  ;;  %v13646_v3 = vcombine.high %v18192_v59, %v18220_v28  ;;  %v11549_v6 = vcombine.low %v11527_v42, %v11534_v60  ;;  %v11550_v49 = vcombine.low %v11541_v25, %v11548_v40  ;;  %v18311_v0 = vpop.eup %15064 }
 0x574   : > { %v8023_v34 = vrot.slane %v8009_v53, %v18124_v2  ;;  %v11421_v44 = vcombine.low %v18212_v29, %v9895_v48  ;;  %v9907_v55 = vrot.slane %v18104_v9, %v18124_v2  ;;  %v13647_v1 = vcombine.high %v18212_v29, %v9895_v48  ;;  %v4465_v48 = vpop.xlane.xlu1 %4464 }
 0x575   : > { %v11429_v23 = vrot.slane %v11419_v30, %v18124_v2  ;;  %v11436_v10 = vrot.slane %v13646_v3, %v18124_v2  ;;  %v11564_v28 = vrot.slane %v11550_v49, %v18124_v2  ;;  %v18321_v60 = vsub.f32 1.0, %v18230_v51 }
 0x576   : > { %4791 = vperm.xlu1 %14852, %v18257_v57   ;;  %v8024_v59 = vcombine.low %v8016_v58, %v8023_v34  ;;  %v11443_v42 = vrot.slane %v11421_v44, %v18124_v2  ;;  %v22073_v53 = vcombine.high %v18104_v9, %v18104_v9  ;;  %v10047_v29 = vcombine.high %v18117_v54, %v18117_v54 }
 0x577   : > { %v11450_v40 = vrot.slane %v13647_v1, %v18124_v2  ;;  %v13573_v58 = vmul.f32 -1.442695, %v4511_v50  ;;  %v11557_v30 = vrot.slane %v11549_v6, %v18124_v2  ;;  %v11451_v3 = vcombine.low %v11429_v23, %v11436_v10 }
 0x578   : > { %v18327_v25 = vrot.slane %v22073_v53, %v18124_v2  ;;  %9545 = vperm.xlu0 %14853, %v8024_v59   ;;  %v6555_v37 = vcombine.high %v18085_v5, %v18085_v5  ;;  %v4632_v9 = vadd.f32 1.0, %v18248_v7  ;;  %v9915_v34 = vcombine.high %v9907_v55, %v9907_v55 }
 0x579   : > { %v10054_v49 = vrot.slane %v18117_v54, %v18124_v2  ;;  %v11452_v44 = vcombine.low %v11443_v42, %v11450_v40  ;;  %15068 = vrcp.f32 %v4629_v32  ;;  %v18340_v1 = vadd.f32 %v18061_v41, %v4465_v48 }
 0x57a   : > { %5633 = vperm.xlu1 %14852, %v18321_v60   ;;  %v11565_v50 = vcombine.low %v11557_v30, %v11564_v28  ;;  %v6562_v6 = vrot.slane %v18085_v5, %v18124_v2  ;;  %15070 = vpow2.f32 %v13570_v45  ;;  %v18345_v23 = vrot.slane %v9907_v55, %v18124_v2 }
 0x57b   : > { %v18348_v10 = vrot.slane %v10047_v29, %v18124_v2  ;;  %v11466_v7 = vrot.slane %v11452_v44, %v18124_v2  ;;  %15072 = vpow2.f32 %v13573_v58  ;;  %v11459_v41 = vrot.slane %v11451_v3, %v18124_v2 }
 0x57c   : > { %12994 = vperm.xlu0 %14853, %v11565_v50   ;;  %v6569_v32 = vrot.slane %v6555_v37, %v18124_v2  ;;  %15074 = vrcp.f32 %v4632_v9  ;;  %v18357_v45 = vrot.slane %v18327_v25, %v18124_v2  ;;  %v18360_v5 = vrot.slane %v9915_v34, %v18124_v2  ;;  %v18379_v34 = vpop.eup %15066 }
 0x57d   : > { %v10062_v55 = vcombine.high %v10054_v49, %v10054_v49  ;;  %v18363_v59 = vrot.slane %v10054_v49, %v18124_v2  ;;  %v11467_v28 = vcombine.low %v11459_v41, %v11466_v7  ;;  %v6570_v42 = vcombine.high %v6562_v6, %v6562_v6 }
 0x57e   : > { %v6571_v53 = vcombine.high %v6569_v32, %v6569_v32  ;;  %v18369_v48 = vrot.slane %v18348_v10, %v18124_v2  ;;  %v6702_v40 = vcombine.high %v18090_v39, %v18090_v39  ;;  %v6709_v58 = vrot.slane %v18090_v39, %v18124_v2 }
 0x57f   : > { %v6578_v30 = vrot.slane %v6562_v6, %v18124_v2  ;;  %v6585_v3 = vrot.slane %v6569_v32, %v18124_v2  ;;  %v6592_v37 = vrot.slane %v6570_v42, %v18124_v2  ;;  %v18382_v49 = vrot.slane %v10062_v55, %v18124_v2 }
 0x580   : > { %12988 = vperm.xlu0 %14853, %v11467_v28   ;;  %v6599_v9 = vrot.slane %v6571_v53, %v18124_v2  ;;  %v10341_v44 = vcombine.high %v18143_v11, %v18143_v11  ;;  %v6716_v50 = vrot.slane %v6702_v40, %v18124_v2  ;;  %v6717_v39 = vcombine.high %v6709_v58, %v6709_v58 }
 0x581   : > { %v8123_v7 = vcombine.low %v6578_v30, %v6592_v37  ;;  %v13588_v41 = vcombine.high %v6578_v30, %v6592_v37  ;;  %v18389_v32 = vrot.slane %v18143_v11, %v18124_v2  ;;  %v6725_v53 = vrot.slane %v6709_v58, %v18124_v2 }
 0x582   : > { %v8125_v6 = vcombine.low %v6585_v3, %v6599_v9  ;;  %v13589_v28 = vcombine.high %v6585_v3, %v6599_v9  ;;  %v6718_v42 = vcombine.high %v6716_v50, %v6716_v50  ;;  %v6739_v55 = vrot.slane %v6717_v39, %v18124_v2 }
 0x583   : > { %v18393_v29 = vpop.eup %15068  ;;  %v8133_v40 = vrot.slane %v8123_v7, %v18124_v2  ;;  %v8140_v54 = vrot.slane %v13588_v41, %v18124_v2  ;;  %v6732_v11 = vrot.slane %v6716_v50, %v18124_v2  ;;  %v18407_v35 = vrot.slane %v10341_v44, %v18124_v2 }
 0x584   : > { %4816 = vperm.xlu0 %14853, %v18240_v46   ;;  %v8147_v30 = vrot.slane %v8125_v6, %v18124_v2  ;;  %v8154_v3 = vrot.slane %v13589_v28, %v18124_v2  ;;  %v18400_v37 = vpop.eup %15070  ;;  %v6746_v58 = vrot.slane %v6718_v42, %v18124_v2  ;;  %v8270_v9 = vcombine.low %v6725_v53, %v6739_v55 }
 0x585   : > { %v13594_v39 = vcombine.high %v6725_v53, %v6739_v55  ;;  %v18404_v61 = vpop.eup %15072  ;;  %v8155_v7 = vcombine.low %v8133_v40, %v8140_v54  ;;  %v6457_v41 = vcombine.high %v18082_v56, %v18082_v56  ;;  %v10243_v44 = vcombine.high %v18238_v17, %v18238_v17 }
 0x586   : > { %22074 = vst [vmem:[#allocation42_spill] sm:$0xff] %v18404_v61  ;;  %v8156_v19 = vcombine.low %v8147_v30, %v8154_v3  ;;  %v18411_v6 = vpop.eup %15074  ;;  %v8272_v28 = vcombine.low %v6732_v11, %v6746_v58  ;;  %v13595_v18 = vcombine.high %v6732_v11, %v6746_v58  ;;  %v8280_v50 = vrot.slane %v8270_v9, %v18124_v2 }
 0x587   : > { %v8287_v42 = vrot.slane %v13594_v39, %v18124_v2  ;;  %v8163_v54 = vrot.slane %v8155_v7, %v18124_v2  ;;  %v18424_v40 = vrot.slane %v18389_v32, %v18124_v2  ;;  %v18429_v58 = vsub.f32 1.0, %v18240_v46 }
 0x588   : > { %4806 = vperm.xlu0 %14853, %v18280_v20   ;;  %v8170_v55 = vrot.slane %v8156_v19, %v18124_v2  ;;  %v8294_v30 = vrot.slane %v8272_v28, %v18124_v2  ;;  %v8301_v3 = vrot.slane %v13595_v18, %v18124_v2  ;;  %v6464_v39 = vrot.slane %v18082_v56, %v18124_v2 }
 0x589   : > { %v8302_v11 = vcombine.low %v8280_v50, %v8287_v42  ;;  %v6471_v7 = vrot.slane %v6457_v41, %v18124_v2  ;;  %v18438_v53 = vrot.slane %v18407_v35, %v18124_v2  ;;  %v18442_v18 = vrot.slane %v18238_v17, %v18124_v2 }
 0x58a   : > { %v8171_v9 = vcombine.low %v8163_v54, %v8170_v55  ;;  %v8303_v28 = vcombine.low %v8294_v30, %v8301_v3  ;;  %v18445_v50 = vrot.slane %v10243_v44, %v18124_v2  ;;  %v18449_v56 = vsub.f32 1.0, %v18257_v57 }
 0x58b   : > { %v18452_v41 = vsub.f32 1.0, %v18280_v20  ;;  %v6472_v42 = vcombine.high %v6464_v39, %v6464_v39  ;;  %v8310_v54 = vrot.slane %v8302_v11, %v18124_v2  ;;  %v6473_v17 = vcombine.high %v6471_v7, %v6471_v7 }
 0x58c   : > { %5648 = vperm.xlu0 %14853, %v18429_v58   ;;  %9554 = vperm.xlu1 %14852, %v8171_v9   ;;  %v8317_v55 = vrot.slane %v8303_v28, %v18124_v2  ;;  %v6480_v30 = vrot.slane %v6464_v39, %v18124_v2  ;;  %v6487_v44 = vrot.slane %v6471_v7, %v18124_v2 }
 0x58d   : > { %v6494_v3 = vrot.slane %v6472_v42, %v18124_v2  ;;  %v6604_v9 = vcombine.high %v18109_v47, %v18109_v47  ;;  %v6611_v19 = vrot.slane %v18109_v47, %v18124_v2  ;;  %v6501_v38 = vrot.slane %v6473_v17, %v18124_v2 }
 0x58e   : > { %v8318_v12 = vcombine.low %v8310_v54, %v8317_v55  ;;  %v22075_v11 = vcombine.high %v18204_v14, %v18204_v14  ;;  %v11566_v39 = vcombine.low %v18225_v26, %v18251_v24  ;;  %v13652_v17 = vcombine.high %v18225_v26, %v18251_v24 }
 0x58f   : > { %v8025_v7 = vcombine.low %v6480_v30, %v6494_v3  ;;  %v13584_v42 = vcombine.high %v6480_v30, %v6494_v3  ;;  %v6618_v8 = vrot.slane %v6604_v9, %v18124_v2  ;;  %v6619_v20 = vcombine.high %v6611_v19, %v6611_v19 }
 0x590   : > { %v10042_v28 = vrot.slane %v22075_v11, %v18124_v2  ;;  %5623 = vperm.xlu1 %14852, %v18449_v56   ;;  %9563 = vperm.xlu0 %14853, %v8318_v12   ;;  %v8027_v47 = vcombine.low %v6487_v44, %v6501_v38  ;;  %v13585_v54 = vcombine.high %v6487_v44, %v6501_v38 }
 0x591   : > { %v6627_v55 = vrot.slane %v6611_v19, %v18124_v2  ;;  %v8035_v14 = vrot.slane %v8025_v7, %v18124_v2  ;;  %v8042_v11 = vrot.slane %v13584_v42, %v18124_v2  ;;  %v6620_v57 = vcombine.high %v6618_v8, %v6618_v8 }
 0x592   : > { %v6634_v46 = vrot.slane %v6618_v8, %v18124_v2  ;;  %v8049_v30 = vrot.slane %v8027_v47, %v18124_v2  ;;  %v8056_v3 = vrot.slane %v13585_v54, %v18124_v2  ;;  %v6641_v12 = vrot.slane %v6619_v20, %v18124_v2 }
 0x593   : > { %v11568_v38 = vcombine.low %v18244_v4, %v10042_v28  ;;  %v8057_v44 = vcombine.low %v8035_v14, %v8042_v11  ;;  %v6648_v19 = vrot.slane %v6620_v57, %v18124_v2  ;;  %v13653_v26 = vcombine.high %v18244_v4, %v10042_v28 }
 0x594   : > { %v11576_v24 = vrot.slane %v11566_v39, %v18124_v2  ;;  %5638 = vperm.xlu0 %14853, %v18452_v41   ;;  %v8058_v9 = vcombine.low %v8049_v30, %v8056_v3  ;;  %v8172_v7 = vcombine.low %v6627_v55, %v6641_v12  ;;  %v13590_v8 = vcombine.high %v6627_v55, %v6641_v12 }
 0x595   : > { %v11583_v42 = vrot.slane %v13652_v17, %v18124_v2  ;;  %v8065_v47 = vrot.slane %v8057_v44, %v18124_v2  ;;  %v8174_v54 = vcombine.low %v6634_v46, %v6648_v19  ;;  %v13591_v20 = vcombine.high %v6634_v46, %v6648_v19 }
 0x596   : > { %v11590_v61 = vrot.slane %v11568_v38, %v18124_v2  ;;  %v8072_v14 = vrot.slane %v8058_v9, %v18124_v2  ;;  %v8182_v57 = vrot.slane %v8172_v7, %v18124_v2  ;;  %v8189_v4 = vrot.slane %v13590_v8, %v18124_v2 }
 0x597   : > { %v11597_v28 = vrot.slane %v13653_v26, %v18124_v2  ;;  %v8196_v39 = vrot.slane %v8174_v54, %v18124_v2  ;;  %v8203_v55 = vrot.slane %v13591_v20, %v18124_v2  ;;  %v11598_v11 = vcombine.low %v11576_v24, %v11583_v42 }
 0x598   : > { %v22076_v17 = vcombine.high %v18235_v22, %v18235_v22  ;;  %v8073_v30 = vcombine.low %v8065_v47, %v8072_v14  ;;  %v8204_v3 = vcombine.low %v8182_v57, %v8189_v4  ;;  %v11713_v38 = vcombine.low %v18254_v62, %v18296_v16 }
 0x599   : > { %v11599_v12 = vcombine.low %v11590_v61, %v11597_v28  ;;  %v8205_v44 = vcombine.low %v8196_v39, %v8203_v55  ;;  %v11606_v19 = vrot.slane %v11598_v11, %v18124_v2  ;;  %v13658_v26 = vcombine.high %v18254_v62, %v18296_v16 }
 0x59a   : > { %v10189_v46 = vrot.slane %v22076_v17, %v18124_v2  ;;  %9548 = vperm.xlu1 %14852, %v8073_v30   ;;  %v8212_v24 = vrot.slane %v8204_v3, %v18124_v2  ;;  %v11723_v61 = vrot.slane %v11713_v38, %v18124_v2  ;;  %v22077_v62 = vcombine.high %v18327_v25, %v18327_v25 }
 0x59b   : > { %v11613_v22 = vrot.slane %v11599_v12, %v18124_v2  ;;  %v8219_v8 = vrot.slane %v8205_v44, %v18124_v2  ;;  %v11730_v42 = vrot.slane %v13658_v26, %v18124_v2  ;;  %v11468_v14 = vcombine.low %v18345_v23, %v18360_v5 }
 0x59c   : > { %v11715_v9 = vcombine.low %v18274_v13, %v10189_v46  ;;  %v13659_v7 = vcombine.high %v18274_v13, %v10189_v46  ;;  %v9944_v16 = vrot.slane %v22077_v62, %v18124_v2  ;;  %v13648_v13 = vcombine.high %v18345_v23, %v18360_v5 }
 0x59d   : > { %v11614_v54 = vcombine.low %v11606_v19, %v11613_v22  ;;  %v8220_v57 = vcombine.low %v8212_v24, %v8219_v8  ;;  %v11745_v4 = vcombine.low %v11723_v61, %v11730_v42  ;;  %v11478_v25 = vrot.slane %v11468_v14, %v18124_v2 }
 0x59e   : > { %v11737_v47 = vrot.slane %v11715_v9, %v18124_v2  ;;  %v11744_v20 = vrot.slane %v13659_v7, %v18124_v2  ;;  %v11470_v28 = vcombine.low %v18357_v45, %v9944_v16  ;;  %v13649_v39 = vcombine.high %v18357_v45, %v9944_v16 }
 0x59f   : > { %12997 = vperm.xlu1 %14852, %v11614_v54   ;;  %v11485_v11 = vrot.slane %v13648_v13, %v18124_v2  ;;  %v22078_v17 = vcombine.high %v18348_v10, %v18348_v10  ;;  %9557 = vperm.xlu0 %14853, %v8220_v57   ;;  %v11753_v23 = vrot.slane %v11745_v4, %v18124_v2 }
 0x5a0   : > { %v11746_v55 = vcombine.low %v11737_v47, %v11744_v20  ;;  %v11492_v5 = vrot.slane %v11470_v28, %v18124_v2  ;;  %v11499_v30 = vrot.slane %v13649_v39, %v18124_v2  ;;  %v11615_v45 = vcombine.low %v18363_v59, %v18382_v49 }
 0x5a1   : > { %v10091_v46 = vrot.slane %v22078_v17, %v18124_v2  ;;  %v11500_v12 = vcombine.low %v11478_v25, %v11485_v11  ;;  %v13654_v38 = vcombine.high %v18363_v59, %v18382_v49  ;;  %v10194_v10 = vcombine.high %v18185_v15, %v18185_v15 }
 0x5a2   : > { %v11760_v3 = vrot.slane %v11746_v55, %v18124_v2  ;;  %v11501_v19 = vcombine.low %v11492_v5, %v11499_v30  ;;  %v11625_v9 = vrot.slane %v11615_v45, %v18124_v2  ;;  %v10201_v24 = vrot.slane %v18185_v15, %v18124_v2 }
 0x5a3   : > { %v11617_v44 = vcombine.low %v18369_v48, %v10091_v46  ;;  %v13655_v26 = vcombine.high %v18369_v48, %v10091_v46  ;;  %v11632_v7 = vrot.slane %v13654_v38, %v18124_v2  ;;  %v10258_v59 = vcombine.high %v18442_v18, %v18442_v18 }
 0x5a4   : > { %v11761_v22 = vcombine.low %v11753_v23, %v11760_v3  ;;  %v11508_v49 = vrot.slane %v11500_v12, %v18124_v2  ;;  %v11515_v8 = vrot.slane %v11501_v19, %v18124_v2  ;;  %v22079_v48 = vcombine.high %v18389_v32, %v18389_v32 }
 0x5a5   : > { %v11639_v61 = vrot.slane %v11617_v44, %v18124_v2  ;;  %v11646_v42 = vrot.slane %v13655_v26, %v18124_v2  ;;  %v11647_v15 = vcombine.low %v11625_v9, %v11632_v7  ;;  %v6751_v62 = vcombine.high %v18128_v63, %v18128_v63 }
 0x5a6   : > { %v18555_v47 = vrot.slane %v22079_v48, %v18124_v2  ;;  %13006 = vperm.xlu0 %14853, %v11761_v22   ;;  %v6758_v16 = vrot.slane %v18128_v63, %v18124_v2  ;;  %v10259_v54 = vcombine.high %v18445_v50, %v18445_v50  ;;  %v18564_v20 = vrot.slane %v10194_v10, %v18124_v2 }
 0x5a7   : > { %v11516_v14 = vcombine.low %v11508_v49, %v11515_v8  ;;  %v11648_v13 = vcombine.low %v11639_v61, %v11646_v42  ;;  %v18568_v32 = vrot.slane %v18442_v18, %v18124_v2  ;;  %v18572_v57 = vrot.slane %v18445_v50, %v18124_v2 }
 0x5a8   : > { %v10209_v4 = vcombine.high %v10201_v24, %v10201_v24  ;;  %v10096_v63 = vcombine.high %v18217_v31, %v18217_v31  ;;  %v18577_v28 = vrot.slane %v10258_v59, %v18124_v2  ;;  %v11655_v39 = vrot.slane %v11647_v15, %v18124_v2 }
 0x5a9   : > { %12991 = vperm.xlu1 %14852, %v11516_v14   ;;  %v11662_v55 = vrot.slane %v11648_v13, %v18124_v2  ;;  %v6765_v25 = vrot.slane %v6751_v62, %v18124_v2  ;;  %v18583_v18 = vrot.slane %v10201_v24, %v18124_v2  ;;  %v18587_v11 = vrot.slane %v18217_v31, %v18124_v2 }
 0x5aa   : > { %v6766_v17 = vcombine.high %v6758_v16, %v6758_v16  ;;  %v6898_v46 = vcombine.high %v18130_v27, %v18130_v27  ;;  %v10210_v23 = vcombine.high %v18564_v20, %v18564_v20  ;;  %v18595_v5 = vrot.slane %v18564_v20, %v18124_v2 }
 0x5ab   : > { %v11663_v30 = vcombine.low %v11655_v39, %v11662_v55  ;;  %v6767_v45 = vcombine.high %v6765_v25, %v6765_v25  ;;  %v18598_v3 = vrot.slane %v10209_v4, %v18124_v2  ;;  %v18601_v12 = vrot.slane %v10096_v63, %v18124_v2 }
 0x5ac   : > { %v6774_v31 = vrot.slane %v6758_v16, %v18124_v2  ;;  %v6788_v38 = vrot.slane %v6766_v17, %v18124_v2  ;;  %v4635_v44 = vadd.f32 1.0, %v18270_v33  ;;  %v6781_v10 = vrot.slane %v6765_v25, %v18124_v2 }
 0x5ad   : > { %13000 = vperm.xlu0 %14853, %v11663_v30   ;;  %4821 = vperm.xlu1 %14852, %v18287_v52   ;;  %v6795_v19 = vrot.slane %v6767_v45, %v18124_v2  ;;  %v6905_v26 = vrot.slane %v18130_v27, %v18124_v2  ;;  %v10111_v9 = vcombine.high %v18587_v11, %v18587_v11  ;;  %v18629_v39 = vsub.f32 1.0, %v18287_v52 }
 0x5ae   : > { %v8319_v24 = vcombine.low %v6774_v31, %v6788_v38  ;;  %v13596_v22 = vcombine.high %v6774_v31, %v6788_v38  ;;  %v6912_v7 = vrot.slane %v6898_v46, %v18124_v2  ;;  %v10390_v33 = vcombine.high %v18321_v60, %v18321_v60 }
 0x5af   : > { %v8321_v61 = vcombine.low %v6781_v10, %v6795_v19  ;;  %v13597_v59 = vcombine.high %v6781_v10, %v6795_v19  ;;  %v6913_v49 = vcombine.high %v6905_v26, %v6905_v26  ;;  %v6921_v27 = vrot.slane %v6905_v26, %v18124_v2 }
 0x5b0   : > { %v8329_v8 = vrot.slane %v8319_v24, %v18124_v2  ;;  %v8336_v42 = vrot.slane %v13596_v22, %v18124_v2  ;;  %v6914_v48 = vcombine.high %v6912_v7, %v6912_v7  ;;  %15076 = vrcp.f32 %v4635_v44 }
 0x5b1   : > { %4836 = vperm.xlu0 %14853, %v18379_v34   ;;  %4811 = vperm.xlu1 %14852, %v18393_v29   ;;  %v8343_v15 = vrot.slane %v8321_v61, %v18124_v2  ;;  %v8350_v62 = vrot.slane %v13597_v59, %v18124_v2  ;;  %v6935_v16 = vrot.slane %v6913_v49, %v18124_v2 }
 0x5b2   : > { %v10397_v14 = vrot.slane %v18321_v60, %v18124_v2  ;;  %v8351_v13 = vcombine.low %v8329_v8, %v8336_v42  ;;  %v6928_v4 = vrot.slane %v6912_v7, %v18124_v2  ;;  %v6942_v63 = vrot.slane %v6914_v48, %v18124_v2 }
 0x5b3   : > { %v8352_v55 = vcombine.low %v8343_v15, %v8350_v62  ;;  %v8466_v25 = vcombine.low %v6921_v27, %v6935_v16  ;;  %v13602_v17 = vcombine.high %v6921_v27, %v6935_v16  ;;  %v18632_v46 = vrot.slane %v10390_v33, %v18124_v2 }
 0x5b4   : > { %v8359_v30 = vrot.slane %v8351_v13, %v18124_v2  ;;  %v8468_v45 = vcombine.low %v6928_v4, %v6942_v63  ;;  %v13603_v31 = vcombine.high %v6928_v4, %v6942_v63  ;;  %v18636_v60 = vadd.f32 1.0, %v18300_v21 }
 0x5b5   : > { %4826 = vperm.xlu0 %14853, %v18411_v6   ;;  %5653 = vperm.xlu1 %14852, %v18629_v39   ;;  %v8366_v38 = vrot.slane %v8352_v55, %v18124_v2  ;;  %v8476_v44 = vrot.slane %v8466_v25, %v18124_v2  ;;  %v8483_v10 = vrot.slane %v13602_v17, %v18124_v2  ;;  %v18652_v7 = vsub.f32 1.0, %v18379_v34 }
 0x5b6   : > { %v10112_v19 = vcombine.high %v18601_v12, %v18601_v12  ;;  %v10405_v26 = vcombine.high %v10397_v14, %v10397_v14  ;;  %v8490_v24 = vrot.slane %v8468_v45, %v18124_v2  ;;  %v8497_v22 = vrot.slane %v13603_v31, %v18124_v2 }
 0x5b7   : > { %v18649_v21 = vrot.slane %v18587_v11, %v18124_v2  ;;  %v8367_v33 = vcombine.low %v8359_v30, %v8366_v38  ;;  %v8498_v61 = vcombine.low %v8476_v44, %v8483_v10  ;;  %v18656_v59 = vrot.slane %v18601_v12, %v18124_v2 }
 0x5b8   : > { %v18659_v49 = vrot.slane %v10111_v9, %v18124_v2  ;;  %v18662_v8 = vrot.slane %v10397_v14, %v18124_v2  ;;  %v8499_v42 = vcombine.low %v8490_v24, %v8497_v22  ;;  %v18665_v48 = vadd.f32 1.0, %v18311_v0 }
 0x5b9   : > { %v10406_v11 = vcombine.high %v18632_v46, %v18632_v46  ;;  %5668 = vperm.xlu0 %14853, %v18652_v7   ;;  %9566 = vperm.xlu1 %14852, %v8367_v33   ;;  %v6653_v27 = vcombine.high %v18145_v43, %v18145_v43  ;;  %v6660_v9 = vrot.slane %v18145_v43, %v18124_v2  ;;  %v18686_v13 = vsub.f32 1.0, %v18393_v29 }
 0x5ba   : > { %v18676_v15 = vrot.slane %v18632_v46, %v18124_v2  ;;  %v18679_v62 = vrot.slane %v10405_v26, %v18124_v2  ;;  %v8506_v0 = vrot.slane %v8498_v61, %v18124_v2  ;;  %v8513_v16 = vrot.slane %v8499_v42, %v18124_v2  ;;  %v18683_v14 = vpop.eup %15076 }
 0x5bb   : > { %v18689_v4 = vsub.f32 1.0, %v18411_v6  ;;  %v6667_v43 = vrot.slane %v6653_v27, %v18124_v2  ;;  %v6668_v63 = vcombine.high %v6660_v9, %v6660_v9  ;;  %v6676_v25 = vrot.slane %v6660_v9, %v18124_v2 }
 0x5bc   : > { %v8514_v55 = vcombine.low %v8506_v0, %v8513_v16  ;;  %v6800_v17 = vcombine.high %v18195_v36, %v18195_v36  ;;  %v6807_v30 = vrot.slane %v18195_v36, %v18124_v2  ;;  %v10238_v44 = vrot.slane %v10210_v23, %v18124_v2 }
 0x5bd   : > { %5643 = vperm.xlu1 %14852, %v18686_v13   ;;  %v6669_v45 = vcombine.high %v6667_v43, %v6667_v43  ;;  %v6683_v31 = vrot.slane %v6667_v43, %v18124_v2  ;;  %v6690_v38 = vrot.slane %v6668_v63, %v18124_v2  ;;  %v11762_v36 = vcombine.low %v18583_v18, %v18598_v3 }
 0x5be   : > { %9575 = vperm.xlu0 %14853, %v8514_v55   ;;  %v6814_v10 = vrot.slane %v6800_v17, %v18124_v2  ;;  %v6815_v26 = vcombine.high %v6807_v30, %v6807_v30  ;;  %v6823_v24 = vrot.slane %v6807_v30, %v18124_v2  ;;  %v13660_v42 = vcombine.high %v18583_v18, %v18598_v3  ;;  %v18716_v55 = vpop.xlane.xlu0 %4449 }
 0x5bf   : > { %v6697_v22 = vrot.slane %v6669_v45, %v18124_v2  ;;  %v8221_v33 = vcombine.low %v6676_v25, %v6690_v38  ;;  %v13592_v61 = vcombine.high %v6676_v25, %v6690_v38  ;;  %v11764_v9 = vcombine.low %v18595_v5, %v10238_v44 }
 0x5c0   : > { %v6816_v27 = vcombine.high %v6814_v10, %v6814_v10  ;;  %v6830_v20 = vrot.slane %v6814_v10, %v18124_v2  ;;  %v6837_v23 = vrot.slane %v6815_v26, %v18124_v2  ;;  %v13661_v17 = vcombine.high %v18595_v5, %v10238_v44 }
 0x5c1   : > { %v8223_v0 = vcombine.low %v6683_v31, %v6697_v22  ;;  %v13593_v16 = vcombine.high %v6683_v31, %v6697_v22  ;;  %v8231_v43 = vrot.slane %v8221_v33, %v18124_v2  ;;  %v8238_v63 = vrot.slane %v13592_v61, %v18124_v2 }
 0x5c2   : > { %5658 = vperm.xlu0 %14853, %v18689_v4   ;;  %v6844_v25 = vrot.slane %v6816_v27, %v18124_v2  ;;  %v8368_v18 = vcombine.low %v6823_v24, %v6837_v23  ;;  %v13598_v3 = vcombine.high %v6823_v24, %v6837_v23  ;;  %v11772_v31 = vrot.slane %v11762_v36, %v18124_v2 }
 0x5c3   : > { %v8245_v30 = vrot.slane %v8223_v0, %v18124_v2  ;;  %v8252_v45 = vrot.slane %v13593_v16, %v18124_v2  ;;  %v8253_v38 = vcombine.low %v8231_v43, %v8238_v63  ;;  %v11779_v24 = vrot.slane %v13660_v42, %v18124_v2 }
 0x5c4   : > { %v8370_v10 = vcombine.low %v6830_v20, %v6844_v25  ;;  %v13599_v26 = vcombine.high %v6830_v20, %v6844_v25  ;;  %v8378_v22 = vrot.slane %v8368_v18, %v18124_v2  ;;  %v8385_v33 = vrot.slane %v13598_v3, %v18124_v2  ;;  %v18739_v25 = vpop.xlane.xlu0 %4467 }
 0x5c5   : > { %v8254_v61 = vcombine.low %v8245_v30, %v8252_v45  ;;  %v8261_v27 = vrot.slane %v8253_v38, %v18124_v2  ;;  %v11786_v5 = vrot.slane %v11764_v9, %v18124_v2  ;;  %v11793_v36 = vrot.slane %v13661_v17, %v18124_v2  ;;  %v18744_v30 = vpop.xlane.xlu1 %4458 }
 0x5c6   : > { %v8392_v44 = vrot.slane %v8370_v10, %v18124_v2  ;;  %v8399_v23 = vrot.slane %v13599_v26, %v18124_v2  ;;  %v8400_v0 = vcombine.low %v8378_v22, %v8385_v33  ;;  %v11794_v16 = vcombine.low %v11772_v31, %v11779_v24 }
 0x5c7   : > { %v8268_v20 = vrot.slane %v8254_v61, %v18124_v2  ;;  %v22080_v43 = vcombine.high %v18407_v35, %v18407_v35  ;;  %v11909_v42 = vcombine.low %v18424_v40, %v18555_v47  ;;  %v11795_v3 = vcombine.low %v11786_v5, %v11793_v36 }
 0x5c8   : > { %v8401_v9 = vcombine.low %v8392_v44, %v8399_v23  ;;  %v8408_v18 = vrot.slane %v8400_v0, %v18124_v2  ;;  %v13666_v17 = vcombine.high %v18424_v40, %v18555_v47  ;;  %v11802_v38 = vrot.slane %v11794_v16, %v18124_v2  ;;  %v18766_v16 = vpop.xlane.xlu0 %4461 }
 0x5c9   : > { %v10385_v63 = vrot.slane %v22080_v43, %v18124_v2  ;;  %v8269_v45 = vcombine.low %v8261_v27, %v8268_v20  ;;  %v11809_v26 = vrot.slane %v11795_v3, %v18124_v2  ;;  %v11919_v22 = vrot.slane %v11909_v42, %v18124_v2 }
 0x5ca   : > { %v8415_v10 = vrot.slane %v8401_v9, %v18124_v2  ;;  %v11926_v33 = vrot.slane %v13666_v17, %v18124_v2  ;;  %v10140_v61 = vrot.slane %v10112_v19, %v18124_v2  ;;  %v13656_v44 = vcombine.high %v18649_v21, %v18659_v49 }
 0x5cb   : > { %v11911_v35 = vcombine.low %v18438_v53, %v10385_v63  ;;  %v13667_v31 = vcombine.high %v18438_v53, %v10385_v63  ;;  %9560 = vperm.xlu1 %14852, %v8269_v45   ;;  %v11664_v53 = vcombine.low %v18649_v21, %v18659_v49  ;;  %v11810_v24 = vcombine.low %v11802_v38, %v11809_v26  ;;  %v18776_v49 = vpop.xlane.xlu1 %4476 }
 0x5cc   : > { %v8416_v27 = vcombine.low %v8408_v18, %v8415_v10  ;;  %v11941_v5 = vcombine.low %v11919_v22, %v11926_v33  ;;  %v11666_v0 = vcombine.low %v18656_v59, %v10140_v61  ;;  %v13657_v36 = vcombine.high %v18656_v59, %v10140_v61  ;;  %v18801_v46 = vpop.xlane.xlu0 %4479  ;;  %v18805_v61 = vld [vmem:[#allocation2] ss:$0 sm:$0xff] }
 0x5cd   : > { %v11933_v40 = vrot.slane %v11911_v35, %v18124_v2  ;;  %v11940_v47 = vrot.slane %v13667_v31, %v18124_v2  ;;  %v11674_v20 = vrot.slane %v11664_v53, %v18124_v2  ;;  %v11681_v19 = vrot.slane %v13656_v44, %v18124_v2 }
 0x5ce   : > { %9569 = vperm.xlu0 %14853, %v8416_v27   ;;  %v11949_v12 = vrot.slane %v11941_v5, %v18124_v2  ;;  %v10287_v43 = vrot.slane %v10259_v54, %v18124_v2  ;;  %v11811_v21 = vcombine.low %v18568_v32, %v18577_v28  ;;  %v11688_v63 = vrot.slane %v11666_v0, %v18124_v2 }
 0x5cf   : > { %v11942_v23 = vcombine.low %v11933_v40, %v11940_v47  ;;  %13009 = vperm.xlu1 %14852, %v11810_v24   ;;  %v11695_v42 = vrot.slane %v13657_v36, %v18124_v2  ;;  %v13662_v9 = vcombine.high %v18568_v32, %v18577_v28  ;;  %v11696_v18 = vcombine.low %v11674_v20, %v11681_v19  ;;  %v18809_v27 = vpop.xlane.xlu1 %4470 }
 0x5d0   : > { %v11813_v3 = vcombine.low %v18572_v57, %v10287_v43  ;;  %v13663_v50 = vcombine.high %v18572_v57, %v10287_v43  ;;  %v11821_v54 = vrot.slane %v11811_v21, %v18124_v2  ;;  %v10434_v35 = vrot.slane %v10406_v11, %v18124_v2 }
 0x5d1   : > { %v11956_v59 = vrot.slane %v11942_v23, %v18124_v2  ;;  %v11697_v45 = vcombine.low %v11688_v63, %v11695_v42  ;;  %v11828_v38 = vrot.slane %v13662_v9, %v18124_v2  ;;  %v11704_v31 = vrot.slane %v11696_v18, %v18124_v2 }
 0x5d2   : > { %v11835_v32 = vrot.slane %v11813_v3, %v18124_v2  ;;  %v11842_v28 = vrot.slane %v13663_v50, %v18124_v2  ;;  %v11958_v57 = vcombine.low %v18662_v8, %v18679_v62  ;;  %v13668_v22 = vcombine.high %v18662_v8, %v18679_v62 }
 0x5d3   : > { %v11957_v17 = vcombine.low %v11949_v12, %v11956_v59  ;;  %v11711_v10 = vrot.slane %v11697_v45, %v18124_v2  ;;  %v11843_v26 = vcombine.low %v11821_v54, %v11828_v38  ;;  %v11960_v33 = vcombine.low %v18676_v15, %v10434_v35  ;;  %v18824_v19 = vpop.permute.xlu1 %4756 }
 0x5d4   : > { %15078 = vrcp.f32 %v18665_v48  ;;  %v11844_v11 = vcombine.low %v11835_v32, %v11842_v28  ;;  %v13669_v40 = vcombine.high %v18676_v15, %v10434_v35  ;;  %v11968_v47 = vrot.slane %v11958_v57, %v18124_v2 }
 0x5d5   : > { %13018 = vperm.xlu0 %14853, %v11957_v17   ;;  %v4509_v53 = vadd.f32 %v18805_v61, %v18716_v55  ;;  %v11712_v24 = vcombine.low %v11704_v31, %v11711_v10  ;;  %v11975_v8 = vrot.slane %v13668_v22, %v18124_v2  ;;  %v11982_v62 = vrot.slane %v11960_v33, %v18124_v2 }
 0x5d6   : > { %15080 = vrcp.f32 %v18636_v60  ;;  %v11851_v48 = vrot.slane %v11843_v26, %v18124_v2  ;;  %v11858_v15 = vrot.slane %v11844_v11, %v18124_v2  ;;  %v11989_v5 = vrot.slane %v13669_v40, %v18124_v2  ;;  %v22082_v40 = vld [vmem:[#allocation42_spill] sm:$0xff] }
 0x5d7   : > { %v4636_v44 = vadd.f32 1.0, %v18400_v37  ;;  %13003 = vperm.xlu1 %14852, %v11712_v24   ;;  %v11990_v23 = vcombine.low %v11968_v47, %v11975_v8  ;;  %v6947_v55 = vcombine.high %v18230_v51, %v18230_v51  ;;  %v6954_v0 = vrot.slane %v18230_v51, %v18124_v2  ;;  %v18828_v37 = vpop.xlane.xlu0 %4473  ;;  %v18857_v10 = vpop.permute.xlu1 %4746 }
 0x5d8   : > { %v11859_v36 = vcombine.low %v11851_v48, %v11858_v15  ;;  %v11991_v20 = vcombine.low %v11982_v62, %v11989_v5  ;;  %v13576_v60 = vmul.f32 -1.442695, %v18340_v1  ;;  %v4512_v43 = vadd.f32 %v18805_v61, %v18744_v30  ;;  %v22083_v5 = vld [vmem:[#allocation24_spill] sm:$0xff] }
 0x5d9   : > { %v6961_v12 = vrot.slane %v6947_v55, %v18124_v2  ;;  %v11998_v21 = vrot.slane %v11990_v23, %v18124_v2  ;;  %v6962_v63 = vcombine.high %v6954_v0, %v6954_v0  ;;  %15082 = vrcp.f32 %v4636_v44 }
 0x5da   : > { %13012 = vperm.xlu0 %14853, %v11859_v36   ;;  %v12005_v59 = vrot.slane %v11991_v20, %v18124_v2  ;;  %v13571_v51 = vmul.f32 -1.442695, %v4509_v53  ;;  %v10292_v1 = vcombine.high %v18449_v56, %v18449_v56  ;;  %v10299_v9 = vrot.slane %v18449_v56, %v18124_v2 }
 0x5db   : > { %4841 = vperm.xlu1 %14852, %v18683_v14   ;;  %v6963_v42 = vcombine.high %v6961_v12, %v6961_v12  ;;  %v6970_v18 = vrot.slane %v6954_v0, %v18124_v2  ;;  %v6984_v3 = vrot.slane %v6962_v63, %v18124_v2  ;;  %v18841_v50 = vadd.f32 %v18805_v61, %v18739_v25  ;;  %v18849_v31 = vpop.permute.xlu0 %5588 }
 0x5dc   : > { %v12006_v30 = vcombine.low %v11998_v21, %v12005_v59  ;;  %v6977_v54 = vrot.slane %v6961_v12, %v18124_v2  ;;  %15084 = vpow2.f32 %v13576_v60  ;;  %v10537_v38 = vcombine.high %v18429_v58, %v18429_v58 }
 0x5dd   : > { %v6991_v17 = vrot.slane %v6963_v42, %v18124_v2  ;;  %v8515_v56 = vcombine.low %v6970_v18, %v6984_v3  ;;  %v13604_v35 = vcombine.high %v6970_v18, %v6984_v3  ;;  %v18851_v32 = vmul.f32 -1.442695, %v4512_v43 }
 0x5de   : > { %v18845_v45 = vpop.eup %15078  ;;  %13021 = vperm.xlu0 %14853, %v12006_v30   ;;  %v18854_v25 = vrot.slane %v10292_v1, %v18124_v2  ;;  %15086 = vpow2.f32 %v13571_v51  ;;  %v10307_v22 = vcombine.high %v10299_v9, %v10299_v9  ;;  %v18864_v47 = vadd.f32 1.0, %v22082_v40 }
 0x5df   : > { %4831 = vperm.xlu1 %14852, %v18845_v45   ;;  %v8517_v28 = vcombine.low %v6977_v54, %v6991_v17  ;;  %v13605_v57 = vcombine.high %v6977_v54, %v6991_v17  ;;  %v8525_v33 = vrot.slane %v8515_v56, %v18124_v2  ;;  %v8532_v11 = vrot.slane %v13604_v35, %v18124_v2  ;;  %v18897_v21 = vpop.permute.xlu0 %4751 }
 0x5e0   : > { %v18859_v26 = vpop.eup %15080  ;;  %v18867_v53 = vsub.f32 1.0, %v18683_v14  ;;  %v18873_v62 = vrot.slane %v18429_v58, %v18124_v2  ;;  %v18876_v48 = vrot.slane %v10537_v38, %v18124_v2  ;;  %v7094_v44 = vcombine.high %v22083_v5, %v22083_v5  ;;  %v22084_v58 = vld [vmem:[#allocation25_spill] sm:$0xff] }
 0x5e1   : > { %22081 = vst [vmem:[#allocation52_spill] sm:$0xff] %v18859_v26  ;;  %v8539_v24 = vrot.slane %v8517_v28, %v18124_v2  ;;  %v8546_v8 = vrot.slane %v13605_v57, %v18124_v2  ;;  %v8547_v15 = vcombine.low %v8525_v33, %v8532_v11  ;;  %v10308_v23 = vcombine.high %v18854_v25, %v18854_v25 }
 0x5e2   : > { %4856 = vperm.xlu0 %14853, %v18859_v26   ;;  %v7101_v0 = vrot.slane %v22083_v5, %v18124_v2  ;;  %v6849_v36 = vcombine.high %v22084_v58, %v22084_v58  ;;  %v18889_v20 = vrot.slane %v10299_v9, %v18124_v2  ;;  %v18892_v60 = vrot.slane %v10307_v22, %v18124_v2  ;;  %v18904_v9 = vpop.permute.xlu1 %4761 }
 0x5e3   : > { %5673 = vperm.xlu1 %14852, %v18867_v53   ;;  %v8548_v55 = vcombine.low %v8539_v24, %v8546_v8  ;;  %v7108_v12 = vrot.slane %v7094_v44, %v18124_v2  ;;  %v6856_v43 = vrot.slane %v22084_v58, %v18124_v2  ;;  %v18899_v59 = vpop.eup %15082  ;;  %v8555_v63 = vrot.slane %v8547_v15, %v18124_v2 }
 0x5e4   : > { %22085 = vst [vmem:[#allocation51_spill] sm:$0xff] %v18899_v59  ;;  %v7109_v1 = vcombine.high %v7101_v0, %v7101_v0  ;;  %v6863_v42 = vrot.slane %v6849_v36, %v18124_v2  ;;  %v18908_v30 = vsub.f32 1.0, %v18859_v26  ;;  %v18911_v18 = vsub.f32 1.0, %v18845_v45  ;;  %v18924_v36 = vpop.permute.xlu0 %5578 }
 0x5e5   : > { %v8562_v51 = vrot.slane %v8548_v55, %v18124_v2  ;;  %v7110_v3 = vcombine.high %v7108_v12, %v7108_v12  ;;  %v6864_v54 = vcombine.high %v6856_v43, %v6856_v43  ;;  %v7117_v38 = vrot.slane %v7101_v0, %v18124_v2 }
 0x5e6   : > { %4846 = vperm.xlu0 %14853, %v18899_v59   ;;  %v7131_v56 = vrot.slane %v7109_v1, %v18124_v2  ;;  %v6865_v35 = vcombine.high %v6863_v42, %v6863_v42  ;;  %v18915_v28 = vpop.eup %15084  ;;  %v7124_v57 = vrot.slane %v7108_v12, %v18124_v2  ;;  %v6872_v33 = vrot.slane %v6856_v43, %v18124_v2  ;;  %v18928_v1 = vpop.permute.xlu1 %5593 }
 0x5e7   : > { %v8563_v17 = vcombine.low %v8555_v63, %v8562_v51  ;;  %v7138_v22 = vrot.slane %v7110_v3, %v18124_v2  ;;  %v6886_v11 = vrot.slane %v6864_v54, %v18124_v2  ;;  %v6879_v8 = vrot.slane %v6863_v42, %v18124_v2 }
 0x5e8   : > { %v8662_v40 = vcombine.low %v7117_v38, %v7131_v56  ;;  %v13610_v24 = vcombine.high %v7117_v38, %v7131_v56  ;;  %v6893_v15 = vrot.slane %v6865_v35, %v18124_v2  ;;  %v15087_v5 = vpop.eup %15086  ;;  %15088 = vrcp.f32 %v18864_v47 }
 0x5e9   : > { %9578 = vperm.xlu1 %14852, %v8563_v17   ;;  %v8664_v44 = vcombine.low %v7124_v57, %v7138_v22  ;;  %v13611_v55 = vcombine.high %v7124_v57, %v7138_v22  ;;  %v8417_v0 = vcombine.low %v6872_v33, %v6886_v11  ;;  %v13600_v58 = vcombine.high %v6872_v33, %v6886_v11 }
 0x5ea   : > { %5688 = vperm.xlu0 %14853, %v18908_v30   ;;  %v8672_v12 = vrot.slane %v8662_v40, %v18124_v2  ;;  %v8679_v43 = vrot.slane %v13610_v24, %v18124_v2  ;;  %v8419_v63 = vcombine.low %v6879_v8, %v6893_v15  ;;  %v13601_v51 = vcombine.high %v6879_v8, %v6893_v15 }
 0x5eb   : > { %v8686_v42 = vrot.slane %v8664_v44, %v18124_v2  ;;  %v8693_v3 = vrot.slane %v13611_v55, %v18124_v2  ;;  %v8427_v54 = vrot.slane %v8417_v0, %v18124_v2  ;;  %v8434_v17 = vrot.slane %v13600_v58, %v18124_v2  ;;  %v18951_v0 = vpop.permute.xlu0 %5608 }
 0x5ec   : > { %v8694_v38 = vcombine.low %v8672_v12, %v8679_v43  ;;  %v8441_v56 = vrot.slane %v8419_v63, %v18124_v2  ;;  %v8448_v35 = vrot.slane %v13601_v51, %v18124_v2  ;;  %v10336_v57 = vrot.slane %v10308_v23, %v18124_v2  ;;  %v18957_v63 = vpop.permute.xlu1 %5583 }
 0x5ed   : > { %5663 = vperm.xlu1 %14852, %v18911_v18   ;;  %v8695_v22 = vcombine.low %v8686_v42, %v8693_v3  ;;  %v8449_v33 = vcombine.low %v8427_v54, %v8434_v17  ;;  %v11860_v11 = vcombine.low %v18889_v20, %v18892_v60  ;;  %v10322_v40 = vrot.slane %v18854_v25, %v18124_v2 }
 0x5ee   : > { %v10439_v24 = vcombine.high %v18452_v41, %v18452_v41  ;;  %v8450_v8 = vcombine.low %v8441_v56, %v8448_v35  ;;  %v13664_v15 = vcombine.high %v18889_v20, %v18892_v60  ;;  %v4637_v44 = vadd.f32 1.0, %v15087_v5  ;;  %v22086_v56 = vld [vmem:[#allocation43_spill] sm:$0xff] }
 0x5ef   : > { %v10552_v23 = vcombine.high %v18873_v62, %v18873_v62  ;;  %v8702_v47 = vrot.slane %v8694_v38, %v18124_v2  ;;  %v8709_v55 = vrot.slane %v8695_v22, %v18124_v2  ;;  %v10553_v25 = vcombine.high %v18876_v48, %v18876_v48 }
 0x5f0   : > { %v8457_v58 = vrot.slane %v8449_v33, %v18124_v2  ;;  %v8464_v12 = vrot.slane %v8450_v8, %v18124_v2  ;;  %v11862_v43 = vcombine.low %v10322_v40, %v10336_v57  ;;  %v10446_v20 = vrot.slane %v18452_v41, %v18124_v2 }
 0x5f1   : > { %v8710_v60 = vcombine.low %v8702_v47, %v8709_v55  ;;  %v13665_v5 = vcombine.high %v10322_v40, %v10336_v57  ;;  %v11870_v51 = vrot.slane %v11860_v11, %v18124_v2  ;;  %v10453_v42 = vrot.slane %v10439_v24, %v18124_v2 }
 0x5f2   : > { %v8465_v3 = vcombine.low %v8457_v58, %v8464_v12  ;;  %v11877_v54 = vrot.slane %v13664_v15, %v18124_v2  ;;  %v11884_v17 = vrot.slane %v11862_v43, %v18124_v2  ;;  %15090 = vrcp.f32 %v4637_v44  ;;  %v18978_v44 = vpop.permute.xlu0 %5598  ;;  %v18983_v58 = vpop.permute.xlu1 %4776 }
 0x5f3   : > { %9587 = vperm.xlu0 %14853, %v8710_v60   ;;  %v11891_v38 = vrot.slane %v13665_v5, %v18124_v2  ;;  %v6996_v35 = vcombine.high %v22086_v56, %v22086_v56  ;;  %v7003_v41 = vrot.slane %v22086_v56, %v18124_v2  ;;  %v10560_v57 = vrot.slane %v18873_v62, %v18124_v2  ;;  %v18985_v12 = vpop.eup %15088 }
 0x5f4   : > { %v10574_v22 = vrot.slane %v10552_v23, %v18124_v2  ;;  %9572 = vperm.xlu1 %14852, %v8465_v3   ;;  %v11892_v33 = vcombine.low %v11870_v51, %v11877_v54  ;;  %v10581_v11 = vrot.slane %v10553_v25, %v18124_v2  ;;  %v18975_v40 = vsub.f32 1.0, %v18899_v59  ;;  %22087 = vst [vmem:[#allocation15_spill] sm:$0xff] %v18985_v12 }
 0x5f5   : > { %v11893_v24 = vcombine.low %v11884_v17, %v11891_v38  ;;  %v7010_v8 = vrot.slane %v6996_v35, %v18124_v2  ;;  %v7011_v15 = vcombine.high %v7003_v41, %v7003_v41  ;;  %v10567_v47 = vrot.slane %v18876_v48, %v18124_v2 }
 0x5f6   : > { %v10454_v55 = vcombine.high %v10446_v20, %v10446_v20  ;;  %v10455_v62 = vcombine.high %v10453_v42, %v10453_v42  ;;  %v7019_v23 = vrot.slane %v7003_v41, %v18124_v2  ;;  %v11900_v25 = vrot.slane %v11892_v33, %v18124_v2 }
 0x5f7   : > { %5678 = vperm.xlu0 %14853, %v18975_v40   ;;  %v11907_v43 = vrot.slane %v11893_v24, %v18124_v2  ;;  %v7012_v60 = vcombine.high %v7010_v8, %v7010_v8  ;;  %v7033_v5 = vrot.slane %v7011_v15, %v18124_v2  ;;  %v7026_v51 = vrot.slane %v7010_v8, %v18124_v2 }
 0x5f8   : > { %v12105_v48 = vcombine.low %v10560_v57, %v10574_v22  ;;  %v13674_v3 = vcombine.high %v10560_v57, %v10574_v22  ;;  %v12107_v54 = vcombine.low %v10567_v47, %v10581_v11  ;;  %v10476_v41 = vrot.slane %v10454_v55, %v18124_v2 }
 0x5f9   : > { %v11908_v17 = vcombine.low %v11900_v25, %v11907_v43  ;;  %v7040_v38 = vrot.slane %v7012_v60, %v18124_v2  ;;  %v8564_v56 = vcombine.low %v7019_v23, %v7033_v5  ;;  %v13606_v35 = vcombine.high %v7019_v23, %v7033_v5  ;;  %v19000_v25 = vpop.permute.xlu0 %4796  ;;  %v19006_v5 = vpop.permute.xlu1 %4766 }
 0x5fa   : > { %v10488_v33 = vcombine.high %v18686_v13, %v18686_v13  ;;  %v10495_v24 = vrot.slane %v18686_v13, %v18124_v2  ;;  %v13675_v59 = vcombine.high %v10567_v47, %v10581_v11  ;;  %v12115_v23 = vrot.slane %v12105_v48, %v18124_v2 }
 0x5fb   : > { %13015 = vperm.xlu1 %14852, %v11908_v17   ;;  %v8566_v15 = vcombine.low %v7026_v51, %v7040_v38  ;;  %v13607_v8 = vcombine.high %v7026_v51, %v7040_v38  ;;  %v8574_v57 = vrot.slane %v8564_v56, %v18124_v2  ;;  %v8581_v22 = vrot.slane %v13606_v35, %v18124_v2 }
 0x5fc   : > { %v12122_v55 = vrot.slane %v13674_v3, %v18124_v2  ;;  %v12129_v43 = vrot.slane %v12107_v54, %v18124_v2  ;;  %v12136_v60 = vrot.slane %v13675_v59, %v18124_v2  ;;  %v19008_v13 = vpop.eup %15090  ;;  %v10462_v11 = vrot.slane %v10446_v20, %v18124_v2 }
 0x5fd   : > { %22088 = vst [vmem:[#allocation16_spill] sm:$0xff] %v19008_v13  ;;  %v8588_v47 = vrot.slane %v8566_v15, %v18124_v2  ;;  %v8595_v51 = vrot.slane %v13607_v8, %v18124_v2  ;;  %v8596_v17 = vcombine.low %v8574_v57, %v8581_v22  ;;  %15092 = vpow2.f32 %v18851_v32  ;;  %v19023_v26 = vpop.permute.xlu0 %5628 }
 0x5fe   : > { %v10502_v48 = vrot.slane %v10488_v33, %v18124_v2  ;;  %v10503_v3 = vcombine.high %v10495_v24, %v10495_v24  ;;  %v10483_v54 = vrot.slane %v10455_v62, %v18124_v2  ;;  %v10469_v59 = vrot.slane %v10453_v42, %v18124_v2 }
 0x5ff   : > { %v8597_v38 = vcombine.low %v8588_v47, %v8595_v51  ;;  %4861 = vperm.xlu1 %14852, %v18985_v12   ;;  %v12138_v56 = vcombine.low %v12129_v43, %v12136_v60  ;;  %v12007_v35 = vcombine.low %v10462_v11, %v10476_v41  ;;  %v4518_v20 = vadd.f32 %v18805_v61, %v18776_v49  ;;  %v19027_v60 = vpop.permute.xlu1 %4781 }
 0x600   : > { %v8604_v15 = vrot.slane %v8596_v17, %v18124_v2  ;;  %v12137_v8 = vcombine.low %v12115_v23, %v12122_v55  ;;  %v13670_v57 = vcombine.high %v10462_v11, %v10476_v41  ;;  %v12009_v33 = vcombine.low %v10469_v59, %v10483_v54 }
 0x601   : > { %v8611_v32 = vrot.slane %v8597_v38, %v18124_v2  ;;  %v13671_v22 = vcombine.high %v10469_v59, %v10483_v54  ;;  %v12017_v62 = vrot.slane %v12007_v35, %v18124_v2  ;;  %v10504_v42 = vcombine.high %v10502_v48, %v10502_v48 }
 0x602   : > { %v10525_v47 = vrot.slane %v10503_v3, %v18124_v2  ;;  %v12024_v43 = vrot.slane %v13670_v57, %v18124_v2  ;;  %v12152_v51 = vrot.slane %v12138_v56, %v18124_v2  ;;  %v12031_v41 = vrot.slane %v12009_v33, %v18124_v2 }
 0x603   : > { %v8612_v49 = vcombine.low %v8604_v15, %v8611_v32  ;;  %4851 = vperm.xlu1 %14852, %v19008_v13   ;;  %v12038_v23 = vrot.slane %v13671_v22, %v18124_v2  ;;  %v13577_v55 = vmul.f32 -1.442695, %v18841_v50  ;;  %v4513_v11 = vadd.f32 %v18805_v61, %v18766_v16  ;;  %v19044_v16 = vpop.permute.xlu0 %9551 }
 0x604   : > { %v10511_v17 = vrot.slane %v10495_v24, %v18124_v2  ;;  %v13580_v3 = vmul.f32 -1.442695, %v4518_v20  ;;  %v12145_v54 = vrot.slane %v12137_v8, %v18124_v2  ;;  %v12039_v59 = vcombine.low %v12017_v62, %v12024_v43  ;;  %22089 = vst [vmem:[#allocation34_spill] sm:$0xff] %v19044_v16 }
 0x605   : > { %9581 = vperm.xlu0 %14853, %v8612_v49   ;;  %v12040_v38 = vcombine.low %v12031_v41, %v12038_v23  ;;  %v10518_v56 = vrot.slane %v10502_v48, %v18124_v2  ;;  %v19040_v35 = vsub.f32 1.0, %v18985_v12  ;;  %v10532_v15 = vrot.slane %v10504_v42, %v18124_v2  ;;  %v19048_v48 = vpop.permute.xlu1 %4771 }
 0x606   : > { %v12056_v57 = vcombine.low %v10511_v17, %v10525_v47  ;;  %v12153_v50 = vcombine.low %v12145_v54, %v12152_v51  ;;  %v4642_v20 = vadd.f32 1.0, %v18915_v28  ;;  %15094 = vpow2.f32 %v13577_v55 }
 0x607   : > { %v12054_v32 = vrot.slane %v12040_v38, %v18124_v2  ;;  %v15093_v24 = vpop.eup %15092  ;;  %5693 = vperm.xlu1 %14852, %v19040_v35   ;;  %v13672_v8 = vcombine.high %v10511_v17, %v10525_v47  ;;  %v12058_v33 = vcombine.low %v10518_v56, %v10532_v15  ;;  %v4516_v22 = vadd.f32 %v18805_v61, %v18809_v27 }
 0x608   : > { %v12047_v62 = vrot.slane %v12039_v59, %v18124_v2  ;;  %v13673_v42 = vcombine.high %v10518_v56, %v10532_v15  ;;  %v12066_v43 = vrot.slane %v12056_v57, %v18124_v2  ;;  %15096 = vpow2.f32 %v13580_v3 }
 0x609   : > { %13030 = vperm.xlu0 %14853, %v12153_v50   ;;  %v13575_v49 = vmul.f32 -1.442695, %v4513_v11  ;;  %v4519_v28 = vadd.f32 %v18805_v61, %v18801_v46  ;;  %v12073_v51 = vrot.slane %v13672_v8, %v18124_v2  ;;  %v4517_v47 = vadd.f32 %v18805_v61, %v18828_v37  ;;  %v19063_v46 = vpop.permute.xlu0 %5618  ;;  %v19067_v37 = vpop.permute.xlu1 %5613 }
 0x60a   : > { %v12055_v41 = vcombine.low %v12047_v62, %v12054_v32  ;;  %v12080_v23 = vrot.slane %v12058_v33, %v18124_v2  ;;  %v12087_v27 = vrot.slane %v13673_v42, %v18124_v2  ;;  %15098 = vrcp.f32 %v4642_v20  ;;  %22090 = vst [vmem:[#allocation35_spill] sm:$0xff] %v19063_v46  ;;  %22091 = vst [vmem:[#allocation38_spill] sm:$0xff] %v19067_v37 }
 0x60b   : > { %v4640_v55 = vadd.f32 1.0, %v15093_v24  ;;  %v12088_v17 = vcombine.low %v12066_v43, %v12073_v51  ;;  %v13578_v54 = vmul.f32 -1.442695, %v4516_v22  ;;  %v7143_v11 = vcombine.high %v18287_v52, %v18287_v52 }
 0x60c   : > { %v12089_v3 = vcombine.low %v12080_v23, %v12087_v27  ;;  %15100 = vpow2.f32 %v13575_v49  ;;  %v13581_v59 = vmul.f32 -1.442695, %v4519_v28  ;;  %v7150_v61 = vrot.slane %v18287_v52, %v18124_v2 }
 0x60d   : > { %13024 = vperm.xlu0 %14853, %v12055_v41   ;;  %v13579_v38 = vmul.f32 -1.442695, %v4517_v47  ;;  %v12096_v56 = vrot.slane %v12088_v17, %v18124_v2  ;;  %15102 = vrcp.f32 %v4640_v55  ;;  %v7157_v57 = vrot.slane %v7143_v11, %v18124_v2  ;;  %v19074_v33 = vpop.permute.xlu0 %9545  ;;  %v19078_v28 = vpop.permute.xlu1 %5603 }
 0x60e   : > { %v12103_v15 = vrot.slane %v12089_v3, %v18124_v2  ;;  %v7158_v50 = vcombine.high %v7150_v61, %v7150_v61  ;;  %15104 = vpow2.f32 %v13578_v54  ;;  %v7166_v8 = vrot.slane %v7150_v61, %v18124_v2  ;;  %22092 = vst [vmem:[#allocation39_spill] sm:$0xff] %v19074_v33  ;;  %22093 = vst [vmem:[#allocation46_spill] sm:$0xff] %v19078_v28 }
 0x60f   : > { %15106 = vpow2.f32 %v13581_v59  ;;  %v7159_v20 = vcombine.high %v7157_v57, %v7157_v57  ;;  %v7173_v62 = vrot.slane %v7157_v57, %v18124_v2  ;;  %v7045_v61 = vcombine.high %v18393_v29, %v18393_v29 }
 0x610   : > { %v12104_v32 = vcombine.low %v12096_v56, %v12103_v15  ;;  %v15095_v24 = vpop.eup %15094  ;;  %v7180_v52 = vrot.slane %v7158_v50, %v18124_v2  ;;  %15108 = vpow2.f32 %v13579_v38  ;;  %v7052_v38 = vrot.slane %v18393_v29, %v18124_v2 }
 0x611   : > { %v7187_v42 = vrot.slane %v7159_v20, %v18124_v2  ;;  %v4643_v17 = vadd.f32 1.0, %v15095_v24  ;;  %v19091_v56 = vpop.permute.xlu0 %12994  ;;  %v19095_v50 = vpop.permute.xlu1 %4786  ;;  %v7059_v20 = vrot.slane %v7045_v61, %v18124_v2 }
 0x612   : > { %13027 = vperm.xlu0 %14853, %v12104_v32   ;;  %v15097_v22 = vpop.eup %15096  ;;  %v8711_v43 = vcombine.low %v7166_v8, %v7180_v52  ;;  %v13612_v49 = vcombine.high %v7166_v8, %v7180_v52  ;;  %22095 = vst [vmem:[#allocation53_spill] sm:$0xff] %v19091_v56  ;;  %22097 = vst [vmem:[#allocation23_spill] sm:$0xff] %v19095_v50  ;;  %v7060_v8 = vcombine.high %v7052_v38, %v7052_v38 }
 0x613   : > { %v8713_v47 = vcombine.low %v7173_v62, %v7187_v42  ;;  %v13613_v41 = vcombine.high %v7173_v62, %v7187_v42  ;;  %v4646_v59 = vadd.f32 1.0, %v15097_v22  ;;  %15110 = vrcp.f32 %v4643_v17 }
 0x614   : > { %v19080_v51 = vpop.eup %15098  ;;  %v8721_v23 = vrot.slane %v8711_v43, %v18124_v2  ;;  %v8728_v27 = vrot.slane %v13612_v49, %v18124_v2  ;;  %v7061_v42 = vcombine.high %v7059_v20, %v7059_v20  ;;  %v10586_v49 = vcombine.high %v18629_v39, %v18629_v39 }
 0x615   : > { %22094 = vst [vmem:[#allocation47_spill] sm:$0xff] %v19080_v51  ;;  %v8735_v54 = vrot.slane %v8713_v47, %v18124_v2  ;;  %v8742_v3 = vrot.slane %v13613_v41, %v18124_v2  ;;  %15112 = vrcp.f32 %v4646_v59  ;;  %v19102_v43 = vsub.f32 1.0, %v19080_v51 }
 0x616   : > { %4876 = vperm.xlu0 %14853, %v19080_v51   ;;  %v15101_v55 = vpop.eup %15100  ;;  %v8743_v11 = vcombine.low %v8721_v23, %v8728_v27  ;;  %v7068_v41 = vrot.slane %v7052_v38, %v18124_v2  ;;  %v7082_v23 = vrot.slane %v7060_v8, %v18124_v2  ;;  %v7089_v17 = vrot.slane %v7061_v42, %v18124_v2 }
 0x617   : > { %v19093_v15 = vpop.eup %15102  ;;  %v8744_v57 = vcombine.low %v8735_v54, %v8742_v3  ;;  %v4641_v24 = vadd.f32 1.0, %v15101_v55  ;;  %v7075_v55 = vrot.slane %v7059_v20, %v18124_v2  ;;  %v19111_v54 = vpop.permute.xlu0 %12988  ;;  %v10593_v38 = vrot.slane %v18629_v39, %v18124_v2 }
 0x618   : > { %22096 = vst [vmem:[#allocation54_spill] sm:$0xff] %v19093_v15  ;;  %v15105_v32 = vpop.eup %15104  ;;  %v8751_v22 = vrot.slane %v8743_v11, %v18124_v2  ;;  %22098 = vst [vmem:[#allocation4_spill] sm:$0xff] %v19111_v54  ;;  %v8613_v59 = vcombine.low %v7068_v41, %v7082_v23  ;;  %v13608_v61 = vcombine.high %v7068_v41, %v7082_v23 }
 0x619   : > { %v15107_v52 = vpop.eup %15106  ;;  %v8758_v29 = vrot.slane %v8744_v57, %v18124_v2  ;;  %15114 = vrcp.f32 %v4641_v24  ;;  %v4644_v27 = vadd.f32 1.0, %v15105_v32  ;;  %v19113_v57 = vpop.permute.xlu1 %4801  ;;  %v8615_v24 = vcombine.low %v7075_v55, %v7089_v17 }
 0x61a   : > { %4866 = vperm.xlu0 %14853, %v19093_v15   ;;  %v15109_v62 = vpop.eup %15108  ;;  %v4647_v3 = vadd.f32 1.0, %v15107_v52  ;;  %22099 = vst [vmem:[#allocation29_spill] sm:$0xff] %v19113_v57  ;;  %v13609_v32 = vcombine.high %v7075_v55, %v7089_v17  ;;  %v7290_v20 = vcombine.high %v18379_v34, %v18379_v34  ;;  %v19120_v8 = vrot.slane %v10586_v49, %v18124_v2 }
 0x61b   : > { %v8759_v47 = vcombine.low %v8751_v22, %v8758_v29  ;;  %v4645_v11 = vadd.f32 1.0, %v15109_v62  ;;  %v19123_v22 = vsub.f32 1.0, %v19008_v13  ;;  %v8623_v52 = vrot.slane %v8613_v59, %v18124_v2  ;;  %v19133_v23 = vpop.permute.xlu0 %4816 }
 0x61c   : > { %22100 = vst [vmem:[#allocation10_spill] sm:$0xff] %v19120_v8  ;;  %v8630_v29 = vrot.slane %v13608_v61, %v18124_v2  ;;  %15116 = vrcp.f32 %v4644_v27  ;;  %v8637_v62 = vrot.slane %v8615_v24, %v18124_v2  ;;  %v8644_v39 = vrot.slane %v13609_v32, %v18124_v2  ;;  %22101 = vst [vmem:[#allocation11_spill] sm:$0xff] %v19133_v23 }
 0x61d   : > { %9590 = vperm.xlu1 %14852, %v8759_v47   ;;  %15118 = vrcp.f32 %v4647_v3  ;;  %v7297_v49 = vrot.slane %v18379_v34, %v18124_v2  ;;  %v7304_v41 = vrot.slane %v7290_v20, %v18124_v2  ;;  %v19135_v55 = vpop.eup %15110  ;;  %v10601_v27 = vcombine.high %v10593_v38, %v10593_v38  ;;  %v19141_v61 = vpop.permute.xlu1 %4791 }
 0x61e   : > { %5708 = vperm.xlu0 %14853, %v19102_v43   ;;  %v8645_v42 = vcombine.low %v8623_v52, %v8630_v29  ;;  %15120 = vrcp.f32 %v4645_v11  ;;  %v8646_v47 = vcombine.low %v8637_v62, %v8644_v39  ;;  %22102 = vst [vmem:[#allocation57_spill] sm:$0xff] %v19135_v55  ;;  %v10733_v3 = vcombine.high %v18652_v7, %v18652_v7 }
 0x61f   : > { %v7305_v59 = vcombine.high %v7297_v49, %v7297_v49  ;;  %22103 = vst [vmem:[#allocation58_spill] sm:$0xff] %v19141_v61  ;;  %v19143_v24 = vpop.eup %15112  ;;  %v10740_v34 = vrot.slane %v18652_v7, %v18124_v2  ;;  %v7306_v20 = vcombine.high %v7304_v41, %v7304_v41  ;;  %v19150_v52 = vrot.slane %v10593_v38, %v18124_v2 }
 0x620   : > { %v8653_v11 = vrot.slane %v8645_v42, %v18124_v2  ;;  %v8660_v32 = vrot.slane %v8646_v47, %v18124_v2  ;;  %v10635_v29 = vcombine.high %v18689_v4, %v18689_v4  ;;  %v7313_v62 = vrot.slane %v7297_v49, %v18124_v2 }
 0x621   : > { %5683 = vperm.xlu1 %14852, %v19123_v22   ;;  %22104 = vst [vmem:[#allocation56_spill] sm:$0xff] %v19150_v52  ;;  %v7327_v39 = vrot.slane %v7305_v59, %v18124_v2  ;;  %v10642_v7 = vrot.slane %v18689_v4, %v18124_v2  ;;  %v7320_v42 = vrot.slane %v7304_v41, %v18124_v2 }
 0x622   : > { %v8661_v56 = vcombine.low %v8653_v11, %v8660_v32  ;;  %v7334_v47 = vrot.slane %v7306_v20, %v18124_v2  ;;  %v19163_v38 = vrot.slane %v10733_v3, %v18124_v2  ;;  %v10782_v54 = vcombine.high %v18867_v53, %v18867_v53  ;;  %v19169_v11 = vpop.permute.xlu0 %4806 }
 0x623   : > { %v19156_v17 = vpop.eup %15114  ;;  %v8858_v16 = vcombine.low %v7313_v62, %v7327_v39  ;;  %v13618_v49 = vcombine.high %v7313_v62, %v7327_v39  ;;  %v10748_v33 = vcombine.high %v10740_v34, %v10740_v34  ;;  %v10789_v59 = vrot.slane %v18867_v53, %v18124_v2  ;;  %22105 = vst [vmem:[#allocation55_spill] sm:$0xff] %v19169_v11  ;;  %v19180_v62 = vpop.permute.xlu1 %5633 }
 0x624   : > { %v8860_v52 = vcombine.low %v7320_v42, %v7334_v47  ;;  %v13619_v4 = vcombine.high %v7320_v42, %v7334_v47  ;;  %v19173_v41 = vrot.slane %v19120_v8, %v18124_v2  ;;  %v19176_v3 = vrot.slane %v10635_v29, %v18124_v2  ;;  %22107 = vst [vmem:[#allocation24_spill] sm:$0xff] %v19180_v62 }
 0x625   : > { %9584 = vperm.xlu1 %14852, %v8661_v56   ;;  %v8868_v32 = vrot.slane %v8858_v16, %v18124_v2  ;;  %v8875_v20 = vrot.slane %v13618_v49, %v18124_v2  ;;  %v19185_v53 = vrot.slane %v10601_v27, %v18124_v2  ;;  %v10650_v56 = vcombine.high %v10642_v7, %v10642_v7 }
 0x626   : > { %22106 = vst [vmem:[#allocation42_spill] sm:$0xff] %v19173_v41  ;;  %v19182_v39 = vpop.eup %15116  ;;  %v8882_v42 = vrot.slane %v8860_v52, %v18124_v2  ;;  %v8889_v47 = vrot.slane %v13619_v4, %v18124_v2  ;;  %v10749_v29 = vcombine.high %v19163_v38, %v19163_v38  ;;  %v19194_v16 = vrot.slane %v10740_v34, %v18124_v2  ;;  %v19227_v34 = vpop.permute.xlu0 %5648 }
 0x627   : > { %22108 = vst [vmem:[#allocation25_spill] sm:$0xff] %v19185_v53  ;;  %v19189_v41 = vpop.eup %15118  ;;  %v19197_v49 = vrot.slane %v10782_v54, %v18124_v2  ;;  %v8890_v8 = vcombine.low %v8868_v32, %v8875_v20  ;;  %v19203_v27 = vrot.slane %v19163_v38, %v18124_v2  ;;  %v19206_v52 = vrot.slane %v10748_v33, %v18124_v2 }
 0x628   : > { %v19199_v62 = vpop.eup %15120  ;;  %v10797_v4 = vcombine.high %v10789_v59, %v10789_v59  ;;  %v8891_v53 = vcombine.low %v8882_v42, %v8889_v47  ;;  %v19212_v54 = vrot.slane %v10642_v7, %v18124_v2  ;;  %v19216_v32 = vrot.slane %v19176_v3, %v18124_v2  ;;  %22109 = vst [vmem:[#allocation43_spill] sm:$0xff] %v19227_v34 }
 0x629   : > { %4881 = vperm.xlu1 %14852, %v19135_v55   ;;  %v10929_v38 = vcombine.high %v18908_v30, %v18908_v30  ;;  %v19221_v33 = vrot.slane %v10650_v56, %v18124_v2  ;;  %v8898_v20 = vrot.slane %v8890_v8, %v18124_v2  ;;  %v7192_v47 = vcombine.high %v18411_v6, %v18411_v6  ;;  %v19240_v56 = vpop.permute.xlu1 %9554 }
 0x62a   : > { %v8905_v42 = vrot.slane %v8891_v53, %v18124_v2  ;;  %v19232_v61 = vrot.slane %v10789_v59, %v18124_v2  ;;  %v19236_v11 = vrot.slane %v19197_v49, %v18124_v2  ;;  %v7199_v8 = vrot.slane %v18411_v6, %v18124_v2  ;;  %22110 = vst [vmem:[#allocation61_spill] sm:$0xff] %v19240_v56  ;;  %v19273_v13 = vpop.permute.xlu0 %9563 }
 0x62b   : > { %v19243_v53 = vrot.slane %v10797_v4, %v18124_v2  ;;  %v7206_v7 = vrot.slane %v7192_v47, %v18124_v2  ;;  %v7339_v59 = vcombine.high %v18683_v14, %v18683_v14  ;;  %v19251_v34 = vrot.slane %v18908_v30, %v18124_v2  ;;  %22113 = vst [vmem:[#allocation64_spill] sm:$0xff] %v19273_v13 }
 0x62c   : > { %v8906_v57 = vcombine.low %v8898_v20, %v8905_v42  ;;  %v19254_v23 = vrot.slane %v10929_v38, %v18124_v2  ;;  %v7207_v6 = vcombine.high %v7199_v8, %v7199_v8  ;;  %v7346_v4 = vrot.slane %v18683_v14, %v18124_v2 }
 0x62d   : > { %4871 = vperm.xlu1 %14852, %v19156_v17   ;;  %v19261_v42 = vsub.f32 1.0, %v19135_v55  ;;  %v7208_v47 = vcombine.high %v7206_v7, %v7206_v7  ;;  %v7353_v56 = vrot.slane %v7339_v59, %v18124_v2  ;;  %v19265_v30 = vsub.f32 1.0, %v19093_v15  ;;  %v19277_v46 = vpop.permute.xlu1 %5623 }
 0x62e   : > { %9599 = vperm.xlu0 %14853, %v8906_v57   ;;  %v7215_v38 = vrot.slane %v7199_v8, %v18124_v2  ;;  %v7229_v50 = vrot.slane %v7207_v6, %v18124_v2  ;;  %v7354_v51 = vcombine.high %v7346_v4, %v7346_v4  ;;  %v7222_v14 = vrot.slane %v7206_v7, %v18124_v2 }
 0x62f   : > { %22111 = vst [vmem:[#allocation62_spill] sm:$0xff] %v19261_v42  ;;  %22112 = vst [vmem:[#allocation63_spill] sm:$0xff] %v19265_v30  ;;  %v7236_v57 = vrot.slane %v7208_v47, %v18124_v2  ;;  %v7355_v20 = vcombine.high %v7353_v56, %v7353_v56  ;;  %v10777_v55 = vrot.slane %v10749_v29, %v18124_v2 }
 0x630   : > { %v8760_v59 = vcombine.low %v7215_v38, %v7229_v50  ;;  %v13614_v28 = vcombine.high %v7215_v38, %v7229_v50  ;;  %v7362_v15 = vrot.slane %v7346_v4, %v18124_v2  ;;  %v7376_v8 = vrot.slane %v7354_v51, %v18124_v2  ;;  %22114 = vst [vmem:[#allocation65_spill] sm:$0xff] %v19277_v46 }
 0x631   : > { %5713 = vperm.xlu1 %14852, %v19261_v42   ;;  %v8762_v6 = vcombine.low %v7222_v14, %v7236_v57  ;;  %v13615_v42 = vcombine.high %v7222_v14, %v7236_v57  ;;  %v7369_v7 = vrot.slane %v7353_v56, %v18124_v2  ;;  %v7383_v47 = vrot.slane %v7355_v20, %v18124_v2 }
 0x632   : > { %5698 = vperm.xlu0 %14853, %v19265_v30   ;;  %v8770_v29 = vrot.slane %v8760_v59, %v18124_v2  ;;  %v8777_v13 = vrot.slane %v13614_v28, %v18124_v2  ;;  %v8907_v37 = vcombine.low %v7362_v15, %v7376_v8  ;;  %v13620_v50 = vcombine.high %v7362_v15, %v7376_v8  ;;  %v19294_v59 = vpop.permute.xlu0 %5638 }
 0x633   : > { %v8784_v4 = vrot.slane %v8762_v6, %v18124_v2  ;;  %v8791_v51 = vrot.slane %v13615_v42, %v18124_v2  ;;  %v8909_v38 = vcombine.low %v7369_v7, %v7383_v47  ;;  %v13621_v46 = vcombine.high %v7369_v7, %v7383_v47  ;;  %22115 = vst [vmem:[#allocation66_spill] sm:$0xff] %v19294_v59  ;;  %v19299_v6 = vpop.permute.xlu1 %9548 }
 0x634   : > { %v8792_v12 = vcombine.low %v8770_v29, %v8777_v13  ;;  %v8917_v30 = vrot.slane %v8907_v37, %v18124_v2  ;;  %v8924_v14 = vrot.slane %v13620_v50, %v18124_v2  ;;  %v12301_v56 = vcombine.low %v19194_v16, %v19206_v52  ;;  %22116 = vst [vmem:[#allocation67_spill] sm:$0xff] %v19299_v6  ;;  %v22117_v50 = vld [vmem:[#allocation14_spill] sm:$0xff] }
 0x635   : > { %v8793_v20 = vcombine.low %v8784_v4, %v8791_v51  ;;  %v8931_v57 = vrot.slane %v8909_v38, %v18124_v2  ;;  %v8938_v28 = vrot.slane %v13621_v46, %v18124_v2  ;;  %v13682_v15 = vcombine.high %v19194_v16, %v19206_v52 }
 0x636   : > { %v8800_v42 = vrot.slane %v8792_v12, %v18124_v2  ;;  %v8939_v13 = vcombine.low %v8917_v30, %v8924_v14  ;;  %v12303_v37 = vcombine.low %v19203_v27, %v10777_v55  ;;  %v13683_v8 = vcombine.high %v19203_v27, %v10777_v55 }
 0x637   : > { %v8807_v7 = vrot.slane %v8793_v20, %v18124_v2  ;;  %v8940_v47 = vcombine.low %v8931_v57, %v8938_v28  ;;  %v12311_v29 = vrot.slane %v12301_v56, %v18124_v2  ;;  %v12318_v46 = vrot.slane %v13682_v15, %v18124_v2 }
 0x638   : > { %v19306_v16 = vmul.f32 %v18824_v19, %v22117_v50  ;;  %v10691_v12 = vrot.slane %v18911_v18, %v18124_v2  ;;  %v12325_v52 = vrot.slane %v12303_v37, %v18124_v2  ;;  %v12332_v55 = vrot.slane %v13683_v8, %v18124_v2  ;;  %v19332_v37 = vpop.permute.xlu0 %9557 }
 0x639   : > { %v8808_v27 = vcombine.low %v8800_v42, %v8807_v7  ;;  %v8947_v30 = vrot.slane %v8939_v13, %v18124_v2  ;;  %v8954_v4 = vrot.slane %v8940_v47, %v18124_v2  ;;  %v12333_v51 = vcombine.low %v12311_v29, %v12318_v46  ;;  %22120 = vst [vmem:[#allocation14_spill] sm:$0xff] %v19332_v37  ;;  %v19340_v47 = vpop.permute.xlu1 %12997 }
 0x63a   : > { %v10944_v38 = vcombine.high %v19251_v34, %v19251_v34  ;;  %v12334_v14 = vcombine.low %v12325_v52, %v12332_v55  ;;  %v22118_v56 = vcombine.high %v19176_v3, %v19176_v3  ;;  %v22119_v57 = vcombine.high %v18911_v18, %v18911_v18  ;;  %22121 = vst [vmem:[#allocation68_spill] sm:$0xff] %v19340_v47 }
 0x63b   : > { %v10831_v15 = vcombine.high %v18975_v40, %v18975_v40  ;;  %9593 = vperm.xlu0 %14853, %v8808_v27   ;;  %v8955_v42 = vcombine.low %v8947_v30, %v8954_v4  ;;  %v12203_v13 = vcombine.low %v19212_v54, %v19221_v33  ;;  %v19336_v3 = vrot.slane %v19251_v34, %v18124_v2 }
 0x63c   : > { %v10679_v20 = vrot.slane %v22118_v56, %v18124_v2  ;;  %v19326_v28 = vrot.slane %v22119_v57, %v18124_v2  ;;  %v10699_v8 = vcombine.high %v10691_v12, %v10691_v12  ;;  %v12341_v7 = vrot.slane %v12333_v51, %v18124_v2 }
 0x63d   : > { %v12348_v18 = vrot.slane %v12334_v14, %v18124_v2  ;;  %v19344_v29 = vrot.slane %v19254_v23, %v18124_v2  ;;  %v10838_v46 = vrot.slane %v18975_v40, %v18124_v2  ;;  %9602 = vperm.xlu1 %14852, %v8955_v42   ;;  %v13678_v52 = vcombine.high %v19212_v54, %v19221_v33 }
 0x63e   : > { %v12205_v34 = vcombine.low %v19216_v32, %v10679_v20  ;;  %v19352_v55 = vrot.slane %v10944_v38, %v18124_v2  ;;  %v19355_v27 = vrot.slane %v10691_v12, %v18124_v2  ;;  %v13679_v4 = vcombine.high %v19216_v32, %v10679_v20  ;;  %v22122_v38 = vld [vmem:[#allocation19_spill] sm:$0xff] }
 0x63f   : > { %v12349_v30 = vcombine.low %v12341_v7, %v12348_v18  ;;  %v19361_v40 = vrot.slane %v10831_v15, %v18124_v2  ;;  %v19364_v14 = vsub.f32 1.0, %v19156_v17  ;;  %v12213_v54 = vrot.slane %v12203_v13, %v18124_v2  ;;  %v19386_v13 = vpop.permute.xlu0 %13006 }
 0x640   : > { %v19369_v33 = vrot.slane %v19326_v28, %v18124_v2  ;;  %v19372_v12 = vrot.slane %v10699_v8, %v18124_v2  ;;  %v19376_v32 = vmul.f32 %v18849_v31, %v22117_v50  ;;  %v19380_v56 = vmul.f32 %v18857_v10, %v22122_v38  ;;  %22123 = vst [vmem:[#allocation19_spill] sm:$0xff] %v19386_v13  ;;  %v22124_v8 = vld [vmem:[#allocation20_spill] sm:$0xff]  ;;  %v22125_v50 = vld [vmem:[#allocation3_spill] sm:$0xff] }
 0x641   : > { %13042 = vperm.xlu0 %14853, %v12349_v30   ;;  %v10846_v20 = vcombine.high %v10838_v46, %v10838_v46  ;;  %5703 = vperm.xlu1 %14852, %v19364_v14   ;;  %v12220_v57 = vrot.slane %v13678_v52, %v18124_v2  ;;  %v12227_v15 = vrot.slane %v12205_v34, %v18124_v2  ;;  %v19400_v52 = vpop.permute.xlu1 %12991 }
 0x642   : > { %v12234_v42 = vrot.slane %v13679_v4, %v18124_v2  ;;  %v19390_v31 = vmul.f32 %v18897_v21, %v22124_v8  ;;  %v19394_v10 = vmul.f32 %v18904_v9, %v22125_v50  ;;  %v7241_v7 = vcombine.high %v18845_v45, %v18845_v45  ;;  %22126 = vst [vmem:[#allocation20_spill] sm:$0xff] %v19400_v52 }
 0x643   : > { %v7248_v18 = vrot.slane %v18845_v45, %v18124_v2  ;;  %v19405_v30 = vrot.slane %v10838_v46, %v18124_v2  ;;  %v12235_v21 = vcombine.low %v12213_v54, %v12220_v57  ;;  %v19409_v9 = vrot.slane %v19361_v40, %v18124_v2  ;;  %v22128_v57 = vld [vmem:[#allocation21_spill] sm:$0xff] }
 0x644   : > { %v12236_v4 = vcombine.low %v12227_v15, %v12234_v42  ;;  %v7255_v19 = vrot.slane %v7241_v7, %v18124_v2  ;;  %v22127_v45 = vcombine.high %v19197_v49, %v19197_v49  ;;  %v19417_v47 = vrot.slane %v10846_v20, %v18124_v2 }
 0x645   : > { %v7256_v51 = vcombine.high %v7248_v18, %v7248_v18  ;;  %v12243_v46 = vrot.slane %v12235_v21, %v18124_v2  ;;  %v19423_v15 = vmul.f32 %v18951_v0, %v22128_v57  ;;  %v7264_v7 = vrot.slane %v7248_v18, %v18124_v2  ;;  %v19436_v18 = vpop.permute.xlu1 %4821 }
 0x646   : > { %v10826_v13 = vrot.slane %v22127_v45, %v18124_v2  ;;  %v12250_v54 = vrot.slane %v12236_v4, %v18124_v2  ;;  %v7257_v42 = vcombine.high %v7255_v19, %v7255_v19  ;;  %v7271_v49 = vrot.slane %v7255_v19, %v18124_v2  ;;  %v19432_v45 = vpop.permute.xlu0 %13000  ;;  %22130 = vst [vmem:[#allocation21_spill] sm:$0xff] %v19436_v18 }
 0x647   : > { %v7278_v34 = vrot.slane %v7256_v51, %v18124_v2  ;;  %v12350_v20 = vcombine.low %v19232_v61, %v19243_v53  ;;  %v13684_v21 = vcombine.high %v19232_v61, %v19243_v53  ;;  %22129 = vst [vmem:[#allocation3_spill] sm:$0xff] %v19432_v45  ;;  %v5736_v51 = vmul.f32 %v18924_v36, %v22122_v38 }
 0x648   : > { %v12251_v52 = vcombine.low %v12243_v46, %v12250_v54  ;;  %v7285_v4 = vrot.slane %v7257_v42, %v18124_v2  ;;  %v12352_v6 = vcombine.low %v19236_v11, %v10826_v13  ;;  %v15136_v19 = vmov 1983009808   ;;  %v22131_v54 = vld [vmem:[#allocation8_spill] sm:$0xff] }
 0x649   : > { %v8809_v0 = vcombine.low %v7264_v7, %v7278_v34  ;;  %v13616_v37 = vcombine.high %v7264_v7, %v7278_v34  ;;  %v4939_v46 = vunpack.c.l.s4 %v15136_v19  ;;  %v5740_v59 = vmul.f32 %v18978_v44, %v22131_v54 }
 0x64a   : > { %13036 = vperm.xlu0 %14853, %v12251_v52   ;;  %v13685_v61 = vcombine.high %v19236_v11, %v10826_v13  ;;  %v8811_v53 = vcombine.low %v7271_v49, %v7285_v4  ;;  %v13617_v45 = vcombine.high %v7271_v49, %v7285_v4  ;;  %v12360_v7 = vrot.slane %v12350_v20, %v18124_v2 }
 0x64b   : > { %v8819_v42 = vrot.slane %v8809_v0, %v18124_v2  ;;  %v8826_v34 = vrot.slane %v13616_v37, %v18124_v2  ;;  %v12367_v18 = vrot.slane %v13684_v21, %v18124_v2  ;;  %v12374_v36 = vrot.slane %v12352_v6, %v18124_v2  ;;  %v19460_v21 = vpop.permute.xlu0 %4836 }
 0x64c   : > { %v12381_v38 = vrot.slane %v13685_v61, %v18124_v2  ;;  %v5784_v44 = vcombine.low %v19376_v32, %v19423_v15  ;;  %v8833_v52 = vrot.slane %v8811_v53, %v18124_v2  ;;  %v8840_v11 = vrot.slane %v13617_v45, %v18124_v2  ;;  %22133 = vst [vmem:[#allocation8_spill] sm:$0xff] %v19460_v21  ;;  %v19466_v61 = vpop.permute.xlu1 %4811 }
 0x64d   : > { %v8841_v13 = vcombine.low %v8819_v42, %v8826_v34  ;;  %v4940_v49 = vunpack.c.0.s8 %v4939_v46  ;;  %v5785_v37 = vcombine.high %v19376_v32, %v19423_v15  ;;  %v5768_v4 = vcombine.low %v5736_v51, %v5740_v59 }
 0x64e   : > { %4896 = vperm.xlu0 %14853, %v19143_v24   ;;  %v22132_v6 = vcombine.high %v19326_v28, %v19326_v28  ;;  %v8842_v0 = vcombine.low %v8833_v52, %v8840_v11  ;;  %v12383_v19 = vcombine.low %v12374_v36, %v12381_v38  ;;  %v12252_v45 = vcombine.low %v19355_v27, %v19372_v12  ;;  %v22134_v52 = vld [vmem:[#allocation60_spill] sm:$0xff] }
 0x64f   : > { %v13680_v46 = vcombine.high %v19355_v27, %v19372_v12  ;;  %v5769_v32 = vcombine.high %v5736_v51, %v5740_v59  ;;  %v12382_v15 = vcombine.low %v12360_v7, %v12367_v18  ;;  %v8849_v28 = vrot.slane %v8841_v13, %v18124_v2 }
 0x650   : > { %v10728_v20 = vrot.slane %v22132_v6, %v18124_v2  ;;  %v8856_v34 = vrot.slane %v8842_v0, %v18124_v2  ;;  %v12262_v36 = vrot.slane %v12252_v45, %v18124_v2  ;;  %v19475_v11 = vsub.s32 %v4940_v49, %v22134_v52  ;;  %v19498_v6 = vpop.permute.xlu0 %4826 }
 0x651   : > { %v12269_v38 = vrot.slane %v13680_v46, %v18124_v2  ;;  %v4908_v27 = vmul.f32 %v19006_v5, %v22131_v54  ;;  %v19484_v12 = vmul.f32 %v18928_v1, %v22125_v50  ;;  %v4910_v18 = vmul.f32 %v18983_v58, %v22128_v57  ;;  %22137 = vst [vmem:[#allocation71_spill] sm:$0xff] %v19498_v6 }
 0x652   : > { %v12254_v53 = vcombine.low %v19369_v33, %v10728_v20  ;;  %v13681_v42 = vcombine.high %v19369_v33, %v10728_v20  ;;  %4886 = vperm.xlu0 %14853, %v19182_v39   ;;  %v8857_v51 = vcombine.low %v8849_v28, %v8856_v34  ;;  %v12397_v7 = vrot.slane %v12383_v19, %v18124_v2  ;;  %v22141_v34 = vld [vmem:[#allocation22_spill] sm:$0xff] }
 0x653   : > { %v19490_v13 = vrot.slane %v5768_v4, %v19475_v11  ;;  %v19493_v5 = vrot.slane %v5769_v32, %v19475_v11  ;;  %v19496_v49 = vsub.f32 1.0, %v19143_v24  ;;  %v10978_v1 = vcombine.high %v19040_v35, %v19040_v35  ;;  %v19505_v4 = vpop.permute.xlu1 %5653 }
 0x654   : > { %v12276_v59 = vrot.slane %v12254_v53, %v18124_v2  ;;  %v12283_v33 = vrot.slane %v13681_v42, %v18124_v2  ;;  %v10985_v58 = vrot.slane %v19040_v35, %v18124_v2  ;;  %9596 = vperm.xlu1 %14852, %v8857_v51   ;;  %v12390_v50 = vrot.slane %v12382_v15, %v18124_v2 }
 0x655   : > { %22135 = vst [vmem:[#allocation69_spill] sm:$0xff] %v19490_v13  ;;  %22136 = vst [vmem:[#allocation70_spill] sm:$0xff] %v19493_v5  ;;  %v12284_v57 = vcombine.low %v12262_v36, %v12269_v38  ;;  %v19508_v20 = vrot.slane %v5784_v44, %v19475_v11  ;;  %v19511_v0 = vrot.slane %v5785_v37, %v19475_v11  ;;  %v19644_v5 = vsub.f32 1.0, %v19189_v41 }
 0x656   : > { %v12285_v54 = vcombine.low %v12276_v59, %v12283_v33  ;;  %22138 = vst [vmem:[#allocation72_spill] sm:$0xff] %v19505_v4  ;;  %v19515_v19 = vmul.f32 %v18957_v63, %v22124_v8  ;;  %v4936_v45 = vcombine.low %v19380_v56, %v4908_v27  ;;  %5728 = vperm.xlu0 %14853, %v19496_v49   ;;  %v19546_v33 = vpop.permute.xlu0 %5668  ;;  %v22156_v4 = vld [vmem:[#allocation15_spill] sm:$0xff] }
 0x657   : > { %22139 = vst [vmem:[#allocation73_spill] sm:$0xff] %v19508_v20  ;;  %22140 = vst [vmem:[#allocation74_spill] sm:$0xff] %v19511_v0  ;;  %v4952_v35 = vcombine.low %v19306_v16, %v4910_v18  ;;  %v4937_v46 = vcombine.high %v19380_v56, %v4908_v27  ;;  %v12398_v32 = vcombine.low %v12390_v50, %v12397_v7  ;;  %v22142_v27 = vld [vmem:[#allocation52_spill] sm:$0xff]  ;;  %v22144_v7 = vld [vmem:[#allocation9_spill] sm:$0xff] }
 0x658   : > { %v12299_v15 = vrot.slane %v12285_v54, %v18124_v2  ;;  %v4953_v8 = vcombine.high %v19306_v16, %v4910_v18  ;;  %v19532_v42 = vrot.slane %v10978_v1, %v18124_v2  ;;  %v10993_v56 = vcombine.high %v10985_v58, %v10985_v58  ;;  %22143 = vst [vmem:[#allocation22_spill] sm:$0xff] %v19546_v33  ;;  %v19556_v1 = vpop.permute.xlu1 %9566 }
 0x659   : > { %13045 = vperm.xlu1 %14852, %v12398_v32   ;;  %v12292_v28 = vrot.slane %v12284_v57, %v18124_v2  ;;  %v19537_v36 = vmul.f32 %v19000_v25, %v22141_v34  ;;  %v19540_v38 = vrot.slane %v4936_v45, %v19475_v11  ;;  %v7486_v16 = vcombine.high %v22142_v27, %v22142_v27 }
 0x65a   : > { %v7493_v59 = vrot.slane %v22142_v27, %v18124_v2  ;;  %v19549_v18 = vrot.slane %v4952_v35, %v19475_v11  ;;  %v19552_v51 = vrot.slane %v4937_v46, %v19475_v11  ;;  %v4911_v25 = vmul.f32 %v19027_v60, %v22144_v7  ;;  %22145 = vst [vmem:[#allocation52_spill] sm:$0xff] %v19556_v1 }
 0x65b   : > { %v12300_v54 = vcombine.low %v12292_v28, %v12299_v15  ;;  %v19559_v50 = vrot.slane %v4953_v8, %v19475_v11  ;;  %v19562_v57 = vrot.slane %v10985_v58, %v18124_v2  ;;  %v7500_v45 = vrot.slane %v7486_v16, %v18124_v2  ;;  %v22150_v58 = vld [vmem:[#allocation18_spill] sm:$0xff]  ;;  %22154 = vst [vmem:[#allocation77_spill] sm:$0xff] %v19644_v5 }
 0x65c   : > { %v7501_v32 = vcombine.high %v7493_v59, %v7493_v59  ;;  %v19569_v46 = vrot.slane %v19532_v42, %v18124_v2  ;;  %v19572_v60 = vrot.slane %v10993_v56, %v18124_v2  ;;  %v19576_v15 = vmul.f32 %v19023_v26, %v22141_v34 }
 0x65d   : > { %13039 = vperm.xlu1 %14852, %v12300_v54   ;;  %v7502_v8 = vcombine.high %v7500_v45, %v7500_v45  ;;  %v7509_v28 = vrot.slane %v7493_v59, %v18124_v2  ;;  %v5224_v53 = vcombine.low %v19394_v10, %v4911_v25  ;;  %v10880_v26 = vcombine.high %v19123_v22, %v19123_v22  ;;  %v19591_v59 = vpop.permute.xlu0 %9575 }
 0x65e   : > { %22146 = vst [vmem:[#allocation9_spill] sm:$0xff] %v19576_v15  ;;  %v7523_v27 = vrot.slane %v7501_v32, %v18124_v2  ;;  %v7516_v34 = vrot.slane %v7500_v45, %v18124_v2  ;;  %22147 = vst [vmem:[#allocation75_spill] sm:$0xff] %v19591_v59  ;;  %v5225_v32 = vcombine.high %v19394_v10, %v4911_v25  ;;  %v22148_v16 = vlaneseq  ;;  %v19604_v45 = vpop.permute.xlu1 %5643 }
 0x65f   : > { %v7530_v54 = vrot.slane %v7502_v8, %v18124_v2  ;;  %v10887_v44 = vrot.slane %v19123_v22, %v18124_v2  ;;  %v19601_v35 = vmul.f32 %v19048_v48, %v22150_v58  ;;  %22151 = vst [vmem:[#allocation18_spill] sm:$0xff] %v19604_v45  ;;  %v19611_v25 = vrot.slane %v5224_v53, %v19475_v11  ;;  %v22152_v48 = vld [vmem:[#allocation51_spill] sm:$0xff] }
 0x660   : > { %v9054_v63 = vcombine.low %v7509_v28, %v7523_v27  ;;  %v13626_v37 = vcombine.high %v7509_v28, %v7523_v27  ;;  %v19597_v56 = vand.u32 127, %v22148_v16  ;;  %v19614_v16 = vrot.slane %v10880_v26, %v18124_v2 }
 0x661   : > { %4901 = vperm.xlu1 %14852, %v19189_v41   ;;  %v9056_v8 = vcombine.low %v7516_v34, %v7530_v54  ;;  %v13627_v28 = vcombine.high %v7516_v34, %v7530_v54  ;;  %v7388_v59 = vcombine.high %v22152_v48, %v22152_v48  ;;  %v10895_v22 = vcombine.high %v10887_v44, %v10887_v44 }
 0x662   : > { %22149 = vst [vmem:[#allocation76_spill] sm:$0xff] %v19597_v56  ;;  %v9064_v27 = vrot.slane %v9054_v63, %v18124_v2  ;;  %v9071_v10 = vrot.slane %v13626_v37, %v18124_v2  ;;  %v7395_v37 = vrot.slane %v22152_v48, %v18124_v2  ;;  %v19623_v63 = vrot.slane %v5225_v32, %v19475_v11 }
 0x663   : > { %v9078_v1 = vrot.slane %v9056_v8, %v18124_v2  ;;  %v9085_v34 = vrot.slane %v13627_v28, %v18124_v2  ;;  %v19626_v53 = vadd.s32 4294967280, %v19597_v56  ;;  %v7402_v26 = vrot.slane %v7388_v59, %v18124_v2 }
 0x664   : > { %v9086_v54 = vcombine.low %v9064_v27, %v9071_v10  ;;  %v19631_v0 = vrot.slane %v10887_v44, %v18124_v2  ;;  %v5208_v8 = vcombine.low %v19390_v31, %v19601_v35  ;;  %v7403_v27 = vcombine.high %v7395_v37, %v7395_v37  ;;  %v19635_v10 = vpop.permute.xlu0 %5658  ;;  %v19646_v44 = vpop.permute.xlu1 %9560 }
 0x665   : > { %4891 = vperm.xlu1 %14852, %v19199_v62   ;;  %v9087_v28 = vcombine.low %v9078_v1, %v9085_v34  ;;  %22153 = vst [vmem:[#allocation51_spill] sm:$0xff] %v19635_v10  ;;  %v19641_v48 = vrot.slane %v19614_v16, %v18124_v2  ;;  %v7404_v59 = vcombine.high %v7402_v26, %v7402_v26  ;;  %22155 = vst [vmem:[#allocation78_spill] sm:$0xff] %v19646_v44 }
 0x666   : > { %v9094_v33 = vrot.slane %v9086_v54, %v18124_v2  ;;  %v7411_v34 = vrot.slane %v7395_v37, %v18124_v2  ;;  %v7425_v10 = vrot.slane %v7403_v27, %v18124_v2  ;;  %v19653_v32 = vrot.slane %v10895_v22, %v18124_v2 }
 0x667   : > { %v9101_v1 = vrot.slane %v9087_v28, %v18124_v2  ;;  %v5209_v21 = vcombine.high %v19390_v31, %v19601_v35  ;;  %v7418_v6 = vrot.slane %v7402_v26, %v18124_v2  ;;  %v7432_v44 = vrot.slane %v7404_v59, %v18124_v2  ;;  %v22158_v59 = vld [vmem:[#allocation38_spill] sm:$0xff] }
 0x668   : > { %v19661_v54 = vrot.slane %v5208_v8, %v19475_v11  ;;  %v8956_v20 = vcombine.low %v7411_v34, %v7425_v10  ;;  %v13622_v37 = vcombine.high %v7411_v34, %v7425_v10  ;;  %v11125_v27 = vcombine.high %v19102_v43, %v19102_v43  ;;  %v19675_v10 = vpop.permute.xlu0 %9569  ;;  %v19684_v34 = vpop.permute.xlu1 %13009 }
 0x669   : > { %5733 = vperm.xlu1 %14852, %v19644_v5   ;;  %v9102_v28 = vcombine.low %v9094_v33, %v9101_v1  ;;  %v8958_v22 = vcombine.low %v7418_v6, %v7432_v44  ;;  %v13623_v13 = vcombine.high %v7418_v6, %v7432_v44  ;;  %v7535_v31 = vcombine.high %v22156_v4, %v22156_v4 }
 0x66a   : > { %v19669_v35 = vrot.slane %v19102_v43, %v18124_v2  ;;  %v8966_v26 = vrot.slane %v8956_v20, %v18124_v2  ;;  %v8973_v8 = vrot.slane %v13622_v37, %v18124_v2  ;;  %v7542_v33 = vrot.slane %v22156_v4, %v18124_v2  ;;  %22157 = vst [vmem:[#allocation15_spill] sm:$0xff] %v19675_v10 }
 0x66b   : > { %9611 = vperm.xlu0 %14853, %v9102_v28   ;;  %v19679_v6 = vmul.f32 %v22158_v59, %v22144_v7  ;;  %v8980_v44 = vrot.slane %v8958_v22, %v18124_v2  ;;  %v8987_v1 = vrot.slane %v13623_v13, %v18124_v2  ;;  %v7549_v43 = vrot.slane %v7535_v31, %v18124_v2 }
 0x66c   : > { %22159 = vst [vmem:[#allocation38_spill] sm:$0xff] %v19684_v34  ;;  %v19687_v20 = vsub.f32 1.0, %v19182_v39  ;;  %v8988_v28 = vcombine.low %v8966_v26, %v8973_v8  ;;  %v7550_v37 = vcombine.high %v7542_v33, %v7542_v33  ;;  %v7558_v4 = vrot.slane %v7542_v33, %v18124_v2  ;;  %v19708_v34 = vpop.permute.xlu0 %13018 }
 0x66d   : > { %v8989_v10 = vcombine.low %v8980_v44, %v8987_v1  ;;  %v7551_v5 = vcombine.high %v7549_v43, %v7549_v43  ;;  %v7565_v7 = vrot.slane %v7549_v43, %v18124_v2  ;;  %v22161_v22 = vcombine.high %v19254_v23, %v19254_v23  ;;  %22162 = vst [vmem:[#allocation80_spill] sm:$0xff] %v19708_v34  ;;  %v22179_v34 = vld [vmem:[#allocation63_spill] sm:$0xff] }
 0x66e   : > { %22160 = vst [vmem:[#allocation79_spill] sm:$0xff] %v19687_v20  ;;  %v8996_v31 = vrot.slane %v8988_v28, %v18124_v2  ;;  %v7572_v59 = vrot.slane %v7550_v37, %v18124_v2  ;;  %v12497_v26 = vcombine.low %v19336_v3, %v19352_v55  ;;  %v13690_v8 = vcombine.high %v19336_v3, %v19352_v55  ;;  %v19711_v55 = vpop.permute.xlu1 %13003 }
 0x66f   : > { %v10973_v13 = vrot.slane %v22161_v22, %v18124_v2  ;;  %5718 = vperm.xlu0 %14853, %v19687_v20   ;;  %v9003_v33 = vrot.slane %v8989_v10, %v18124_v2  ;;  %v7579_v44 = vrot.slane %v7551_v5, %v18124_v2  ;;  %22163 = vst [vmem:[#allocation81_spill] sm:$0xff] %v19711_v55 }
 0x670   : > { %v9103_v43 = vcombine.low %v7558_v4, %v7572_v59  ;;  %v13628_v22 = vcombine.high %v7558_v4, %v7572_v59  ;;  %v12507_v28 = vrot.slane %v12497_v26, %v18124_v2  ;;  %v12514_v37 = vrot.slane %v13690_v8, %v18124_v2  ;;  %v22165_v8 = vld [vmem:[#allocation50_spill] sm:$0xff] }
 0x671   : > { %v12499_v1 = vcombine.low %v19344_v29, %v10973_v13  ;;  %v13691_v23 = vcombine.high %v19344_v29, %v10973_v13  ;;  %v9004_v45 = vcombine.low %v8996_v31, %v9003_v33  ;;  %v9105_v15 = vcombine.low %v7565_v7, %v7579_v44  ;;  %v22166_v33 = vld [vmem:[#allocation35_spill] sm:$0xff] }
 0x672   : > { %v13629_v20 = vcombine.high %v7565_v7, %v7579_v44  ;;  %v9113_v5 = vrot.slane %v9103_v43, %v18124_v2  ;;  %v9120_v10 = vrot.slane %v13628_v22, %v18124_v2  ;;  %v12529_v4 = vcombine.low %v12507_v28, %v12514_v37  ;;  %v22167_v43 = vld [vmem:[#allocation46_spill] sm:$0xff] }
 0x673   : > { %v12521_v3 = vrot.slane %v12499_v1, %v18124_v2  ;;  %v12528_v29 = vrot.slane %v13691_v23, %v18124_v2  ;;  %v19718_v13 = vsub.s32 %v19626_v53, %v22134_v52  ;;  %v19721_v59 = vrot.slane %v5209_v21, %v19475_v11  ;;  %9605 = vperm.xlu0 %14853, %v9004_v45  }
 0x674   : > { %v9127_v7 = vrot.slane %v9105_v15, %v18124_v2  ;;  %v9134_v31 = vrot.slane %v13629_v20, %v18124_v2  ;;  %v19729_v44 = vmul.f32 %v22166_v33, %v22165_v8  ;;  %v9135_v1 = vcombine.low %v9113_v5, %v9120_v10 }
 0x675   : > { %22164 = vst [vmem:[#allocation82_spill] sm:$0xff] %v19718_v13  ;;  %v12530_v23 = vcombine.low %v12521_v3, %v12528_v29  ;;  %v19734_v21 = vrot.slane %v11125_v27, %v18124_v2  ;;  %v11140_v15 = vcombine.high %v19669_v35, %v19669_v35  ;;  %v6056_v20 = vcombine.low %v19484_v12, %v19679_v6  ;;  %v19744_v3 = vpop.permute.xlu0 %13012 }
 0x676   : > { %v9136_v45 = vcombine.low %v9127_v7, %v9134_v31  ;;  %v5741_v22 = vmul.f32 %v22167_v43, %v22150_v58  ;;  %v12537_v28 = vrot.slane %v12529_v4, %v18124_v2  ;;  %22168 = vst [vmem:[#allocation50_spill] sm:$0xff] %v19744_v3  ;;  %v9143_v5 = vrot.slane %v9135_v1, %v18124_v2  ;;  %v19754_v31 = vpop.permute.xlu1 %4841 }
 0x677   : > { %v12544_v37 = vrot.slane %v12530_v23, %v18124_v2  ;;  %v22169_v29 = vcombine.high %v19361_v40, %v19361_v40  ;;  %22170 = vst [vmem:[#allocation35_spill] sm:$0xff] %v19754_v31  ;;  %v19760_v4 = vsub.s32 %v19597_v56, %v22134_v52  ;;  %v12399_v1 = vcombine.low %v19405_v30, %v19417_v47 }
 0x678   : > { %v9150_v10 = vrot.slane %v9136_v45, %v18124_v2  ;;  %v19768_v40 = vrot.slane %v19669_v35, %v18124_v2  ;;  %v19772_v45 = vrot.slane %v19734_v21, %v18124_v2  ;;  %v6040_v58 = vcombine.low %v19515_v19, %v5741_v22 }
 0x679   : > { %v10875_v7 = vrot.slane %v22169_v29, %v18124_v2  ;;  %22171 = vst [vmem:[#allocation46_spill] sm:$0xff] %v19760_v4  ;;  %v12545_v33 = vcombine.low %v12537_v28, %v12544_v37  ;;  %v19775_v29 = vrot.slane %v11140_v15, %v18124_v2  ;;  %v6057_v28 = vcombine.high %v19484_v12, %v19679_v6  ;;  %v22173_v6 = vld [vmem:[#allocation16_spill] sm:$0xff] }
 0x67a   : > { %v9151_v43 = vcombine.low %v9143_v5, %v9150_v10  ;;  %v19780_v37 = vrot.slane %v6056_v20, %v19475_v11  ;;  %v13686_v35 = vcombine.high %v19405_v30, %v19417_v47  ;;  %v12409_v15 = vrot.slane %v12399_v1, %v18124_v2 }
 0x67b   : > { %13054 = vperm.xlu0 %14853, %v12545_v33   ;;  %v12401_v27 = vcombine.low %v19409_v9, %v10875_v7  ;;  %v13687_v5 = vcombine.high %v19409_v9, %v10875_v7  ;;  %v6041_v10 = vcombine.high %v19515_v19, %v5741_v22  ;;  %v19790_v12 = vsub.f32 1.0, %v19199_v62  ;;  %v22175_v7 = vld [vmem:[#allocation47_spill] sm:$0xff]  ;;  %v19803_v22 = vpop.permute.xlu1 %4831 }
 0x67c   : > { %22172 = vst [vmem:[#allocation83_spill] sm:$0xff] %v19780_v37  ;;  %9614 = vperm.xlu1 %14852, %v9151_v43   ;;  %v7437_v20 = vcombine.high %v22173_v6, %v22173_v6  ;;  %v7444_v33 = vrot.slane %v22173_v6, %v18124_v2  ;;  %v19796_v43 = vpop.permute.xlu0 %13021  ;;  %v12416_v47 = vrot.slane %v13686_v35, %v18124_v2  ;;  %22176 = vst [vmem:[#allocation47_spill] sm:$0xff] %v19803_v22  ;;  %v22178_v35 = vld [vmem:[#allocation23_spill] sm:$0xff] }
 0x67d   : > { %22174 = vst [vmem:[#allocation16_spill] sm:$0xff] %v19796_v43  ;;  %v12423_v30 = vrot.slane %v12401_v27, %v18124_v2  ;;  %v12430_v9 = vrot.slane %v13687_v5, %v18124_v2  ;;  %v7682_v19 = vcombine.high %v22175_v7, %v22175_v7  ;;  %v19806_v1 = vrot.slane %v6057_v28, %v19475_v11 }
 0x67e   : > { %v19809_v53 = vrot.slane %v6040_v58, %v19475_v11  ;;  %v7451_v6 = vrot.slane %v7437_v20, %v18124_v2  ;;  %v7452_v26 = vcombine.high %v7444_v33, %v7444_v33  ;;  %v19814_v23 = vmul.f32 %v22178_v35, %v22165_v8 }
 0x67f   : > { %v12431_v27 = vcombine.low %v12409_v15, %v12416_v47  ;;  %v12432_v5 = vcombine.low %v12423_v30, %v12430_v9  ;;  %v7689_v43 = vrot.slane %v22175_v7, %v18124_v2  ;;  %v19820_v28 = vrot.slane %v6041_v10, %v19475_v11  ;;  %v19835_v22 = vpop.permute.xlu1 %5673 }
 0x680   : > { %22177 = vst [vmem:[#allocation84_spill] sm:$0xff] %v19809_v53  ;;  %5723 = vperm.xlu1 %14852, %v19790_v12   ;;  %v11027_v58 = vcombine.high %v22179_v34, %v22179_v34  ;;  %v7453_v3 = vcombine.high %v7451_v6, %v7451_v6  ;;  %v7460_v20 = vrot.slane %v7444_v33, %v18124_v2  ;;  %v19833_v7 = vpop.permute.xlu0 %4856  ;;  %22181 = vst [vmem:[#allocation63_spill] sm:$0xff] %v19835_v22 }
 0x681   : > { %v12439_v55 = vrot.slane %v12431_v27, %v18124_v2  ;;  %v12446_v8 = vrot.slane %v12432_v5, %v18124_v2  ;;  %v7474_v35 = vrot.slane %v7452_v26, %v18124_v2  ;;  %v7696_v15 = vrot.slane %v7682_v19, %v18124_v2  ;;  %22180 = vst [vmem:[#allocation23_spill] sm:$0xff] %v19833_v7 }
 0x682   : > { %v7467_v10 = vrot.slane %v7451_v6, %v18124_v2  ;;  %v7481_v30 = vrot.slane %v7453_v3, %v18124_v2  ;;  %v7697_v9 = vcombine.high %v7689_v43, %v7689_v43  ;;  %v7705_v19 = vrot.slane %v7689_v43, %v18124_v2 }
 0x683   : > { %v12447_v13 = vcombine.low %v12439_v55, %v12446_v8  ;;  %v9005_v33 = vcombine.low %v7460_v20, %v7474_v35  ;;  %v13624_v4 = vcombine.high %v7460_v20, %v7474_v35  ;;  %v7698_v27 = vcombine.high %v7696_v15, %v7696_v15 }
 0x684   : > { %v9007_v5 = vcombine.low %v7467_v10, %v7481_v30  ;;  %v13625_v26 = vcombine.high %v7467_v10, %v7481_v30  ;;  %v7719_v31 = vrot.slane %v7697_v9, %v18124_v2  ;;  %v7712_v47 = vrot.slane %v7696_v15, %v18124_v2 }
 0x685   : > { %13048 = vperm.xlu0 %14853, %v12447_v13   ;;  %v9015_v6 = vrot.slane %v9005_v33, %v18124_v2  ;;  %v9022_v3 = vrot.slane %v13624_v4, %v18124_v2  ;;  %v7726_v55 = vrot.slane %v7698_v27, %v18124_v2  ;;  %v22182_v15 = vcombine.high %v19532_v42, %v19532_v42 }
 0x686   : > { %v9029_v20 = vrot.slane %v9007_v5, %v18124_v2  ;;  %v9036_v8 = vrot.slane %v13625_v26, %v18124_v2  ;;  %v9250_v35 = vcombine.low %v7705_v19, %v7719_v31  ;;  %v13634_v22 = vcombine.high %v7705_v19, %v7719_v31  ;;  %v19853_v5 = vpop.permute.xlu0 %4846 }
 0x687   : > { %v9037_v10 = vcombine.low %v9015_v6, %v9022_v3  ;;  %v9252_v30 = vcombine.low %v7712_v47, %v7726_v55  ;;  %v13635_v13 = vcombine.high %v7712_v47, %v7726_v55  ;;  %v11022_v27 = vrot.slane %v22182_v15, %v18124_v2  ;;  %v19860_v6 = vpop.permute.xlu1 %9578 }
 0x688   : > { %v9038_v9 = vcombine.low %v9029_v20, %v9036_v8  ;;  %v9260_v33 = vrot.slane %v9250_v35, %v18124_v2  ;;  %v9267_v4 = vrot.slane %v13634_v22, %v18124_v2  ;;  %v12546_v47 = vcombine.low %v19562_v57, %v19572_v60  ;;  %22183 = vst [vmem:[#allocation85_spill] sm:$0xff] %v19860_v6 }
 0x689   : > { %v9045_v31 = vrot.slane %v9037_v10, %v18124_v2  ;;  %v9274_v26 = vrot.slane %v9252_v30, %v18124_v2  ;;  %v9281_v19 = vrot.slane %v13635_v13, %v18124_v2  ;;  %v13692_v42 = vcombine.high %v19562_v57, %v19572_v60 }
 0x68a   : > { %v9052_v22 = vrot.slane %v9038_v9, %v18124_v2  ;;  %v9282_v3 = vcombine.low %v9260_v33, %v9267_v4  ;;  %v12548_v55 = vcombine.low %v19569_v46, %v11022_v27  ;;  %v11034_v20 = vrot.slane %v22179_v34, %v18124_v2  ;;  %v22184_v4 = vld [vmem:[#allocation54_spill] sm:$0xff] }
 0x68b   : > { %v9283_v8 = vcombine.low %v9274_v26, %v9281_v19  ;;  %v13693_v35 = vcombine.high %v19569_v46, %v11022_v27  ;;  %v12556_v10 = vrot.slane %v12546_v47, %v18124_v2  ;;  %v11041_v30 = vrot.slane %v11027_v58, %v18124_v2  ;;  %v22185_v26 = vld [vmem:[#allocation62_spill] sm:$0xff]  ;;  %v19886_v19 = vpop.permute.xlu0 %5688 }
 0x68c   : > { %v9053_v13 = vcombine.low %v9045_v31, %v9052_v22  ;;  %v12563_v15 = vrot.slane %v13692_v42, %v18124_v2  ;;  %v12570_v9 = vrot.slane %v12548_v55, %v18124_v2  ;;  %v9290_v33 = vrot.slane %v9282_v3, %v18124_v2  ;;  %22186 = vst [vmem:[#allocation54_spill] sm:$0xff] %v19886_v19 }
 0x68d   : > { %v9297_v57 = vrot.slane %v9283_v8, %v18124_v2  ;;  %v12577_v60 = vrot.slane %v13693_v35, %v18124_v2  ;;  %v7584_v34 = vcombine.high %v22184_v4, %v22184_v4  ;;  %v11174_v46 = vcombine.high %v22185_v26, %v22185_v26  ;;  %v19893_v8 = vpop.permute.xlu1 %5663 }
 0x68e   : > { %v19882_v58 = vrot.slane %v22185_v26, %v18124_v2  ;;  %9608 = vperm.xlu1 %14852, %v9053_v13   ;;  %v12578_v27 = vcombine.low %v12556_v10, %v12563_v15  ;;  %v7591_v31 = vrot.slane %v22184_v4, %v18124_v2  ;;  %v22187_v42 = vcombine.high %v19614_v16, %v19614_v16 }
 0x68f   : > { %v9298_v47 = vcombine.low %v9290_v33, %v9297_v57  ;;  %v12579_v22 = vcombine.low %v12570_v9, %v12577_v60  ;;  %v7598_v3 = vrot.slane %v7584_v34, %v18124_v2  ;;  %22188 = vst [vmem:[#allocation62_spill] sm:$0xff] %v19893_v8  ;;  %v11042_v35 = vcombine.high %v11034_v20, %v11034_v20 }
 0x690   : > { %v10924_v55 = vrot.slane %v22187_v42, %v18124_v2  ;;  %v11043_v26 = vcombine.high %v11041_v30, %v11041_v30  ;;  %v11050_v10 = vrot.slane %v11034_v20, %v18124_v2  ;;  %v7599_v13 = vcombine.high %v7591_v31, %v7591_v31 }
 0x691   : > { %v11057_v15 = vrot.slane %v11041_v30, %v18124_v2  ;;  %9623 = vperm.xlu0 %14853, %v9298_v47   ;;  %v12586_v33 = vrot.slane %v12578_v27, %v18124_v2  ;;  %v12593_v9 = vrot.slane %v12579_v22, %v18124_v2  ;;  %v7600_v57 = vcombine.high %v7598_v3, %v7598_v3 }
 0x692   : > { %v7607_v60 = vrot.slane %v7591_v31, %v18124_v2  ;;  %v7614_v16 = vrot.slane %v7598_v3, %v18124_v2  ;;  %v7621_v4 = vrot.slane %v7599_v13, %v18124_v2  ;;  %v12448_v34 = vcombine.low %v19631_v0, %v19653_v32  ;;  %v19913_v13 = vpop.permute.xlu0 %9587 }
 0x693   : > { %v12594_v42 = vcombine.low %v12586_v33, %v12593_v9  ;;  %v7628_v20 = vrot.slane %v7600_v57, %v18124_v2  ;;  %v13688_v30 = vcombine.high %v19631_v0, %v19653_v32  ;;  %v12450_v27 = vcombine.low %v19641_v48, %v10924_v55  ;;  %22189 = vst [vmem:[#allocation86_spill] sm:$0xff] %v19913_v13  ;;  %v22190_v33 = vld [vmem:[#allocation30_spill] sm:$0xff]  ;;  %v22191_v9 = vld [vmem:[#allocation11_spill] sm:$0xff]  ;;  %v19918_v32 = vpop.permute.xlu1 %9572 }
 0x694   : > { %v19909_v47 = vrot.slane %v11174_v46, %v18124_v2  ;;  %v11189_v31 = vcombine.high %v19882_v58, %v19882_v58  ;;  %v9152_v22 = vcombine.low %v7607_v60, %v7621_v4  ;;  %v13630_v3 = vcombine.high %v7607_v60, %v7621_v4  ;;  %22192 = vst [vmem:[#allocation30_spill] sm:$0xff] %v19918_v32 }
 0x695   : > { %v11064_v43 = vrot.slane %v11042_v35, %v18124_v2  ;;  %v4918_v57 = vmul.f32 %v22191_v9, %v22190_v33  ;;  %13057 = vperm.xlu1 %14852, %v12594_v42   ;;  %v9154_v6 = vcombine.low %v7614_v16, %v7628_v20  ;;  %v13631_v0 = vcombine.high %v7614_v16, %v7628_v20 }
 0x696   : > { %v9162_v46 = vrot.slane %v9152_v22, %v18124_v2  ;;  %v9169_v8 = vrot.slane %v13630_v3, %v18124_v2  ;;  %v13689_v37 = vcombine.high %v19641_v48, %v10924_v55  ;;  %v12458_v60 = vrot.slane %v12448_v34, %v18124_v2  ;;  %v19935_v53 = vpop.permute.xlu0 %5678 }
 0x697   : > { %v9176_v4 = vrot.slane %v9154_v6, %v18124_v2  ;;  %v9183_v35 = vrot.slane %v13631_v0, %v18124_v2  ;;  %v12465_v13 = vrot.slane %v13688_v30, %v18124_v2  ;;  %v12472_v42 = vrot.slane %v12450_v27, %v18124_v2  ;;  %22193 = vst [vmem:[#allocation11_spill] sm:$0xff] %v19935_v53 }
 0x698   : > { %v19930_v16 = vrot.slane %v19882_v58, %v18124_v2  ;;  %v9184_v20 = vcombine.low %v9162_v46, %v9169_v8  ;;  %v12479_v22 = vrot.slane %v13689_v37, %v18124_v2  ;;  %v11071_v3 = vrot.slane %v11043_v26, %v18124_v2  ;;  %v19941_v26 = vpop.permute.xlu1 %13015 }
 0x699   : > { %v9185_v48 = vcombine.low %v9176_v4, %v9183_v35  ;;  %v12480_v55 = vcombine.low %v12458_v60, %v12465_v13  ;;  %v12595_v34 = vcombine.low %v11050_v10, %v11064_v43  ;;  %v13694_v9 = vcombine.high %v11050_v10, %v11064_v43  ;;  %22194 = vst [vmem:[#allocation87_spill] sm:$0xff] %v19941_v26 }
 0x69a   : > { %v4984_v6 = vcombine.low %v19537_v36, %v4918_v57  ;;  %v12481_v0 = vcombine.low %v12472_v42, %v12479_v22  ;;  %v12597_v32 = vcombine.low %v11057_v15, %v11071_v3  ;;  %v13695_v30 = vcombine.high %v11057_v15, %v11071_v3  ;;  %v22195_v3 = vld [vmem:[#allocation57_spill] sm:$0xff] }
 0x69b   : > { %v9192_v27 = vrot.slane %v9184_v20, %v18124_v2  ;;  %v9199_v58 = vrot.slane %v9185_v48, %v18124_v2  ;;  %v12605_v8 = vrot.slane %v12595_v34, %v18124_v2  ;;  %v12612_v37 = vrot.slane %v13694_v9, %v18124_v2  ;;  %v22197_v34 = vld [vmem:[#allocation29_spill] sm:$0xff] }
 0x69c   : > { %v12488_v13 = vrot.slane %v12480_v55, %v18124_v2  ;;  %v12495_v43 = vrot.slane %v12481_v0, %v18124_v2  ;;  %v12619_v10 = vrot.slane %v12597_v32, %v18124_v2  ;;  %v12626_v15 = vrot.slane %v13695_v30, %v18124_v2  ;;  %v22196_v55 = vld [vmem:[#allocation7_spill] sm:$0xff]  ;;  %v22198_v0 = vld [vmem:[#allocation6_spill] sm:$0xff] }
 0x69d   : > { %v4985_v60 = vcombine.high %v19537_v36, %v4918_v57  ;;  %v9200_v4 = vcombine.low %v9192_v27, %v9199_v58  ;;  %v12627_v35 = vcombine.low %v12605_v8, %v12612_v37  ;;  %v19952_v42 = vrot.slane %v19909_v47, %v18124_v2  ;;  %v22199_v36 = vld [vmem:[#allocation55_spill] sm:$0xff]  ;;  %v19975_v37 = vpop.permute.xlu0 %9581 }
 0x69e   : > { %v12496_v20 = vcombine.low %v12488_v13, %v12495_v43  ;;  %v12628_v22 = vcombine.low %v12619_v10, %v12626_v15  ;;  %v7731_v48 = vcombine.high %v22195_v3, %v22195_v3  ;;  %v19957_v32 = vrot.slane %v11189_v31, %v18124_v2  ;;  %22200 = vst [vmem:[#allocation57_spill] sm:$0xff] %v19975_v37  ;;  %v19984_v15 = vpop.permute.xlu1 %4861 }
 0x69f   : > { %v19961_v9 = vmul.f32 %v22197_v34, %v22196_v55  ;;  %v19965_v57 = vmul.f32 %v22199_v36, %v22198_v0  ;;  %9617 = vperm.xlu0 %14853, %v9200_v4   ;;  %v7738_v30 = vrot.slane %v22195_v3, %v18124_v2  ;;  %v19970_v27 = vrot.slane %v4984_v6, %v19475_v11  ;;  %v22202_v4 = vld [vmem:[#allocation17_spill] sm:$0xff] }
 0x6a0   : > { %13051 = vperm.xlu1 %14852, %v12496_v20   ;;  %v12635_v58 = vrot.slane %v12627_v35, %v18124_v2  ;;  %v12642_v31 = vrot.slane %v12628_v22, %v18124_v2  ;;  %v7745_v8 = vrot.slane %v7731_v48, %v18124_v2  ;;  %v19978_v13 = vrot.slane %v4985_v60, %v19475_v11  ;;  %v22203_v35 = vld [vmem:[#allocation58_spill] sm:$0xff] }
 0x6a1   : > { %v11076_v43 = vcombine.high %v19364_v14, %v19364_v14  ;;  %v7746_v10 = vcombine.high %v7738_v30, %v7738_v30  ;;  %v7878_v6 = vcombine.high %v19143_v24, %v19143_v24  ;;  %22201 = vst [vmem:[#allocation7_spill] sm:$0xff] %v19984_v15  ;;  %v19988_v20 = vmul.f32 %v22203_v35, %v22202_v4  ;;  %v20009_v7 = vpop.permute.xlu0 %13030 }
 0x6a2   : > { %v19992_v22 = vrot.slane %v19364_v14, %v18124_v2  ;;  %v12643_v3 = vcombine.low %v12635_v58, %v12642_v31  ;;  %v7747_v60 = vcombine.high %v7745_v8, %v7745_v8  ;;  %v4968_v48 = vcombine.low %v19814_v23, %v19965_v57  ;;  %22204 = vst [vmem:[#allocation29_spill] sm:$0xff] %v20009_v7 }
 0x6a3   : > { %v7754_v34 = vrot.slane %v7738_v30, %v18124_v2  ;;  %v7768_v36 = vrot.slane %v7746_v10, %v18124_v2  ;;  %v7885_v46 = vrot.slane %v19143_v24, %v18124_v2  ;;  %v4969_v35 = vcombine.high %v19814_v23, %v19965_v57 }
 0x6a4   : > { %13060 = vperm.xlu0 %14853, %v12643_v3   ;;  %v7761_v26 = vrot.slane %v7745_v8, %v18124_v2  ;;  %v7775_v14 = vrot.slane %v7747_v60, %v18124_v2  ;;  %v7892_v58 = vrot.slane %v7878_v6, %v18124_v2  ;;  %v20006_v31 = vrot.slane %v11076_v43, %v18124_v2  ;;  %v20015_v43 = vpop.permute.xlu1 %4851 }
 0x6a5   : > { %v9299_v37 = vcombine.low %v7754_v34, %v7768_v36  ;;  %v13636_v30 = vcombine.high %v7754_v34, %v7768_v36  ;;  %v7893_v15 = vcombine.high %v7885_v46, %v7885_v46  ;;  %v7901_v24 = vrot.slane %v7885_v46, %v18124_v2  ;;  %22205 = vst [vmem:[#allocation6_spill] sm:$0xff] %v20015_v43 }
 0x6a6   : > { %v9301_v10 = vcombine.low %v7761_v26, %v7775_v14  ;;  %v13637_v19 = vcombine.high %v7761_v26, %v7775_v14  ;;  %v7894_v53 = vcombine.high %v7892_v58, %v7892_v58  ;;  %v7908_v8 = vrot.slane %v7892_v58, %v18124_v2 }
 0x6a7   : > { %v9309_v23 = vrot.slane %v9299_v37, %v18124_v2  ;;  %v9316_v57 = vrot.slane %v13636_v30, %v18124_v2  ;;  %v7915_v6 = vrot.slane %v7893_v15, %v18124_v2  ;;  %v22206_v46 = vcombine.high %v19734_v21, %v19734_v21 }
 0x6a8   : > { %v9323_v3 = vrot.slane %v9301_v10, %v18124_v2  ;;  %v9330_v60 = vrot.slane %v13637_v19, %v18124_v2  ;;  %v7922_v26 = vrot.slane %v7894_v53, %v18124_v2  ;;  %v12693_v58 = vcombine.low %v19768_v40, %v19775_v29 }
 0x6a9   : > { %v11169_v34 = vrot.slane %v22206_v46, %v18124_v2  ;;  %v9331_v37 = vcombine.low %v9309_v23, %v9316_v57  ;;  %v9446_v36 = vcombine.low %v7901_v24, %v7915_v6  ;;  %v13642_v14 = vcombine.high %v7901_v24, %v7915_v6 }
 0x6aa   : > { %v9332_v15 = vcombine.low %v9323_v3, %v9330_v60  ;;  %v9448_v30 = vcombine.low %v7908_v8, %v7922_v26  ;;  %v13643_v7 = vcombine.high %v7908_v8, %v7922_v26  ;;  %v13698_v10 = vcombine.high %v19768_v40, %v19775_v29  ;;  %v20036_v8 = vpop.permute.xlu0 %13024  ;;  %v20041_v26 = vpop.permute.xlu1 %5693 }
 0x6ab   : > { %v9339_v19 = vrot.slane %v9331_v37, %v18124_v2  ;;  %v9456_v53 = vrot.slane %v9446_v36, %v18124_v2  ;;  %v9463_v43 = vrot.slane %v13642_v14, %v18124_v2  ;;  %v12695_v21 = vcombine.low %v19772_v45, %v11169_v34  ;;  %22207 = vst [vmem:[#allocation55_spill] sm:$0xff] %v20036_v8 }
 0x6ac   : > { %v9346_v23 = vrot.slane %v9332_v15, %v18124_v2  ;;  %v9470_v24 = vrot.slane %v9448_v30, %v18124_v2  ;;  %v9477_v57 = vrot.slane %v13643_v7, %v18124_v2  ;;  %v13699_v6 = vcombine.high %v19772_v45, %v11169_v34 }
 0x6ad   : > { %v9478_v3 = vcombine.low %v9456_v53, %v9463_v43  ;;  %v12703_v40 = vrot.slane %v12693_v58, %v18124_v2  ;;  %v12710_v29 = vrot.slane %v13698_v10, %v18124_v2  ;;  %v12717_v60 = vrot.slane %v12695_v21, %v18124_v2 }
 0x6ae   : > { %v11091_v46 = vcombine.high %v19992_v22, %v19992_v22  ;;  %v9347_v37 = vcombine.low %v9339_v19, %v9346_v23  ;;  %v9479_v36 = vcombine.low %v9470_v24, %v9477_v57  ;;  %v12724_v7 = vrot.slane %v13699_v6, %v18124_v2  ;;  %v20069_v6 = vpop.permute.xlu0 %13027 }
 0x6af   : > { %v20048_v45 = vrot.slane %v19992_v22, %v18124_v2  ;;  %v12725_v43 = vcombine.low %v12703_v40, %v12710_v29  ;;  %v7780_v34 = vcombine.high %v19182_v39, %v19182_v39  ;;  %v7787_v14 = vrot.slane %v19182_v39, %v18124_v2  ;;  %22208 = vst [vmem:[#allocation17_spill] sm:$0xff] %v20069_v6  ;;  %v20075_v29 = vpop.permute.xlu1 %9590 }
 0x6b0   : > { %9626 = vperm.xlu1 %14852, %v9347_v37   ;;  %v9486_v58 = vrot.slane %v9478_v3, %v18124_v2  ;;  %v9493_v15 = vrot.slane %v9479_v36, %v18124_v2  ;;  %v12726_v30 = vcombine.low %v12717_v60, %v12724_v7  ;;  %v7633_v10 = vcombine.high %v19156_v17, %v19156_v17 }
 0x6b1   : > { %v20059_v19 = vrot.slane %v4968_v48, %v19475_v11  ;;  %v20062_v22 = vrot.slane %v4969_v35, %v19475_v11  ;;  %v7794_v53 = vrot.slane %v7780_v34, %v18124_v2  ;;  %v7795_v21 = vcombine.high %v7787_v14, %v7787_v14  ;;  %22209 = vst [vmem:[#allocation58_spill] sm:$0xff] %v20075_v29 }
 0x6b2   : > { %v9494_v23 = vcombine.low %v9486_v58, %v9493_v15  ;;  %v12733_v39 = vrot.slane %v12725_v43, %v18124_v2  ;;  %v12740_v24 = vrot.slane %v12726_v30, %v18124_v2  ;;  %v7640_v57 = vrot.slane %v19156_v17, %v18124_v2 }
 0x6b3   : > { %v7796_v3 = vcombine.high %v7794_v53, %v7794_v53  ;;  %v7803_v35 = vrot.slane %v7787_v14, %v18124_v2  ;;  %v7817_v40 = vrot.slane %v7795_v21, %v18124_v2  ;;  %v20078_v60 = vrot.slane %v11091_v46, %v18124_v2 }
 0x6b4   : > { %9635 = vperm.xlu0 %14853, %v9494_v23   ;;  %v12741_v37 = vcombine.low %v12733_v39, %v12740_v24  ;;  %v7647_v36 = vrot.slane %v7633_v10, %v18124_v2  ;;  %v7648_v17 = vcombine.high %v7640_v57, %v7640_v57  ;;  %v7810_v7 = vrot.slane %v7794_v53, %v18124_v2 }
 0x6b5   : > { %v7824_v43 = vrot.slane %v7796_v3, %v18124_v2  ;;  %v9348_v34 = vcombine.low %v7803_v35, %v7817_v40  ;;  %v13638_v58 = vcombine.high %v7803_v35, %v7817_v40  ;;  %v5032_v14 = vcombine.low %v20059_v19, %v19970_v27  ;;  %v20091_v40 = vpop.permute.xlu0 %4876 }
 0x6b6   : > { %13066 = vperm.xlu1 %14852, %v12741_v37   ;;  %v7649_v15 = vcombine.high %v7647_v36, %v7647_v36  ;;  %v7656_v30 = vrot.slane %v7640_v57, %v18124_v2  ;;  %v7670_v46 = vrot.slane %v7648_v17, %v18124_v2  ;;  %v7663_v53 = vrot.slane %v7647_v36, %v18124_v2  ;;  %v20095_v17 = vpop.permute.xlu1 %5683 }
 0x6b7   : > { %v9350_v21 = vcombine.low %v7810_v7, %v7824_v43  ;;  %v13639_v23 = vcombine.high %v7810_v7, %v7824_v43  ;;  %v9358_v10 = vrot.slane %v9348_v34, %v18124_v2  ;;  %v9365_v39 = vrot.slane %v13638_v58, %v18124_v2 }
 0x6b8   : > { %v7677_v24 = vrot.slane %v7649_v15, %v18124_v2  ;;  %v9201_v3 = vcombine.low %v7656_v30, %v7670_v46  ;;  %v13632_v35 = vcombine.high %v7656_v30, %v7670_v46  ;;  %v5033_v36 = vcombine.high %v20059_v19, %v19970_v27 }
 0x6b9   : > { %v9372_v37 = vrot.slane %v9350_v21, %v18124_v2  ;;  %v9379_v57 = vrot.slane %v13639_v23, %v18124_v2  ;;  %v9380_v48 = vcombine.low %v9358_v10, %v9365_v39  ;;  %v15137_v46 = vmov 1934713408  }
 0x6ba   : > { %v9203_v7 = vcombine.low %v7663_v53, %v7677_v24  ;;  %v13633_v43 = vcombine.high %v7663_v53, %v7677_v24  ;;  %v9211_v34 = vrot.slane %v9201_v3, %v18124_v2  ;;  %v9218_v58 = vrot.slane %v13632_v35, %v18124_v2 }
 0x6bb   : > { %v9381_v15 = vcombine.low %v9372_v37, %v9379_v57  ;;  %v9388_v30 = vrot.slane %v9380_v48, %v18124_v2  ;;  %v5003_v6 = vunpack.c.l.s4 %v15137_v46  ;;  %v22210_v39 = vcombine.high %v19909_v47, %v19909_v47 }
 0x6bc   : > { %v9225_v21 = vrot.slane %v9203_v7, %v18124_v2  ;;  %v9232_v23 = vrot.slane %v13633_v43, %v18124_v2  ;;  %v9233_v10 = vcombine.low %v9211_v34, %v9218_v58  ;;  %v12742_v27 = vcombine.low %v19930_v16, %v19957_v32  ;;  %v20117_v7 = vpop.permute.xlu0 %4866  ;;  %v20124_v58 = vpop.permute.xlu1 %9584 }
 0x6bd   : > { %v11218_v53 = vrot.slane %v22210_v39, %v18124_v2  ;;  %v9395_v24 = vrot.slane %v9381_v15, %v18124_v2  ;;  %v5004_v3 = vunpack.c.0.s8 %v5003_v6  ;;  %v13700_v19 = vcombine.high %v19930_v16, %v19957_v32  ;;  %22211 = vst [vmem:[#allocation88_spill] sm:$0xff] %v20124_v58 }
 0x6be   : > { %v11321_v48 = vcombine.high %v19496_v49, %v19496_v49  ;;  %v9234_v35 = vcombine.low %v9225_v21, %v9232_v23  ;;  %v12752_v6 = vrot.slane %v12742_v27, %v18124_v2  ;;  %v9241_v16 = vrot.slane %v9233_v10, %v18124_v2 }
 0x6bf   : > { %v12744_v37 = vcombine.low %v19952_v42, %v11218_v53  ;;  %v13701_v57 = vcombine.high %v19952_v42, %v11218_v53  ;;  %v9396_v47 = vcombine.low %v9388_v30, %v9395_v24  ;;  %v20120_v43 = vsub.s32 %v5004_v3, %v22134_v52 }
 0x6c0   : > { %v12759_v34 = vrot.slane %v13700_v19, %v18124_v2  ;;  %v9248_v32 = vrot.slane %v9234_v35, %v18124_v2  ;;  %v11106_v30 = vrot.slane %v20006_v31, %v18124_v2  ;;  %v22212_v46 = vcombine.low %v19540_v38, %v19549_v18 }
 0x6c1   : > { %v12766_v15 = vrot.slane %v12744_v37, %v18124_v2  ;;  %v12773_v42 = vrot.slane %v13701_v57, %v18124_v2  ;;  %9629 = vperm.xlu0 %14853, %v9396_v47   ;;  %v20139_v23 = vrot.slane %v5032_v14, %v20120_v43  ;;  %v5048_v39 = vcombine.low %v20062_v22, %v19978_v13 }
 0x6c2   : > { %v20136_v21 = vrot.slane %v22212_v46, %v20120_v43  ;;  %v12774_v10 = vcombine.low %v12752_v6, %v12759_v34  ;;  %v9249_v53 = vcombine.low %v9241_v16, %v9248_v32  ;;  %v20144_v3 = vrot.slane %v5033_v36, %v20120_v43  ;;  %v20167_v6 = vpop.permute.xlu0 %5708  ;;  %v22220_v34 = vld [vmem:[#allocation5_spill] sm:$0xff]  ;;  %v20176_v46 = vpop.permute.xlu1 %4881 }
 0x6c3   : > { %22214 = vst [vmem:[#allocation90_spill] sm:$0xff] %v20139_v23  ;;  %v12775_v24 = vcombine.low %v12766_v15, %v12773_v42  ;;  %v11328_v27 = vrot.slane %v19496_v49, %v18124_v2  ;;  %v20149_v19 = vrot.slane %v11321_v48, %v18124_v2  ;;  %v22216_v14 = vcombine.high %v20006_v31, %v20006_v31  ;;  %v22221_v16 = vld [vmem:[#allocation21_spill] sm:$0xff] }
 0x6c4   : > { %22213 = vst [vmem:[#allocation89_spill] sm:$0xff] %v20136_v21  ;;  %22215 = vst [vmem:[#allocation91_spill] sm:$0xff] %v20144_v3  ;;  %v5065_v35 = vcombine.high %v20136_v21, %v20139_v23  ;;  %9620 = vperm.xlu1 %14852, %v9249_v53   ;;  %v12782_v57 = vrot.slane %v12774_v10, %v18124_v2  ;;  %v22217_v49 = vcombine.high %v19540_v38, %v19549_v18  ;;  %v22222_v38 = vld [vmem:[#allocation31_spill] sm:$0xff] }
 0x6c5   : > { %v11120_v37 = vrot.slane %v22216_v14, %v18124_v2  ;;  %v12789_v36 = vrot.slane %v12775_v24, %v18124_v2  ;;  %v12644_v48 = vcombine.low %v20048_v45, %v20078_v60  ;;  %22219 = vst [vmem:[#allocation93_spill] sm:$0xff] %v20167_v6  ;;  %v20171_v31 = vmul.f32 %v22221_v16, %v22220_v34 }
 0x6c6   : > { %v20163_v47 = vrot.slane %v22217_v49, %v20120_v43  ;;  %5482 = vrot.lane.b32.xlu0 %v5065_v35, %s15133_s20  ;;  %v13696_v32 = vcombine.high %v20048_v45, %v20078_v60  ;;  %v20180_v18 = vmul.f32 %v19466_v61, %v22222_v38  ;;  %v20189_v60 = vrot.slane %v5048_v39, %v20120_v43 }
 0x6c7   : > { %v12646_v15 = vcombine.low %v11106_v30, %v11120_v37  ;;  %v13697_v42 = vcombine.high %v11106_v30, %v11120_v37  ;;  %v12790_v10 = vcombine.low %v12782_v57, %v12789_v36  ;;  %v12654_v24 = vrot.slane %v12644_v48, %v18124_v2 }
 0x6c8   : > { %22218 = vst [vmem:[#allocation92_spill] sm:$0xff] %v20163_v47  ;;  %v5067_v53 = vcombine.high %v20163_v47, %v20144_v3  ;;  %v12661_v14 = vrot.slane %v13696_v32, %v18124_v2  ;;  %22223 = vst [vmem:[#allocation5_spill] sm:$0xff] %v20189_v60  ;;  %v5049_v30 = vcombine.high %v20062_v22, %v19978_v13 }
 0x6c9   : > { %v12668_v35 = vrot.slane %v12646_v15, %v18124_v2  ;;  %v12675_v45 = vrot.slane %v13697_v42, %v18124_v2  ;;  %v11336_v61 = vcombine.high %v11328_v27, %v11328_v27  ;;  %v11337_v37 = vcombine.high %v20149_v19, %v20149_v19  ;;  %13069 = vperm.xlu1 %14852, %v12790_v10   ;;  %v20212_v42 = vpop.permute.xlu0 %9599 }
 0x6ca   : > { %v7927_v57 = vcombine.high %v19189_v41, %v19189_v41  ;;  %5490 = vrot.lane.b32.xlu0 %v5067_v53, %s15133_s20  ;;  %v12676_v36 = vcombine.low %v12654_v24, %v12661_v14  ;;  %v22224_v39 = vcombine.low %v19552_v51, %v19559_v50  ;;  %v7934_v13 = vrot.slane %v19189_v41, %v18124_v2  ;;  %v20218_v14 = vpop.permute.xlu1 %4871 }
 0x6cb   : > { %v12677_v49 = vcombine.low %v12668_v35, %v12675_v45  ;;  %v11344_v22 = vrot.slane %v11328_v27, %v18124_v2  ;;  %v5256_v16 = vcombine.low %v19961_v9, %v20171_v31  ;;  %v5240_v32 = vcombine.low %v19988_v20, %v20180_v18  ;;  %v22226_v35 = vld [vmem:[#allocation79_spill] sm:$0xff] }
 0x6cc   : > { %v20202_v48 = vrot.slane %v22224_v39, %v20120_v43  ;;  %v7941_v15 = vrot.slane %v7927_v57, %v18124_v2  ;;  %v12684_v10 = vrot.slane %v12676_v36, %v18124_v2  ;;  %v7942_v41 = vcombine.high %v7934_v13, %v7934_v13 }
 0x6cd   : > { %v12691_v53 = vrot.slane %v12677_v49, %v18124_v2  ;;  %v11358_v27 = vrot.slane %v11336_v61, %v18124_v2  ;;  %v11223_v45 = vcombine.high %v22226_v35, %v22226_v35  ;;  %v22227_v57 = vcombine.high %v19552_v51, %v19559_v50 }
 0x6ce   : > { %22225 = vst [vmem:[#allocation21_spill] sm:$0xff] %v20202_v48  ;;  %v5069_v24 = vcombine.high %v20202_v48, %v20189_v60  ;;  %v7943_v39 = vcombine.high %v7941_v15, %v7941_v15  ;;  %v7950_v49 = vrot.slane %v7934_v13, %v18124_v2  ;;  %v7964_v29 = vrot.slane %v7942_v41, %v18124_v2 }
 0x6cf   : > { %v20227_v8 = vrot.slane %v22227_v57, %v20120_v43  ;;  %v12692_v36 = vcombine.low %v12684_v10, %v12691_v53  ;;  %v20233_v58 = vrot.slane %v5049_v30, %v20120_v43  ;;  %v11230_v61 = vrot.slane %v22226_v35, %v18124_v2  ;;  %v20244_v35 = vpop.permute.xlu0 %5698 }
 0x6d0   : > { %5498 = vrot.lane.b32.xlu0 %v5069_v24, %s15133_s20  ;;  %v5248_v48 = vrot.slane %v5240_v32, %v19475_v11  ;;  %v7957_v60 = vrot.slane %v7941_v15, %v18124_v2  ;;  %v7971_v51 = vrot.slane %v7943_v39, %v18124_v2  ;;  %v5264_v50 = vrot.slane %v5256_v16, %v19475_v11  ;;  %v22230_v32 = vld [vmem:[#allocation43_spill] sm:$0xff]  ;;  %v22231_v39 = vld [vmem:[#allocation66_spill] sm:$0xff] }
 0x6d1   : > { %22228 = vst [vmem:[#allocation31_spill] sm:$0xff] %v20227_v8  ;;  %22229 = vst [vmem:[#allocation79_spill] sm:$0xff] %v20233_v58  ;;  %13063 = vperm.xlu1 %14852, %v12692_v36   ;;  %v9495_v10 = vcombine.low %v7950_v49, %v7964_v29  ;;  %v13644_v53 = vcombine.high %v7950_v49, %v7964_v29  ;;  %v5071_v13 = vcombine.high %v20227_v8, %v20233_v58 }
 0x6d2   : > { %v9497_v24 = vcombine.low %v7957_v60, %v7971_v51  ;;  %v13645_v30 = vcombine.high %v7957_v60, %v7971_v51  ;;  %v11365_v41 = vrot.slane %v11337_v37, %v18124_v2  ;;  %v12889_v57 = vcombine.low %v11344_v22, %v11358_v27  ;;  %v20257_v60 = vpop.permute.xlu1 %5713 }
 0x6d3   : > { %v20248_v15 = vmul.f32 %v22230_v32, %v22190_v33  ;;  %v20252_v16 = vmul.f32 %v22231_v39, %v22198_v0  ;;  %v9505_v29 = vrot.slane %v9495_v10, %v18124_v2  ;;  %v9512_v36 = vrot.slane %v13644_v53, %v18124_v2  ;;  %22232 = vst [vmem:[#allocation43_spill] sm:$0xff] %v20257_v60 }
 0x6d4   : > { %5506 = vrot.lane.b32.xlu0 %v5071_v13, %s15133_s20  ;;  %v11351_v37 = vrot.slane %v20149_v19, %v18124_v2  ;;  %v5304_v49 = vcombine.low %v5248_v48, %v5264_v50  ;;  %v9519_v51 = vrot.slane %v9497_v24, %v18124_v2  ;;  %v9526_v33 = vrot.slane %v13645_v30, %v18124_v2 }
 0x6d5   : > { %v11237_v32 = vrot.slane %v11223_v45, %v18124_v2  ;;  %v11238_v0 = vcombine.high %v11230_v61, %v11230_v61  ;;  %v9527_v39 = vcombine.low %v9505_v29, %v9512_v36  ;;  %v13706_v8 = vcombine.high %v11344_v22, %v11358_v27 }
 0x6d6   : > { %v9528_v10 = vcombine.low %v9519_v51, %v9526_v33  ;;  %v12891_v58 = vcombine.low %v11351_v37, %v11365_v41  ;;  %v13707_v53 = vcombine.high %v11351_v37, %v11365_v41  ;;  %v12899_v13 = vrot.slane %v12889_v57, %v18124_v2  ;;  %v20288_v37 = vpop.permute.xlu1 %9602 }
 0x6d7   : > { %v20266_v47 = vrot.slane %v11230_v61, %v18124_v2  ;;  %v9535_v19 = vrot.slane %v9527_v39, %v18124_v2  ;;  %v12906_v3 = vrot.slane %v13706_v8, %v18124_v2  ;;  %v22233_v24 = vcombine.low %v19661_v54, %v19611_v25  ;;  %v20282_v61 = vpop.permute.xlu0 %9593 }
 0x6d8   : > { %v9542_v22 = vrot.slane %v9528_v10, %v18124_v2  ;;  %v12913_v27 = vrot.slane %v12891_v58, %v18124_v2  ;;  %v12920_v30 = vrot.slane %v13707_v53, %v18124_v2  ;;  %v20280_v41 = vrot.slane %v5304_v49, %v20120_v43 }
 0x6d9   : > { %v20274_v45 = vrot.slane %v22233_v24, %v20120_v43  ;;  %v5257_v8 = vcombine.high %v19961_v9, %v20171_v31  ;;  %v5241_v57 = vcombine.high %v19988_v20, %v20180_v18  ;;  %v5305_v29 = vcombine.high %v5248_v48, %v5264_v50 }
 0x6da   : > { %22235 = vst [vmem:[#allocation94_spill] sm:$0xff] %v20280_v41  ;;  %v12921_v36 = vcombine.low %v12899_v13, %v12906_v3  ;;  %v9543_v51 = vcombine.low %v9535_v19, %v9542_v22  ;;  %v12922_v33 = vcombine.low %v12913_v27, %v12920_v30  ;;  %v7829_v49 = vcombine.high %v19199_v62, %v19199_v62 }
 0x6db   : > { %22234 = vst [vmem:[#allocation66_spill] sm:$0xff] %v20274_v45  ;;  %v5337_v58 = vcombine.high %v20274_v45, %v20280_v41  ;;  %v11239_v39 = vcombine.high %v11237_v32, %v11237_v32  ;;  %v11260_v10 = vrot.slane %v11238_v0, %v18124_v2  ;;  %v11272_v9 = vcombine.high %v19790_v12, %v19790_v12  ;;  %v20319_v27 = vpop.permute.xlu0 %13042  ;;  %v22262_v45 = vld [vmem:[#allocation27_spill] sm:$0xff] }
 0x6dc   : > { %v7836_v20 = vrot.slane %v19199_v62, %v18124_v2  ;;  %9638 = vperm.xlu1 %14852, %v9543_v51   ;;  %v12929_v3 = vrot.slane %v12921_v36, %v18124_v2  ;;  %v12936_v31 = vrot.slane %v12922_v33, %v18124_v2  ;;  %v7843_v18 = vrot.slane %v7829_v49, %v18124_v2 }
 0x6dd   : > { %5514 = vrot.lane.b32.xlu0 %v5337_v58, %s15133_s20  ;;  %v20304_v48 = vrot.slane %v5241_v57, %v19475_v11  ;;  %v22236_v0 = vcombine.high %v19661_v54, %v19611_v25  ;;  %v20313_v62 = vrot.slane %v5305_v29, %v20120_v43  ;;  %v11253_v13 = vrot.slane %v11237_v32, %v18124_v2  ;;  %v20327_v29 = vpop.permute.xlu1 %5703 }
 0x6de   : > { %v7844_v50 = vcombine.high %v7836_v20, %v7836_v20  ;;  %v20317_v19 = vrot.slane %v5257_v8, %v19475_v11  ;;  %v12937_v24 = vcombine.low %v12929_v3, %v12936_v31  ;;  %v7845_v22 = vcombine.high %v7843_v18, %v7843_v18  ;;  %22239 = vst [vmem:[#allocation97_spill] sm:$0xff] %v20327_v29  ;;  %v22287_v29 = vld [vmem:[#allocation36_spill] sm:$0xff] }
 0x6df   : > { %v20310_v53 = vrot.slane %v22236_v0, %v20120_v43  ;;  %22238 = vst [vmem:[#allocation96_spill] sm:$0xff] %v20313_v62  ;;  %v11279_v30 = vrot.slane %v19790_v12, %v18124_v2  ;;  %v7852_v57 = vrot.slane %v7836_v20, %v18124_v2  ;;  %v11286_v32 = vrot.slane %v11272_v9, %v18124_v2 }
 0x6e0   : > { %v7866_v25 = vrot.slane %v7844_v50, %v18124_v2  ;;  %13078 = vperm.xlu1 %14852, %v12937_v24   ;;  %v7859_v8 = vrot.slane %v7843_v18, %v18124_v2  ;;  %v7873_v36 = vrot.slane %v7845_v22, %v18124_v2  ;;  %v11267_v51 = vrot.slane %v11239_v39, %v18124_v2 }
 0x6e1   : > { %22237 = vst [vmem:[#allocation95_spill] sm:$0xff] %v20310_v53  ;;  %v5339_v54 = vcombine.high %v20310_v53, %v20313_v62  ;;  %v5320_v12 = vcombine.low %v20304_v48, %v20317_v19  ;;  %v12791_v49 = vcombine.low %v20266_v47, %v11260_v10  ;;  %v13702_v9 = vcombine.high %v20266_v47, %v11260_v10 }
 0x6e2   : > { %v9397_v33 = vcombine.low %v7852_v57, %v7866_v25  ;;  %v13640_v58 = vcombine.high %v7852_v57, %v7866_v25  ;;  %v9399_v20 = vcombine.low %v7859_v8, %v7873_v36  ;;  %v13641_v3 = vcombine.high %v7859_v8, %v7873_v36  ;;  %v20348_v36 = vpop.permute.xlu1 %9596 }
 0x6e3   : > { %5522 = vrot.lane.b32.xlu0 %v5339_v54, %s15133_s20  ;;  %v12793_v31 = vcombine.low %v11253_v13, %v11267_v51  ;;  %v11287_v50 = vcombine.high %v11279_v30, %v11279_v30  ;;  %v13703_v39 = vcombine.high %v11253_v13, %v11267_v51  ;;  %v11288_v24 = vcombine.high %v11286_v32, %v11286_v32  ;;  %v20343_v54 = vpop.permute.xlu0 %13036 }
 0x6e4   : > { %v9407_v18 = vrot.slane %v9397_v33, %v18124_v2  ;;  %v9414_v0 = vrot.slane %v13640_v58, %v18124_v2  ;;  %v9421_v22 = vrot.slane %v9399_v20, %v18124_v2  ;;  %v9428_v57 = vrot.slane %v13641_v3, %v18124_v2  ;;  %v22243_v3 = vld [vmem:[#allocation9_spill] sm:$0xff] }
 0x6e5   : > { %v12801_v25 = vrot.slane %v12791_v49, %v18124_v2  ;;  %v12808_v8 = vrot.slane %v13702_v9, %v18124_v2  ;;  %v12815_v47 = vrot.slane %v12793_v31, %v18124_v2  ;;  %v12822_v10 = vrot.slane %v13703_v39, %v18124_v2 }
 0x6e6   : > { %v9429_v53 = vcombine.low %v9407_v18, %v9414_v0  ;;  %v5800_v13 = vcombine.low %v19729_v44, %v20252_v16  ;;  %v9430_v51 = vcombine.low %v9421_v22, %v9428_v57  ;;  %v22240_v33 = vcombine.low %v19721_v59, %v19623_v63 }
 0x6e7   : > { %v20359_v49 = vrot.slane %v5320_v12, %v20120_v43  ;;  %v5816_v9 = vcombine.low %v22243_v3, %v20248_v15  ;;  %v11309_v31 = vrot.slane %v11287_v50, %v18124_v2  ;;  %v12824_v18 = vcombine.low %v12815_v47, %v12822_v10 }
 0x6e8   : > { %v20356_v58 = vrot.slane %v22240_v33, %v20120_v43  ;;  %v9437_v0 = vrot.slane %v9429_v53, %v18124_v2  ;;  %v9444_v39 = vrot.slane %v9430_v51, %v18124_v2  ;;  %v12823_v22 = vcombine.low %v12801_v25, %v12808_v8  ;;  %v20381_v8 = vpop.permute.xlu0 %4896 }
 0x6e9   : > { %22242 = vst [vmem:[#allocation99_spill] sm:$0xff] %v20359_v49  ;;  %v9660_v12 = vadd.s32 4294967272, %v19597_v56  ;;  %v11295_v33 = vrot.slane %v11279_v30, %v18124_v2  ;;  %v11302_v20 = vrot.slane %v11286_v32, %v18124_v2  ;;  %v11316_v62 = vrot.slane %v11288_v24, %v18124_v2 }
 0x6ea   : > { %22241 = vst [vmem:[#allocation98_spill] sm:$0xff] %v20356_v58  ;;  %v5341_v57 = vcombine.high %v20356_v58, %v20359_v49  ;;  %v5817_v50 = vcombine.high %v22243_v3, %v20248_v15  ;;  %v20377_v47 = vrot.slane %v5800_v13, %v19475_v11  ;;  %v9445_v53 = vcombine.low %v9437_v0, %v9444_v39  ;;  %v20384_v58 = vpop.permute.xlu1 %13045  ;;  %v22260_v49 = vld [vmem:[#allocation37_spill] sm:$0xff] }
 0x6eb   : > { %v12838_v25 = vrot.slane %v12824_v18, %v18124_v2  ;;  %v5824_v10 = vrot.slane %v5816_v9, %v19475_v11  ;;  %v12840_v30 = vcombine.low %v11295_v33, %v11309_v31  ;;  %v13704_v51 = vcombine.high %v11295_v33, %v11309_v31 }
 0x6ec   : > { %5530 = vrot.lane.b32.xlu0 %v5341_v57, %s15133_s20  ;;  %v12842_v32 = vcombine.low %v11302_v20, %v11316_v62  ;;  %v9681_v24 = vadd.s32 4294967248, %v19597_v56  ;;  %v5801_v15 = vcombine.high %v19729_v44, %v20252_v16  ;;  %v5321_v13 = vcombine.high %v20304_v48, %v20317_v19  ;;  %9632 = vperm.xlu1 %14852, %v9445_v53   ;;  %v22244_v57 = vld [vmem:[#allocation24_spill] sm:$0xff] }
 0x6ed   : > { %v12831_v3 = vrot.slane %v12823_v22, %v18124_v2  ;;  %v13705_v18 = vcombine.high %v11302_v20, %v11316_v62  ;;  %v12850_v0 = vrot.slane %v12840_v30, %v18124_v2  ;;  %v12857_v9 = vrot.slane %v13704_v51, %v18124_v2  ;;  %v22246_v62 = vld [vmem:[#allocation18_spill] sm:$0xff] }
 0x6ee   : > { %v12864_v31 = vrot.slane %v12842_v32, %v18124_v2  ;;  %v5747_v33 = vmul.f32 %v22244_v57, %v22196_v55  ;;  %v5864_v44 = vcombine.low %v20377_v47, %v5824_v10  ;;  %v20401_v48 = vsub.s32 %v9660_v12, %v22134_v52 }
 0x6ef   : > { %v12839_v16 = vcombine.low %v12831_v3, %v12838_v25  ;;  %v5749_v19 = vmul.f32 %v22246_v62, %v22222_v38  ;;  %v12871_v20 = vrot.slane %v13705_v18, %v18124_v2  ;;  %v12872_v22 = vcombine.low %v12850_v0, %v12857_v9  ;;  %v20421_v38 = vpop.permute.xlu0 %4886  ;;  %v20430_v0 = vpop.permute.xlu1 %13039  ;;  %v22256_v62 = vld [vmem:[#allocation73_spill] sm:$0xff] }
 0x6f0   : > { %22245 = vst [vmem:[#allocation9_spill] sm:$0xff] %v20401_v48  ;;  %v20407_v53 = vrot.slane %v5817_v50, %v19475_v11  ;;  %v20410_v30 = vrot.slane %v5801_v15, %v19475_v11  ;;  %v22247_v55 = vcombine.high %v19721_v59, %v19623_v63  ;;  %v20419_v12 = vrot.slane %v5321_v13, %v20120_v43  ;;  %v22251_v50 = vld [vmem:[#allocation65_spill] sm:$0xff]  ;;  %v22252_v15 = vld [vmem:[#allocation72_spill] sm:$0xff] }
 0x6f1   : > { %13072 = vperm.xlu1 %14852, %v12839_v16   ;;  %v20424_v51 = vsub.s32 %v9681_v24, %v22134_v52  ;;  %v5745_v32 = vmul.f32 %v22251_v50, %v22202_v4  ;;  %v5751_v3 = vmul.f32 %v22252_v15, %v22220_v34  ;;  %v12873_v18 = vcombine.low %v12864_v31, %v12871_v20 }
 0x6f2   : > { %v20416_v25 = vrot.slane %v22247_v55, %v20120_v43  ;;  %22249 = vst [vmem:[#allocation18_spill] sm:$0xff] %v20419_v12  ;;  %v5865_v63 = vcombine.high %v20377_v47, %v5824_v10  ;;  %v9646_v59 = vadd.s32 4294967288, %v19597_v56  ;;  %v20437_v9 = vrot.slane %v5864_v44, %v20120_v43  ;;  %v22254_v10 = vld [vmem:[#allocation45_spill] sm:$0xff] }
 0x6f3   : > { %22250 = vst [vmem:[#allocation100_spill] sm:$0xff] %v20424_v51  ;;  %v9667_v24 = vadd.s32 4294967264, %v19597_v56  ;;  %v6072_v57 = vcombine.low %v5745_v32, %v5749_v19  ;;  %v12880_v4 = vrot.slane %v12872_v22, %v18124_v2  ;;  %v12887_v34 = vrot.slane %v12873_v18, %v18124_v2  ;;  %v22255_v44 = vld [vmem:[#allocation69_spill] sm:$0xff]  ;;  %v20464_v21 = vpop.permute.xlu0 %5728 }
 0x6f4   : > { %22248 = vst [vmem:[#allocation24_spill] sm:$0xff] %v20416_v25  ;;  %v5343_v13 = vcombine.high %v20416_v25, %v20419_v12  ;;  %22253 = vst [vmem:[#allocation65_spill] sm:$0xff] %v20437_v9  ;;  %v5880_v31 = vcombine.low %v20410_v30, %v20407_v53  ;;  %v5881_v47 = vcombine.high %v20410_v30, %v20407_v53  ;;  %v22261_v53 = vld [vmem:[#allocation71_spill] sm:$0xff] }
 0x6f5   : > { %v4924_v16 = vmul.f32 %v19853_v5, %v22254_v10  ;;  %v22257_v20 = vcombine.low %v22255_v44, %v22256_v62  ;;  %v6088_v22 = vcombine.low %v5747_v33, %v5751_v3  ;;  %v6089_v50 = vcombine.high %v5747_v33, %v5751_v3  ;;  %v22263_v5 = vld [vmem:[#allocation23_spill] sm:$0xff]  ;;  %22264 = vst [vmem:[#allocation69_spill] sm:$0xff] %v20464_v21  ;;  %v20476_v3 = vpop.permute.xlu1 %4901 }
 0x6f6   : > { %5538 = vrot.lane.b32.xlu0 %v5343_v13, %s15133_s20  ;;  %v6073_v15 = vcombine.high %v5745_v32, %v5749_v19  ;;  %v12888_v18 = vcombine.low %v12880_v4, %v12887_v34  ;;  %v20456_v39 = vsub.s32 %v9646_v59, %v22134_v52  ;;  %v4920_v30 = vmul.f32 %v22261_v53, %v22260_v49  ;;  %v22267_v59 = vld [vmem:[#allocation13_spill] sm:$0xff]  ;;  %v22268_v4 = vld [vmem:[#allocation8_spill] sm:$0xff]  ;;  %v22269_v53 = vld [vmem:[#allocation22_spill] sm:$0xff] }
 0x6f7   : > { %v20453_v55 = vrot.slane %v22257_v20, %v20120_v43  ;;  %v4926_v41 = vmul.f32 %v22263_v5, %v22262_v45  ;;  %v20467_v20 = vsub.s32 %v9667_v24, %v22134_v52  ;;  %v9688_v33 = vadd.s32 4294967240, %v19597_v56  ;;  %v20523_v25 = vpop.permute.xlu0 %9611 }
 0x6f8   : > { %22259 = vst [vmem:[#allocation45_spill] sm:$0xff] %v20456_v39  ;;  %v20471_v19 = vrot.slane %v6072_v57, %v19475_v11  ;;  %13075 = vperm.xlu1 %14852, %v12888_v18   ;;  %v20474_v32 = vrot.slane %v5865_v63, %v20120_v43  ;;  %v4922_v34 = vmul.f32 %v22268_v4, %v22267_v59  ;;  %22281 = vst [vmem:[#allocation8_spill] sm:$0xff] %v20523_v25 }
 0x6f9   : > { %22258 = vst [vmem:[#allocation72_spill] sm:$0xff] %v20453_v55  ;;  %v5897_v13 = vcombine.high %v20453_v55, %v20437_v9  ;;  %22265 = vst [vmem:[#allocation73_spill] sm:$0xff] %v20467_v20  ;;  %v5754_v5 = vmul.f32 %v22269_v53, %v22267_v59  ;;  %v5072_v23 = vcombine.low %v4920_v30, %v4924_v16  ;;  %v22272_v53 = vld [vmem:[#allocation11_spill] sm:$0xff] }
 0x6fa   : > { %22266 = vst [vmem:[#allocation37_spill] sm:$0xff] %v20474_v32  ;;  %v22270_v24 = vcombine.high %v22255_v44, %v22256_v62  ;;  %v20490_v63 = vrot.slane %v6088_v22, %v19475_v11  ;;  %v20493_v18 = vrot.slane %v6089_v50, %v19475_v11  ;;  %v20496_v4 = vrot.slane %v6073_v15, %v19475_v11 }
 0x6fb   : > { %6314 = vrot.lane.b32.xlu0 %v5897_v13, %s15133_s20  ;;  %v5073_v55 = vcombine.high %v4920_v30, %v4924_v16  ;;  %v5088_v59 = vcombine.low %v4922_v34, %v4926_v41  ;;  %v5756_v13 = vmul.f32 %v22272_v53, %v22254_v10  ;;  %v20503_v44 = vrot.slane %v5880_v31, %v20120_v43  ;;  %v22275_v16 = vld [vmem:[#allocation51_spill] sm:$0xff]  ;;  %v22277_v31 = vld [vmem:[#allocation70_spill] sm:$0xff] }
 0x6fc   : > { %v20487_v57 = vrot.slane %v22270_v24, %v20120_v43  ;;  %v20506_v62 = vsub.s32 %v9688_v33, %v22134_v52  ;;  %v6136_v22 = vcombine.low %v20471_v19, %v20490_v63  ;;  %v9674_v50 = vadd.s32 4294967256, %v19597_v56  ;;  %v22276_v24 = vld [vmem:[#allocation54_spill] sm:$0xff] }
 0x6fd   : > { %22273 = vst [vmem:[#allocation27_spill] sm:$0xff] %v20503_v44  ;;  %v5089_v15 = vcombine.high %v4922_v34, %v4926_v41  ;;  %v5752_v30 = vmul.f32 %v22275_v16, %v22260_v49  ;;  %v5080_v10 = vrot.slane %v5072_v23, %v19475_v11  ;;  %v5758_v53 = vmul.f32 %v22276_v24, %v22262_v45  ;;  %v22278_v33 = vld [vmem:[#allocation74_spill] sm:$0xff]  ;;  %v20531_v34 = vpop.permute.xlu1 %4891 }
 0x6fe   : > { %22271 = vst [vmem:[#allocation71_spill] sm:$0xff] %v20487_v57  ;;  %v5899_v9 = vcombine.high %v20487_v57, %v20474_v32  ;;  %22274 = vst [vmem:[#allocation23_spill] sm:$0xff] %v20506_v62  ;;  %v22279_v57 = vcombine.low %v22277_v31, %v22278_v33  ;;  %v6137_v41 = vcombine.high %v20471_v19, %v20490_v63  ;;  %v9695_v23 = vadd.s32 4294967232, %v19597_v56 }
 0x6ff   : > { %v6152_v49 = vcombine.low %v20496_v4, %v20493_v18  ;;  %v5087_v45 = vrot.slane %v5073_v55, %v19475_v11  ;;  %v5904_v16 = vcombine.low %v5752_v30, %v5756_v13  ;;  %v20537_v24 = vrot.slane %v5881_v47, %v20120_v43 }
 0x700   : > { %6322 = vrot.lane.b32.xlu0 %v5899_v9, %s15133_s20  ;;  %v20521_v32 = vrot.slane %v22279_v57, %v20120_v43  ;;  %v5096_v9 = vrot.slane %v5088_v59, %v19475_v11  ;;  %v20542_v63 = vsub.s32 %v9674_v50, %v22134_v52  ;;  %v5103_v56 = vrot.slane %v5089_v15, %v19475_v11  ;;  %v22288_v15 = vld [vmem:[#allocation35_spill] sm:$0xff] }
 0x701   : > { %22282 = vst [vmem:[#allocation22_spill] sm:$0xff] %v20537_v24  ;;  %v5905_v55 = vcombine.high %v5752_v30, %v5756_v13  ;;  %v5920_v62 = vcombine.low %v5754_v5, %v5758_v53  ;;  %v22284_v59 = vcombine.high %v22277_v31, %v22278_v33  ;;  %v20557_v13 = vmul.f32 %v22288_v15, %v22287_v29  ;;  %v20567_v33 = vpop.permute.xlu0 %5718  ;;  %v20584_v15 = vpop.permute.xlu1 %5733 }
 0x702   : > { %22280 = vst [vmem:[#allocation13_spill] sm:$0xff] %v20521_v32  ;;  %v5901_v57 = vcombine.high %v20521_v32, %v20503_v44  ;;  %22283 = vst [vmem:[#allocation11_spill] sm:$0xff] %v20542_v63  ;;  %v5136_v12 = vcombine.low %v5080_v10, %v5096_v9  ;;  %v5137_v60 = vcombine.high %v5080_v10, %v5096_v9  ;;  %v22292_v9 = vld [vmem:[#allocation47_spill] sm:$0xff] }
 0x703   : > { %v20550_v47 = vrot.slane %v22284_v59, %v20120_v43  ;;  %v20553_v32 = vsub.s32 %v9695_v23, %v22134_v52  ;;  %v5152_v19 = vcombine.low %v5087_v45, %v5103_v56  ;;  %v5153_v50 = vcombine.high %v5087_v45, %v5103_v56  ;;  %22290 = vst [vmem:[#allocation74_spill] sm:$0xff] %v20567_v33  ;;  %v22291_v23 = vld [vmem:[#allocation12_spill] sm:$0xff]  ;;  %v22293_v56 = vld [vmem:[#allocation63_spill] sm:$0xff] }
 0x704   : > { %6330 = vrot.lane.b32.xlu0 %v5901_v57, %s15133_s20  ;;  %v5921_v44 = vcombine.high %v5754_v5, %v5758_v53  ;;  %v20560_v30 = vrot.slane %v5904_v16, %v19475_v11  ;;  %v20565_v31 = vrot.slane %v6136_v22, %v20120_v43  ;;  %v20571_v57 = vmul.f32 %v22292_v9, %v22291_v23  ;;  %v22294_v45 = vld [vmem:[#allocation44_spill] sm:$0xff]  ;;  %v22295_v16 = vld [vmem:[#allocation7_spill] sm:$0xff] }
 0x705   : > { %22285 = vst [vmem:[#allocation51_spill] sm:$0xff] %v20550_v47  ;;  %22286 = vst [vmem:[#allocation54_spill] sm:$0xff] %v20553_v32  ;;  %v5903_v10 = vcombine.high %v20550_v47, %v20537_v24  ;;  %v20575_v5 = vmul.f32 %v22293_v56, %v22287_v29  ;;  %v20578_v53 = vrot.slane %v5905_v55, %v19475_v11  ;;  %v22297_v29 = vld [vmem:[#allocation84_spill] sm:$0xff]  ;;  %v22298_v55 = vld [vmem:[#allocation83_spill] sm:$0xff] }
 0x706   : > { %22289 = vst [vmem:[#allocation70_spill] sm:$0xff] %v20565_v31  ;;  %v20582_v59 = vmul.f32 %v22295_v16, %v22294_v45  ;;  %22296 = vst [vmem:[#allocation36_spill] sm:$0xff] %v20584_v15  ;;  %v20587_v22 = vrot.slane %v5136_v12, %v20120_v43  ;;  %v20590_v52 = vrot.slane %v5137_v60, %v20120_v43  ;;  %v22303_v24 = vld [vmem:[#allocation26_spill] sm:$0xff] }
 0x707   : > { %v20593_v9 = vrot.slane %v5920_v62, %v19475_v11  ;;  %v22299_v56 = vcombine.low %v22297_v29, %v22298_v55  ;;  %v20603_v16 = vrot.slane %v5152_v19, %v20120_v43  ;;  %v20606_v12 = vrot.slane %v5153_v50, %v20120_v43  ;;  %v22304_v62 = vld [vmem:[#allocation6_spill] sm:$0xff] }
 0x708   : > { %6338 = vrot.lane.b32.xlu0 %v5903_v10, %s15133_s20  ;;  %v20609_v60 = vrot.slane %v5921_v44, %v19475_v11  ;;  %v20613_v32 = vmul.f32 %v22304_v62, %v22303_v24  ;;  %v22305_v10 = vld [vmem:[#allocation62_spill] sm:$0xff]  ;;  %v20624_v50 = vrot.slane %v6137_v41, %v20120_v43  ;;  %v22307_v41 = vcombine.high %v22297_v29, %v22298_v55  ;;  %v22311_v62 = vld [vmem:[#allocation25_spill] sm:$0xff]  ;;  %v22313_v55 = vld [vmem:[#allocation48_spill] sm:$0xff] }
 0x709   : > { %v20600_v47 = vrot.slane %v22299_v56, %v20120_v43  ;;  %22301 = vst [vmem:[#allocation12_spill] sm:$0xff] %v20603_v16  ;;  %22302 = vst [vmem:[#allocation47_spill] sm:$0xff] %v20606_v12  ;;  %v20617_v15 = vmul.f32 %v22305_v10, %v22291_v23  ;;  %v5968_v56 = vcombine.low %v20560_v30, %v20593_v9  ;;  %v22312_v12 = vld [vmem:[#allocation56_spill] sm:$0xff] }
 0x70a   : > { %22306 = vst [vmem:[#allocation63_spill] sm:$0xff] %v20624_v50  ;;  %v5969_v44 = vcombine.high %v20560_v30, %v20593_v9  ;;  %v5360_v23 = vcombine.low %v20557_v13, %v20582_v59  ;;  %v5361_v10 = vcombine.high %v20557_v13, %v20582_v59  ;;  %v12154_v25 = vcombine.low %v22312_v12, %v22311_v62  ;;  %v20649_v13 = vpop.permute.xlu0 %9605 }
 0x70b   : > { %22300 = vst [vmem:[#allocation35_spill] sm:$0xff] %v20600_v47  ;;  %v6169_v19 = vcombine.high %v20600_v47, %v20565_v31  ;;  %v20639_v47 = vrot.slane %v22307_v41, %v20120_v43  ;;  %v22309_v31 = vld [vmem:[#allocation10_spill] sm:$0xff]  ;;  %v13676_v51 = vcombine.high %v22312_v12, %v22311_v62  ;;  %v5344_v59 = vcombine.low %v20571_v57, %v20613_v32  ;;  %v22314_v41 = vld [vmem:[#allocation33_spill] sm:$0xff] }
 0x70c   : > { %v22310_v30 = vcombine.high %v22309_v31, %v22309_v31  ;;  %v5345_v29 = vcombine.high %v20571_v57, %v20613_v32  ;;  %v4928_v31 = vmul.f32 %v20117_v7, %v22314_v41  ;;  %v20664_v12 = vrot.slane %v6152_v49, %v20120_v43  ;;  %v22317_v62 = vld [vmem:[#allocation42_spill] sm:$0xff]  ;;  %v22320_v57 = vld [vmem:[#allocation59_spill] sm:$0xff] }
 0x70d   : > { %6346 = vrot.lane.b32.xlu0 %v6169_v19, %s15133_s20  ;;  %22308 = vst [vmem:[#allocation44_spill] sm:$0xff] %v20639_v47  ;;  %v4930_v19 = vmul.f32 %v20091_v40, %v22313_v55  ;;  %v6171_v6 = vcombine.high %v20639_v47, %v20624_v50  ;;  %v22318_v32 = vcombine.low %v19820_v28, %v19806_v1  ;;  %v22321_v55 = vld [vmem:[#allocation41_spill] sm:$0xff]  ;;  %v22322_v50 = vld [vmem:[#allocation46_spill] sm:$0xff] }
 0x70e   : > { %v10630_v9 = vrot.slane %v22310_v30, %v18124_v2  ;;  %v20659_v30 = vpop.permute.xlu1 %9614  ;;  %22316 = vst [vmem:[#allocation84_spill] sm:$0xff] %v20664_v12  ;;  %v12164_v7 = vrot.slane %v12154_v25, %v18124_v2  ;;  %v4932_v47 = vmul.f32 %v20421_v38, %v22321_v55  ;;  %v12171_v49 = vrot.slane %v13676_v51, %v18124_v2 }
 0x70f   : > { %22315 = vst [vmem:[#allocation7_spill] sm:$0xff] %v20659_v30  ;;  %v20672_v40 = vrot.slane %v22318_v32, %v20120_v43  ;;  %v4934_v30 = vmul.f32 %v20381_v8, %v22320_v57  ;;  %v13169_v32 = vrot.slane %v20430_v0, %v20456_v39  ;;  %v20687_v25 = vmul.f32 %v20041_v26, %v22294_v45  ;;  %v22324_v0 = vld [vmem:[#allocation82_spill] sm:$0xff]  ;;  %v20701_v26 = vpop.permute.xlu0 %13054 }
 0x710   : > { %v12156_v63 = vcombine.low %v22317_v62, %v10630_v9  ;;  %v13677_v16 = vcombine.high %v22317_v62, %v10630_v9  ;;  %v13165_v8 = vrot.slane %v20343_v54, %v22322_v50  ;;  %v5104_v38 = vcombine.low %v4928_v31, %v4932_v47 }
 0x711   : > { %22319 = vst [vmem:[#allocation83_spill] sm:$0xff] %v20672_v40  ;;  %6354 = vrot.lane.b32.xlu0 %v6171_v6, %s15133_s20  ;;  %v5120_v21 = vcombine.low %v4930_v19, %v4934_v30  ;;  %v6173_v6 = vcombine.high %v20672_v40, %v20664_v12  ;;  %v22323_v51 = vcombine.high %v20496_v4, %v20493_v18 }
 0x712   : > { %v12178_v9 = vrot.slane %v12156_v63, %v18124_v2  ;;  %v12185_v62 = vrot.slane %v13677_v16, %v18124_v2  ;;  %v13174_v57 = vrot.slane %v20319_v27, %v22324_v0  ;;  %v5105_v54 = vcombine.high %v4928_v31, %v4932_v47  ;;  %v20706_v40 = vpop.permute.xlu1 %5723 }
 0x713   : > { %v20697_v63 = vrot.slane %v22323_v51, %v20120_v43  ;;  %v5128_v45 = vrot.slane %v5120_v21, %v19475_v11  ;;  %v5112_v33 = vrot.slane %v5104_v38, %v19475_v11  ;;  %v13170_v55 = vsel %vm9651_vm4, %v13169_v32, %v13165_v8  ;;  %v22329_v38 = vld [vmem:[#allocation49_spill] sm:$0xff] }
 0x714   : > { %v12187_v16 = vcombine.low %v12178_v9, %v12185_v62  ;;  %v5352_v12 = vrot.slane %v5344_v59, %v19475_v11  ;;  %v22325_v18 = vcombine.high %v19820_v28, %v19806_v1  ;;  %v12186_v4 = vcombine.low %v12164_v7, %v12171_v49 }
 0x715   : > { %6362 = vrot.lane.b32.xlu0 %v6173_v6, %s15133_s20  ;;  %v20717_v21 = vsel %vm9658_vm5, %v13174_v57, %v13170_v55  ;;  %v20720_v47 = vrot.slane %v5968_v56, %v20120_v43  ;;  %v5985_v31 = vcombine.high %v20578_v53, %v20609_v60  ;;  %v5121_v9 = vcombine.high %v4930_v19, %v4934_v30  ;;  %v22330_v6 = vld [vmem:[#allocation40_spill] sm:$0xff] }
 0x716   : > { %v20714_v27 = vrot.slane %v22325_v18, %v20120_v43  ;;  %v5168_v59 = vcombine.low %v5112_v33, %v5128_v45  ;;  %v5368_v62 = vrot.slane %v5360_v23, %v19475_v11  ;;  %v12201_v1 = vrot.slane %v12187_v16, %v18124_v2  ;;  %v20760_v16 = vpop.permute.xlu1 %9608 }
 0x717   : > { %22326 = vst [vmem:[#allocation26_spill] sm:$0xff] %v20720_v47  ;;  %v5169_v28 = vcombine.high %v5112_v33, %v5128_v45  ;;  %v20729_v7 = vrot.slane %v5969_v44, %v20120_v43  ;;  %v20732_v55 = vrot.slane %v5361_v10, %v19475_v11  ;;  %v5119_v56 = vrot.slane %v5105_v54, %v19475_v11  ;;  %v20745_v44 = vpop.permute.xlu0 %13048  ;;  %v22328_v10 = vld [vmem:[#allocation28_spill] sm:$0xff] }
 0x718   : > { %v6175_v32 = vcombine.high %v20714_v27, %v20697_v63  ;;  %v20736_v57 = vrot.slane %v5168_v59, %v20120_v43  ;;  %v20739_v19 = vrot.slane %v5345_v29, %v19475_v11  ;;  %v5408_v23 = vcombine.low %v5352_v12, %v5368_v62 }
 0x719   : > { %22327 = vst [vmem:[#allocation6_spill] sm:$0xff] %v20729_v7  ;;  %v6192_v30 = vcombine.low %v20575_v5, %v20687_v25  ;;  %v12194_v33 = vrot.slane %v12186_v4, %v18124_v2  ;;  %v20749_v49 = vmul.f32 %v20218_v14, %v22328_v10  ;;  %v5135_v8 = vrot.slane %v5121_v9, %v19475_v11 }
 0x71a   : > { %6370 = vrot.lane.b32.xlu0 %v6175_v32, %s15133_s20  ;;  %v20754_v29 = vmul.f32 %v20476_v3, %v22329_v38  ;;  %v20758_v51 = vmul.f32 %v20531_v34, %v22330_v6  ;;  %v9758_v54 = vrot.slane %v20348_v36, %v20456_v39  ;;  %v20765_v18 = vrot.slane %v5169_v28, %v20120_v43  ;;  %v22331_v3 = vld [vmem:[#allocation32_spill] sm:$0xff] }
 0x71b   : > { %v12202_v45 = vcombine.low %v12194_v33, %v12201_v1  ;;  %v5201_v14 = vcombine.high %v20587_v22, %v20736_v57  ;;  %v5409_v4 = vcombine.high %v5352_v12, %v5368_v62  ;;  %v20771_v9 = vmul.f32 %v20176_v46, %v22331_v3 }
 0x71c   : > { %v5184_v34 = vcombine.low %v5119_v56, %v5135_v8  ;;  %v5376_v59 = vcombine.low %v20749_v49, %v20758_v51  ;;  %v5424_v36 = vcombine.low %v20739_v19, %v20732_v55  ;;  %v20779_v32 = vmul.f32 %v20095_v17, %v22303_v24  ;;  %v20813_v17 = vpop.permute.xlu1 %13057 }
 0x71d   : > { %v9754_v1 = vrot.slane %v20282_v61, %v22322_v50  ;;  %5484 = vrot.lane.b32.xlu1 %v5201_v14, %s15133_s20  ;;  %v22332_v46 = vcombine.low %v20578_v53, %v20609_v60  ;;  %v20791_v62 = vrot.slane %v5985_v31, %v20120_v43  ;;  %v5392_v24 = vcombine.low %v20771_v9, %v20754_v29  ;;  %v20805_v31 = vpop.permute.xlu0 %9623 }
 0x71e   : > { %13033 = vperm.xlu0 %14853, %v12202_v45   ;;  %v20800_v28 = vrot.slane %v6192_v30, %v19475_v11  ;;  %v5203_v60 = vcombine.high %v20590_v52, %v20765_v18  ;;  %22335 = vst [vmem:[#allocation25_spill] sm:$0xff] %v20805_v31  ;;  %v9763_v33 = vrot.slane %v20212_v42, %v22324_v0  ;;  %v22338_v42 = vld [vmem:[#allocation74_spill] sm:$0xff]  ;;  %v22346_v0 = vld [vmem:[#allocation100_spill] sm:$0xff] }
 0x71f   : > { %v20788_v12 = vrot.slane %v22332_v46, %v20120_v43  ;;  %22334 = vst [vmem:[#allocation10_spill] sm:$0xff] %v20791_v62  ;;  %v9759_v53 = vsel %vm9651_vm4, %v9758_v54, %v9754_v1  ;;  %v5185_v45 = vcombine.high %v5119_v56, %v5135_v8  ;;  %v20810_v14 = vrot.slane %v5184_v34, %v20120_v43 }
 0x720   : > { %v5384_v46 = vrot.slane %v5376_v59, %v19475_v11  ;;  %v20816_v30 = vrot.slane %v5408_v23, %v20120_v43  ;;  %v20819_v54 = vrot.slane %v5409_v4, %v20120_v43  ;;  %v20822_v1 = vrot.slane %v5424_v36, %v20120_v43 }
 0x721   : > { %22333 = vst [vmem:[#allocation62_spill] sm:$0xff] %v20788_v12  ;;  %5492 = vrot.lane.b32.xlu1 %v5203_v60, %s15133_s20  ;;  %v5760_v56 = vmul.f32 %v20244_v35, %v22314_v41  ;;  %v9764_v8 = vsel %vm9658_vm5, %v9763_v33, %v9759_v53  ;;  %v5400_v34 = vrot.slane %v5392_v24, %v19475_v11  ;;  %v22337_v60 = vld [vmem:[#allocation41_spill] sm:$0xff]  ;;  %v22339_v41 = vld [vmem:[#allocation59_spill] sm:$0xff] }
 0x722   : > { %22336 = vst [vmem:[#allocation56_spill] sm:$0xff] %v20822_v1  ;;  %v9773_v23 = vrot.slane %v20649_v13, %v20467_v20  ;;  %v9768_v4 = vrot.slane %v20288_v37, %v20401_v48  ;;  %v13179_v59 = vrot.slane %v20384_v58, %v20401_v48  ;;  %v5377_v36 = vcombine.high %v20749_v49, %v20758_v51  ;;  %v22340_v24 = vld [vmem:[#allocation69_spill] sm:$0xff]  ;;  %v22341_v13 = vld [vmem:[#allocation12_spill] sm:$0xff]  ;;  %v22342_v51 = vld [vmem:[#allocation11_spill] sm:$0xff] }
 0x723   : > { %v5764_v61 = vmul.f32 %v22338_v42, %v22337_v60  ;;  %v20842_v35 = vrot.slane %v5185_v45, %v20120_v43  ;;  %v5766_v53 = vmul.f32 %v22340_v24, %v22339_v41  ;;  %v5440_v33 = vcombine.low %v5384_v46, %v5400_v34  ;;  %v20855_v42 = vpop.permute.xlu0 %9617  ;;  %v22344_v60 = vld [vmem:[#allocation48_spill] sm:$0xff]  ;;  %v22345_v41 = vld [vmem:[#allocation93_spill] sm:$0xff] }
 0x724   : > { %v5205_v31 = vcombine.high %v22341_v13, %v20810_v14  ;;  %v9769_v37 = vsel %vm9665_vm6, %v9768_v4, %v9764_v8  ;;  %v13180_v58 = vsel %vm9665_vm6, %v13179_v59, %v20717_v21  ;;  %v13184_v49 = vrot.slane %v20745_v44, %v20467_v20  ;;  %22343 = vst [vmem:[#allocation33_spill] sm:$0xff] %v20855_v42  ;;  %v22347_v8 = vld [vmem:[#allocation8_spill] sm:$0xff]  ;;  %v13052_v44 = vpop.permute.xlu1 %13051 }
 0x725   : > { %v9778_v45 = vrot.slane %v20760_v16, %v22342_v51  ;;  %v5762_v24 = vmul.f32 %v22345_v41, %v22344_v60  ;;  %v5393_v48 = vcombine.high %v20771_v9, %v20754_v29  ;;  %v9783_v4 = vrot.slane %v22347_v8, %v22346_v0  ;;  %v22348_v29 = vld [vmem:[#allocation47_spill] sm:$0xff] }
 0x726   : > { %v9774_v21 = vsel %vm9672_vm7, %v9773_v23, %v9769_v37  ;;  %5500 = vrot.lane.b32.xlu1 %v5205_v31, %s15133_s20  ;;  %v5391_v59 = vrot.slane %v5377_v36, %v19475_v11  ;;  %v5936_v16 = vcombine.low %v5760_v56, %v5764_v61  ;;  %v13185_v42 = vsel %vm9672_vm7, %v13184_v49, %v13180_v58  ;;  %v22350_v31 = vld [vmem:[#allocation97_spill] sm:$0xff] }
 0x727   : > { %v9779_v20 = vsel %vm9679_vm8, %v9778_v45, %v9774_v21  ;;  %v5441_v50 = vcombine.high %v5384_v46, %v5400_v34  ;;  %v20869_v60 = vrot.slane %v5440_v33, %v20120_v43  ;;  %v5207_v9 = vcombine.high %v22348_v29, %v20842_v35  ;;  %v22351_v34 = vld [vmem:[#allocation36_spill] sm:$0xff] }
 0x728   : > { %v20874_v41 = vsel %vm9686_vm9, %v9783_v4, %v9779_v20  ;;  %v20878_v23 = vmul.f32 %v22350_v31, %v22328_v10  ;;  %v5952_v36 = vcombine.low %v5762_v24, %v5766_v53  ;;  %v5937_v37 = vcombine.high %v5760_v56, %v5764_v61  ;;  %v13061_v20 = vpop.permute.xlu0 %13060  ;;  %v22355_v4 = vld [vmem:[#allocation43_spill] sm:$0xff] }
 0x729   : > { %22349 = vst [vmem:[#allocation42_spill] sm:$0xff] %v20874_v41  ;;  %v13189_v58 = vrot.slane %v13052_v44, %v22342_v51  ;;  %v5953_v49 = vcombine.high %v5762_v24, %v5766_v53  ;;  %v5407_v46 = vrot.slane %v5393_v48, %v19475_v11  ;;  %v20884_v33 = vmul.f32 %v22351_v34, %v22329_v38  ;;  %v22352_v53 = vld [vmem:[#allocation54_spill] sm:$0xff] }
 0x72a   : > { %v20888_v45 = vmul.f32 %v20706_v40, %v22330_v6  ;;  %5508 = vrot.lane.b32.xlu1 %v5207_v9, %s15133_s20  ;;  %v5944_v10 = vrot.slane %v5936_v16, %v19475_v11  ;;  %v13194_v61 = vrot.slane %v20701_v26, %v22346_v0  ;;  %v13204_v48 = vrot.slane %v13061_v20, %v22352_v53  ;;  %v22354_v6 = vld [vmem:[#allocation23_spill] sm:$0xff] }
 0x72b   : > { %v13190_v56 = vsel %vm9679_vm8, %v13189_v58, %v13185_v42  ;;  %v20897_v24 = vrot.slane %v5441_v50, %v20120_v43  ;;  %v5456_v38 = vcombine.low %v5391_v59, %v5407_v46  ;;  %v5473_v40 = vcombine.high %v20816_v30, %v20869_v60 }
 0x72c   : > { %v13199_v8 = vrot.slane %v20813_v17, %v22354_v6  ;;  %v20905_v21 = vmul.f32 %v22355_v4, %v22331_v3  ;;  %v5960_v26 = vrot.slane %v5952_v36, %v19475_v11  ;;  %v5951_v42 = vrot.slane %v5937_v37, %v19475_v11  ;;  %v22373_v4 = vld [vmem:[#allocation35_spill] sm:$0xff] }
 0x72d   : > { %22353 = vst [vmem:[#allocation28_spill] sm:$0xff] %v20897_v24  ;;  %v13195_v44 = vsel %vm9686_vm9, %v13194_v61, %v13190_v56  ;;  %v22356_v50 = vcombine.high %v20739_v19, %v20732_v55  ;;  %v5967_v9 = vrot.slane %v5953_v49, %v19475_v11  ;;  %v6208_v17 = vcombine.low %v20878_v23, %v20888_v45  ;;  %v22360_v56 = vld [vmem:[#allocation18_spill] sm:$0xff] }
 0x72e   : > { %5516 = vrot.lane.b32.xlu1 %v5473_v40, %s15133_s20  ;;  %v13200_v3 = vsel %vm9693_vm10, %v13199_v8, %v13195_v44  ;;  %v5457_v31 = vcombine.high %v5391_v59, %v5407_v46  ;;  %v6000_v36 = vcombine.low %v5944_v10, %v5960_v26  ;;  %v6224_v37 = vcombine.low %v20905_v21, %v20884_v33  ;;  %v22363_v44 = vld [vmem:[#allocation72_spill] sm:$0xff] }
 0x72f   : > { %v20914_v16 = vrot.slane %v22356_v50, %v20120_v43  ;;  %v20924_v58 = vsel %vm9700_vm11, %v13204_v48, %v13200_v3  ;;  %v6177_v55 = vcombine.high %v20617_v15, %v20779_v32  ;;  %v22358_v19 = vcombine.low %v20617_v15, %v20779_v32  ;;  %v22361_v48 = vld [vmem:[#allocation24_spill] sm:$0xff]  ;;  %v22374_v32 = vld [vmem:[#allocation63_spill] sm:$0xff] }
 0x730   : > { %v20933_v34 = vrot.slane %v5456_v38, %v20120_v43  ;;  %v5475_v59 = vcombine.high %v20819_v54, %v20897_v24  ;;  %v6001_v46 = vcombine.high %v5944_v10, %v5960_v26  ;;  %v6016_v20 = vcombine.low %v5951_v42, %v5967_v9  ;;  %v22375_v50 = vld [vmem:[#allocation44_spill] sm:$0xff] }
 0x731   : > { %22357 = vst [vmem:[#allocation49_spill] sm:$0xff] %v20914_v16  ;;  %v6184_v49 = vrot.slane %v22358_v19, %v19475_v11  ;;  %v6017_v61 = vcombine.high %v5951_v42, %v5967_v9  ;;  %v6216_v8 = vrot.slane %v6208_v17, %v19475_v11  ;;  %v20948_v10 = vrot.slane %v5457_v31, %v20120_v43  ;;  %v22371_v17 = vld [vmem:[#allocation51_spill] sm:$0xff]  ;;  %v22376_v3 = vld [vmem:[#allocation84_spill] sm:$0xff] }
 0x732   : > { %22359 = vst [vmem:[#allocation40_spill] sm:$0xff] %v20933_v34  ;;  %5524 = vrot.lane.b32.xlu1 %v5475_v59, %s15133_s20  ;;  %v20951_v26 = vrot.slane %v6000_v36, %v20120_v43  ;;  %v6232_v42 = vrot.slane %v6224_v37, %v19475_v11  ;;  %v5477_v15 = vcombine.high %v20822_v1, %v20933_v34  ;;  %v22377_v31 = vld [vmem:[#allocation83_spill] sm:$0xff]  ;;  %v22403_v1 = vld [vmem:[#allocation73_spill] sm:$0xff] }
 0x733   : > { %22368 = vst [vmem:[#allocation32_spill] sm:$0xff] %v20948_v10  ;;  %v20965_v36 = vrot.slane %v6001_v46, %v20120_v43  ;;  %v20968_v37 = vrot.slane %v6016_v20, %v20120_v43  ;;  %v6209_v59 = vcombine.high %v20878_v23, %v20888_v45  ;;  %v20975_v38 = vrot.slane %v6017_v61, %v20120_v43  ;;  %v22382_v46 = vld [vmem:[#allocation77_spill] sm:$0xff] }
 0x734   : > { %22369 = vst [vmem:[#allocation41_spill] sm:$0xff] %v20951_v26  ;;  %v6272_v40 = vcombine.low %v6216_v8, %v6232_v42  ;;  %v6240_v20 = vcombine.low %v6184_v49, %v20800_v28  ;;  %v6225_v23 = vcombine.high %v20905_v21, %v20884_v33  ;;  %v6273_v41 = vcombine.high %v6216_v8, %v6232_v42 }
 0x735   : > { %22378 = vst [vmem:[#allocation74_spill] sm:$0xff] %v20965_v36  ;;  %22379 = vst [vmem:[#allocation59_spill] sm:$0xff] %v20968_v37  ;;  %v6223_v33 = vrot.slane %v6209_v59, %v19475_v11  ;;  %v11370_v21 = vcombine.high %v22382_v46, %v22382_v46  ;;  %v6191_v61 = vrot.slane %v6177_v55, %v19475_v11  ;;  %v21029_v55 = vpop.permute.xlu1 %9626 }
 0x736   : > { %22380 = vst [vmem:[#allocation69_spill] sm:$0xff] %v20975_v38  ;;  %5532 = vrot.lane.b32.xlu1 %v5477_v15, %s15133_s20  ;;  %v5479_v15 = vcombine.high %v20914_v16, %v20948_v10  ;;  %v21005_v19 = vrot.slane %v6272_v40, %v20120_v43  ;;  %v6241_v10 = vcombine.high %v6184_v49, %v20800_v28  ;;  %v22394_v16 = vld [vmem:[#allocation39_spill] sm:$0xff] }
 0x737   : > { %v21017_v8 = vrot.slane %v6240_v20, %v20120_v43  ;;  %v6239_v40 = vrot.slane %v6225_v23, %v19475_v11  ;;  %v6033_v42 = vcombine.high %v20720_v47, %v20951_v26  ;;  %v21027_v9 = vrot.slane %v6273_v41, %v20120_v43  ;;  %v22393_v47 = vld [vmem:[#allocation46_spill] sm:$0xff] }
 0x738   : > { %22381 = vst [vmem:[#allocation12_spill] sm:$0xff] %v21005_v19  ;;  %v11384_v49 = vrot.slane %v11370_v21, %v18124_v2  ;;  %v21036_v20 = vrot.slane %v6241_v10, %v20120_v43 }
 0x739   : > { %22383 = vst [vmem:[#allocation11_spill] sm:$0xff] %v21017_v8  ;;  %22385 = vst [vmem:[#allocation48_spill] sm:$0xff] %v21027_v9  ;;  %v6288_v45 = vcombine.low %v6223_v33, %v6239_v40  ;;  %v6289_v41 = vcombine.high %v6223_v33, %v6239_v40 }
 0x73a   : > { %5540 = vrot.lane.b32.xlu1 %v5479_v15, %s15133_s20  ;;  %v22384_v15 = vcombine.high %v20575_v5, %v20687_v25  ;;  %22386 = vst [vmem:[#allocation93_spill] sm:$0xff] %v21036_v20  ;;  %v21040_v5 = vpop.permute.xlu0 %9635  ;;  %v11377_v25 = vrot.slane %v22382_v46, %v18124_v2  ;;  %v11386_v21 = vcombine.high %v11384_v49, %v11384_v49 }
 0x73b   : > { %v6037_v46 = vcombine.high %v20788_v12, %v20968_v37  ;;  %v11400_v10 = vrot.slane %v11384_v49, %v18124_v2 }
 0x73c   : > { %v6207_v59 = vrot.slane %v22384_v15, %v19475_v11  ;;  %v6035_v11 = vcombine.high %v20729_v7, %v20965_v36  ;;  %v21053_v36 = vpop.permute.xlu1 %13066  ;;  %v11385_v33 = vcombine.high %v11377_v25, %v11377_v25  ;;  %v11393_v49 = vrot.slane %v11377_v25, %v18124_v2  ;;  %v22390_v7 = vld [vmem:[#allocation67_spill] sm:$0xff] }
 0x73d   : > { %v9650_v26 = vrot.slane %v22390_v7, %v20456_v39  ;;  %v6307_v7 = vcombine.high %v21036_v20, %v21027_v9  ;;  %v22399_v9 = vld [vmem:[#allocation34_spill] sm:$0xff] }
 0x73e   : > { %6316 = vrot.lane.b32.xlu1 %v6033_v42, %s15133_s20  ;;  %v6256_v23 = vcombine.low %v6191_v61, %v6207_v59  ;;  %v21045_v42 = vrot.slane %v6288_v45, %v20120_v43  ;;  %v6257_v15 = vcombine.high %v6191_v61, %v6207_v59  ;;  %v21058_v45 = vrot.slane %v6289_v41, %v20120_v43 }
 0x73f   : > { %v6039_v59 = vcombine.high %v20791_v62, %v20975_v38  ;;  %v11407_v41 = vrot.slane %v11385_v33, %v18124_v2  ;;  %v6305_v38 = vcombine.high %v21017_v8, %v21005_v19 }
 0x740   : > { %v21051_v28 = vrot.slane %v6256_v23, %v20120_v43  ;;  %22387 = vst [vmem:[#allocation100_spill] sm:$0xff] %v21058_v45  ;;  %v21067_v61 = vrot.slane %v6257_v15, %v20120_v43  ;;  %v11414_v23 = vrot.slane %v11386_v21, %v18124_v2  ;;  %v22389_v43 = vld [vmem:[#allocation89_spill] sm:$0xff] }
 0x741   : > { %v12938_v21 = vcombine.low %v11393_v49, %v11407_v41  ;;  %v13708_v25 = vcombine.high %v11393_v49, %v11407_v41  ;;  %v22396_v49 = vld [vmem:[#allocation5_spill] sm:$0xff] }
 0x742   : > { %6324 = vrot.lane.b32.xlu1 %v6035_v11, %s15133_s20  ;;  %v21063_v11 = vpop.permute.xlu0 %9629  ;;  %v12940_v62 = vcombine.low %v11400_v10, %v11414_v23  ;;  %v13709_v12 = vcombine.high %v11400_v10, %v11414_v23 }
 0x743   : > { %v21074_v37 = vpop.permute.xlu1 %9620 }
 0x744   : > { %v12969_v23 = vrot.slane %v13709_v12, %v18124_v2 }
 0x746   : > { %6332 = vrot.lane.b32.xlu1 %v6037_v46, %s15133_s20  ;;  %v22388_v46 = vld [vmem:[#allocation90_spill] sm:$0xff]  ;;  %v5483_v33 = vpop.permute.xlu0 %5482 }
 0x747   : > { %v5064_v15 = vcombine.low %v22389_v43, %v22388_v46  ;;  %v22391_v46 = vld [vmem:[#allocation91_spill] sm:$0xff] }
 0x748   : > { %v13070_v19 = vpop.permute.xlu1 %13069 }
 0x749   : > { %v5544_v40 = vsel %vm1326_vm3, %v5064_v15, %v5483_v33  ;;  %v9645_v15 = vrot.slane %v22394_v16, %v22393_v47  ;;  %v22395_v33 = vld [vmem:[#allocation76_spill] sm:$0xff]  ;;  %v6309_v47 = vcombine.high %v21051_v28, %v21045_v42 }
 0x74a   : > { %6340 = vrot.lane.b32.xlu1 %v6039_v59, %s15133_s20  ;;  %5560 = vst [vmem:[%s21081_s18] sm:$0xff] %v5544_v40  ;;  %v22392_v59 = vld [vmem:[#allocation92_spill] sm:$0xff]  ;;  %v9702_v34 = vadd.s32 4294967224, %v22395_v33  ;;  %v5491_v8 = vpop.permute.xlu0 %5490  ;;  %v12962_v40 = vrot.slane %v12940_v62, %v18124_v2  ;;  %v9709_v41 = vadd.s32 4294967216, %v22395_v33  ;;  %v9716_v16 = vadd.s32 4294967208, %v22395_v33  ;;  %v22398_v62 = vld [vmem:[#allocation82_spill] sm:$0xff] }
 0x74b   : > { %v5066_v43 = vcombine.low %v22392_v59, %v22391_v46  ;;  %v22397_v46 = vld [vmem:[#allocation21_spill] sm:$0xff]  ;;  %v9657_v12 = vrot.slane %v22399_v9, %v22398_v62 }
 0x74c   : > { %v5068_v59 = vcombine.low %v22397_v46, %v22396_v49  ;;  %v12971_v39 = vcombine.low %v12962_v40, %v12969_v23  ;;  %v22401_v49 = vld [vmem:[#allocation9_spill] sm:$0xff]  ;;  %v22406_v40 = vld [vmem:[#allocation31_spill] sm:$0xff] }
 0x74d   : > { %v5546_v10 = vsel %vm1326_vm3, %v5066_v43, %v5491_v8  ;;  %v12948_v8 = vrot.slane %v12938_v21, %v18124_v2  ;;  %v12955_v43 = vrot.slane %v13708_v25, %v18124_v2  ;;  %v22402_v46 = vld [vmem:[#allocation61_spill] sm:$0xff]  ;;  %v22404_v25 = vld [vmem:[#allocation14_spill] sm:$0xff] }
 0x74e   : > { %6348 = vrot.lane.b32.xlu1 %v6305_v38, %s15133_s20  ;;  %v9652_v38 = vsel %vm9651_vm4, %v9650_v26, %v9645_v15  ;;  %5561 = vst [vmem:[%s21081_s18 + $0x8] sm:$0xff] %v5546_v10  ;;  %v5499_v20 = vpop.permute.xlu0 %5498  ;;  %v22400_v26 = vld [vmem:[#allocation60_spill] sm:$0xff]  ;;  %v9671_v24 = vrot.slane %v22404_v25, %v22403_v1 }
 0x74f   : > { %v21118_v15 = vsub.s32 %v9702_v34, %v22400_v26  ;;  %v5548_v10 = vsel %vm1326_vm3, %v5068_v59, %v5499_v20  ;;  %v9659_v21 = vsel %vm9658_vm5, %v9657_v12, %v9652_v38  ;;  %v21129_v9 = vsub.s32 %v9709_v41, %v22400_v26  ;;  %v22405_v59 = vld [vmem:[#allocation79_spill] sm:$0xff] }
 0x750   : > { %v13064_v62 = vpop.permute.xlu1 %13063  ;;  %5562 = vst [vmem:[%s21081_s18 + $0x10] sm:$0xff] %v5548_v10  ;;  %v21133_v34 = vsub.s32 %v9716_v16, %v22400_v26  ;;  %v5070_v23 = vcombine.low %v22406_v40, %v22405_v59  ;;  %v12970_v38 = vcombine.low %v12948_v8, %v12955_v43  ;;  %v6311_v10 = vcombine.high %v21067_v61, %v21058_v45  ;;  %v22407_v43 = vld [vmem:[#allocation78_spill] sm:$0xff] }
 0x751   : > { %v13209_v20 = vrot.slane %v13064_v62, %v21118_v15  ;;  %v13214_v41 = vrot.slane %v21053_v36, %v21129_v9  ;;  %v9678_v25 = vrot.slane %v22407_v43, %v22342_v51  ;;  %v22408_v59 = vld [vmem:[#allocation94_spill] sm:$0xff] }
 0x752   : > { %6356 = vrot.lane.b32.xlu1 %v6307_v7, %s15133_s20  ;;  %v9664_v7 = vrot.slane %v22402_v46, %v22401_v49  ;;  %v5507_v12 = vpop.permute.xlu0 %5506  ;;  %v13219_v16 = vrot.slane %v13070_v19, %v21133_v34  ;;  %v22409_v40 = vld [vmem:[#allocation66_spill] sm:$0xff] }
 0x753   : > { %v13210_v62 = vsel %vm9707_vm12, %v13209_v20, %v20924_v58  ;;  %v5550_v46 = vsel %vm1326_vm3, %v5070_v23, %v5507_v12  ;;  %v5336_v19 = vcombine.low %v22409_v40, %v22408_v59  ;;  %v22415_v59 = vld [vmem:[#allocation99_spill] sm:$0xff]  ;;  %v22416_v40 = vld [vmem:[#allocation98_spill] sm:$0xff] }
 0x754   : > { %v9666_v8 = vsel %vm9665_vm6, %v9664_v7, %v9659_v21  ;;  %v13215_v36 = vsel %vm9714_vm13, %v13214_v41, %v13210_v62  ;;  %5563 = vst [vmem:[%s21081_s18 + $0x18] sm:$0xff] %v5550_v46  ;;  %v22410_v41 = vld [vmem:[#allocation64_spill] sm:$0xff] }
 0x755   : > { %v21156_v45 = vsel %vm9721_vm14, %v13219_v16, %v13215_v36  ;;  %v9673_v7 = vsel %vm9672_vm7, %v9671_v24, %v9666_v8  ;;  %v9685_v12 = vrot.slane %v22410_v41, %v22346_v0  ;;  %v22411_v62 = vld [vmem:[#allocation96_spill] sm:$0xff]  ;;  %v22412_v16 = vld [vmem:[#allocation95_spill] sm:$0xff]  ;;  %v9723_v36 = vadd.s32 4294967200, %v22395_v33 }
 0x756   : > { %6364 = vrot.lane.b32.xlu1 %v6309_v47, %s15133_s20  ;;  %v12985_v47 = vrot.slane %v12971_v39, %v18124_v2  ;;  %v12978_v39 = vrot.slane %v12970_v38, %v18124_v2  ;;  %v5515_v58 = vpop.permute.xlu0 %5514  ;;  %v9680_v23 = vsel %vm9679_vm8, %v9678_v25, %v9673_v7  ;;  %v5338_v46 = vcombine.low %v22412_v16, %v22411_v62  ;;  %v22413_v24 = vld [vmem:[#allocation52_spill] sm:$0xff]  ;;  %v22419_v16 = vld [vmem:[#allocation7_spill] sm:$0xff] }
 0x757   : > { %v5552_v21 = vsel %vm1326_vm3, %v5336_v19, %v5515_v58  ;;  %v9692_v8 = vrot.slane %v22413_v24, %v22354_v6  ;;  %v5340_v19 = vcombine.low %v22416_v40, %v22415_v59  ;;  %v22417_v58 = vld [vmem:[#allocation30_spill] sm:$0xff]  ;;  %v9730_v62 = vadd.s32 4294967192, %v22395_v33  ;;  %v22421_v59 = vld [vmem:[#allocation75_spill] sm:$0xff] }
 0x758   : > { %v12986_v20 = vcombine.low %v12978_v39, %v12985_v47  ;;  %5564 = vst [vmem:[%s21081_s18 + $0x20] sm:$0xff] %v5552_v21  ;;  %v22414_v47 = vld [vmem:[#allocation15_spill] sm:$0xff]  ;;  %v9706_v7 = vrot.slane %v22417_v58, %v21118_v15  ;;  %v9713_v40 = vrot.slane %v22421_v59, %v21129_v9 }
 0x759   : > { %v9699_v25 = vrot.slane %v22414_v47, %v22352_v53 }
 0x75a   : > { %6372 = vrot.lane.b32.xlu1 %v6311_v10, %s15133_s20  ;;  %v5523_v43 = vpop.permute.xlu0 %5522  ;;  %v9687_v10 = vsel %vm9686_vm9, %v9685_v12, %v9680_v23 }
 0x75b   : > { %v5554_v38 = vsel %vm1326_vm3, %v5338_v46, %v5523_v43  ;;  %v9694_v39 = vsel %vm9693_vm10, %v9692_v8, %v9687_v10  ;;  %v9639_v41 = vpop.permute.xlu1 %9638  ;;  %v9788_v46 = vrot.slane %v22419_v16, %v22354_v6  ;;  %v9798_v43 = vrot.slane %v21074_v37, %v21118_v15  ;;  %v22420_v8 = vld [vmem:[#allocation42_spill] sm:$0xff]  ;;  %v22424_v16 = vld [vmem:[#allocation85_spill] sm:$0xff] }
 0x75c   : > { %5565 = vst [vmem:[%s21081_s18 + $0x28] sm:$0xff] %v5554_v38  ;;  %v9701_v10 = vsel %vm9700_vm11, %v9699_v25, %v9694_v39  ;;  %v21192_v38 = vsub.s32 %v9723_v36, %v22400_v26  ;;  %v21202_v37 = vsub.s32 %v9730_v62, %v22400_v26  ;;  %v22422_v39 = vld [vmem:[#allocation57_spill] sm:$0xff]  ;;  %v22425_v62 = vld [vmem:[#allocation88_spill] sm:$0xff] }
 0x75d   : > { %v9708_v24 = vsel %vm9707_vm12, %v9706_v7, %v9701_v10  ;;  %v9789_v47 = vsel %vm9693_vm10, %v9788_v46, %v22420_v8  ;;  %v9720_v46 = vrot.slane %v22424_v16, %v21133_v34 }
 0x75e   : > { %13081 = vperm.xlu1 %14852, %v12986_v20   ;;  %v5531_v21 = vpop.permute.xlu0 %5530  ;;  %v22418_v20 = vld [vmem:[#allocation33_spill] sm:$0xff]  ;;  %v9715_v36 = vsel %vm9714_vm13, %v9713_v40, %v9708_v24  ;;  %v9727_v7 = vrot.slane %v22422_v39, %v21192_v38  ;;  %v9734_v10 = vrot.slane %v22425_v62, %v21202_v37  ;;  %v9813_v39 = vrot.slane %v21063_v11, %v21192_v38  ;;  %v22430_v11 = vld [vmem:[#allocation58_spill] sm:$0xff] }
 0x75f   : > { %v9793_v23 = vrot.slane %v22418_v20, %v22352_v53  ;;  %v5556_v12 = vsel %vm1326_vm3, %v5340_v19, %v5531_v21  ;;  %v9737_v19 = vadd.s32 4294967184, %v22395_v33  ;;  %v22423_v21 = vld [vmem:[#allocation25_spill] sm:$0xff]  ;;  %v9722_v40 = vsel %vm9721_vm14, %v9720_v46, %v9715_v36 }
 0x760   : > { %5566 = vst [vmem:[%s21081_s18 + $0x30] sm:$0xff] %v5556_v12  ;;  %v9803_v20 = vrot.slane %v22423_v21, %v21129_v9  ;;  %v13079_v12 = vpop.permute.xlu1 %13078  ;;  %v22428_v21 = vld [vmem:[#allocation65_spill] sm:$0xff] }
 0x761   : > { %v9794_v58 = vsel %vm9700_vm11, %v9793_v23, %v9789_v47  ;;  %v9744_v23 = vadd.s32 4294967176, %v22395_v33  ;;  %v21216_v24 = vsub.s32 %v9737_v19, %v22400_v26  ;;  %v22426_v47 = vcombine.low %v22361_v48, %v22360_v56 }
 0x762   : > { %v9799_v25 = vsel %vm9707_vm12, %v9798_v43, %v9794_v58  ;;  %v9808_v58 = vrot.slane %v21029_v55, %v21133_v34  ;;  %v9729_v33 = vsel %vm9728_vm15, %v9727_v7, %v9722_v40  ;;  %v22427_v55 = vld [vmem:[#allocation86_spill] sm:$0xff]  ;;  %v22431_v40 = vld [vmem:[#allocation71_spill] sm:$0xff] }
 0x763   : > { %v9804_v8 = vsel %vm9714_vm13, %v9803_v20, %v9799_v25  ;;  %v21236_v56 = vsub.s32 %v9744_v23, %v22400_v26  ;;  %v9736_v48 = vsel %vm9735_vm0, %v9734_v10, %v9729_v33  ;;  %v9741_v36 = vrot.slane %v22427_v55, %v21216_v24 }
 0x764   : > { %v9809_v19 = vsel %vm9721_vm14, %v9808_v58, %v9804_v8  ;;  %v22429_v20 = vcombine.low %v22363_v44, %v22428_v21  ;;  %v9823_v23 = vrot.slane %v21040_v5, %v21216_v24  ;;  %v22432_v58 = vld [vmem:[#allocation37_spill] sm:$0xff] }
 0x765   : > { %v9743_v46 = vsel %vm9742_vm1, %v9741_v36, %v9736_v48  ;;  %v9814_v62 = vsel %vm9728_vm15, %v9813_v39, %v9809_v19  ;;  %v9748_v10 = vrot.slane %v22430_v11, %v21236_v56  ;;  %v9828_v44 = vrot.slane %v9639_v41, %v21236_v56  ;;  %v22434_v39 = vld [vmem:[#allocation13_spill] sm:$0xff] }
 0x766   : > { %v22433_v33 = vcombine.low %v22431_v40, %v22432_v58  ;;  %v22442_v58 = vld [vmem:[#allocation70_spill] sm:$0xff] }
 0x767   : > { %v9750_v19 = vsel %vm21788_vm2, %v9748_v10, %v9743_v46  ;;  %v22440_v10 = vld [vmem:[#allocation22_spill] sm:$0xff] }
 0x768   : > { %v5539_v43 = vpop.permute.xlu0 %5538 }
 0x769   : > { %v5558_v59 = vsel %vm1326_vm3, %v22426_v47, %v5539_v43 }
 0x76a   : > { %5567 = vst [vmem:[%s21081_s18 + $0x38] sm:$0xff] %v5558_v59 }
 0x76b   : > { %v9633_v7 = vpop.permute.xlu1 %9632 }
 0x76c   : > { %v9818_v26 = vrot.slane %v9633_v7, %v21202_v37  ;;  %v22435_v7 = vld [vmem:[#allocation27_spill] sm:$0xff] }
 0x76d   : > { %v6315_v25 = vpop.permute.xlu0 %6314  ;;  %v22436_v21 = vcombine.low %v22434_v39, %v22435_v7 }
 0x76e   : > { %v6376_v16 = vsel %vm1326_vm3, %v22429_v20, %v6315_v25  ;;  %v9819_v43 = vsel %vm9735_vm0, %v9818_v26, %v9814_v62  ;;  %v22437_v26 = vlaneseq }
 0x76f   : > { %6392 = vst [vmem:[%s21233_s21] sm:$0xff] %v6376_v16  ;;  %v9824_v47 = vsel %vm9742_vm1, %v9823_v23, %v9819_v43 }
 0x770   : > { %v13073_v59 = vpop.permute.xlu1 %13072  ;;  %v9829_v41 = vsel %vm21788_vm2, %v9828_v44, %v9824_v47  ;;  %vm21282_vm2 = vcmp.lt.s32.totalorder %v22437_v26, 256  ;;  %v22441_v44 = vcombine.low %v22371_v17, %v22440_v10  ;;  %v22458_v10 = vld [vmem:[#allocation32_spill] sm:$0xff] }
 0x771   : > { %v13224_v48 = vrot.slane %v13073_v59, %v21192_v38  ;;  %v9830_v25 = vcombine.low %v9750_v19, %v9829_v41  ;;  %v22445_v41 = vcombine.low %v22377_v31, %v22376_v3  ;;  %v22448_v31 = vcombine.low %v20590_v52, %v20765_v18 }
 0x772   : > { %v6323_v8 = vpop.permute.xlu0 %6322  ;;  %v22451_v18 = vcombine.low %v20816_v30, %v20869_v60  ;;  %v22457_v60 = vld [vmem:[#allocation49_spill] sm:$0xff] }
 0x773   : > { %v6378_v5 = vsel %vm1326_vm3, %v22433_v33, %v6323_v8  ;;  %v13225_v55 = vsel %vm9728_vm15, %v13224_v48, %v21156_v45  ;;  %v9837_v16 = vrot.slane %v9830_v25, %v18124_v2  ;;  %v13234_v8 = vrot.slane %v13079_v12, %v21216_v24 }
 0x774   : > { %6393 = vst [vmem:[%s21233_s21 + $0x8] sm:$0xff] %v6378_v5  ;;  %v22443_v33 = vcombine.low %v22373_v4, %v22442_v58  ;;  %v22444_v48 = vcombine.low %v22375_v50, %v22374_v32  ;;  %v22447_v50 = vcombine.low %v20587_v22, %v20736_v57  ;;  %v22450_v57 = vcombine.low %v22348_v29, %v20842_v35  ;;  %v22454_v29 = vld [vmem:[#allocation56_spill] sm:$0xff] }
 0x775   : > { %v9844_v45 = vrot.slane %v9837_v16, %v18124_v2 }
 0x776   : > { %v6331_v36 = vpop.permute.xlu0 %6330 }
 0x777   : > { %v6380_v20 = vsel %vm1326_vm3, %v22436_v21, %v6331_v36  ;;  %v13076_v23 = vpop.permute.xlu1 %13075  ;;  %9850 = vst.msk [vmem:[%s444_s8] sm:$0x3] %vm21282_vm2, %v9844_v45 }
 0x778   : > { %6394 = vst [vmem:[%s21233_s21 + $0x10] sm:$0xff] %v6380_v20  ;;  %v13229_v11 = vrot.slane %v13076_v23, %v21202_v37  ;;  %v22455_v23 = vld [vmem:[#allocation40_spill] sm:$0xff] }
 0x77a   : > { %v6339_v62 = vpop.permute.xlu0 %6338  ;;  %v13230_v47 = vsel %vm9735_vm0, %v13229_v11, %v13225_v55  ;;  %v22446_v55 = vcombine.low %v20714_v27, %v20697_v63  ;;  %v22449_v27 = vcombine.low %v22341_v13, %v20810_v14  ;;  %v22452_v13 = vld [vmem:[#allocation28_spill] sm:$0xff] }
 0x77b   : > { %v6382_v43 = vsel %vm1326_vm3, %v22441_v44, %v6339_v62  ;;  %v21298_v40 = vsel %vm9742_vm1, %v13234_v8, %v13230_v47  ;;  %v22453_v26 = vcombine.low %v20819_v54, %v22452_v13  ;;  %v22456_v62 = vcombine.low %v22454_v29, %v22455_v23  ;;  %v22460_v8 = vld [vmem:[#allocation26_spill] sm:$0xff]  ;;  %v22461_v47 = vld [vmem:[#allocation41_spill] sm:$0xff]  ;;  %v22479_v13 = vld [vmem:[#allocation12_spill] sm:$0xff] }
 0x77c   : > { %6395 = vst [vmem:[%s21233_s21 + $0x18] sm:$0xff] %v6382_v43  ;;  %v22459_v44 = vcombine.low %v22457_v60, %v22458_v10  ;;  %v22481_v29 = vld [vmem:[#allocation68_spill] sm:$0xff]  ;;  %v22483_v60 = vld [vmem:[#allocation93_spill] sm:$0xff] }
 0x77d   : > { %v13100_v23 = vrot.slane %v22481_v29, %v22401_v49  ;;  %v22484_v10 = vld [vmem:[#allocation48_spill] sm:$0xff]  ;;  %v22487_v49 = vcombine.low %v21051_v28, %v21045_v42  ;;  %v22492_v28 = vld [vmem:[#allocation50_spill] sm:$0xff] }
 0x77e   : > { %v13125_v42 = vrot.slane %v22492_v28, %v22352_v53 }
 0x77f   : > { %v6347_v59 = vpop.permute.xlu0 %6346 }
 0x780   : > { %v6384_v17 = vsel %vm1326_vm3, %v22443_v33, %v6347_v59  ;;  %v22462_v59 = vcombine.low %v22460_v8, %v22461_v47  ;;  %v22486_v8 = vld [vmem:[#allocation81_spill] sm:$0xff] }
 0x781   : > { %6396 = vst [vmem:[%s21233_s21 + $0x20] sm:$0xff] %v6384_v17  ;;  %v22463_v17 = vld [vmem:[#allocation6_spill] sm:$0xff]  ;;  %v13110_v47 = vrot.slane %v22486_v8, %v22342_v51  ;;  %v22489_v51 = vld [vmem:[#allocation100_spill] sm:$0xff] }
 0x783   : > { %v6355_v5 = vpop.permute.xlu0 %6354 }
 0x784   : > { %v6386_v12 = vsel %vm1326_vm3, %v22444_v48, %v6355_v5  ;;  %v22464_v5 = vld [vmem:[#allocation74_spill] sm:$0xff] }
 0x785   : > { %6397 = vst [vmem:[%s21233_s21 + $0x28] sm:$0xff] %v6386_v12  ;;  %v22465_v48 = vcombine.low %v22463_v17, %v22464_v5  ;;  %v22488_v17 = vld [vmem:[#allocation19_spill] sm:$0xff] }
 0x786   : > { %v13115_v5 = vrot.slane %v22488_v17, %v22346_v0 }
 0x787   : > { %v6363_v19 = vpop.permute.xlu0 %6362 }
 0x788   : > { %v6388_v25 = vsel %vm1326_vm3, %v22445_v41, %v6363_v19  ;;  %v22466_v41 = vld [vmem:[#allocation62_spill] sm:$0xff] }
 0x789   : > { %6398 = vst [vmem:[%s21233_s21 + $0x30] sm:$0xff] %v6388_v25  ;;  %v22467_v25 = vld [vmem:[#allocation59_spill] sm:$0xff] }
 0x78c   : > { %v6371_v4 = vpop.permute.xlu0 %6370 }
 0x78d   : > { %v6390_v36 = vsel %vm1326_vm3, %v22446_v55, %v6371_v4  ;;  %v22468_v4 = vcombine.low %v22466_v41, %v22467_v25  ;;  %v22491_v25 = vld [vmem:[#allocation38_spill] sm:$0xff] }
 0x78e   : > { %6399 = vst [vmem:[%s21233_s21 + $0x38] sm:$0xff] %v6390_v36  ;;  %v22469_v36 = vld [vmem:[#allocation45_spill] sm:$0xff] }
 0x78f   : > { %v5485_v32 = vpop.permute.xlu1 %5484 }
 0x790   : > { %v5545_v39 = vsel %vm1326_vm3, %v22447_v50, %v5485_v32  ;;  %v22470_v32 = vld [vmem:[#allocation20_spill] sm:$0xff] }
 0x791   : > { %5568 = vst [vmem:[%s21081_s18 + $0x40] sm:$0xff] %v5545_v39  ;;  %v13090_v50 = vrot.slane %v22470_v32, %v22469_v36  ;;  %v22493_v36 = vld [vmem:[#allocation87_spill] sm:$0xff] }
 0x792   : > { %v13130_v0 = vrot.slane %v22493_v36, %v21118_v15 }
 0x793   : > { %v5493_v3 = vpop.permute.xlu1 %5492 }
 0x794   : > { %v5547_v7 = vsel %vm1326_vm3, %v22448_v31, %v5493_v3  ;;  %v22471_v3 = vld [vmem:[#allocation10_spill] sm:$0xff]  ;;  %v22472_v31 = vld [vmem:[#allocation69_spill] sm:$0xff] }
 0x795   : > { %5569 = vst [vmem:[%s21081_s18 + $0x48] sm:$0xff] %v5547_v7  ;;  %v22473_v7 = vcombine.low %v22471_v3, %v22472_v31 }
 0x798   : > { %v5501_v63 = vpop.permute.xlu1 %5500 }
 0x799   : > { %v5549_v21 = vsel %vm1326_vm3, %v22449_v27, %v5501_v63  ;;  %v22474_v27 = vld [vmem:[#allocation46_spill] sm:$0xff] }
 0x79a   : > { %5570 = vst [vmem:[%s21081_s18 + $0x50] sm:$0xff] %v5549_v21  ;;  %v22475_v21 = vld [vmem:[#allocation4_spill] sm:$0xff] }
 0x79c   : > { %v5509_v22 = vpop.permute.xlu1 %5508 }
 0x79d   : > { %v5551_v20 = vsel %vm1326_vm3, %v22450_v57, %v5509_v22  ;;  %v13086_v22 = vrot.slane %v22475_v21, %v22474_v27  ;;  %v13034_v15 = vpop.permute.xlu0 %13033 }
 0x79e   : > { %5571 = vst [vmem:[%s21081_s18 + $0x58] sm:$0xff] %v5551_v20 }
 0x79f   : > { %v13091_v57 = vsel %vm9651_vm4, %v13090_v50, %v13086_v22 }
 0x7a0   : > { %v5517_v52 = vpop.permute.xlu1 %5516 }
 0x7a1   : > { %v5553_v16 = vsel %vm1326_vm3, %v22451_v18, %v5517_v52  ;;  %v22476_v52 = vld [vmem:[#allocation82_spill] sm:$0xff]  ;;  %v22477_v18 = vld [vmem:[#allocation53_spill] sm:$0xff] }
 0x7a2   : > { %5572 = vst [vmem:[%s21081_s18 + $0x60] sm:$0xff] %v5553_v16  ;;  %v13095_v16 = vrot.slane %v22477_v18, %v22476_v52 }
 0x7a4   : > { %v5525_v14 = vpop.permute.xlu1 %5524 }
 0x7a5   : > { %v5555_v45 = vsel %vm1326_vm3, %v22453_v26, %v5525_v14  ;;  %v22478_v14 = vld [vmem:[#allocation11_spill] sm:$0xff] }
 0x7a6   : > { %5573 = vst [vmem:[%s21081_s18 + $0x68] sm:$0xff] %v5555_v45  ;;  %v22480_v26 = vcombine.low %v22478_v14, %v22479_v13 }
 0x7a8   : > { %v5533_v35 = vpop.permute.xlu1 %5532 }
 0x7a9   : > { %v5557_v11 = vsel %vm1326_vm3, %v22456_v62, %v5533_v35  ;;  %v13096_v35 = vsel %vm9658_vm5, %v13095_v16, %v13091_v57 }
 0x7aa   : > { %5574 = vst [vmem:[%s21081_s18 + $0x70] sm:$0xff] %v5557_v11  ;;  %v22482_v11 = vld [vmem:[#allocation3_spill] sm:$0xff] }
 0x7ac   : > { %v5541_v30 = vpop.permute.xlu1 %5540 }
 0x7ad   : > { %v5559_v43 = vsel %vm1326_vm3, %v22459_v44, %v5541_v30  ;;  %v13105_v30 = vrot.slane %v22482_v11, %v22403_v1  ;;  %v22485_v44 = vcombine.low %v22483_v60, %v22484_v10 }
 0x7ae   : > { %5575 = vst [vmem:[%s21081_s18 + $0x78] sm:$0xff] %v5559_v43 }
 0x7b0   : > { %v6317_v54 = vpop.permute.xlu1 %6316 }
 0x7b1   : > { %v6377_v58 = vsel %vm1326_vm3, %v22462_v59, %v6317_v54  ;;  %v13101_v54 = vsel %vm9665_vm6, %v13100_v23, %v13096_v35 }
 0x7b2   : > { %6400 = vst [vmem:[%s21233_s21 + $0x40] sm:$0xff] %v6377_v58  ;;  %v13106_v58 = vsel %vm9672_vm7, %v13105_v30, %v13101_v54 }
 0x7b3   : > { %v13111_v1 = vsel %vm9679_vm8, %v13110_v47, %v13106_v58 }
 0x7b4   : > { %v6325_v33 = vpop.permute.xlu1 %6324 }
 0x7b5   : > { %v6379_v12 = vsel %vm1326_vm3, %v22465_v48, %v6325_v33 }
 0x7b6   : > { %6401 = vst [vmem:[%s21233_s21 + $0x48] sm:$0xff] %v6379_v12  ;;  %v13116_v12 = vsel %vm9686_vm9, %v13115_v5, %v13111_v1 }
 0x7b8   : > { %v6333_v19 = vpop.permute.xlu1 %6332 }
 0x7b9   : > { %v6381_v55 = vsel %vm1326_vm3, %v22468_v4, %v6333_v19  ;;  %v22490_v19 = vcombine.low %v21067_v61, %v22489_v51  ;;  %v13120_v4 = vrot.slane %v22491_v25, %v22354_v6  ;;  %v22494_v61 = vld [vmem:[#allocation80_spill] sm:$0xff]  ;;  %v22495_v6 = vld [vmem:[#allocation55_spill] sm:$0xff] }
 0x7ba   : > { %6402 = vst [vmem:[%s21233_s21 + $0x50] sm:$0xff] %v6381_v55  ;;  %v13145_v31 = vrot.slane %v22495_v6, %v21192_v38 }
 0x7bb   : > { %v13121_v55 = vsel %vm9693_vm10, %v13120_v4, %v13116_v12 }
 0x7bc   : > { %v6341_v39 = vpop.permute.xlu1 %6340  ;;  %v13126_v32 = vsel %vm9700_vm11, %v13125_v42, %v13121_v55 }
 0x7bd   : > { %v6383_v63 = vsel %vm1326_vm3, %v22473_v7, %v6341_v39  ;;  %v13131_v50 = vsel %vm9707_vm12, %v13130_v0, %v13126_v32  ;;  %v13135_v39 = vrot.slane %v22494_v61, %v21129_v9  ;;  %v22496_v7 = vld [vmem:[#allocation16_spill] sm:$0xff]  ;;  %v13160_v9 = vrot.slane %v13034_v15, %v21236_v56 }
 0x7be   : > { %6403 = vst [vmem:[%s21233_s21 + $0x58] sm:$0xff] %v6383_v63  ;;  %v13140_v53 = vrot.slane %v22496_v7, %v21133_v34  ;;  %v22497_v63 = vld [vmem:[#allocation17_spill] sm:$0xff] }
 0x7bf   : > { %v13136_v3 = vsel %vm9714_vm13, %v13135_v39, %v13131_v50  ;;  %v13150_v27 = vrot.slane %v22497_v63, %v21202_v37 }
 0x7c0   : > { %v6349_v20 = vpop.permute.xlu1 %6348  ;;  %v13141_v21 = vsel %vm9721_vm14, %v13140_v53, %v13136_v3 }
 0x7c1   : > { %v6385_v45 = vsel %vm1326_vm3, %v22480_v26, %v6349_v20  ;;  %v13146_v22 = vsel %vm9728_vm15, %v13145_v31, %v13141_v21  ;;  %v22498_v20 = vld [vmem:[#allocation29_spill] sm:$0xff] }
 0x7c2   : > { %6404 = vst [vmem:[%s21233_s21 + $0x60] sm:$0xff] %v6385_v45  ;;  %v13151_v57 = vsel %vm9735_vm0, %v13150_v27, %v13146_v22  ;;  %v13155_v52 = vrot.slane %v22498_v20, %v21216_v24 }
 0x7c4   : > { %v6357_v62 = vpop.permute.xlu1 %6356  ;;  %v13156_v34 = vsel %vm9742_vm1, %v13155_v52, %v13151_v57 }
 0x7c5   : > { %v6387_v43 = vsel %vm1326_vm3, %v22485_v44, %v6357_v62 }
 0x7c6   : > { %6405 = vst [vmem:[%s21233_s21 + $0x68] sm:$0xff] %v6387_v43 }
 0x7c8   : > { %v6365_v59 = vpop.permute.xlu1 %6364 }
 0x7c9   : > { %v6389_v33 = vsel %vm1326_vm3, %v22487_v49, %v6365_v59 }
 0x7ca   : > { %6406 = vst [vmem:[%s21233_s21 + $0x70] sm:$0xff] %v6389_v33 }
 0x7cc   : > { %v6373_v48 = vpop.permute.xlu1 %6372 }
 0x7cd   : > { %v6391_v41 = vsel %vm1326_vm3, %v22490_v19, %v6373_v48  ;;  %vm22499_vm3 = vcmask 1048512  }
 0x7ce   : > { %6407 = vst [vmem:[%s21233_s21 + $0x78] sm:$0xff] %v6391_v41  ;;  %v13161_v16 = vsel %vm22499_vm3, %v13160_v9, %v13156_v34  ;;  %vm22500_vm4 = vmmov %vm22499_vm3 }
 0x7dd   : > { %v13082_v38 = vpop.permute.xlu1 %13081 }
 0x7de   : > { %v13239_v18 = vrot.slane %v13082_v38, %v21236_v56 }
 0x7e0   : > { %v13240_v37 = vsel %vm22500_vm4, %v13239_v18, %v21298_v40 }
 0x7e1   : > { %v13241_v14 = vcombine.low %v13161_v16, %v13240_v37 }
 0x7e3   : > { %v13248_v13 = vrot.slane %v13241_v14, %v18124_v2 }
 0x7e5   : > { %v13255_v24 = vrot.slane %v13248_v13, %v18124_v2 }
 0x7e7   : > { %13257 = vst.msk [vmem:[%s448_s29] sm:$0x3] %vm21282_vm2, %v13255_v24 }
 0x7e8 PF: > { %s25_s23 = sadd.s32 1, %s15131_s23  }
 0x7e9   : > { %p22_p4 = scmp.ge.s32.totalorder %s25_s23, 4  }
 0x7eb   :  { %24 = sbr.rel (!%p22_p4) target bundleno = 3 (0x3), region = 122 }

</bundles_post_ra>
